<compile_context>
chip_gen: v5e
topology: v5e:2x2
jax: 0.10.0
libtpu: 0.0.40
codegen_flags: <defaults>
</compile_context>

<pallas_src>
import functools

import jax
import jax.numpy as jnp
from jax.experimental import pallas as pl
from jax.experimental.pallas import tpu as pltpu


# ----------------------------------------------------------------------------
# conv1 / conv2: fused im2col-GEMM + BN shift + activation
# ----------------------------------------------------------------------------
def _conv_gemm_kernel(x_ref, w_ref, s_ref, o_ref, *, act):
    y = jnp.dot(x_ref[...], w_ref[...], preferred_element_type=jnp.float32)
    y = y + s_ref[...]                       # BN shift (scale folded into w)
    if act == "relu":
        y = jnp.maximum(y, 0.0)
    else:                                    # leaky_relu, PyTorch slope 0.01
        y = jnp.maximum(y, 0.01 * y)
    o_ref[...] = y.astype(o_ref.dtype)


def conv_gemm(patches, w, shift, *, act, num_tiles):
    """y = act((patches @ w) + shift), row-tiled; bf16 in/out, f32 accumulate."""
    M, K = patches.shape
    N = w.shape[1]
    if num_tiles <= 1:
        tm = M
    else:
        tm = -(-M // num_tiles)
        tm = -(-tm // 16) * 16               # multiple of 16 (bf16 sublane pack)
    kernel = functools.partial(_conv_gemm_kernel, act=act)
    return pl.pallas_call(
        kernel,
        out_shape=jax.ShapeDtypeStruct((M, N), jnp.bfloat16),
        grid=(pl.cdiv(M, tm),),
        in_specs=[
            pl.BlockSpec((tm, K), lambda i: (i, 0)),   # row tile of patches
            pl.BlockSpec((K, N), lambda i: (0, 0)),    # full weight
            pl.BlockSpec((1, N), lambda i: (0, 0)),    # BN/bias shift
        ],
        out_specs=pl.BlockSpec((tm, N), lambda i: (i, 0)),
        compiler_params=pltpu.CompilerParams(
            dimension_semantics=("parallel",),
            vmem_limit_bytes=32 * 1024 * 1024),
        cost_estimate=pl.CostEstimate(
            flops=2 * M * K * N, transcendentals=0,
            bytes_accessed=2 * (M * K + K * N + M * N) + 4 * N),
    )(patches, w, shift)


# ----------------------------------------------------------------------------
# Fused tail: conv3 (im2col GEMM) -> conv4/conv5 (in-kernel taps) -> fc1..fc4
# One grid step per batch element ("parallel" -> one per TC on v7x).
# Spatial sizes are fixed by fc1 (128*1*18): conv3 out 5x22, conv4 out 3x20,
# conv5 out 1x18.
# ----------------------------------------------------------------------------
def _tail_kernel(p3_ref, w3_ref, s3_ref, w4_ref, s4_ref, w5_ref, s5_ref,
                 w1_ref, b1_ref, w2_ref, b2_ref, w3f_ref, b3f_ref,
                 w4f_ref, b4f_ref, o_ref):
    f32, bf16 = jnp.float32, jnp.bfloat16

    # conv3 (stride-2 conv as im2col GEMM) + BN + relu. Row r = h*22 + w.
    x3 = jnp.dot(p3_ref[0], w3_ref[...], preferred_element_type=f32) + s3_ref[...]
    x3 = jnp.maximum(x3, 0.0).astype(bf16)                       # (110, 64)

    # conv4 (stride-1 3x3) via 9 tap-accumulated matmuls + BN + leaky_relu.
    # Keep each output row separate to avoid sublane-repacking reshapes.
    y4 = []
    for ho in range(3):
        acc = jnp.zeros((20, 96), f32)
        for kh in range(3):
            row = (ho + kh) * 22
            for kw in range(3):
                tap = x3[row + kw:row + kw + 20, :]               # (20, 64)
                acc += jnp.dot(tap, w4_ref[kh * 3 + kw],
                               preferred_element_type=f32)
        acc += s4_ref[...]
        acc = jnp.maximum(acc, 0.01 * acc)
        y4.append(acc.astype(bf16))                               # (20, 96)

    # conv5 (stride-1 3x3): 3x20 -> 1x18, + BN + relu.
    acc = jnp.zeros((18, 128), f32)
    for kh in range(3):
        for kw in range(3):
            acc += jnp.dot(y4[kh][kw:kw + 18, :], w5_ref[kh * 3 + kw],
                           preferred_element_type=f32)
    y5 = jnp.maximum(acc + s5_ref[...], 0.0).astype(bf16)         # (18, 128) [w, c]

    # fc1 + relu. The PyTorch flatten (f = c*18 + w) is folded into per-w
    # weight taps w1_ref[w] of shape (128, 256).  Dropout = identity (eval).
    h = jnp.zeros((1, 256), f32)
    for w in range(18):
        h += jnp.dot(y5[w:w + 1, :], w1_ref[w], preferred_element_type=f32)
    h = jnp.maximum(h + b1_ref[...], 0.0).astype(bf16)            # (1, 256)

    # fc2 / fc3 / fc4 (fc4 output padded to 128 lanes; column 0 is real).
    h = jnp.dot(h, w2_ref[...], preferred_element_type=f32) + b2_ref[...]
    h = jnp.maximum(h, 0.0).astype(bf16)                          # (1, 128)
    h = jnp.dot(h, w3f_ref[...], preferred_element_type=f32) + b3f_ref[...]
    h = jnp.maximum(h, 0.0).astype(bf16)                          # (1, 64)
    out = jnp.dot(h, w4f_ref[...], preferred_element_type=f32) + b4f_ref[...]
    o_ref[0, :, :] = out.astype(o_ref.dtype)                      # (1, 128)


def fused_tail(p3, t):
    B, M3, K3 = p3.shape
    assert (M3, K3) == (110, 432), (M3, K3)

    def rep(a):
        nd = a.ndim
        return pl.BlockSpec(a.shape, lambda b, _nd=nd: (0,) * _nd)

    args = (p3, t["w3"], t["s3"], t["w4"], t["s4"], t["w5"], t["s5"],
            t["w1"], t["b1"], t["w2"], t["b2"], t["w3f"], t["b3"],
            t["w4f"], t["b4"])
    in_specs = [pl.BlockSpec((1, M3, K3), lambda b: (b, 0, 0))]
    in_specs += [rep(a) for a in args[1:]]

    flops = 2 * B * (110 * 432 * 64 + 60 * 9 * 64 * 96 + 18 * 9 * 96 * 128
                     + 2304 * 256 + 256 * 128 + 128 * 64 + 64 * 128)
    bytes_accessed = int(sum(a.size * a.dtype.itemsize for a in args)
                         + B * 128 * 4)

    return pl.pallas_call(
        _tail_kernel,
        out_shape=jax.ShapeDtypeStruct((B, 1, 128), jnp.float32),
        grid=(B,),
        in_specs=in_specs,
        out_specs=pl.BlockSpec((1, 1, 128), lambda b: (b, 0, 0)),
        compiler_params=pltpu.CompilerParams(
            dimension_semantics=("parallel",),
            vmem_limit_bytes=32 * 1024 * 1024),
        cost_estimate=pl.CostEstimate(flops=flops, transcendentals=0,
                                      bytes_accessed=bytes_accessed),
    )(*args)


# ----------------------------------------------------------------------------
# Parameter construction (deterministic, synthetic) — mirrors the PyTorch module
# ----------------------------------------------------------------------------
def make_params(key):
    def conv_p(key, cout, cin, k=3):
        k1, k2, k3, k4, k5, k6 = jax.random.split(key, 6)
        fan_in = cin * k * k
        std = 1.0 / jnp.sqrt(fan_in)
        return dict(
            w=jax.random.normal(k1, (cout, cin, k, k), jnp.float32) * std,
            b=jax.random.normal(k2, (cout,), jnp.float32) * std,
            gamma=jax.random.uniform(k3, (cout,), jnp.float32, 0.5, 1.5),
            beta=jax.random.normal(k4, (cout,), jnp.float32) * 0.1,
            mean=jax.random.normal(k5, (cout,), jnp.float32) * 0.1,
            var=jax.random.uniform(k6, (cout,), jnp.float32, 0.5, 1.5),
        )

    def fc_p(key, nout, nin):
        k1, k2 = jax.random.split(key)
        std = 1.0 / jnp.sqrt(nin)
        return dict(
            w=jax.random.normal(k1, (nout, nin), jnp.float32) * std,
            b=jax.random.normal(k2, (nout,), jnp.float32) * std,
        )

    ks = jax.random.split(key, 9)
    return dict(
        conv1=conv_p(ks[0], 32, 5),
        conv2=conv_p(ks[1], 48, 32),
        conv3=conv_p(ks[2], 64, 48),
        conv4=conv_p(ks[3], 96, 64),
        conv5=conv_p(ks[4], 128, 96),
        fc1=fc_p(ks[5], 256, 128 * 1 * 18),
        fc2=fc_p(ks[6], 128, 256),
        fc3=fc_p(ks[7], 64, 128),
        fc4=fc_p(ks[8], 1, 64),
    )


# ----------------------------------------------------------------------------
# One-time parameter preprocessing (host-side, outside the jitted forward)
# ----------------------------------------------------------------------------
def preprocess_params(params, eps=1e-5):
    f32, bf16 = jnp.float32, jnp.bfloat16

    def bn_fold(p):
        scale = p["gamma"] / jnp.sqrt(p["var"] + eps)
        shift = p["beta"] - p["mean"] * scale + p["b"] * scale   # conv bias folded
        return scale, shift.reshape(1, -1).astype(f32)

    def conv_flat(p):
        # ((kh, kw, cin), cout) im2col order; BN scale folded into columns.
        scale, shift = bn_fold(p)
        cout = p["w"].shape[0]
        w = jnp.transpose(p["w"], (2, 3, 1, 0)).reshape(-1, cout) * scale[None, :]
        return w.astype(bf16), shift

    def conv_taps(p):
        # (tap = kh*3+kw, cin, cout) for in-kernel tap-accumulated im2col.
        scale, shift = bn_fold(p)
        cout, cin = p["w"].shape[0], p["w"].shape[1]
        w = (jnp.transpose(p["w"], (2, 3, 1, 0)).reshape(9, cin, cout)
             * scale[None, None, :])
        return w.astype(bf16), shift

    w1c, s1 = conv_flat(params["conv1"])
    w2c, s2 = conv_flat(params["conv2"])
    w3c, s3 = conv_flat(params["conv3"])
    w4c, s4 = conv_taps(params["conv4"])
    w5c, s5 = conv_taps(params["conv5"])

    # fc1: PyTorch flatten index f = c*18 + w; our conv5 output is [w, c].
    # Reorder into per-w taps (18, 128, 256) so fc1 = sum_w y5[w] @ w1[w].
    w1 = jnp.transpose(params["fc1"]["w"])               # (2304, 256), row f=c*18+w
    w1 = w1.reshape(128, 18, 256).transpose(1, 0, 2)     # (18, 128, 256) [w, c, o]

    w4f = jnp.transpose(params["fc4"]["w"])              # (64, 1)
    w4f = jnp.pad(w4f, ((0, 0), (0, 127)))               # lane-dense final store
    b4f = jnp.pad(params["fc4"]["b"], (0, 127)).reshape(1, -1)

    tail = dict(
        w3=w3c, s3=s3, w4=w4c, s4=s4, w5=w5c, s5=s5,
        w1=w1.astype(bf16), b1=params["fc1"]["b"].reshape(1, -1).astype(f32),
        w2=jnp.transpose(params["fc2"]["w"]).astype(bf16),
        b2=params["fc2"]["b"].reshape(1, -1).astype(f32),
        w3f=jnp.transpose(params["fc3"]["w"]).astype(bf16),
        b3=params["fc3"]["b"].reshape(1, -1).astype(f32),
        w4f=w4f.astype(bf16), b4=b4f.astype(f32),
    )
    return dict(conv1=(w1c, s1), conv2=(w2c, s2), tail=tail)


# ----------------------------------------------------------------------------
# Forward pass
# ----------------------------------------------------------------------------
def _im2col(x_nhwc, stride):
    """3x3 valid-conv patches -> (B, Ho*Wo, 9*C), column order (kh, kw, c)."""
    B, H, W, C = x_nhwc.shape
    Ho = (H - 3) // stride + 1
    Wo = (W - 3) // stride + 1
    cols = []
    for kh in range(3):
        for kw in range(3):
            cols.append(
                x_nhwc[:, kh:kh + stride * (Ho - 1) + 1:stride,
                          kw:kw + stride * (Wo - 1) + 1:stride, :])
    patches = jnp.concatenate(cols, axis=-1)             # (B, Ho, Wo, 9C)
    return patches.reshape(B, Ho * Wo, 9 * C), (Ho, Wo)


def integrated_nn2_forward(prepped, x_nchw):
    B = x_nchw.shape[0]
    x = jnp.transpose(x_nchw, (0, 2, 3, 1)).astype(jnp.bfloat16)   # NHWC, bf16

    p1, (oh1, ow1) = _im2col(x, 2)                                  # (B, 2093, 45)
    y1 = conv_gemm(p1.reshape(B * oh1 * ow1, -1), *prepped["conv1"],
                   act="relu", num_tiles=2)
    x = y1.reshape(B, oh1, ow1, -1)                                 # (B, 23, 91, 32)

    p2, (oh2, ow2) = _im2col(x, 2)                                  # (B, 495, 288)
    y2 = conv_gemm(p2.reshape(B * oh2 * ow2, -1), *prepped["conv2"],
                   act="leaky_relu", num_tiles=2)
    x = y2.reshape(B, oh2, ow2, -1)                                 # (B, 11, 45, 48)

    p3, (oh3, ow3) = _im2col(x, 2)                                  # (B, 110, 432)
    out = fused_tail(p3, prepped["tail"])                           # (B, 1, 128)
    return out[:, 0, :1]                                            # (B, 1)


if __name__ == "__main__":
    key = jax.random.PRNGKey(0)
    kp, kx = jax.random.split(key)
    params = make_params(kp)
    prepped = preprocess_params(params)

    # fc1 expects 128*1*18 features -> smallest valid input is H=47, W=183.
    x = jax.random.normal(kx, (2, 5, 47, 183), jnp.float32)         # NCHW

    fwd = jax.jit(integrated_nn2_forward)
    out = jax.block_until_ready(fwd(prepped, x))
    assert out.shape == (2, 1), out.shape
    assert bool(jnp.all(jnp.isfinite(out)))
    print("KERNEL_OK")
</pallas_src>

<mosaic_0001>
module attributes {stable_mosaic.version = 11 : i64} {
  func.func @_conv_gemm_kernel(%arg0: i32, %arg1: memref<2096x45xbf16, #tpu.memory_space<vmem>>, %arg2: memref<45x32xbf16, #tpu.memory_space<vmem>>, %arg3: memref<1x32xf32, #tpu.memory_space<vmem>>, %arg4: memref<2096x32xbf16, #tpu.memory_space<vmem>>) attributes {dimension_semantics = [#tpu.dimension_semantics<parallel>], iteration_bounds = array<i64: 2>, scalar_prefetch = 0 : i64, scratch_operands = 0 : i64, tpu.core_type = #tpu.core_type<tc>, window_params = [{transform_indices = @transform_0, window_bounds = array<i64: 2096, 45>}, {pipeline_mode = #tpu.pipeline_mode<synchronous>, transform_indices = @transform_1, window_bounds = array<i64: 45, 32>}, {pipeline_mode = #tpu.pipeline_mode<synchronous>, transform_indices = @transform_2, window_bounds = array<i64: 1, 32>}, {transform_indices = @transform_3, window_bounds = array<i64: 2096, 32>}]} {
    %c0 = arith.constant 0 : index
    %c0_0 = arith.constant 0 : index
    %0 = vector.load %arg1[%c0, %c0_0] : memref<2096x45xbf16, #tpu.memory_space<vmem>>, vector<2096x45xbf16>
    %c0_1 = arith.constant 0 : index
    %c0_2 = arith.constant 0 : index
    %1 = vector.load %arg2[%c0_1, %c0_2] : memref<45x32xbf16, #tpu.memory_space<vmem>>, vector<45x32xbf16>
    %cst = arith.constant dense<0.000000e+00> : vector<2096x32xf32>
    %2 = tpu.matmul %0, %1, %cst {dimension_numbers = #tpu.dot_dimension_numbers<[1], [0], [0], [1], [0, 0, 1, 1], [], []>} : vector<2096x45xbf16>, vector<45x32xbf16>, vector<2096x32xf32> -> vector<2096x32xf32>
    %c0_3 = arith.constant 0 : index
    %c0_4 = arith.constant 0 : index
    %3 = vector.load %arg3[%c0_3, %c0_4] : memref<1x32xf32, #tpu.memory_space<vmem>>, vector<1x32xf32>
    %4 = vector.broadcast %3 : vector<1x32xf32> to vector<2096x32xf32>
    %5 = arith.addf %2, %4 : vector<2096x32xf32>
    %cst_5 = arith.constant 0.000000e+00 : f32
    %6 = vector.broadcast %cst_5 : f32 to vector<2096x32xf32>
    %7 = arith.maximumf %5, %6 : vector<2096x32xf32>
    %8 = arith.truncf %7 : vector<2096x32xf32> to vector<2096x32xbf16>
    %c0_6 = arith.constant 0 : index
    %c0_7 = arith.constant 0 : index
    %9 = vector.load %arg4[%c0_6, %c0_7] : memref<2096x32xbf16, #tpu.memory_space<vmem>>, vector<2096x32xbf16>
    tpu.vector_store %arg4[%c0_6, %c0_7], %8 {strides = array<i32>} : memref<2096x32xbf16, #tpu.memory_space<vmem>>, vector<2096x32xbf16>,
    return
  }
  func.func @transform_0(%arg0: i32) -> (i32, i32) {
    %c0_i32 = arith.constant 0 : i32
    %c0_i32_0 = arith.constant 0 : i32
    return %arg0, %c0_i32 : i32, i32
  }
  func.func @transform_1(%arg0: i32) -> (i32, i32) {
    %c0_i32 = arith.constant 0 : i32
    %c0_i32_0 = arith.constant 0 : i32
    %c0_i32_1 = arith.constant 0 : i32
    return %c0_i32, %c0_i32_0 : i32, i32
  }
  func.func @transform_2(%arg0: i32) -> (i32, i32) {
    %c0_i32 = arith.constant 0 : i32
    %c0_i32_0 = arith.constant 0 : i32
    %c0_i32_1 = arith.constant 0 : i32
    return %c0_i32, %c0_i32_0 : i32, i32
  }
  func.func @transform_3(%arg0: i32) -> (i32, i32) {
    %c0_i32 = arith.constant 0 : i32
    %c0_i32_0 = arith.constant 0 : i32
    return %arg0, %c0_i32 : i32, i32
  }
}

module attributes {stable_mosaic.version = 11 : i64} {
  func.func @_conv_gemm_kernel(%arg0: i32, %arg1: memref<496x288xbf16, #tpu.memory_space<vmem>>, %arg2: memref<288x48xbf16, #tpu.memory_space<vmem>>, %arg3: memref<1x48xf32, #tpu.memory_space<vmem>>, %arg4: memref<496x48xbf16, #tpu.memory_space<vmem>>) attributes {dimension_semantics = [#tpu.dimension_semantics<parallel>], iteration_bounds = array<i64: 2>, scalar_prefetch = 0 : i64, scratch_operands = 0 : i64, tpu.core_type = #tpu.core_type<tc>, window_params = [{transform_indices = @transform_0, window_bounds = array<i64: 496, 288>}, {pipeline_mode = #tpu.pipeline_mode<synchronous>, transform_indices = @transform_1, window_bounds = array<i64: 288, 48>}, {pipeline_mode = #tpu.pipeline_mode<synchronous>, transform_indices = @transform_2, window_bounds = array<i64: 1, 48>}, {transform_indices = @transform_3, window_bounds = array<i64: 496, 48>}]} {
    %c0 = arith.constant 0 : index
    %c0_0 = arith.constant 0 : index
    %0 = vector.load %arg1[%c0, %c0_0] : memref<496x288xbf16, #tpu.memory_space<vmem>>, vector<496x288xbf16>
    %c0_1 = arith.constant 0 : index
    %c0_2 = arith.constant 0 : index
    %1 = vector.load %arg2[%c0_1, %c0_2] : memref<288x48xbf16, #tpu.memory_space<vmem>>, vector<288x48xbf16>
    %cst = arith.constant dense<0.000000e+00> : vector<496x48xf32>
    %2 = tpu.matmul %0, %1, %cst {dimension_numbers = #tpu.dot_dimension_numbers<[1], [0], [0], [1], [0, 0, 1, 1], [], []>} : vector<496x288xbf16>, vector<288x48xbf16>, vector<496x48xf32> -> vector<496x48xf32>
    %c0_3 = arith.constant 0 : index
    %c0_4 = arith.constant 0 : index
    %3 = vector.load %arg3[%c0_3, %c0_4] : memref<1x48xf32, #tpu.memory_space<vmem>>, vector<1x48xf32>
    %4 = vector.broadcast %3 : vector<1x48xf32> to vector<496x48xf32>
    %5 = arith.addf %2, %4 : vector<496x48xf32>
    %cst_5 = arith.constant 0.00999999977 : f32
    %6 = vector.broadcast %cst_5 : f32 to vector<496x48xf32>
    %7 = arith.mulf %6, %5 : vector<496x48xf32>
    %8 = arith.maximumf %5, %7 : vector<496x48xf32>
    %9 = arith.truncf %8 : vector<496x48xf32> to vector<496x48xbf16>
    %c0_6 = arith.constant 0 : index
    %c0_7 = arith.constant 0 : index
    %10 = vector.load %arg4[%c0_6, %c0_7] : memref<496x48xbf16, #tpu.memory_space<vmem>>, vector<496x48xbf16>
    tpu.vector_store %arg4[%c0_6, %c0_7], %9 {strides = array<i32>} : memref<496x48xbf16, #tpu.memory_space<vmem>>, vector<496x48xbf16>,
    return
  }
  func.func @transform_0(%arg0: i32) -> (i32, i32) {
    %c0_i32 = arith.constant 0 : i32
    %c0_i32_0 = arith.constant 0 : i32
    return %arg0, %c0_i32 : i32, i32
  }
  func.func @transform_1(%arg0: i32) -> (i32, i32) {
    %c0_i32 = arith.constant 0 : i32
    %c0_i32_0 = arith.constant 0 : i32
    %c0_i32_1 = arith.constant 0 : i32
    return %c0_i32, %c0_i32_0 : i32, i32
  }
  func.func @transform_2(%arg0: i32) -> (i32, i32) {
    %c0_i32 = arith.constant 0 : i32
    %c0_i32_0 = arith.constant 0 : i32
    %c0_i32_1 = arith.constant 0 : i32
    return %c0_i32, %c0_i32_0 : i32, i32
  }
  func.func @transform_3(%arg0: i32) -> (i32, i32) {
    %c0_i32 = arith.constant 0 : i32
    %c0_i32_0 = arith.constant 0 : i32
    return %arg0, %c0_i32 : i32, i32
  }
}

module attributes {stable_mosaic.version = 11 : i64} {
  func.func @_tail_kernel(%arg0: i32, %arg1: memref<1x110x432xbf16, #tpu.memory_space<vmem>>, %arg2: memref<432x64xbf16, #tpu.memory_space<vmem>>, %arg3: memref<1x64xf32, #tpu.memory_space<vmem>>, %arg4: memref<9x64x96xbf16, #tpu.memory_space<vmem>>, %arg5: memref<1x96xf32, #tpu.memory_space<vmem>>, %arg6: memref<9x96x128xbf16, #tpu.memory_space<vmem>>, %arg7: memref<1x128xf32, #tpu.memory_space<vmem>>, %arg8: memref<18x128x256xbf16, #tpu.memory_space<vmem>>, %arg9: memref<1x256xf32, #tpu.memory_space<vmem>>, %arg10: memref<256x128xbf16, #tpu.memory_space<vmem>>, %arg11: memref<1x128xf32, #tpu.memory_space<vmem>>, %arg12: memref<128x64xbf16, #tpu.memory_space<vmem>>, %arg13: memref<1x64xf32, #tpu.memory_space<vmem>>, %arg14: memref<64x128xbf16, #tpu.memory_space<vmem>>, %arg15: memref<1x128xf32, #tpu.memory_space<vmem>>, %arg16: memref<1x1x128xf32, #tpu.memory_space<vmem>>) attributes {dimension_semantics = [#tpu.dimension_semantics<parallel>], iteration_bounds = array<i64: 2>, scalar_prefetch = 0 : i64, scratch_operands = 0 : i64, tpu.core_type = #tpu.core_type<tc>, window_params = [{transform_indices = @transform_0, window_bounds = array<i64: 1, 110, 432>}, {pipeline_mode = #tpu.pipeline_mode<synchronous>, transform_indices = @transform_1, window_bounds = array<i64: 432, 64>}, {pipeline_mode = #tpu.pipeline_mode<synchronous>, transform_indices = @transform_2, window_bounds = array<i64: 1, 64>}, {pipeline_mode = #tpu.pipeline_mode<synchronous>, transform_indices = @transform_3, window_bounds = array<i64: 9, 64, 96>}, {pipeline_mode = #tpu.pipeline_mode<synchronous>, transform_indices = @transform_4, window_bounds = array<i64: 1, 96>}, {pipeline_mode = #tpu.pipeline_mode<synchronous>, transform_indices = @transform_5, window_bounds = array<i64: 9, 96, 128>}, {pipeline_mode = #tpu.pipeline_mode<synchronous>, transform_indices = @transform_6, window_bounds = array<i64: 1, 128>}, {pipeline_mode = #tpu.pipeline_mode<synchronous>, transform_indices = @transform_7, window_bounds = array<i64: 18, 128, 256>}, {pipeline_mode = #tpu.pipeline_mode<synchronous>, transform_indices = @transform_8, window_bounds = array<i64: 1, 256>}, {pipeline_mode = #tpu.pipeline_mode<synchronous>, transform_indices = @transform_9, window_bounds = array<i64: 256, 128>}, {pipeline_mode = #tpu.pipeline_mode<synchronous>, transform_indices = @transform_10, window_bounds = array<i64: 1, 128>}, {pipeline_mode = #tpu.pipeline_mode<synchronous>, transform_indices = @transform_11, window_bounds = array<i64: 128, 64>}, {pipeline_mode = #tpu.pipeline_mode<synchronous>, transform_indices = @transform_12, window_bounds = array<i64: 1, 64>}, {pipeline_mode = #tpu.pipeline_mode<synchronous>, transform_indices = @transform_13, window_bounds = array<i64: 64, 128>}, {pipeline_mode = #tpu.pipeline_mode<synchronous>, transform_indices = @transform_14, window_bounds = array<i64: 1, 128>}, {transform_indices = @transform_15, window_bounds = array<i64: 1, 1, 128>}]} {
    %c0 = arith.constant 0 : index
    %c0_0 = arith.constant 0 : index
    %c0_1 = arith.constant 0 : index
    %0 = vector.load %arg1[%c0, %c0_0, %c0_1] : memref<1x110x432xbf16, #tpu.memory_space<vmem>>, vector<1x110x432xbf16>
    %1 = vector.shape_cast %0 : vector<1x110x432xbf16> to vector<110x432xbf16>
    %c0_2 = arith.constant 0 : index
    %c0_3 = arith.constant 0 : index
    %2 = vector.load %arg2[%c0_2, %c0_3] : memref<432x64xbf16, #tpu.memory_space<vmem>>, vector<432x64xbf16>
    %cst = arith.constant dense<0.000000e+00> : vector<110x64xf32>
    %3 = tpu.matmul %1, %2, %cst {dimension_numbers = #tpu.dot_dimension_numbers<[1], [0], [0], [1], [0, 0, 1, 1], [], []>} : vector<110x432xbf16>, vector<432x64xbf16>, vector<110x64xf32> -> vector<110x64xf32>
    %c0_4 = arith.constant 0 : index
    %c0_5 = arith.constant 0 : index
    %4 = vector.load %arg3[%c0_4, %c0_5] : memref<1x64xf32, #tpu.memory_space<vmem>>, vector<1x64xf32>
    %5 = vector.broadcast %4 : vector<1x64xf32> to vector<110x64xf32>
    %6 = arith.addf %3, %5 : vector<110x64xf32>
    %cst_6 = arith.constant 0.000000e+00 : f32
    %7 = vector.broadcast %cst_6 : f32 to vector<110x64xf32>
    %8 = arith.maximumf %6, %7 : vector<110x64xf32>
    %9 = arith.truncf %8 : vector<110x64xf32> to vector<110x64xbf16>
    %cst_7 = arith.constant 0.000000e+00 : f32
    %10 = vector.broadcast %cst_7 : f32 to vector<20x96xf32>
    %11 = vector.extract_strided_slice %9 {offsets = [0, 0], sizes = [20, 64], strides = [1, 1]} : vector<110x64xbf16> to vector<20x64xbf16>
    %c0_8 = arith.constant 0 : index
    %c0_9 = arith.constant 0 : index
    %c0_10 = arith.constant 0 : index
    %12 = vector.load %arg4[%c0_8, %c0_9, %c0_10] : memref<9x64x96xbf16, #tpu.memory_space<vmem>>, vector<1x64x96xbf16>
    %13 = vector.shape_cast %12 : vector<1x64x96xbf16> to vector<64x96xbf16>
    %cst_11 = arith.constant dense<0.000000e+00> : vector<20x96xf32>
    %14 = tpu.matmul %11, %13, %cst_11 {dimension_numbers = #tpu.dot_dimension_numbers<[1], [0], [0], [1], [0, 0, 1, 1], [], []>} : vector<20x64xbf16>, vector<64x96xbf16>, vector<20x96xf32> -> vector<20x96xf32>
    %15 = arith.addf %10, %14 : vector<20x96xf32>
    %16 = vector.extract_strided_slice %9 {offsets = [1, 0], sizes = [20, 64], strides = [1, 1]} : vector<110x64xbf16> to vector<20x64xbf16>
    %c1 = arith.constant 1 : index
    %c0_12 = arith.constant 0 : index
    %c0_13 = arith.constant 0 : index
    %17 = vector.load %arg4[%c1, %c0_12, %c0_13] : memref<9x64x96xbf16, #tpu.memory_space<vmem>>, vector<1x64x96xbf16>
    %18 = vector.shape_cast %17 : vector<1x64x96xbf16> to vector<64x96xbf16>
    %cst_14 = arith.constant dense<0.000000e+00> : vector<20x96xf32>
    %19 = tpu.matmul %16, %18, %cst_14 {dimension_numbers = #tpu.dot_dimension_numbers<[1], [0], [0], [1], [0, 0, 1, 1], [], []>} : vector<20x64xbf16>, vector<64x96xbf16>, vector<20x96xf32> -> vector<20x96xf32>
    %20 = arith.addf %15, %19 : vector<20x96xf32>
    %21 = vector.extract_strided_slice %9 {offsets = [2, 0], sizes = [20, 64], strides = [1, 1]} : vector<110x64xbf16> to vector<20x64xbf16>
    %c2 = arith.constant 2 : index
    %c0_15 = arith.constant 0 : index
    %c0_16 = arith.constant 0 : index
    %22 = vector.load %arg4[%c2, %c0_15, %c0_16] : memref<9x64x96xbf16, #tpu.memory_space<vmem>>, vector<1x64x96xbf16>
    %23 = vector.shape_cast %22 : vector<1x64x96xbf16> to vector<64x96xbf16>
    %cst_17 = arith.constant dense<0.000000e+00> : vector<20x96xf32>
    %24 = tpu.matmul %21, %23, %cst_17 {dimension_numbers = #tpu.dot_dimension_numbers<[1], [0], [0], [1], [0, 0, 1, 1], [], []>} : vector<20x64xbf16>, vector<64x96xbf16>, vector<20x96xf32> -> vector<20x96xf32>
    %25 = arith.addf %20, %24 : vector<20x96xf32>
    %26 = vector.extract_strided_slice %9 {offsets = [22, 0], sizes = [20, 64], strides = [1, 1]} : vector<110x64xbf16> to vector<20x64xbf16>
    %c3 = arith.constant 3 : index
    %c0_18 = arith.constant 0 : index
    %c0_19 = arith.constant 0 : index
    %27 = vector.load %arg4[%c3, %c0_18, %c0_19] : memref<9x64x96xbf16, #tpu.memory_space<vmem>>, vector<1x64x96xbf16>
    %28 = vector.shape_cast %27 : vector<1x64x96xbf16> to vector<64x96xbf16>
    %cst_20 = arith.constant dense<0.000000e+00> : vector<20x96xf32>
    %29 = tpu.matmul %26, %28, %cst_20 {dimension_numbers = #tpu.dot_dimension_numbers<[1], [0], [0], [1], [0, 0, 1, 1], [], []>} : vector<20x64xbf16>, vector<64x96xbf16>, vector<20x96xf32> -> vector<20x96xf32>
    %30 = arith.addf %25, %29 : vector<20x96xf32>
    %31 = vector.extract_strided_slice %9 {offsets = [23, 0], sizes = [20, 64], strides = [1, 1]} : vector<110x64xbf16> to vector<20x64xbf16>
    %c4 = arith.constant 4 : index
    %c0_21 = arith.constant 0 : index
    %c0_22 = arith.constant 0 : index
    %32 = vector.load %arg4[%c4, %c0_21, %c0_22] : memref<9x64x96xbf16, #tpu.memory_space<vmem>>, vector<1x64x96xbf16>
    %33 = vector.shape_cast %32 : vector<1x64x96xbf16> to vector<64x96xbf16>
    %cst_23 = arith.constant dense<0.000000e+00> : vector<20x96xf32>
    %34 = tpu.matmul %31, %33, %cst_23 {dimension_numbers = #tpu.dot_dimension_numbers<[1], [0], [0], [1], [0, 0, 1, 1], [], []>} : vector<20x64xbf16>, vector<64x96xbf16>, vector<20x96xf32> -> vector<20x96xf32>
    %35 = arith.addf %30, %34 : vector<20x96xf32>
    %36 = vector.extract_strided_slice %9 {offsets = [24, 0], sizes = [20, 64], strides = [1, 1]} : vector<110x64xbf16> to vector<20x64xbf16>
    %c5 = arith.constant 5 : index
    %c0_24 = arith.constant 0 : index
    %c0_25 = arith.constant 0 : index
    %37 = vector.load %arg4[%c5, %c0_24, %c0_25] : memref<9x64x96xbf16, #tpu.memory_space<vmem>>, vector<1x64x96xbf16>
    %38 = vector.shape_cast %37 : vector<1x64x96xbf16> to vector<64x96xbf16>
    %cst_26 = arith.constant dense<0.000000e+00> : vector<20x96xf32>
    %39 = tpu.matmul %36, %38, %cst_26 {dimension_numbers = #tpu.dot_dimension_numbers<[1], [0], [0], [1], [0, 0, 1, 1], [], []>} : vector<20x64xbf16>, vector<64x96xbf16>, vector<20x96xf32> -> vector<20x96xf32>
    %40 = arith.addf %35, %39 : vector<20x96xf32>
    %41 = vector.extract_strided_slice %9 {offsets = [44, 0], sizes = [20, 64], strides = [1, 1]} : vector<110x64xbf16> to vector<20x64xbf16>
    %c6 = arith.constant 6 : index
    %c0_27 = arith.constant 0 : index
    %c0_28 = arith.constant 0 : index
    %42 = vector.load %arg4[%c6, %c0_27, %c0_28] : memref<9x64x96xbf16, #tpu.memory_space<vmem>>, vector<1x64x96xbf16>
    %43 = vector.shape_cast %42 : vector<1x64x96xbf16> to vector<64x96xbf16>
    %cst_29 = arith.constant dense<0.000000e+00> : vector<20x96xf32>
    %44 = tpu.matmul %41, %43, %cst_29 {dimension_numbers = #tpu.dot_dimension_numbers<[1], [0], [0], [1], [0, 0, 1, 1], [], []>} : vector<20x64xbf16>, vector<64x96xbf16>, vector<20x96xf32> -> vector<20x96xf32>
    %45 = arith.addf %40, %44 : vector<20x96xf32>
    %46 = vector.extract_strided_slice %9 {offsets = [45, 0], sizes = [20, 64], strides = [1, 1]} : vector<110x64xbf16> to vector<20x64xbf16>
    %c7 = arith.constant 7 : index
    %c0_30 = arith.constant 0 : index
    %c0_31 = arith.constant 0 : index
    %47 = vector.load %arg4[%c7, %c0_30, %c0_31] : memref<9x64x96xbf16, #tpu.memory_space<vmem>>, vector<1x64x96xbf16>
    %48 = vector.shape_cast %47 : vector<1x64x96xbf16> to vector<64x96xbf16>
    %cst_32 = arith.constant dense<0.000000e+00> : vector<20x96xf32>
    %49 = tpu.matmul %46, %48, %cst_32 {dimension_numbers = #tpu.dot_dimension_numbers<[1], [0], [0], [1], [0, 0, 1, 1], [], []>} : vector<20x64xbf16>, vector<64x96xbf16>, vector<20x96xf32> -> vector<20x96xf32>
    %50 = arith.addf %45, %49 : vector<20x96xf32>
    %51 = vector.extract_strided_slice %9 {offsets = [46, 0], sizes = [20, 64], strides = [1, 1]} : vector<110x64xbf16> to vector<20x64xbf16>
    %c8 = arith.constant 8 : index
    %c0_33 = arith.constant 0 : index
    %c0_34 = arith.constant 0 : index
    %52 = vector.load %arg4[%c8, %c0_33, %c0_34] : memref<9x64x96xbf16, #tpu.memory_space<vmem>>, vector<1x64x96xbf16>
    %53 = vector.shape_cast %52 : vector<1x64x96xbf16> to vector<64x96xbf16>
    %cst_35 = arith.constant dense<0.000000e+00> : vector<20x96xf32>
    %54 = tpu.matmul %51, %53, %cst_35 {dimension_numbers = #tpu.dot_dimension_numbers<[1], [0], [0], [1], [0, 0, 1, 1], [], []>} : vector<20x64xbf16>, vector<64x96xbf16>, vector<20x96xf32> -> vector<20x96xf32>
    %55 = arith.addf %50, %54 : vector<20x96xf32>
    %c0_36 = arith.constant 0 : index
    %c0_37 = arith.constant 0 : index
    %56 = vector.load %arg5[%c0_36, %c0_37] : memref<1x96xf32, #tpu.memory_space<vmem>>, vector<1x96xf32>
    %57 = vector.broadcast %56 : vector<1x96xf32> to vector<20x96xf32>
    %58 = arith.addf %55, %57 : vector<20x96xf32>
    %cst_38 = arith.constant 0.00999999977 : f32
    %59 = vector.broadcast %cst_38 : f32 to vector<20x96xf32>
    %60 = arith.mulf %59, %58 : vector<20x96xf32>
    %61 = arith.maximumf %58, %60 : vector<20x96xf32>
    %62 = arith.truncf %61 : vector<20x96xf32> to vector<20x96xbf16>
    %cst_39 = arith.constant 0.000000e+00 : f32
    %63 = vector.broadcast %cst_39 : f32 to vector<20x96xf32>
    %64 = vector.extract_strided_slice %9 {offsets = [22, 0], sizes = [20, 64], strides = [1, 1]} : vector<110x64xbf16> to vector<20x64xbf16>
    %c0_40 = arith.constant 0 : index
    %c0_41 = arith.constant 0 : index
    %c0_42 = arith.constant 0 : index
    %65 = vector.load %arg4[%c0_40, %c0_41, %c0_42] : memref<9x64x96xbf16, #tpu.memory_space<vmem>>, vector<1x64x96xbf16>
    %66 = vector.shape_cast %65 : vector<1x64x96xbf16> to vector<64x96xbf16>
    %cst_43 = arith.constant dense<0.000000e+00> : vector<20x96xf32>
    %67 = tpu.matmul %64, %66, %cst_43 {dimension_numbers = #tpu.dot_dimension_numbers<[1], [0], [0], [1], [0, 0, 1, 1], [], []>} : vector<20x64xbf16>, vector<64x96xbf16>, vector<20x96xf32> -> vector<20x96xf32>
    %68 = arith.addf %63, %67 : vector<20x96xf32>
    %69 = vector.extract_strided_slice %9 {offsets = [23, 0], sizes = [20, 64], strides = [1, 1]} : vector<110x64xbf16> to vector<20x64xbf16>
    %c1_44 = arith.constant 1 : index
    %c0_45 = arith.constant 0 : index
    %c0_46 = arith.constant 0 : index
    %70 = vector.load %arg4[%c1_44, %c0_45, %c0_46] : memref<9x64x96xbf16, #tpu.memory_space<vmem>>, vector<1x64x96xbf16>
    %71 = vector.shape_cast %70 : vector<1x64x96xbf16> to vector<64x96xbf16>
    %cst_47 = arith.constant dense<0.000000e+00> : vector<20x96xf32>
    %72 = tpu.matmul %69, %71, %cst_47 {dimension_numbers = #tpu.dot_dimension_numbers<[1], [0], [0], [1], [0, 0, 1, 1], [], []>} : vector<20x64xbf16>, vector<64x96xbf16>, vector<20x96xf32> -> vector<20x96xf32>
    %73 = arith.addf %68, %72 : vector<20x96xf32>
    %74 = vector.extract_strided_slice %9 {offsets = [24, 0], sizes = [20, 64], strides = [1, 1]} : vector<110x64xbf16> to vector<20x64xbf16>
    %c2_48 = arith.constant 2 : index
    %c0_49 = arith.constant 0 : index
    %c0_50 = arith.constant 0 : index
    %75 = vector.load %arg4[%c2_48, %c0_49, %c0_50] : memref<9x64x96xbf16, #tpu.memory_space<vmem>>, vector<1x64x96xbf16>
    %76 = vector.shape_cast %75 : vector<1x64x96xbf16> to vector<64x96xbf16>
    %cst_51 = arith.constant dense<0.000000e+00> : vector<20x96xf32>
    %77 = tpu.matmul %74, %76, %cst_51 {dimension_numbers = #tpu.dot_dimension_numbers<[1], [0], [0], [1], [0, 0, 1, 1], [], []>} : vector<20x64xbf16>, vector<64x96xbf16>, vector<20x96xf32> -> vector<20x96xf32>
    %78 = arith.addf %73, %77 : vector<20x96xf32>
    %79 = vector.extract_strided_slice %9 {offsets = [44, 0], sizes = [20, 64], strides = [1, 1]} : vector<110x64xbf16> to vector<20x64xbf16>
    %c3_52 = arith.constant 3 : index
    %c0_53 = arith.constant 0 : index
    %c0_54 = arith.constant 0 : index
    %80 = vector.load %arg4[%c3_52, %c0_53, %c0_54] : memref<9x64x96xbf16, #tpu.memory_space<vmem>>, vector<1x64x96xbf16>
    %81 = vector.shape_cast %80 : vector<1x64x96xbf16> to vector<64x96xbf16>
    %cst_55 = arith.constant dense<0.000000e+00> : vector<20x96xf32>
    %82 = tpu.matmul %79, %81, %cst_55 {dimension_numbers = #tpu.dot_dimension_numbers<[1], [0], [0], [1], [0, 0, 1, 1], [], []>} : vector<20x64xbf16>, vector<64x96xbf16>, vector<20x96xf32> -> vector<20x96xf32>
    %83 = arith.addf %78, %82 : vector<20x96xf32>
    %84 = vector.extract_strided_slice %9 {offsets = [45, 0], sizes = [20, 64], strides = [1, 1]} : vector<110x64xbf16> to vector<20x64xbf16>
    %c4_56 = arith.constant 4 : index
    %c0_57 = arith.constant 0 : index
    %c0_58 = arith.constant 0 : index
    %85 = vector.load %arg4[%c4_56, %c0_57, %c0_58] : memref<9x64x96xbf16, #tpu.memory_space<vmem>>, vector<1x64x96xbf16>
    %86 = vector.shape_cast %85 : vector<1x64x96xbf16> to vector<64x96xbf16>
    %cst_59 = arith.constant dense<0.000000e+00> : vector<20x96xf32>
    %87 = tpu.matmul %84, %86, %cst_59 {dimension_numbers = #tpu.dot_dimension_numbers<[1], [0], [0], [1], [0, 0, 1, 1], [], []>} : vector<20x64xbf16>, vector<64x96xbf16>, vector<20x96xf32> -> vector<20x96xf32>
    %88 = arith.addf %83, %87 : vector<20x96xf32>
    %89 = vector.extract_strided_slice %9 {offsets = [46, 0], sizes = [20, 64], strides = [1, 1]} : vector<110x64xbf16> to vector<20x64xbf16>
    %c5_60 = arith.constant 5 : index
    %c0_61 = arith.constant 0 : index
    %c0_62 = arith.constant 0 : index
    %90 = vector.load %arg4[%c5_60, %c0_61, %c0_62] : memref<9x64x96xbf16, #tpu.memory_space<vmem>>, vector<1x64x96xbf16>
    %91 = vector.shape_cast %90 : vector<1x64x96xbf16> to vector<64x96xbf16>
    %cst_63 = arith.constant dense<0.000000e+00> : vector<20x96xf32>
    %92 = tpu.matmul %89, %91, %cst_63 {dimension_numbers = #tpu.dot_dimension_numbers<[1], [0], [0], [1], [0, 0, 1, 1], [], []>} : vector<20x64xbf16>, vector<64x96xbf16>, vector<20x96xf32> -> vector<20x96xf32>
    %93 = arith.addf %88, %92 : vector<20x96xf32>
    %94 = vector.extract_strided_slice %9 {offsets = [66, 0], sizes = [20, 64], strides = [1, 1]} : vector<110x64xbf16> to vector<20x64xbf16>
    %c6_64 = arith.constant 6 : index
    %c0_65 = arith.constant 0 : index
    %c0_66 = arith.constant 0 : index
    %95 = vector.load %arg4[%c6_64, %c0_65, %c0_66] : memref<9x64x96xbf16, #tpu.memory_space<vmem>>, vector<1x64x96xbf16>
    %96 = vector.shape_cast %95 : vector<1x64x96xbf16> to vector<64x96xbf16>
    %cst_67 = arith.constant dense<0.000000e+00> : vector<20x96xf32>
    %97 = tpu.matmul %94, %96, %cst_67 {dimension_numbers = #tpu.dot_dimension_numbers<[1], [0], [0], [1], [0, 0, 1, 1], [], []>} : vector<20x64xbf16>, vector<64x96xbf16>, vector<20x96xf32> -> vector<20x96xf32>
    %98 = arith.addf %93, %97 : vector<20x96xf32>
    %99 = vector.extract_strided_slice %9 {offsets = [67, 0], sizes = [20, 64], strides = [1, 1]} : vector<110x64xbf16> to vector<20x64xbf16>
    %c7_68 = arith.constant 7 : index
    %c0_69 = arith.constant 0 : index
    %c0_70 = arith.constant 0 : index
    %100 = vector.load %arg4[%c7_68, %c0_69, %c0_70] : memref<9x64x96xbf16, #tpu.memory_space<vmem>>, vector<1x64x96xbf16>
    %101 = vector.shape_cast %100 : vector<1x64x96xbf16> to vector<64x96xbf16>
    %cst_71 = arith.constant dense<0.000000e+00> : vector<20x96xf32>
    %102 = tpu.matmul %99, %101, %cst_71 {dimension_numbers = #tpu.dot_dimension_numbers<[1], [0], [0], [1], [0, 0, 1, 1], [], []>} : vector<20x64xbf16>, vector<64x96xbf16>, vector<20x96xf32> -> vector<20x96xf32>
    %103 = arith.addf %98, %102 : vector<20x96xf32>
    %104 = vector.extract_strided_slice %9 {offsets = [68, 0], sizes = [20, 64], strides = [1, 1]} : vector<110x64xbf16> to vector<20x64xbf16>
    %c8_72 = arith.constant 8 : index
    %c0_73 = arith.constant 0 : index
    %c0_74 = arith.constant 0 : index
    %105 = vector.load %arg4[%c8_72, %c0_73, %c0_74] : memref<9x64x96xbf16, #tpu.memory_space<vmem>>, vector<1x64x96xbf16>
    %106 = vector.shape_cast %105 : vector<1x64x96xbf16> to vector<64x96xbf16>
    %cst_75 = arith.constant dense<0.000000e+00> : vector<20x96xf32>
    %107 = tpu.matmul %104, %106, %cst_75 {dimension_numbers = #tpu.dot_dimension_numbers<[1], [0], [0], [1], [0, 0, 1, 1], [], []>} : vector<20x64xbf16>, vector<64x96xbf16>, vector<20x96xf32> -> vector<20x96xf32>
    %108 = arith.addf %103, %107 : vector<20x96xf32>
    %c0_76 = arith.constant 0 : index
    %c0_77 = arith.constant 0 : index
    %109 = vector.load %arg5[%c0_76, %c0_77] : memref<1x96xf32, #tpu.memory_space<vmem>>, vector<1x96xf32>
    %110 = vector.broadcast %109 : vector<1x96xf32> to vector<20x96xf32>
    %111 = arith.addf %108, %110 : vector<20x96xf32>
    %cst_78 = arith.constant 0.00999999977 : f32
    %112 = vector.broadcast %cst_78 : f32 to vector<20x96xf32>
    %113 = arith.mulf %112, %111 : vector<20x96xf32>
    %114 = arith.maximumf %111, %113 : vector<20x96xf32>
    %115 = arith.truncf %114 : vector<20x96xf32> to vector<20x96xbf16>
    %cst_79 = arith.constant 0.000000e+00 : f32
    %116 = vector.broadcast %cst_79 : f32 to vector<20x96xf32>
    %117 = vector.extract_strided_slice %9 {offsets = [44, 0], sizes = [20, 64], strides = [1, 1]} : vector<110x64xbf16> to vector<20x64xbf16>
    %c0_80 = arith.constant 0 : index
    %c0_81 = arith.constant 0 : index
    %c0_82 = arith.constant 0 : index
    %118 = vector.load %arg4[%c0_80, %c0_81, %c0_82] : memref<9x64x96xbf16, #tpu.memory_space<vmem>>, vector<1x64x96xbf16>
    %119 = vector.shape_cast %118 : vector<1x64x96xbf16> to vector<64x96xbf16>
    %cst_83 = arith.constant dense<0.000000e+00> : vector<20x96xf32>
    %120 = tpu.matmul %117, %119, %cst_83 {dimension_numbers = #tpu.dot_dimension_numbers<[1], [0], [0], [1], [0, 0, 1, 1], [], []>} : vector<20x64xbf16>, vector<64x96xbf16>, vector<20x96xf32> -> vector<20x96xf32>
    %121 = arith.addf %116, %120 : vector<20x96xf32>
    %122 = vector.extract_strided_slice %9 {offsets = [45, 0], sizes = [20, 64], strides = [1, 1]} : vector<110x64xbf16> to vector<20x64xbf16>
    %c1_84 = arith.constant 1 : index
    %c0_85 = arith.constant 0 : index
    %c0_86 = arith.constant 0 : index
    %123 = vector.load %arg4[%c1_84, %c0_85, %c0_86] : memref<9x64x96xbf16, #tpu.memory_space<vmem>>, vector<1x64x96xbf16>
    %124 = vector.shape_cast %123 : vector<1x64x96xbf16> to vector<64x96xbf16>
    %cst_87 = arith.constant dense<0.000000e+00> : vector<20x96xf32>
    %125 = tpu.matmul %122, %124, %cst_87 {dimension_numbers = #tpu.dot_dimension_numbers<[1], [0], [0], [1], [0, 0, 1, 1], [], []>} : vector<20x64xbf16>, vector<64x96xbf16>, vector<20x96xf32> -> vector<20x96xf32>
    %126 = arith.addf %121, %125 : vector<20x96xf32>
    %127 = vector.extract_strided_slice %9 {offsets = [46, 0], sizes = [20, 64], strides = [1, 1]} : vector<110x64xbf16> to vector<20x64xbf16>
    %c2_88 = arith.constant 2 : index
    %c0_89 = arith.constant 0 : index
    %c0_90 = arith.constant 0 : index
    %128 = vector.load %arg4[%c2_88, %c0_89, %c0_90] : memref<9x64x96xbf16, #tpu.memory_space<vmem>>, vector<1x64x96xbf16>
    %129 = vector.shape_cast %128 : vector<1x64x96xbf16> to vector<64x96xbf16>
    %cst_91 = arith.constant dense<0.000000e+00> : vector<20x96xf32>
    %130 = tpu.matmul %127, %129, %cst_91 {dimension_numbers = #tpu.dot_dimension_numbers<[1], [0], [0], [1], [0, 0, 1, 1], [], []>} : vector<20x64xbf16>, vector<64x96xbf16>, vector<20x96xf32> -> vector<20x96xf32>
    %131 = arith.addf %126, %130 : vector<20x96xf32>
    %132 = vector.extract_strided_slice %9 {offsets = [66, 0], sizes = [20, 64], strides = [1, 1]} : vector<110x64xbf16> to vector<20x64xbf16>
    %c3_92 = arith.constant 3 : index
    %c0_93 = arith.constant 0 : index
    %c0_94 = arith.constant 0 : index
    %133 = vector.load %arg4[%c3_92, %c0_93, %c0_94] : memref<9x64x96xbf16, #tpu.memory_space<vmem>>, vector<1x64x96xbf16>
    %134 = vector.shape_cast %133 : vector<1x64x96xbf16> to vector<64x96xbf16>
    %cst_95 = arith.constant dense<0.000000e+00> : vector<20x96xf32>
    %135 = tpu.matmul %132, %134, %cst_95 {dimension_numbers = #tpu.dot_dimension_numbers<[1], [0], [0], [1], [0, 0, 1, 1], [], []>} : vector<20x64xbf16>, vector<64x96xbf16>, vector<20x96xf32> -> vector<20x96xf32>
    %136 = arith.addf %131, %135 : vector<20x96xf32>
    %137 = vector.extract_strided_slice %9 {offsets = [67, 0], sizes = [20, 64], strides = [1, 1]} : vector<110x64xbf16> to vector<20x64xbf16>
    %c4_96 = arith.constant 4 : index
    %c0_97 = arith.constant 0 : index
    %c0_98 = arith.constant 0 : index
    %138 = vector.load %arg4[%c4_96, %c0_97, %c0_98] : memref<9x64x96xbf16, #tpu.memory_space<vmem>>, vector<1x64x96xbf16>
    %139 = vector.shape_cast %138 : vector<1x64x96xbf16> to vector<64x96xbf16>
    %cst_99 = arith.constant dense<0.000000e+00> : vector<20x96xf32>
    %140 = tpu.matmul %137, %139, %cst_99 {dimension_numbers = #tpu.dot_dimension_numbers<[1], [0], [0], [1], [0, 0, 1, 1], [], []>} : vector<20x64xbf16>, vector<64x96xbf16>, vector<20x96xf32> -> vector<20x96xf32>
    %141 = arith.addf %136, %140 : vector<20x96xf32>
    %142 = vector.extract_strided_slice %9 {offsets = [68, 0], sizes = [20, 64], strides = [1, 1]} : vector<110x64xbf16> to vector<20x64xbf16>
    %c5_100 = arith.constant 5 : index
    %c0_101 = arith.constant 0 : index
    %c0_102 = arith.constant 0 : index
    %143 = vector.load %arg4[%c5_100, %c0_101, %c0_102] : memref<9x64x96xbf16, #tpu.memory_space<vmem>>, vector<1x64x96xbf16>
    %144 = vector.shape_cast %143 : vector<1x64x96xbf16> to vector<64x96xbf16>
    %cst_103 = arith.constant dense<0.000000e+00> : vector<20x96xf32>
    %145 = tpu.matmul %142, %144, %cst_103 {dimension_numbers = #tpu.dot_dimension_numbers<[1], [0], [0], [1], [0, 0, 1, 1], [], []>} : vector<20x64xbf16>, vector<64x96xbf16>, vector<20x96xf32> -> vector<20x96xf32>
    %146 = arith.addf %141, %145 : vector<20x96xf32>
    %147 = vector.extract_strided_slice %9 {offsets = [88, 0], sizes = [20, 64], strides = [1, 1]} : vector<110x64xbf16> to vector<20x64xbf16>
    %c6_104 = arith.constant 6 : index
    %c0_105 = arith.constant 0 : index
    %c0_106 = arith.constant 0 : index
    %148 = vector.load %arg4[%c6_104, %c0_105, %c0_106] : memref<9x64x96xbf16, #tpu.memory_space<vmem>>, vector<1x64x96xbf16>
    %149 = vector.shape_cast %148 : vector<1x64x96xbf16> to vector<64x96xbf16>
    %cst_107 = arith.constant dense<0.000000e+00> : vector<20x96xf32>
    %150 = tpu.matmul %147, %149, %cst_107 {dimension_numbers = #tpu.dot_dimension_numbers<[1], [0], [0], [1], [0, 0, 1, 1], [], []>} : vector<20x64xbf16>, vector<64x96xbf16>, vector<20x96xf32> -> vector<20x96xf32>
    %151 = arith.addf %146, %150 : vector<20x96xf32>
    %152 = vector.extract_strided_slice %9 {offsets = [89, 0], sizes = [20, 64], strides = [1, 1]} : vector<110x64xbf16> to vector<20x64xbf16>
    %c7_108 = arith.constant 7 : index
    %c0_109 = arith.constant 0 : index
    %c0_110 = arith.constant 0 : index
    %153 = vector.load %arg4[%c7_108, %c0_109, %c0_110] : memref<9x64x96xbf16, #tpu.memory_space<vmem>>, vector<1x64x96xbf16>
    %154 = vector.shape_cast %153 : vector<1x64x96xbf16> to vector<64x96xbf16>
    %cst_111 = arith.constant dense<0.000000e+00> : vector<20x96xf32>
    %155 = tpu.matmul %152, %154, %cst_111 {dimension_numbers = #tpu.dot_dimension_numbers<[1], [0], [0], [1], [0, 0, 1, 1], [], []>} : vector<20x64xbf16>, vector<64x96xbf16>, vector<20x96xf32> -> vector<20x96xf32>
    %156 = arith.addf %151, %155 : vector<20x96xf32>
    %157 = vector.extract_strided_slice %9 {offsets = [90, 0], sizes = [20, 64], strides = [1, 1]} : vector<110x64xbf16> to vector<20x64xbf16>
    %c8_112 = arith.constant 8 : index
    %c0_113 = arith.constant 0 : index
    %c0_114 = arith.constant 0 : index
    %158 = vector.load %arg4[%c8_112, %c0_113, %c0_114] : memref<9x64x96xbf16, #tpu.memory_space<vmem>>, vector<1x64x96xbf16>
    %159 = vector.shape_cast %158 : vector<1x64x96xbf16> to vector<64x96xbf16>
    %cst_115 = arith.constant dense<0.000000e+00> : vector<20x96xf32>
    %160 = tpu.matmul %157, %159, %cst_115 {dimension_numbers = #tpu.dot_dimension_numbers<[1], [0], [0], [1], [0, 0, 1, 1], [], []>} : vector<20x64xbf16>, vector<64x96xbf16>, vector<20x96xf32> -> vector<20x96xf32>
    %161 = arith.addf %156, %160 : vector<20x96xf32>
    %c0_116 = arith.constant 0 : index
    %c0_117 = arith.constant 0 : index
    %162 = vector.load %arg5[%c0_116, %c0_117] : memref<1x96xf32, #tpu.memory_space<vmem>>, vector<1x96xf32>
    %163 = vector.broadcast %162 : vector<1x96xf32> to vector<20x96xf32>
    %164 = arith.addf %161, %163 : vector<20x96xf32>
    %cst_118 = arith.constant 0.00999999977 : f32
    %165 = vector.broadcast %cst_118 : f32 to vector<20x96xf32>
    %166 = arith.mulf %165, %164 : vector<20x96xf32>
    %167 = arith.maximumf %164, %166 : vector<20x96xf32>
    %168 = arith.truncf %167 : vector<20x96xf32> to vector<20x96xbf16>
    %cst_119 = arith.constant 0.000000e+00 : f32
    %169 = vector.broadcast %cst_119 : f32 to vector<18x128xf32>
    %170 = vector.extract_strided_slice %62 {offsets = [0, 0], sizes = [18, 96], strides = [1, 1]} : vector<20x96xbf16> to vector<18x96xbf16>
    %c0_120 = arith.constant 0 : index
    %c0_121 = arith.constant 0 : index
    %c0_122 = arith.constant 0 : index
    %171 = vector.load %arg6[%c0_120, %c0_121, %c0_122] : memref<9x96x128xbf16, #tpu.memory_space<vmem>>, vector<1x96x128xbf16>
    %172 = vector.shape_cast %171 : vector<1x96x128xbf16> to vector<96x128xbf16>
    %cst_123 = arith.constant dense<0.000000e+00> : vector<18x128xf32>
    %173 = tpu.matmul %170, %172, %cst_123 {dimension_numbers = #tpu.dot_dimension_numbers<[1], [0], [0], [1], [0, 0, 1, 1], [], []>} : vector<18x96xbf16>, vector<96x128xbf16>, vector<18x128xf32> -> vector<18x128xf32>
    %174 = arith.addf %169, %173 : vector<18x128xf32>
    %175 = vector.extract_strided_slice %62 {offsets = [1, 0], sizes = [18, 96], strides = [1, 1]} : vector<20x96xbf16> to vector<18x96xbf16>
    %c1_124 = arith.constant 1 : index
    %c0_125 = arith.constant 0 : index
    %c0_126 = arith.constant 0 : index
    %176 = vector.load %arg6[%c1_124, %c0_125, %c0_126] : memref<9x96x128xbf16, #tpu.memory_space<vmem>>, vector<1x96x128xbf16>
    %177 = vector.shape_cast %176 : vector<1x96x128xbf16> to vector<96x128xbf16>
    %cst_127 = arith.constant dense<0.000000e+00> : vector<18x128xf32>
    %178 = tpu.matmul %175, %177, %cst_127 {dimension_numbers = #tpu.dot_dimension_numbers<[1], [0], [0], [1], [0, 0, 1, 1], [], []>} : vector<18x96xbf16>, vector<96x128xbf16>, vector<18x128xf32> -> vector<18x128xf32>
    %179 = arith.addf %174, %178 : vector<18x128xf32>
    %180 = vector.extract_strided_slice %62 {offsets = [2, 0], sizes = [18, 96], strides = [1, 1]} : vector<20x96xbf16> to vector<18x96xbf16>
    %c2_128 = arith.constant 2 : index
    %c0_129 = arith.constant 0 : index
    %c0_130 = arith.constant 0 : index
    %181 = vector.load %arg6[%c2_128, %c0_129, %c0_130] : memref<9x96x128xbf16, #tpu.memory_space<vmem>>, vector<1x96x128xbf16>
    %182 = vector.shape_cast %181 : vector<1x96x128xbf16> to vector<96x128xbf16>
    %cst_131 = arith.constant dense<0.000000e+00> : vector<18x128xf32>
    %183 = tpu.matmul %180, %182, %cst_131 {dimension_numbers = #tpu.dot_dimension_numbers<[1], [0], [0], [1], [0, 0, 1, 1], [], []>} : vector<18x96xbf16>, vector<96x128xbf16>, vector<18x128xf32> -> vector<18x128xf32>
    %184 = arith.addf %179, %183 : vector<18x128xf32>
    %185 = vector.extract_strided_slice %115 {offsets = [0, 0], sizes = [18, 96], strides = [1, 1]} : vector<20x96xbf16> to vector<18x96xbf16>
    %c3_132 = arith.constant 3 : index
    %c0_133 = arith.constant 0 : index
    %c0_134 = arith.constant 0 : index
    %186 = vector.load %arg6[%c3_132, %c0_133, %c0_134] : memref<9x96x128xbf16, #tpu.memory_space<vmem>>, vector<1x96x128xbf16>
    %187 = vector.shape_cast %186 : vector<1x96x128xbf16> to vector<96x128xbf16>
    %cst_135 = arith.constant dense<0.000000e+00> : vector<18x128xf32>
    %188 = tpu.matmul %185, %187, %cst_135 {dimension_numbers = #tpu.dot_dimension_numbers<[1], [0], [0], [1], [0, 0, 1, 1], [], []>} : vector<18x96xbf16>, vector<96x128xbf16>, vector<18x128xf32> -> vector<18x128xf32>
    %189 = arith.addf %184, %188 : vector<18x128xf32>
    %190 = vector.extract_strided_slice %115 {offsets = [1, 0], sizes = [18, 96], strides = [1, 1]} : vector<20x96xbf16> to vector<18x96xbf16>
    %c4_136 = arith.constant 4 : index
    %c0_137 = arith.constant 0 : index
    %c0_138 = arith.constant 0 : index
    %191 = vector.load %arg6[%c4_136, %c0_137, %c0_138] : memref<9x96x128xbf16, #tpu.memory_space<vmem>>, vector<1x96x128xbf16>
    %192 = vector.shape_cast %191 : vector<1x96x128xbf16> to vector<96x128xbf16>
    %cst_139 = arith.constant dense<0.000000e+00> : vector<18x128xf32>
    %193 = tpu.matmul %190, %192, %cst_139 {dimension_numbers = #tpu.dot_dimension_numbers<[1], [0], [0], [1], [0, 0, 1, 1], [], []>} : vector<18x96xbf16>, vector<96x128xbf16>, vector<18x128xf32> -> vector<18x128xf32>
    %194 = arith.addf %189, %193 : vector<18x128xf32>
    %195 = vector.extract_strided_slice %115 {offsets = [2, 0], sizes = [18, 96], strides = [1, 1]} : vector<20x96xbf16> to vector<18x96xbf16>
    %c5_140 = arith.constant 5 : index
    %c0_141 = arith.constant 0 : index
    %c0_142 = arith.constant 0 : index
    %196 = vector.load %arg6[%c5_140, %c0_141, %c0_142] : memref<9x96x128xbf16, #tpu.memory_space<vmem>>, vector<1x96x128xbf16>
    %197 = vector.shape_cast %196 : vector<1x96x128xbf16> to vector<96x128xbf16>
    %cst_143 = arith.constant dense<0.000000e+00> : vector<18x128xf32>
    %198 = tpu.matmul %195, %197, %cst_143 {dimension_numbers = #tpu.dot_dimension_numbers<[1], [0], [0], [1], [0, 0, 1, 1], [], []>} : vector<18x96xbf16>, vector<96x128xbf16>, vector<18x128xf32> -> vector<18x128xf32>
    %199 = arith.addf %194, %198 : vector<18x128xf32>
    %200 = vector.extract_strided_slice %168 {offsets = [0, 0], sizes = [18, 96], strides = [1, 1]} : vector<20x96xbf16> to vector<18x96xbf16>
    %c6_144 = arith.constant 6 : index
    %c0_145 = arith.constant 0 : index
    %c0_146 = arith.constant 0 : index
    %201 = vector.load %arg6[%c6_144, %c0_145, %c0_146] : memref<9x96x128xbf16, #tpu.memory_space<vmem>>, vector<1x96x128xbf16>
    %202 = vector.shape_cast %201 : vector<1x96x128xbf16> to vector<96x128xbf16>
    %cst_147 = arith.constant dense<0.000000e+00> : vector<18x128xf32>
    %203 = tpu.matmul %200, %202, %cst_147 {dimension_numbers = #tpu.dot_dimension_numbers<[1], [0], [0], [1], [0, 0, 1, 1], [], []>} : vector<18x96xbf16>, vector<96x128xbf16>, vector<18x128xf32> -> vector<18x128xf32>
    %204 = arith.addf %199, %203 : vector<18x128xf32>
    %205 = vector.extract_strided_slice %168 {offsets = [1, 0], sizes = [18, 96], strides = [1, 1]} : vector<20x96xbf16> to vector<18x96xbf16>
    %c7_148 = arith.constant 7 : index
    %c0_149 = arith.constant 0 : index
    %c0_150 = arith.constant 0 : index
    %206 = vector.load %arg6[%c7_148, %c0_149, %c0_150] : memref<9x96x128xbf16, #tpu.memory_space<vmem>>, vector<1x96x128xbf16>
    %207 = vector.shape_cast %206 : vector<1x96x128xbf16> to vector<96x128xbf16>
    %cst_151 = arith.constant dense<0.000000e+00> : vector<18x128xf32>
    %208 = tpu.matmul %205, %207, %cst_151 {dimension_numbers = #tpu.dot_dimension_numbers<[1], [0], [0], [1], [0, 0, 1, 1], [], []>} : vector<18x96xbf16>, vector<96x128xbf16>, vector<18x128xf32> -> vector<18x128xf32>
    %209 = arith.addf %204, %208 : vector<18x128xf32>
    %210 = vector.extract_strided_slice %168 {offsets = [2, 0], sizes = [18, 96], strides = [1, 1]} : vector<20x96xbf16> to vector<18x96xbf16>
    %c8_152 = arith.constant 8 : index
    %c0_153 = arith.constant 0 : index
    %c0_154 = arith.constant 0 : index
    %211 = vector.load %arg6[%c8_152, %c0_153, %c0_154] : memref<9x96x128xbf16, #tpu.memory_space<vmem>>, vector<1x96x128xbf16>
    %212 = vector.shape_cast %211 : vector<1x96x128xbf16> to vector<96x128xbf16>
    %cst_155 = arith.constant dense<0.000000e+00> : vector<18x128xf32>
    %213 = tpu.matmul %210, %212, %cst_155 {dimension_numbers = #tpu.dot_dimension_numbers<[1], [0], [0], [1], [0, 0, 1, 1], [], []>} : vector<18x96xbf16>, vector<96x128xbf16>, vector<18x128xf32> -> vector<18x128xf32>
    %214 = arith.addf %209, %213 : vector<18x128xf32>
    %c0_156 = arith.constant 0 : index
    %c0_157 = arith.constant 0 : index
    %215 = vector.load %arg7[%c0_156, %c0_157] : memref<1x128xf32, #tpu.memory_space<vmem>>, vector<1x128xf32>
    %216 = vector.broadcast %215 : vector<1x128xf32> to vector<18x128xf32>
    %217 = arith.addf %214, %216 : vector<18x128xf32>
    %cst_158 = arith.constant 0.000000e+00 : f32
    %218 = vector.broadcast %cst_158 : f32 to vector<18x128xf32>
    %219 = arith.maximumf %217, %218 : vector<18x128xf32>
    %220 = arith.truncf %219 : vector<18x128xf32> to vector<18x128xbf16>
    %cst_159 = arith.constant 0.000000e+00 : f32
    %221 = vector.broadcast %cst_159 : f32 to vector<1x256xf32>
    %222 = vector.extract_strided_slice %220 {offsets = [0, 0], sizes = [1, 128], strides = [1, 1]} : vector<18x128xbf16> to vector<1x128xbf16>
    %c0_160 = arith.constant 0 : index
    %c0_161 = arith.constant 0 : index
    %c0_162 = arith.constant 0 : index
    %223 = vector.load %arg8[%c0_160, %c0_161, %c0_162] : memref<18x128x256xbf16, #tpu.memory_space<vmem>>, vector<1x128x256xbf16>
    %224 = vector.shape_cast %223 : vector<1x128x256xbf16> to vector<128x256xbf16>
    %cst_163 = arith.constant dense<0.000000e+00> : vector<1x256xf32>
    %225 = tpu.matmul %222, %224, %cst_163 {dimension_numbers = #tpu.dot_dimension_numbers<[1], [0], [0], [1], [0, 0, 1, 1], [], []>} : vector<1x128xbf16>, vector<128x256xbf16>, vector<1x256xf32> -> vector<1x256xf32>
    %226 = arith.addf %221, %225 : vector<1x256xf32>
    %227 = vector.extract_strided_slice %220 {offsets = [1, 0], sizes = [1, 128], strides = [1, 1]} : vector<18x128xbf16> to vector<1x128xbf16>
    %c1_164 = arith.constant 1 : index
    %c0_165 = arith.constant 0 : index
    %c0_166 = arith.constant 0 : index
    %228 = vector.load %arg8[%c1_164, %c0_165, %c0_166] : memref<18x128x256xbf16, #tpu.memory_space<vmem>>, vector<1x128x256xbf16>
    %229 = vector.shape_cast %228 : vector<1x128x256xbf16> to vector<128x256xbf16>
    %cst_167 = arith.constant dense<0.000000e+00> : vector<1x256xf32>
    %230 = tpu.matmul %227, %229, %cst_167 {dimension_numbers = #tpu.dot_dimension_numbers<[1], [0], [0], [1], [0, 0, 1, 1], [], []>} : vector<1x128xbf16>, vector<128x256xbf16>, vector<1x256xf32> -> vector<1x256xf32>
    %231 = arith.addf %226, %230 : vector<1x256xf32>
    %232 = vector.extract_strided_slice %220 {offsets = [2, 0], sizes = [1, 128], strides = [1, 1]} : vector<18x128xbf16> to vector<1x128xbf16>
    %c2_168 = arith.constant 2 : index
    %c0_169 = arith.constant 0 : index
    %c0_170 = arith.constant 0 : index
    %233 = vector.load %arg8[%c2_168, %c0_169, %c0_170] : memref<18x128x256xbf16, #tpu.memory_space<vmem>>, vector<1x128x256xbf16>
    %234 = vector.shape_cast %233 : vector<1x128x256xbf16> to vector<128x256xbf16>
    %cst_171 = arith.constant dense<0.000000e+00> : vector<1x256xf32>
    %235 = tpu.matmul %232, %234, %cst_171 {dimension_numbers = #tpu.dot_dimension_numbers<[1], [0], [0], [1], [0, 0, 1, 1], [], []>} : vector<1x128xbf16>, vector<128x256xbf16>, vector<1x256xf32> -> vector<1x256xf32>
    %236 = arith.addf %231, %235 : vector<1x256xf32>
    %237 = vector.extract_strided_slice %220 {offsets = [3, 0], sizes = [1, 128], strides = [1, 1]} : vector<18x128xbf16> to vector<1x128xbf16>
    %c3_172 = arith.constant 3 : index
    %c0_173 = arith.constant 0 : index
    %c0_174 = arith.constant 0 : index
    %238 = vector.load %arg8[%c3_172, %c0_173, %c0_174] : memref<18x128x256xbf16, #tpu.memory_space<vmem>>, vector<1x128x256xbf16>
    %239 = vector.shape_cast %238 : vector<1x128x256xbf16> to vector<128x256xbf16>
    %cst_175 = arith.constant dense<0.000000e+00> : vector<1x256xf32>
    %240 = tpu.matmul %237, %239, %cst_175 {dimension_numbers = #tpu.dot_dimension_numbers<[1], [0], [0], [1], [0, 0, 1, 1], [], []>} : vector<1x128xbf16>, vector<128x256xbf16>, vector<1x256xf32> -> vector<1x256xf32>
    %241 = arith.addf %236, %240 : vector<1x256xf32>
    %242 = vector.extract_strided_slice %220 {offsets = [4, 0], sizes = [1, 128], strides = [1, 1]} : vector<18x128xbf16> to vector<1x128xbf16>
    %c4_176 = arith.constant 4 : index
    %c0_177 = arith.constant 0 : index
    %c0_178 = arith.constant 0 : index
    %243 = vector.load %arg8[%c4_176, %c0_177, %c0_178] : memref<18x128x256xbf16, #tpu.memory_space<vmem>>, vector<1x128x256xbf16>
    %244 = vector.shape_cast %243 : vector<1x128x256xbf16> to vector<128x256xbf16>
    %cst_179 = arith.constant dense<0.000000e+00> : vector<1x256xf32>
    %245 = tpu.matmul %242, %244, %cst_179 {dimension_numbers = #tpu.dot_dimension_numbers<[1], [0], [0], [1], [0, 0, 1, 1], [], []>} : vector<1x128xbf16>, vector<128x256xbf16>, vector<1x256xf32> -> vector<1x256xf32>
    %246 = arith.addf %241, %245 : vector<1x256xf32>
    %247 = vector.extract_strided_slice %220 {offsets = [5, 0], sizes = [1, 128], strides = [1, 1]} : vector<18x128xbf16> to vector<1x128xbf16>
    %c5_180 = arith.constant 5 : index
    %c0_181 = arith.constant 0 : index
    %c0_182 = arith.constant 0 : index
    %248 = vector.load %arg8[%c5_180, %c0_181, %c0_182] : memref<18x128x256xbf16, #tpu.memory_space<vmem>>, vector<1x128x256xbf16>
    %249 = vector.shape_cast %248 : vector<1x128x256xbf16> to vector<128x256xbf16>
    %cst_183 = arith.constant dense<0.000000e+00> : vector<1x256xf32>
    %250 = tpu.matmul %247, %249, %cst_183 {dimension_numbers = #tpu.dot_dimension_numbers<[1], [0], [0], [1], [0, 0, 1, 1], [], []>} : vector<1x128xbf16>, vector<128x256xbf16>, vector<1x256xf32> -> vector<1x256xf32>
    %251 = arith.addf %246, %250 : vector<1x256xf32>
    %252 = vector.extract_strided_slice %220 {offsets = [6, 0], sizes = [1, 128], strides = [1, 1]} : vector<18x128xbf16> to vector<1x128xbf16>
    %c6_184 = arith.constant 6 : index
    %c0_185 = arith.constant 0 : index
    %c0_186 = arith.constant 0 : index
    %253 = vector.load %arg8[%c6_184, %c0_185, %c0_186] : memref<18x128x256xbf16, #tpu.memory_space<vmem>>, vector<1x128x256xbf16>
    %254 = vector.shape_cast %253 : vector<1x128x256xbf16> to vector<128x256xbf16>
    %cst_187 = arith.constant dense<0.000000e+00> : vector<1x256xf32>
    %255 = tpu.matmul %252, %254, %cst_187 {dimension_numbers = #tpu.dot_dimension_numbers<[1], [0], [0], [1], [0, 0, 1, 1], [], []>} : vector<1x128xbf16>, vector<128x256xbf16>, vector<1x256xf32> -> vector<1x256xf32>
    %256 = arith.addf %251, %255 : vector<1x256xf32>
    %257 = vector.extract_strided_slice %220 {offsets = [7, 0], sizes = [1, 128], strides = [1, 1]} : vector<18x128xbf16> to vector<1x128xbf16>
    %c7_188 = arith.constant 7 : index
    %c0_189 = arith.constant 0 : index
    %c0_190 = arith.constant 0 : index
    %258 = vector.load %arg8[%c7_188, %c0_189, %c0_190] : memref<18x128x256xbf16, #tpu.memory_space<vmem>>, vector<1x128x256xbf16>
    %259 = vector.shape_cast %258 : vector<1x128x256xbf16> to vector<128x256xbf16>
    %cst_191 = arith.constant dense<0.000000e+00> : vector<1x256xf32>
    %260 = tpu.matmul %257, %259, %cst_191 {dimension_numbers = #tpu.dot_dimension_numbers<[1], [0], [0], [1], [0, 0, 1, 1], [], []>} : vector<1x128xbf16>, vector<128x256xbf16>, vector<1x256xf32> -> vector<1x256xf32>
    %261 = arith.addf %256, %260 : vector<1x256xf32>
    %262 = vector.extract_strided_slice %220 {offsets = [8, 0], sizes = [1, 128], strides = [1, 1]} : vector<18x128xbf16> to vector<1x128xbf16>
    %c8_192 = arith.constant 8 : index
    %c0_193 = arith.constant 0 : index
    %c0_194 = arith.constant 0 : index
    %263 = vector.load %arg8[%c8_192, %c0_193, %c0_194] : memref<18x128x256xbf16, #tpu.memory_space<vmem>>, vector<1x128x256xbf16>
    %264 = vector.shape_cast %263 : vector<1x128x256xbf16> to vector<128x256xbf16>
    %cst_195 = arith.constant dense<0.000000e+00> : vector<1x256xf32>
    %265 = tpu.matmul %262, %264, %cst_195 {dimension_numbers = #tpu.dot_dimension_numbers<[1], [0], [0], [1], [0, 0, 1, 1], [], []>} : vector<1x128xbf16>, vector<128x256xbf16>, vector<1x256xf32> -> vector<1x256xf32>
    %266 = arith.addf %261, %265 : vector<1x256xf32>
    %267 = vector.extract_strided_slice %220 {offsets = [9, 0], sizes = [1, 128], strides = [1, 1]} : vector<18x128xbf16> to vector<1x128xbf16>
    %c9 = arith.constant 9 : index
    %c0_196 = arith.constant 0 : index
    %c0_197 = arith.constant 0 : index
    %268 = vector.load %arg8[%c9, %c0_196, %c0_197] : memref<18x128x256xbf16, #tpu.memory_space<vmem>>, vector<1x128x256xbf16>
    %269 = vector.shape_cast %268 : vector<1x128x256xbf16> to vector<128x256xbf16>
    %cst_198 = arith.constant dense<0.000000e+00> : vector<1x256xf32>
    %270 = tpu.matmul %267, %269, %cst_198 {dimension_numbers = #tpu.dot_dimension_numbers<[1], [0], [0], [1], [0, 0, 1, 1], [], []>} : vector<1x128xbf16>, vector<128x256xbf16>, vector<1x256xf32> -> vector<1x256xf32>
    %271 = arith.addf %266, %270 : vector<1x256xf32>
    %272 = vector.extract_strided_slice %220 {offsets = [10, 0], sizes = [1, 128], strides = [1, 1]} : vector<18x128xbf16> to vector<1x128xbf16>
    %c10 = arith.constant 10 : index
    %c0_199 = arith.constant 0 : index
    %c0_200 = arith.constant 0 : index
    %273 = vector.load %arg8[%c10, %c0_199, %c0_200] : memref<18x128x256xbf16, #tpu.memory_space<vmem>>, vector<1x128x256xbf16>
    %274 = vector.shape_cast %273 : vector<1x128x256xbf16> to vector<128x256xbf16>
    %cst_201 = arith.constant dense<0.000000e+00> : vector<1x256xf32>
    %275 = tpu.matmul %272, %274, %cst_201 {dimension_numbers = #tpu.dot_dimension_numbers<[1], [0], [0], [1], [0, 0, 1, 1], [], []>} : vector<1x128xbf16>, vector<128x256xbf16>, vector<1x256xf32> -> vector<1x256xf32>
    %276 = arith.addf %271, %275 : vector<1x256xf32>
    %277 = vector.extract_strided_slice %220 {offsets = [11, 0], sizes = [1, 128], strides = [1, 1]} : vector<18x128xbf16> to vector<1x128xbf16>
    %c11 = arith.constant 11 : index
    %c0_202 = arith.constant 0 : index
    %c0_203 = arith.constant 0 : index
    %278 = vector.load %arg8[%c11, %c0_202, %c0_203] : memref<18x128x256xbf16, #tpu.memory_space<vmem>>, vector<1x128x256xbf16>
    %279 = vector.shape_cast %278 : vector<1x128x256xbf16> to vector<128x256xbf16>
    %cst_204 = arith.constant dense<0.000000e+00> : vector<1x256xf32>
    %280 = tpu.matmul %277, %279, %cst_204 {dimension_numbers = #tpu.dot_dimension_numbers<[1], [0], [0], [1], [0, 0, 1, 1], [], []>} : vector<1x128xbf16>, vector<128x256xbf16>, vector<1x256xf32> -> vector<1x256xf32>
    %281 = arith.addf %276, %280 : vector<1x256xf32>
    %282 = vector.extract_strided_slice %220 {offsets = [12, 0], sizes = [1, 128], strides = [1, 1]} : vector<18x128xbf16> to vector<1x128xbf16>
    %c12 = arith.constant 12 : index
    %c0_205 = arith.constant 0 : index
    %c0_206 = arith.constant 0 : index
    %283 = vector.load %arg8[%c12, %c0_205, %c0_206] : memref<18x128x256xbf16, #tpu.memory_space<vmem>>, vector<1x128x256xbf16>
    %284 = vector.shape_cast %283 : vector<1x128x256xbf16> to vector<128x256xbf16>
    %cst_207 = arith.constant dense<0.000000e+00> : vector<1x256xf32>
    %285 = tpu.matmul %282, %284, %cst_207 {dimension_numbers = #tpu.dot_dimension_numbers<[1], [0], [0], [1], [0, 0, 1, 1], [], []>} : vector<1x128xbf16>, vector<128x256xbf16>, vector<1x256xf32> -> vector<1x256xf32>
    %286 = arith.addf %281, %285 : vector<1x256xf32>
    %287 = vector.extract_strided_slice %220 {offsets = [13, 0], sizes = [1, 128], strides = [1, 1]} : vector<18x128xbf16> to vector<1x128xbf16>
    %c13 = arith.constant 13 : index
    %c0_208 = arith.constant 0 : index
    %c0_209 = arith.constant 0 : index
    %288 = vector.load %arg8[%c13, %c0_208, %c0_209] : memref<18x128x256xbf16, #tpu.memory_space<vmem>>, vector<1x128x256xbf16>
    %289 = vector.shape_cast %288 : vector<1x128x256xbf16> to vector<128x256xbf16>
    %cst_210 = arith.constant dense<0.000000e+00> : vector<1x256xf32>
    %290 = tpu.matmul %287, %289, %cst_210 {dimension_numbers = #tpu.dot_dimension_numbers<[1], [0], [0], [1], [0, 0, 1, 1], [], []>} : vector<1x128xbf16>, vector<128x256xbf16>, vector<1x256xf32> -> vector<1x256xf32>
    %291 = arith.addf %286, %290 : vector<1x256xf32>
    %292 = vector.extract_strided_slice %220 {offsets = [14, 0], sizes = [1, 128], strides = [1, 1]} : vector<18x128xbf16> to vector<1x128xbf16>
    %c14 = arith.constant 14 : index
    %c0_211 = arith.constant 0 : index
    %c0_212 = arith.constant 0 : index
    %293 = vector.load %arg8[%c14, %c0_211, %c0_212] : memref<18x128x256xbf16, #tpu.memory_space<vmem>>, vector<1x128x256xbf16>
    %294 = vector.shape_cast %293 : vector<1x128x256xbf16> to vector<128x256xbf16>
    %cst_213 = arith.constant dense<0.000000e+00> : vector<1x256xf32>
    %295 = tpu.matmul %292, %294, %cst_213 {dimension_numbers = #tpu.dot_dimension_numbers<[1], [0], [0], [1], [0, 0, 1, 1], [], []>} : vector<1x128xbf16>, vector<128x256xbf16>, vector<1x256xf32> -> vector<1x256xf32>
    %296 = arith.addf %291, %295 : vector<1x256xf32>
    %297 = vector.extract_strided_slice %220 {offsets = [15, 0], sizes = [1, 128], strides = [1, 1]} : vector<18x128xbf16> to vector<1x128xbf16>
    %c15 = arith.constant 15 : index
    %c0_214 = arith.constant 0 : index
    %c0_215 = arith.constant 0 : index
    %298 = vector.load %arg8[%c15, %c0_214, %c0_215] : memref<18x128x256xbf16, #tpu.memory_space<vmem>>, vector<1x128x256xbf16>
    %299 = vector.shape_cast %298 : vector<1x128x256xbf16> to vector<128x256xbf16>
    %cst_216 = arith.constant dense<0.000000e+00> : vector<1x256xf32>
    %300 = tpu.matmul %297, %299, %cst_216 {dimension_numbers = #tpu.dot_dimension_numbers<[1], [0], [0], [1], [0, 0, 1, 1], [], []>} : vector<1x128xbf16>, vector<128x256xbf16>, vector<1x256xf32> -> vector<1x256xf32>
    %301 = arith.addf %296, %300 : vector<1x256xf32>
    %302 = vector.extract_strided_slice %220 {offsets = [16, 0], sizes = [1, 128], strides = [1, 1]} : vector<18x128xbf16> to vector<1x128xbf16>
    %c16 = arith.constant 16 : index
    %c0_217 = arith.constant 0 : index
    %c0_218 = arith.constant 0 : index
    %303 = vector.load %arg8[%c16, %c0_217, %c0_218] : memref<18x128x256xbf16, #tpu.memory_space<vmem>>, vector<1x128x256xbf16>
    %304 = vector.shape_cast %303 : vector<1x128x256xbf16> to vector<128x256xbf16>
    %cst_219 = arith.constant dense<0.000000e+00> : vector<1x256xf32>
    %305 = tpu.matmul %302, %304, %cst_219 {dimension_numbers = #tpu.dot_dimension_numbers<[1], [0], [0], [1], [0, 0, 1, 1], [], []>} : vector<1x128xbf16>, vector<128x256xbf16>, vector<1x256xf32> -> vector<1x256xf32>
    %306 = arith.addf %301, %305 : vector<1x256xf32>
    %307 = vector.extract_strided_slice %220 {offsets = [17, 0], sizes = [1, 128], strides = [1, 1]} : vector<18x128xbf16> to vector<1x128xbf16>
    %c17 = arith.constant 17 : index
    %c0_220 = arith.constant 0 : index
    %c0_221 = arith.constant 0 : index
    %308 = vector.load %arg8[%c17, %c0_220, %c0_221] : memref<18x128x256xbf16, #tpu.memory_space<vmem>>, vector<1x128x256xbf16>
    %309 = vector.shape_cast %308 : vector<1x128x256xbf16> to vector<128x256xbf16>
    %cst_222 = arith.constant dense<0.000000e+00> : vector<1x256xf32>
    %310 = tpu.matmul %307, %309, %cst_222 {dimension_numbers = #tpu.dot_dimension_numbers<[1], [0], [0], [1], [0, 0, 1, 1], [], []>} : vector<1x128xbf16>, vector<128x256xbf16>, vector<1x256xf32> -> vector<1x256xf32>
    %311 = arith.addf %306, %310 : vector<1x256xf32>
    %c0_223 = arith.constant 0 : index
    %c0_224 = arith.constant 0 : index
    %312 = vector.load %arg9[%c0_223, %c0_224] : memref<1x256xf32, #tpu.memory_space<vmem>>, vector<1x256xf32>
    %313 = arith.addf %311, %312 : vector<1x256xf32>
    %cst_225 = arith.constant 0.000000e+00 : f32
    %314 = vector.broadcast %cst_225 : f32 to vector<1x256xf32>
    %315 = arith.maximumf %313, %314 : vector<1x256xf32>
    %316 = arith.truncf %315 : vector<1x256xf32> to vector<1x256xbf16>
    %c0_226 = arith.constant 0 : index
    %c0_227 = arith.constant 0 : index
    %317 = vector.load %arg10[%c0_226, %c0_227] : memref<256x128xbf16, #tpu.memory_space<vmem>>, vector<256x128xbf16>
    %cst_228 = arith.constant dense<0.000000e+00> : vector<1x128xf32>
    %318 = tpu.matmul %316, %317, %cst_228 {dimension_numbers = #tpu.dot_dimension_numbers<[1], [0], [0], [1], [0, 0, 1, 1], [], []>} : vector<1x256xbf16>, vector<256x128xbf16>, vector<1x128xf32> -> vector<1x128xf32>
    %c0_229 = arith.constant 0 : index
    %c0_230 = arith.constant 0 : index
    %319 = vector.load %arg11[%c0_229, %c0_230] : memref<1x128xf32, #tpu.memory_space<vmem>>, vector<1x128xf32>
    %320 = arith.addf %318, %319 : vector<1x128xf32>
    %cst_231 = arith.constant 0.000000e+00 : f32
    %321 = vector.broadcast %cst_231 : f32 to vector<1x128xf32>
    %322 = arith.maximumf %320, %321 : vector<1x128xf32>
    %323 = arith.truncf %322 : vector<1x128xf32> to vector<1x128xbf16>
    %c0_232 = arith.constant 0 : index
    %c0_233 = arith.constant 0 : index
    %324 = vector.load %arg12[%c0_232, %c0_233] : memref<128x64xbf16, #tpu.memory_space<vmem>>, vector<128x64xbf16>
    %cst_234 = arith.constant dense<0.000000e+00> : vector<1x64xf32>
    %325 = tpu.matmul %323, %324, %cst_234 {dimension_numbers = #tpu.dot_dimension_numbers<[1], [0], [0], [1], [0, 0, 1, 1], [], []>} : vector<1x128xbf16>, vector<128x64xbf16>, vector<1x64xf32> -> vector<1x64xf32>
    %c0_235 = arith.constant 0 : index
    %c0_236 = arith.constant 0 : index
    %326 = vector.load %arg13[%c0_235, %c0_236] : memref<1x64xf32, #tpu.memory_space<vmem>>, vector<1x64xf32>
    %327 = arith.addf %325, %326 : vector<1x64xf32>
    %cst_237 = arith.constant 0.000000e+00 : f32
    %328 = vector.broadcast %cst_237 : f32 to vector<1x64xf32>
    %329 = arith.maximumf %327, %328 : vector<1x64xf32>
    %330 = arith.truncf %329 : vector<1x64xf32> to vector<1x64xbf16>
    %c0_238 = arith.constant 0 : index
    %c0_239 = arith.constant 0 : index
    %331 = vector.load %arg14[%c0_238, %c0_239] : memref<64x128xbf16, #tpu.memory_space<vmem>>, vector<64x128xbf16>
    %cst_240 = arith.constant dense<0.000000e+00> : vector<1x128xf32>
    %332 = tpu.matmul %330, %331, %cst_240 {dimension_numbers = #tpu.dot_dimension_numbers<[1], [0], [0], [1], [0, 0, 1, 1], [], []>} : vector<1x64xbf16>, vector<64x128xbf16>, vector<1x128xf32> -> vector<1x128xf32>
    %c0_241 = arith.constant 0 : index
    %c0_242 = arith.constant 0 : index
    %333 = vector.load %arg15[%c0_241, %c0_242] : memref<1x128xf32, #tpu.memory_space<vmem>>, vector<1x128xf32>
    %334 = arith.addf %332, %333 : vector<1x128xf32>
    %c0_243 = arith.constant 0 : index
    %c0_244 = arith.constant 0 : index
    %c0_245 = arith.constant 0 : index
    %335 = vector.load %arg16[%c0_243, %c0_244, %c0_245] : memref<1x1x128xf32, #tpu.memory_space<vmem>>, vector<1x1x128xf32>
    %336 = vector.shape_cast %335 : vector<1x1x128xf32> to vector<1x128xf32>
    %337 = vector.shape_cast %334 : vector<1x128xf32> to vector<1x1x128xf32>
    tpu.vector_store %arg16[%c0_243, %c0_244, %c0_245], %337 {strides = array<i32>} : memref<1x1x128xf32, #tpu.memory_space<vmem>>, vector<1x1x128xf32>,
    return
  }
  func.func @transform_0(%arg0: i32) -> (i32, i32, i32) {
    %c0_i32 = arith.constant 0 : i32
    %c0_i32_0 = arith.constant 0 : i32
    %c0_i32_1 = arith.constant 0 : i32
    return %arg0, %c0_i32, %c0_i32_0 : i32, i32, i32
  }
  func.func @transform_1(%arg0: i32) -> (i32, i32) {
    %c0_i32 = arith.constant 0 : i32
    %c0_i32_0 = arith.constant 0 : i32
    %c0_i32_1 = arith.constant 0 : i32
    return %c0_i32, %c0_i32_0 : i32, i32
  }
  func.func @transform_2(%arg0: i32) -> (i32, i32) {
    %c0_i32 = arith.constant 0 : i32
    %c0_i32_0 = arith.constant 0 : i32
    %c0_i32_1 = arith.constant 0 : i32
    return %c0_i32, %c0_i32_0 : i32, i32
  }
  func.func @transform_3(%arg0: i32) -> (i32, i32, i32) {
    %c0_i32 = arith.constant 0 : i32
    %c0_i32_0 = arith.constant 0 : i32
    %c0_i32_1 = arith.constant 0 : i32
    %c0_i32_2 = arith.constant 0 : i32
    return %c0_i32, %c0_i32_0, %c0_i32_1 : i32, i32, i32
  }
  func.func @transform_4(%arg0: i32) -> (i32, i32) {
    %c0_i32 = arith.constant 0 : i32
    %c0_i32_0 = arith.constant 0 : i32
    %c0_i32_1 = arith.constant 0 : i32
    return %c0_i32, %c0_i32_0 : i32, i32
  }
  func.func @transform_5(%arg0: i32) -> (i32, i32, i32) {
    %c0_i32 = arith.constant 0 : i32
    %c0_i32_0 = arith.constant 0 : i32
    %c0_i32_1 = arith.constant 0 : i32
    %c0_i32_2 = arith.constant 0 : i32
    return %c0_i32, %c0_i32_0, %c0_i32_1 : i32, i32, i32
  }
  func.func @transform_6(%arg0: i32) -> (i32, i32) {
    %c0_i32 = arith.constant 0 : i32
    %c0_i32_0 = arith.constant 0 : i32
    %c0_i32_1 = arith.constant 0 : i32
    return %c0_i32, %c0_i32_0 : i32, i32
  }
  func.func @transform_7(%arg0: i32) -> (i32, i32, i32) {
    %c0_i32 = arith.constant 0 : i32
    %c0_i32_0 = arith.constant 0 : i32
    %c0_i32_1 = arith.constant 0 : i32
    %c0_i32_2 = arith.constant 0 : i32
    return %c0_i32, %c0_i32_0, %c0_i32_1 : i32, i32, i32
  }
  func.func @transform_8(%arg0: i32) -> (i32, i32) {
    %c0_i32 = arith.constant 0 : i32
    %c0_i32_0 = arith.constant 0 : i32
    %c0_i32_1 = arith.constant 0 : i32
    return %c0_i32, %c0_i32_0 : i32, i32
  }
  func.func @transform_9(%arg0: i32) -> (i32, i32) {
    %c0_i32 = arith.constant 0 : i32
    %c0_i32_0 = arith.constant 0 : i32
    %c0_i32_1 = arith.constant 0 : i32
    return %c0_i32, %c0_i32_0 : i32, i32
  }
  func.func @transform_10(%arg0: i32) -> (i32, i32) {
    %c0_i32 = arith.constant 0 : i32
    %c0_i32_0 = arith.constant 0 : i32
    %c0_i32_1 = arith.constant 0 : i32
    return %c0_i32, %c0_i32_0 : i32, i32
  }
  func.func @transform_11(%arg0: i32) -> (i32, i32) {
    %c0_i32 = arith.constant 0 : i32
    %c0_i32_0 = arith.constant 0 : i32
    %c0_i32_1 = arith.constant 0 : i32
    return %c0_i32, %c0_i32_0 : i32, i32
  }
  func.func @transform_12(%arg0: i32) -> (i32, i32) {
    %c0_i32 = arith.constant 0 : i32
    %c0_i32_0 = arith.constant 0 : i32
    %c0_i32_1 = arith.constant 0 : i32
    return %c0_i32, %c0_i32_0 : i32, i32
  }
  func.func @transform_13(%arg0: i32) -> (i32, i32) {
    %c0_i32 = arith.constant 0 : i32
    %c0_i32_0 = arith.constant 0 : i32
    %c0_i32_1 = arith.constant 0 : i32
    return %c0_i32, %c0_i32_0 : i32, i32
  }
  func.func @transform_14(%arg0: i32) -> (i32, i32) {
    %c0_i32 = arith.constant 0 : i32
    %c0_i32_0 = arith.constant 0 : i32
    %c0_i32_1 = arith.constant 0 : i32
    return %c0_i32, %c0_i32_0 : i32, i32
  }
  func.func @transform_15(%arg0: i32) -> (i32, i32, i32) {
    %c0_i32 = arith.constant 0 : i32
    %c0_i32_0 = arith.constant 0 : i32
    %c0_i32_1 = arith.constant 0 : i32
    return %arg0, %c0_i32, %c0_i32_0 : i32, i32, i32
  }
}

</mosaic_0001>

<bundles_post_ra>
// kernel: integrated_nn2_forward.3
= control target key start
LH: loop header
LB: loop body
LE: loop exit
PB: predicated region body
PF: predicated region fallthrough
CT: control target
= control target key end

     0   :  { %s3887_s12 = smov 0   ;;  %s4990_s0 = inlined_call_operand.vmem [shape: bf16[4186,45], index: 0, kind: input, shape index: {}]   ;;  %s4991_s1 = inlined_call_operand.vmem [shape: bf16[45,32], index: 1, kind: input, shape index: {}]   ;;  %s4992_s2 = inlined_call_operand.vmem [shape: f32[1,32], index: 2, kind: input, shape index: {}]   ;;  %s4993_s3 = inlined_call_operand.vmem [shape: bf16[4186,32], index: 3, kind: output, shape index: {}]  }
   0x1 LB: > { %s3027_s13 = sadd.s32 4294967295, %s3864_s12   ;;  %p3031_p0 = scmp.ge.s32.totalorder %s3864_s12, 1  ;;  %s3864_s12 = sphi %s3887_s12, %s13_s12  }
   0x2   : > { %p138_p1 = scmp.lt.s32.totalorder %s3864_s12, 3 }
   0x4   : > { %p139_p2 = pnand %p3031_p0, %p138_p1 }
   0x5   : > { %s162_s18 = smul.u32 (!%p139_p2), 262, %s3027_s13 }
   0x6   : > { %142 = sbr.rel (%p139_p2) target bundleno = 688 (0x2b0), region = 32 }
   0x7   : > { %p163_p3 = scmp.lt.s32.totalorder (!%p139_p2), %s162_s18, 523 }
   0xb   : > { %v3568_v0 = vld [vmem:[%s4991_s1 + $0x10] sm:$0xf]  ;;  %v3836_v1 = vld [vmem:[%s4991_s1 + $0x10] sm:$0x70]  ;;  %vm1513_vm0 = vcmask 1045504   ;;  %vm1514_vm1 = vcmask 1046528  }
   0xc   : > { %v3569_v2 = vor.u32 %v3836_v1, %v3568_v0  ;;  %v3866_v3 = vmov 65535   ;;  %s4995_s18 = smov (!%p163_p3, %s162_s18), 523  ;;  %v3835_v7 = vld [vmem:[%s4991_s1 + $0x8] sm:$0xff]  ;;  %v3834_v8 = vld [vmem:[%s4991_s1] sm:$0xff]  ;;  %vm1119_vm2 = vcmask 367616   ;;  %vm2708_vm3 = vcmask 257024  }
   0xd   : > { %v1515_v4 = vsel %vm1513_vm0, 4294967295, %v3866_v3  ;;  %s3032_s21 = sshll.u32 %s4995_s18, 2  ;;  %v3984_v41 = vld [vmem:[%s4992_s2] ss:$0 sm:$0xff] }
   0xe   : > { %v1516_v5 = vsel %vm1514_vm1, %v1515_v4, 0  ;;  %s3915_s26 = scalar_lea.vmem %s4990_s0, %s3032_s21  ;;  %s3999_s4 = scalar_lea.vmem %s4993_s3, %s3032_s21 }
   0xf   : > { %v1518_v6 = vand.u32 %v3569_v2, %v1516_v5  ;;  %v3703_v9 = vld [vmem:[%s3915_s26] sm:$0xff]  ;;  %v3736_v10 = vld [vmem:[%s3915_s26 + $0x108] sm:$0xff]  ;;  %v3769_v11 = vld [vmem:[%s3915_s26 + $0x210] sm:$0xff] }
  0x10   : > { %v3802_v12 = vld [vmem:[%s3915_s26 + $0x318] sm:$0xff]  ;;  %v3704_v13 = vld [vmem:[%s3915_s26 + $0x8] sm:$0xff]  ;;  %v3737_v14 = vld [vmem:[%s3915_s26 + $0x110] sm:$0xff] }
  0x11   : > { %1525 = vmatpush.bf16.msra.mxu0 %v1518_v6  ;;  %3837 = vmatpush.bf16.msra.mxu1 %v1518_v6  ;;  %v3770_v15 = vld [vmem:[%s3915_s26 + $0x218] sm:$0xff]  ;;  %v3803_v16 = vld [vmem:[%s3915_s26 + $0x320] sm:$0xff]  ;;  %v3705_v17 = vld [vmem:[%s3915_s26 + $0x10] sm:$0xff] }
  0x12   : > { %3838 = vmatpush.bf16.msra.mxu2 %v1518_v6  ;;  %3839 = vmatpush.bf16.msra.mxu3 %v1518_v6  ;;  %v3738_v18 = vld [vmem:[%s3915_s26 + $0x118] sm:$0xff]  ;;  %v3771_v19 = vld [vmem:[%s3915_s26 + $0x220] sm:$0xff]  ;;  %v3804_v20 = vld [vmem:[%s3915_s26 + $0x328] sm:$0xff] }
  0x13   : > { %v3706_v21 = vld [vmem:[%s3915_s26 + $0x18] sm:$0xff]  ;;  %v3739_v22 = vld [vmem:[%s3915_s26 + $0x120] sm:$0xff]  ;;  %v3772_v23 = vld [vmem:[%s3915_s26 + $0x228] sm:$0xff] }
  0x14   : > { %v3805_v24 = vld [vmem:[%s3915_s26 + $0x330] sm:$0xff]  ;;  %v3707_v25 = vld [vmem:[%s3915_s26 + $0x20] sm:$0xff]  ;;  %v3740_v26 = vld [vmem:[%s3915_s26 + $0x128] sm:$0xff] }
  0x15   : > { %1526 = vmatpush.bf16.msra.mxu0 %v3835_v7  ;;  %3840 = vmatpush.bf16.msra.mxu1 %v3835_v7  ;;  %v3773_v27 = vld [vmem:[%s3915_s26 + $0x230] sm:$0xff]  ;;  %v3806_v28 = vld [vmem:[%s3915_s26 + $0x338] sm:$0xff]  ;;  %v3708_v29 = vld [vmem:[%s3915_s26 + $0x28] sm:$0xff] }
  0x16   : > { %3841 = vmatpush.bf16.msra.mxu2 %v3835_v7  ;;  %3842 = vmatpush.bf16.msra.mxu3 %v3835_v7  ;;  %v3741_v30 = vld [vmem:[%s3915_s26 + $0x130] sm:$0xff]  ;;  %v3774_v31 = vld [vmem:[%s3915_s26 + $0x238] sm:$0xff]  ;;  %v3807_v32 = vld [vmem:[%s3915_s26 + $0x340] sm:$0xff] }
  0x17   : > { %v3709_v33 = vld [vmem:[%s3915_s26 + $0x30] sm:$0xff]  ;;  %v3742_v34 = vld [vmem:[%s3915_s26 + $0x138] sm:$0xff]  ;;  %v3775_v35 = vld [vmem:[%s3915_s26 + $0x240] sm:$0xff] }
  0x18   : > { %v3808_v36 = vld [vmem:[%s3915_s26 + $0x348] sm:$0xff]  ;;  %v3710_v37 = vld [vmem:[%s3915_s26 + $0x38] sm:$0xff]  ;;  %v3743_v38 = vld [vmem:[%s3915_s26 + $0x140] sm:$0xff] }
  0x19   : > { %1527 = vmatpush.bf16.msra.mxu0 %v3834_v8  ;;  %3843 = vmatpush.bf16.msra.mxu1 %v3834_v8  ;;  %v3776_v39 = vld [vmem:[%s3915_s26 + $0x248] sm:$0xff]  ;;  %v3809_v40 = vld [vmem:[%s3915_s26 + $0x350] sm:$0xff]  ;;  %v3711_v42 = vld [vmem:[%s3915_s26 + $0x40] sm:$0xff] }
  0x1a   : > { %3844 = vmatpush.bf16.msra.mxu2 %v3834_v8  ;;  %3845 = vmatpush.bf16.msra.mxu3 %v3834_v8  ;;  %v3744_v43 = vld [vmem:[%s3915_s26 + $0x148] sm:$0xff]  ;;  %v3777_v46 = vld [vmem:[%s3915_s26 + $0x250] sm:$0xff]  ;;  %v3810_v47 = vld [vmem:[%s3915_s26 + $0x358] sm:$0xff] }
  0x1b   : > { %v3712_v7 = vld [vmem:[%s3915_s26 + $0x48] sm:$0xff]  ;;  %v3745_v8 = vld [vmem:[%s3915_s26 + $0x150] sm:$0xff] }
  0x1c   : > { %3570 = vmatmul.msk.bf16.vlgmr.msra.gmra.mxu0 %vm1119_vm2, %v3703_v9  ;;  %3603 = vmatmul.msk.bf16.vlgmr.msra.gmra.mxu1 %vm1119_vm2, %v3736_v10 }
  0x1d   : > { %3636 = vmatmul.msk.bf16.vlgmr.msra.gmra.mxu2 %vm1119_vm2, %v3769_v11  ;;  %3669 = vmatmul.msk.bf16.vlgmr.msra.gmra.mxu3 %vm1119_vm2, %v3802_v12 }
  0x2c   : > { %3571 = vmatmul.msk.bf16.gmra.mxu0 %vm1119_vm2, %v3704_v13  ;;  %3604 = vmatmul.msk.bf16.gmra.mxu1 %vm1119_vm2, %v3737_v14  ;;  %v3778_v13 = vld [vmem:[%s3915_s26 + $0x258] sm:$0xff] }
  0x2d   : > { %3637 = vmatmul.msk.bf16.gmra.mxu2 %vm1119_vm2, %v3770_v15  ;;  %3670 = vmatmul.msk.bf16.gmra.mxu3 %vm1119_vm2, %v3803_v16  ;;  %v3811_v15 = vld [vmem:[%s3915_s26 + $0x360] sm:$0xff] }
  0x3c   : > { %3572 = vmatmul.msk.bf16.gmra.mxu0 %vm1119_vm2, %v3705_v17  ;;  %3605 = vmatmul.msk.bf16.gmra.mxu1 %vm1119_vm2, %v3738_v18 }
  0x3d   : > { %3638 = vmatmul.msk.bf16.gmra.mxu2 %vm1119_vm2, %v3771_v19  ;;  %3671 = vmatmul.msk.bf16.gmra.mxu3 %vm1119_vm2, %v3804_v20 }
  0x4c   : > { %3573 = vmatmul.msk.bf16.gmra.mxu0 %vm1119_vm2, %v3706_v21  ;;  %3606 = vmatmul.msk.bf16.gmra.mxu1 %vm1119_vm2, %v3739_v22 }
  0x4d   : > { %3639 = vmatmul.msk.bf16.gmra.mxu2 %vm1119_vm2, %v3772_v23  ;;  %3672 = vmatmul.msk.bf16.gmra.mxu3 %vm1119_vm2, %v3805_v24 }
  0x5c   : > { %3574 = vmatmul.msk.bf16.gmra.mxu0 %vm1119_vm2, %v3707_v25  ;;  %3607 = vmatmul.msk.bf16.gmra.mxu1 %vm1119_vm2, %v3740_v26 }
  0x5d   : > { %3640 = vmatmul.msk.bf16.gmra.mxu2 %vm1119_vm2, %v3773_v27  ;;  %3673 = vmatmul.msk.bf16.gmra.mxu3 %vm1119_vm2, %v3806_v28 }
  0x6c   : > { %3575 = vmatmul.msk.bf16.gmra.mxu0 %vm1119_vm2, %v3708_v29  ;;  %3608 = vmatmul.msk.bf16.gmra.mxu1 %vm1119_vm2, %v3741_v30 }
  0x6d   : > { %3641 = vmatmul.msk.bf16.gmra.mxu2 %vm1119_vm2, %v3774_v31  ;;  %3674 = vmatmul.msk.bf16.gmra.mxu3 %vm1119_vm2, %v3807_v32 }
  0x7c   : > { %3576 = vmatmul.msk.bf16.gmra.mxu0 %vm1119_vm2, %v3709_v33  ;;  %3609 = vmatmul.msk.bf16.gmra.mxu1 %vm1119_vm2, %v3742_v34 }
  0x7d   : > { %3642 = vmatmul.msk.bf16.gmra.mxu2 %vm1119_vm2, %v3775_v35  ;;  %3675 = vmatmul.msk.bf16.gmra.mxu3 %vm1119_vm2, %v3808_v36 }
  0x8c   : > { %3577 = vmatmul.msk.bf16.gmra.mxu0 %vm1119_vm2, %v3710_v37  ;;  %3610 = vmatmul.msk.bf16.gmra.mxu1 %vm1119_vm2, %v3743_v38 }
  0x8d   : > { %3643 = vmatmul.msk.bf16.gmra.mxu2 %vm1119_vm2, %v3776_v39  ;;  %3676 = vmatmul.msk.bf16.gmra.mxu3 %vm1119_vm2, %v3809_v40 }
  0x99   : > { %v1529_v44 = vpop.f32.mrf.mxu0  ;;  %v1694_v45 = vpop.f32.mrf.mxu1 }
  0x9a   : > { %v1530_v48 = vadd.f32 %v3984_v41, %v1529_v44  ;;  %v1695_v49 = vadd.f32 %v3984_v41, %v1694_v45  ;;  %v3713_v44 = vld [vmem:[%s3915_s26 + $0x50] sm:$0xff]  ;;  %v3746_v45 = vld [vmem:[%s3915_s26 + $0x158] sm:$0xff] }
  0x9c   : > { %v2184_v50 = vmax.f32 %v1530_v48, 0.0  ;;  %v2250_v51 = vmax.f32 %v1695_v49, 0.0  ;;  %3578 = vmatmul.msk.bf16.gmra.mxu0 %vm1119_vm2, %v3711_v42  ;;  %3611 = vmatmul.msk.bf16.gmra.mxu1 %vm1119_vm2, %v3744_v43 }
  0x9d   : > { %3644 = vmatmul.msk.bf16.gmra.mxu2 %vm1119_vm2, %v3777_v46  ;;  %3677 = vmatmul.msk.bf16.gmra.mxu3 %vm1119_vm2, %v3810_v47 }
  0x9e   : > { %v2446_v52 = vpack.c.bf16 %v2184_v50, %v2184_v50  ;;  %v2512_v53 = vpack.c.bf16 %v2250_v51, %v2250_v51  ;;  %v3779_v50 = vld [vmem:[%s3915_s26 + $0x260] sm:$0xff] }
  0xa0   : > { %2709 = vst.msk [vmem:[%s3999_s4] sm:$0xf] %vm2708_vm3, %v2446_v52  ;;  %v1859_v54 = vpop.f32.mrf.mxu2  ;;  %v2024_v55 = vpop.f32.mrf.mxu3  ;;  %v3812_v52 = vld [vmem:[%s3915_s26 + $0x368] sm:$0xff] }
  0xa1   : > { %2775 = vst.msk [vmem:[%s3999_s4 + $0x108] sm:$0xf] %vm2708_vm3, %v2512_v53  ;;  %v1860_v56 = vadd.f32 %v3984_v41, %v1859_v54  ;;  %v1531_v57 = vpop.f32.mrf.mxu0  ;;  %v1696_v58 = vpop.f32.mrf.mxu1  ;;  %v2025_v59 = vadd.f32 %v3984_v41, %v2024_v55 }
  0xa2   : > { %v1532_v60 = vadd.f32 %v3984_v41, %v1531_v57  ;;  %v1697_v61 = vadd.f32 %v3984_v41, %v1696_v58 }
  0xa3   : > { %v2316_v62 = vmax.f32 %v1860_v56, 0.0  ;;  %v2382_v63 = vmax.f32 %v2025_v59, 0.0 }
  0xa4   : > { %v2185_v0 = vmax.f32 %v1532_v60, 0.0  ;;  %v2251_v1 = vmax.f32 %v1697_v61, 0.0 }
  0xa5   : > { %v2578_v2 = vpack.c.bf16 %v2316_v62, %v2316_v62  ;;  %v2644_v5 = vpack.c.bf16 %v2382_v63, %v2382_v63 }
  0xa6   : > { %v2447_v3 = vpack.c.bf16 %v2185_v0, %v2185_v0  ;;  %v2513_v4 = vpack.c.bf16 %v2251_v1, %v2251_v1 }
  0xa7   : > { %2841 = vst.msk [vmem:[%s3999_s4 + $0x210] sm:$0xf] %vm2708_vm3, %v2578_v2 }
  0xa8   : > { %2710 = vst.msk [vmem:[%s3999_s4 + $0x4] sm:$0xf] %vm2708_vm3, %v2447_v3  ;;  %v1861_v6 = vpop.f32.mrf.mxu2  ;;  %v2026_v9 = vpop.f32.mrf.mxu3 }
  0xa9   : > { %2776 = vst.msk [vmem:[%s3999_s4 + $0x10c] sm:$0xf] %vm2708_vm3, %v2513_v4  ;;  %v1862_v10 = vadd.f32 %v3984_v41, %v1861_v6  ;;  %v1534_v11 = vpop.f32.mrf.mxu0  ;;  %v1699_v12 = vpop.f32.mrf.mxu1  ;;  %v2027_v14 = vadd.f32 %v3984_v41, %v2026_v9 }
  0xaa   : > { %2907 = vst.msk [vmem:[%s3999_s4 + $0x318] sm:$0xf] %vm2708_vm3, %v2644_v5  ;;  %v1535_v16 = vadd.f32 %v3984_v41, %v1534_v11  ;;  %v1700_v17 = vadd.f32 %v3984_v41, %v1699_v12 }
  0xab   : > { %v2317_v18 = vmax.f32 %v1862_v10, 0.0  ;;  %v2383_v19 = vmax.f32 %v2027_v14, 0.0 }
  0xac   : > { %v2186_v20 = vmax.f32 %v1535_v16, 0.0  ;;  %v2252_v21 = vmax.f32 %v1700_v17, 0.0  ;;  %3579 = vmatmul.msk.bf16.gmra.mxu0 %vm1119_vm2, %v3712_v7  ;;  %3612 = vmatmul.msk.bf16.gmra.mxu1 %vm1119_vm2, %v3745_v8  ;;  %v3714_v16 = vld [vmem:[%s3915_s26 + $0x58] sm:$0xff]  ;;  %v3747_v17 = vld [vmem:[%s3915_s26 + $0x160] sm:$0xff] }
  0xad   : > { %v2579_v22 = vpack.c.bf16 %v2317_v18, %v2317_v18  ;;  %3645 = vmatmul.msk.bf16.gmra.mxu2 %vm1119_vm2, %v3778_v13  ;;  %3678 = vmatmul.msk.bf16.gmra.mxu3 %vm1119_vm2, %v3811_v15  ;;  %v2645_v25 = vpack.c.bf16 %v2383_v19, %v2383_v19 }
  0xae   : > { %v2448_v23 = vpack.c.bf16 %v2186_v20, %v2186_v20  ;;  %v2514_v24 = vpack.c.bf16 %v2252_v21, %v2252_v21 }
  0xaf   : > { %2842 = vst.msk [vmem:[%s3999_s4 + $0x214] sm:$0xf] %vm2708_vm3, %v2579_v22  ;;  %v3780_v22 = vld [vmem:[%s3915_s26 + $0x268] sm:$0xff] }
  0xb0   : > { %2711 = vst.msk [vmem:[%s3999_s4 + $0x8] sm:$0xf] %vm2708_vm3, %v2448_v23  ;;  %v1864_v26 = vpop.f32.mrf.mxu2  ;;  %v2029_v27 = vpop.f32.mrf.mxu3 }
  0xb1   : > { %2777 = vst.msk [vmem:[%s3999_s4 + $0x110] sm:$0xf] %vm2708_vm3, %v2514_v24  ;;  %v1865_v28 = vadd.f32 %v3984_v41, %v1864_v26  ;;  %v1536_v29 = vpop.f32.mrf.mxu0  ;;  %v1701_v30 = vpop.f32.mrf.mxu1  ;;  %v2030_v31 = vadd.f32 %v3984_v41, %v2029_v27  ;;  %v3813_v24 = vld [vmem:[%s3915_s26 + $0x370] sm:$0xff] }
  0xb2   : > { %2908 = vst.msk [vmem:[%s3999_s4 + $0x31c] sm:$0xf] %vm2708_vm3, %v2645_v25  ;;  %v1537_v32 = vadd.f32 %v3984_v41, %v1536_v29  ;;  %v1702_v33 = vadd.f32 %v3984_v41, %v1701_v30 }
  0xb3   : > { %v2318_v34 = vmax.f32 %v1865_v28, 0.0  ;;  %v2384_v35 = vmax.f32 %v2030_v31, 0.0 }
  0xb4   : > { %v2187_v36 = vmax.f32 %v1537_v32, 0.0  ;;  %v2253_v37 = vmax.f32 %v1702_v33, 0.0 }
  0xb5   : > { %v2580_v38 = vpack.c.bf16 %v2318_v34, %v2318_v34  ;;  %v2646_v42 = vpack.c.bf16 %v2384_v35, %v2384_v35 }
  0xb6   : > { %v2449_v39 = vpack.c.bf16 %v2187_v36, %v2187_v36  ;;  %v2515_v40 = vpack.c.bf16 %v2253_v37, %v2253_v37 }
  0xb7   : > { %2843 = vst.msk [vmem:[%s3999_s4 + $0x218] sm:$0xf] %vm2708_vm3, %v2580_v38 }
  0xb8   : > { %2712 = vst.msk [vmem:[%s3999_s4 + $0xc] sm:$0xf] %vm2708_vm3, %v2449_v39  ;;  %v1866_v43 = vpop.f32.mrf.mxu2  ;;  %v2031_v46 = vpop.f32.mrf.mxu3 }
  0xb9   : > { %2778 = vst.msk [vmem:[%s3999_s4 + $0x114] sm:$0xf] %vm2708_vm3, %v2515_v40  ;;  %v1867_v47 = vadd.f32 %v3984_v41, %v1866_v43  ;;  %v1539_v48 = vpop.f32.mrf.mxu0  ;;  %v1704_v49 = vpop.f32.mrf.mxu1  ;;  %v2032_v51 = vadd.f32 %v3984_v41, %v2031_v46 }
  0xba   : > { %2909 = vst.msk [vmem:[%s3999_s4 + $0x320] sm:$0xf] %vm2708_vm3, %v2646_v42  ;;  %v1540_v53 = vadd.f32 %v3984_v41, %v1539_v48  ;;  %v1705_v54 = vadd.f32 %v3984_v41, %v1704_v49 }
  0xbb   : > { %v2319_v55 = vmax.f32 %v1867_v47, 0.0  ;;  %v2385_v56 = vmax.f32 %v2032_v51, 0.0 }
  0xbc   : > { %v2188_v57 = vmax.f32 %v1540_v53, 0.0  ;;  %v2254_v58 = vmax.f32 %v1705_v54, 0.0  ;;  %3580 = vmatmul.msk.bf16.gmra.mxu0 %vm1119_vm2, %v3713_v44  ;;  %3613 = vmatmul.msk.bf16.gmra.mxu1 %vm1119_vm2, %v3746_v45  ;;  %v3715_v53 = vld [vmem:[%s3915_s26 + $0x60] sm:$0xff]  ;;  %v3748_v54 = vld [vmem:[%s3915_s26 + $0x168] sm:$0xff] }
  0xbd   : > { %v2581_v59 = vpack.c.bf16 %v2319_v55, %v2319_v55  ;;  %3646 = vmatmul.msk.bf16.gmra.mxu2 %vm1119_vm2, %v3779_v50  ;;  %3679 = vmatmul.msk.bf16.gmra.mxu3 %vm1119_vm2, %v3812_v52  ;;  %v2647_v62 = vpack.c.bf16 %v2385_v56, %v2385_v56 }
  0xbe   : > { %v2450_v60 = vpack.c.bf16 %v2188_v57, %v2188_v57  ;;  %v2516_v61 = vpack.c.bf16 %v2254_v58, %v2254_v58 }
  0xbf   : > { %2844 = vst.msk [vmem:[%s3999_s4 + $0x21c] sm:$0xf] %vm2708_vm3, %v2581_v59  ;;  %v3781_v59 = vld [vmem:[%s3915_s26 + $0x270] sm:$0xff] }
  0xc0   : > { %2713 = vst.msk [vmem:[%s3999_s4 + $0x10] sm:$0xf] %vm2708_vm3, %v2450_v60  ;;  %v1869_v63 = vpop.f32.mrf.mxu2  ;;  %v2034_v0 = vpop.f32.mrf.mxu3 }
  0xc1   : > { %2779 = vst.msk [vmem:[%s3999_s4 + $0x118] sm:$0xf] %vm2708_vm3, %v2516_v61  ;;  %v1870_v1 = vadd.f32 %v3984_v41, %v1869_v63  ;;  %v1541_v2 = vpop.f32.mrf.mxu0  ;;  %v1706_v3 = vpop.f32.mrf.mxu1  ;;  %v2035_v4 = vadd.f32 %v3984_v41, %v2034_v0  ;;  %v3814_v61 = vld [vmem:[%s3915_s26 + $0x378] sm:$0xff] }
  0xc2   : > { %2910 = vst.msk [vmem:[%s3999_s4 + $0x324] sm:$0xf] %vm2708_vm3, %v2647_v62  ;;  %v1542_v5 = vadd.f32 %v3984_v41, %v1541_v2  ;;  %v1707_v6 = vadd.f32 %v3984_v41, %v1706_v3 }
  0xc3   : > { %v2320_v7 = vmax.f32 %v1870_v1, 0.0  ;;  %v2386_v8 = vmax.f32 %v2035_v4, 0.0 }
  0xc4   : > { %v2189_v9 = vmax.f32 %v1542_v5, 0.0  ;;  %v2255_v10 = vmax.f32 %v1707_v6, 0.0 }
  0xc5   : > { %v2582_v11 = vpack.c.bf16 %v2320_v7, %v2320_v7  ;;  %v2648_v14 = vpack.c.bf16 %v2386_v8, %v2386_v8 }
  0xc6   : > { %v2451_v12 = vpack.c.bf16 %v2189_v9, %v2189_v9  ;;  %v2517_v13 = vpack.c.bf16 %v2255_v10, %v2255_v10 }
  0xc7   : > { %2845 = vst.msk [vmem:[%s3999_s4 + $0x220] sm:$0xf] %vm2708_vm3, %v2582_v11 }
  0xc8   : > { %2714 = vst.msk [vmem:[%s3999_s4 + $0x14] sm:$0xf] %vm2708_vm3, %v2451_v12  ;;  %v1871_v15 = vpop.f32.mrf.mxu2  ;;  %v2036_v18 = vpop.f32.mrf.mxu3 }
  0xc9   : > { %2780 = vst.msk [vmem:[%s3999_s4 + $0x11c] sm:$0xf] %vm2708_vm3, %v2517_v13  ;;  %v1872_v19 = vadd.f32 %v3984_v41, %v1871_v15  ;;  %v1544_v20 = vpop.f32.mrf.mxu0  ;;  %v1709_v21 = vpop.f32.mrf.mxu1  ;;  %v2037_v23 = vadd.f32 %v3984_v41, %v2036_v18 }
  0xca   : > { %2911 = vst.msk [vmem:[%s3999_s4 + $0x328] sm:$0xf] %vm2708_vm3, %v2648_v14  ;;  %v1545_v25 = vadd.f32 %v3984_v41, %v1544_v20  ;;  %v1710_v26 = vadd.f32 %v3984_v41, %v1709_v21 }
  0xcb   : > { %v2321_v27 = vmax.f32 %v1872_v19, 0.0  ;;  %v2387_v28 = vmax.f32 %v2037_v23, 0.0 }
  0xcc   : > { %v2190_v29 = vmax.f32 %v1545_v25, 0.0  ;;  %v2256_v30 = vmax.f32 %v1710_v26, 0.0  ;;  %3581 = vmatmul.msk.bf16.gmra.mxu0 %vm1119_vm2, %v3714_v16  ;;  %3614 = vmatmul.msk.bf16.gmra.mxu1 %vm1119_vm2, %v3747_v17  ;;  %v3716_v25 = vld [vmem:[%s3915_s26 + $0x68] sm:$0xff]  ;;  %v3749_v26 = vld [vmem:[%s3915_s26 + $0x170] sm:$0xff] }
  0xcd   : > { %v2583_v31 = vpack.c.bf16 %v2321_v27, %v2321_v27  ;;  %3647 = vmatmul.msk.bf16.gmra.mxu2 %vm1119_vm2, %v3780_v22  ;;  %3680 = vmatmul.msk.bf16.gmra.mxu3 %vm1119_vm2, %v3813_v24  ;;  %v2649_v34 = vpack.c.bf16 %v2387_v28, %v2387_v28 }
  0xce   : > { %v2452_v32 = vpack.c.bf16 %v2190_v29, %v2190_v29  ;;  %v2518_v33 = vpack.c.bf16 %v2256_v30, %v2256_v30 }
  0xcf   : > { %2846 = vst.msk [vmem:[%s3999_s4 + $0x224] sm:$0xf] %vm2708_vm3, %v2583_v31  ;;  %v3782_v31 = vld [vmem:[%s3915_s26 + $0x278] sm:$0xff] }
  0xd0   : > { %2715 = vst.msk [vmem:[%s3999_s4 + $0x18] sm:$0xf] %vm2708_vm3, %v2452_v32  ;;  %v1874_v35 = vpop.f32.mrf.mxu2  ;;  %v2039_v36 = vpop.f32.mrf.mxu3 }
  0xd1   : > { %2781 = vst.msk [vmem:[%s3999_s4 + $0x120] sm:$0xf] %vm2708_vm3, %v2518_v33  ;;  %v1875_v37 = vadd.f32 %v3984_v41, %v1874_v35  ;;  %v1546_v38 = vpop.f32.mrf.mxu0  ;;  %v1711_v39 = vpop.f32.mrf.mxu1  ;;  %v2040_v40 = vadd.f32 %v3984_v41, %v2039_v36  ;;  %v3815_v33 = vld [vmem:[%s3915_s26 + $0x380] sm:$0xff] }
  0xd2   : > { %2912 = vst.msk [vmem:[%s3999_s4 + $0x32c] sm:$0xf] %vm2708_vm3, %v2649_v34  ;;  %v1547_v42 = vadd.f32 %v3984_v41, %v1546_v38  ;;  %v1712_v43 = vadd.f32 %v3984_v41, %v1711_v39 }
  0xd3   : > { %v2322_v44 = vmax.f32 %v1875_v37, 0.0  ;;  %v2388_v45 = vmax.f32 %v2040_v40, 0.0 }
  0xd4   : > { %v2191_v46 = vmax.f32 %v1547_v42, 0.0  ;;  %v2257_v47 = vmax.f32 %v1712_v43, 0.0 }
  0xd5   : > { %v2584_v48 = vpack.c.bf16 %v2322_v44, %v2322_v44  ;;  %v2650_v51 = vpack.c.bf16 %v2388_v45, %v2388_v45 }
  0xd6   : > { %v2453_v49 = vpack.c.bf16 %v2191_v46, %v2191_v46  ;;  %v2519_v50 = vpack.c.bf16 %v2257_v47, %v2257_v47 }
  0xd7   : > { %2847 = vst.msk [vmem:[%s3999_s4 + $0x228] sm:$0xf] %vm2708_vm3, %v2584_v48 }
  0xd8   : > { %2716 = vst.msk [vmem:[%s3999_s4 + $0x1c] sm:$0xf] %vm2708_vm3, %v2453_v49  ;;  %v1876_v52 = vpop.f32.mrf.mxu2  ;;  %v2041_v55 = vpop.f32.mrf.mxu3 }
  0xd9   : > { %2782 = vst.msk [vmem:[%s3999_s4 + $0x124] sm:$0xf] %vm2708_vm3, %v2519_v50  ;;  %v1877_v56 = vadd.f32 %v3984_v41, %v1876_v52  ;;  %v1549_v57 = vpop.f32.mrf.mxu0  ;;  %v1714_v58 = vpop.f32.mrf.mxu1  ;;  %v2042_v60 = vadd.f32 %v3984_v41, %v2041_v55 }
  0xda   : > { %2913 = vst.msk [vmem:[%s3999_s4 + $0x330] sm:$0xf] %vm2708_vm3, %v2650_v51  ;;  %v1550_v62 = vadd.f32 %v3984_v41, %v1549_v57  ;;  %v1715_v63 = vadd.f32 %v3984_v41, %v1714_v58 }
  0xdb   : > { %v2323_v0 = vmax.f32 %v1877_v56, 0.0  ;;  %v2389_v1 = vmax.f32 %v2042_v60, 0.0 }
  0xdc   : > { %v2192_v2 = vmax.f32 %v1550_v62, 0.0  ;;  %v2258_v3 = vmax.f32 %v1715_v63, 0.0  ;;  %3582 = vmatmul.msk.bf16.gmra.mxu0 %vm1119_vm2, %v3715_v53  ;;  %3615 = vmatmul.msk.bf16.gmra.mxu1 %vm1119_vm2, %v3748_v54  ;;  %v3717_v62 = vld [vmem:[%s3915_s26 + $0x70] sm:$0xff]  ;;  %v3750_v63 = vld [vmem:[%s3915_s26 + $0x178] sm:$0xff] }
  0xdd   : > { %v2585_v4 = vpack.c.bf16 %v2323_v0, %v2323_v0  ;;  %3648 = vmatmul.msk.bf16.gmra.mxu2 %vm1119_vm2, %v3781_v59  ;;  %3681 = vmatmul.msk.bf16.gmra.mxu3 %vm1119_vm2, %v3814_v61  ;;  %v2651_v7 = vpack.c.bf16 %v2389_v1, %v2389_v1 }
  0xde   : > { %v2454_v5 = vpack.c.bf16 %v2192_v2, %v2192_v2  ;;  %v2520_v6 = vpack.c.bf16 %v2258_v3, %v2258_v3 }
  0xdf   : > { %2848 = vst.msk [vmem:[%s3999_s4 + $0x22c] sm:$0xf] %vm2708_vm3, %v2585_v4  ;;  %v3783_v4 = vld [vmem:[%s3915_s26 + $0x280] sm:$0xff] }
  0xe0   : > { %2717 = vst.msk [vmem:[%s3999_s4 + $0x20] sm:$0xf] %vm2708_vm3, %v2454_v5  ;;  %v1879_v8 = vpop.f32.mrf.mxu2  ;;  %v2044_v9 = vpop.f32.mrf.mxu3 }
  0xe1   : > { %2783 = vst.msk [vmem:[%s3999_s4 + $0x128] sm:$0xf] %vm2708_vm3, %v2520_v6  ;;  %v1880_v10 = vadd.f32 %v3984_v41, %v1879_v8  ;;  %v1551_v11 = vpop.f32.mrf.mxu0  ;;  %v1716_v12 = vpop.f32.mrf.mxu1  ;;  %v2045_v13 = vadd.f32 %v3984_v41, %v2044_v9  ;;  %v3816_v6 = vld [vmem:[%s3915_s26 + $0x388] sm:$0xff] }
  0xe2   : > { %2914 = vst.msk [vmem:[%s3999_s4 + $0x334] sm:$0xf] %vm2708_vm3, %v2651_v7  ;;  %v1552_v14 = vadd.f32 %v3984_v41, %v1551_v11  ;;  %v1717_v15 = vadd.f32 %v3984_v41, %v1716_v12 }
  0xe3   : > { %v2324_v16 = vmax.f32 %v1880_v10, 0.0  ;;  %v2390_v17 = vmax.f32 %v2045_v13, 0.0 }
  0xe4   : > { %v2193_v18 = vmax.f32 %v1552_v14, 0.0  ;;  %v2259_v19 = vmax.f32 %v1717_v15, 0.0 }
  0xe5   : > { %v2586_v20 = vpack.c.bf16 %v2324_v16, %v2324_v16  ;;  %v2652_v23 = vpack.c.bf16 %v2390_v17, %v2390_v17 }
  0xe6   : > { %v2455_v21 = vpack.c.bf16 %v2193_v18, %v2193_v18  ;;  %v2521_v22 = vpack.c.bf16 %v2259_v19, %v2259_v19 }
  0xe7   : > { %2849 = vst.msk [vmem:[%s3999_s4 + $0x230] sm:$0xf] %vm2708_vm3, %v2586_v20 }
  0xe8   : > { %2718 = vst.msk [vmem:[%s3999_s4 + $0x24] sm:$0xf] %vm2708_vm3, %v2455_v21  ;;  %v1881_v24 = vpop.f32.mrf.mxu2  ;;  %v2046_v27 = vpop.f32.mrf.mxu3 }
  0xe9   : > { %2784 = vst.msk [vmem:[%s3999_s4 + $0x12c] sm:$0xf] %vm2708_vm3, %v2521_v22  ;;  %v1882_v28 = vadd.f32 %v3984_v41, %v1881_v24  ;;  %v1554_v29 = vpop.f32.mrf.mxu0  ;;  %v1719_v30 = vpop.f32.mrf.mxu1  ;;  %v2047_v32 = vadd.f32 %v3984_v41, %v2046_v27 }
  0xea   : > { %2915 = vst.msk [vmem:[%s3999_s4 + $0x338] sm:$0xf] %vm2708_vm3, %v2652_v23  ;;  %v1555_v34 = vadd.f32 %v3984_v41, %v1554_v29  ;;  %v1720_v35 = vadd.f32 %v3984_v41, %v1719_v30 }
  0xeb   : > { %v2325_v36 = vmax.f32 %v1882_v28, 0.0  ;;  %v2391_v37 = vmax.f32 %v2047_v32, 0.0 }
  0xec   : > { %v2194_v38 = vmax.f32 %v1555_v34, 0.0  ;;  %v2260_v39 = vmax.f32 %v1720_v35, 0.0  ;;  %3583 = vmatmul.msk.bf16.gmra.mxu0 %vm1119_vm2, %v3716_v25  ;;  %3616 = vmatmul.msk.bf16.gmra.mxu1 %vm1119_vm2, %v3749_v26  ;;  %v3718_v34 = vld [vmem:[%s3915_s26 + $0x78] sm:$0xff]  ;;  %v3751_v35 = vld [vmem:[%s3915_s26 + $0x180] sm:$0xff] }
  0xed   : > { %v2587_v40 = vpack.c.bf16 %v2325_v36, %v2325_v36  ;;  %3649 = vmatmul.msk.bf16.gmra.mxu2 %vm1119_vm2, %v3782_v31  ;;  %3682 = vmatmul.msk.bf16.gmra.mxu3 %vm1119_vm2, %v3815_v33  ;;  %v2653_v44 = vpack.c.bf16 %v2391_v37, %v2391_v37 }
  0xee   : > { %v2456_v42 = vpack.c.bf16 %v2194_v38, %v2194_v38  ;;  %v2522_v43 = vpack.c.bf16 %v2260_v39, %v2260_v39 }
  0xef   : > { %2850 = vst.msk [vmem:[%s3999_s4 + $0x234] sm:$0xf] %vm2708_vm3, %v2587_v40  ;;  %v3784_v40 = vld [vmem:[%s3915_s26 + $0x288] sm:$0xff] }
  0xf0   : > { %2719 = vst.msk [vmem:[%s3999_s4 + $0x28] sm:$0xf] %vm2708_vm3, %v2456_v42  ;;  %v1884_v45 = vpop.f32.mrf.mxu2  ;;  %v2049_v46 = vpop.f32.mrf.mxu3 }
  0xf1   : > { %2785 = vst.msk [vmem:[%s3999_s4 + $0x130] sm:$0xf] %vm2708_vm3, %v2522_v43  ;;  %v1885_v47 = vadd.f32 %v3984_v41, %v1884_v45  ;;  %v1556_v48 = vpop.f32.mrf.mxu0  ;;  %v1721_v49 = vpop.f32.mrf.mxu1  ;;  %v2050_v50 = vadd.f32 %v3984_v41, %v2049_v46  ;;  %v3817_v43 = vld [vmem:[%s3915_s26 + $0x390] sm:$0xff] }
  0xf2   : > { %2916 = vst.msk [vmem:[%s3999_s4 + $0x33c] sm:$0xf] %vm2708_vm3, %v2653_v44  ;;  %v1557_v51 = vadd.f32 %v3984_v41, %v1556_v48  ;;  %v1722_v52 = vadd.f32 %v3984_v41, %v1721_v49 }
  0xf3   : > { %v2326_v53 = vmax.f32 %v1885_v47, 0.0  ;;  %v2392_v54 = vmax.f32 %v2050_v50, 0.0 }
  0xf4   : > { %v2195_v55 = vmax.f32 %v1557_v51, 0.0  ;;  %v2261_v56 = vmax.f32 %v1722_v52, 0.0 }
  0xf5   : > { %v2588_v57 = vpack.c.bf16 %v2326_v53, %v2326_v53  ;;  %v2654_v60 = vpack.c.bf16 %v2392_v54, %v2392_v54 }
  0xf6   : > { %v2457_v58 = vpack.c.bf16 %v2195_v55, %v2195_v55  ;;  %v2523_v59 = vpack.c.bf16 %v2261_v56, %v2261_v56 }
  0xf7   : > { %2851 = vst.msk [vmem:[%s3999_s4 + $0x238] sm:$0xf] %vm2708_vm3, %v2588_v57 }
  0xf8   : > { %2720 = vst.msk [vmem:[%s3999_s4 + $0x2c] sm:$0xf] %vm2708_vm3, %v2457_v58  ;;  %v1886_v61 = vpop.f32.mrf.mxu2  ;;  %v2051_v0 = vpop.f32.mrf.mxu3 }
  0xf9   : > { %2786 = vst.msk [vmem:[%s3999_s4 + $0x134] sm:$0xf] %vm2708_vm3, %v2523_v59  ;;  %v1887_v1 = vadd.f32 %v3984_v41, %v1886_v61  ;;  %v1559_v2 = vpop.f32.mrf.mxu0  ;;  %v1724_v3 = vpop.f32.mrf.mxu1  ;;  %v2052_v5 = vadd.f32 %v3984_v41, %v2051_v0 }
  0xfa   : > { %2917 = vst.msk [vmem:[%s3999_s4 + $0x340] sm:$0xf] %vm2708_vm3, %v2654_v60  ;;  %v1560_v7 = vadd.f32 %v3984_v41, %v1559_v2  ;;  %v1725_v8 = vadd.f32 %v3984_v41, %v1724_v3 }
  0xfb   : > { %v2327_v9 = vmax.f32 %v1887_v1, 0.0  ;;  %v2393_v10 = vmax.f32 %v2052_v5, 0.0 }
  0xfc   : > { %v2196_v11 = vmax.f32 %v1560_v7, 0.0  ;;  %v2262_v12 = vmax.f32 %v1725_v8, 0.0  ;;  %3584 = vmatmul.msk.bf16.gmra.mxu0 %vm1119_vm2, %v3717_v62  ;;  %3617 = vmatmul.msk.bf16.gmra.mxu1 %vm1119_vm2, %v3750_v63  ;;  %v3719_v7 = vld [vmem:[%s3915_s26 + $0x80] sm:$0xff]  ;;  %v3752_v8 = vld [vmem:[%s3915_s26 + $0x188] sm:$0xff] }
  0xfd   : > { %v2589_v13 = vpack.c.bf16 %v2327_v9, %v2327_v9  ;;  %3650 = vmatmul.msk.bf16.gmra.mxu2 %vm1119_vm2, %v3783_v4  ;;  %3683 = vmatmul.msk.bf16.gmra.mxu3 %vm1119_vm2, %v3816_v6  ;;  %v2655_v16 = vpack.c.bf16 %v2393_v10, %v2393_v10 }
  0xfe   : > { %v2458_v14 = vpack.c.bf16 %v2196_v11, %v2196_v11  ;;  %v2524_v15 = vpack.c.bf16 %v2262_v12, %v2262_v12 }
  0xff   : > { %2852 = vst.msk [vmem:[%s3999_s4 + $0x23c] sm:$0xf] %vm2708_vm3, %v2589_v13  ;;  %v3785_v13 = vld [vmem:[%s3915_s26 + $0x290] sm:$0xff] }
 0x100   : > { %2721 = vst.msk [vmem:[%s3999_s4 + $0x30] sm:$0xf] %vm2708_vm3, %v2458_v14  ;;  %v1889_v17 = vpop.f32.mrf.mxu2  ;;  %v2054_v18 = vpop.f32.mrf.mxu3 }
 0x101   : > { %2787 = vst.msk [vmem:[%s3999_s4 + $0x138] sm:$0xf] %vm2708_vm3, %v2524_v15  ;;  %v1890_v19 = vadd.f32 %v3984_v41, %v1889_v17  ;;  %v1561_v20 = vpop.f32.mrf.mxu0  ;;  %v1726_v21 = vpop.f32.mrf.mxu1  ;;  %v2055_v22 = vadd.f32 %v3984_v41, %v2054_v18  ;;  %v3818_v15 = vld [vmem:[%s3915_s26 + $0x398] sm:$0xff] }
 0x102   : > { %2918 = vst.msk [vmem:[%s3999_s4 + $0x344] sm:$0xf] %vm2708_vm3, %v2655_v16  ;;  %v1562_v23 = vadd.f32 %v3984_v41, %v1561_v20  ;;  %v1727_v24 = vadd.f32 %v3984_v41, %v1726_v21 }
 0x103   : > { %v2328_v25 = vmax.f32 %v1890_v19, 0.0  ;;  %v2394_v26 = vmax.f32 %v2055_v22, 0.0 }
 0x104   : > { %v2197_v27 = vmax.f32 %v1562_v23, 0.0  ;;  %v2263_v28 = vmax.f32 %v1727_v24, 0.0 }
 0x105   : > { %v2590_v29 = vpack.c.bf16 %v2328_v25, %v2328_v25  ;;  %v2656_v32 = vpack.c.bf16 %v2394_v26, %v2394_v26 }
 0x106   : > { %v2459_v30 = vpack.c.bf16 %v2197_v27, %v2197_v27  ;;  %v2525_v31 = vpack.c.bf16 %v2263_v28, %v2263_v28 }
 0x107   : > { %2853 = vst.msk [vmem:[%s3999_s4 + $0x240] sm:$0xf] %vm2708_vm3, %v2590_v29 }
 0x108   : > { %2722 = vst.msk [vmem:[%s3999_s4 + $0x34] sm:$0xf] %vm2708_vm3, %v2459_v30  ;;  %v1891_v33 = vpop.f32.mrf.mxu2  ;;  %v2056_v36 = vpop.f32.mrf.mxu3 }
 0x109   : > { %2788 = vst.msk [vmem:[%s3999_s4 + $0x13c] sm:$0xf] %vm2708_vm3, %v2525_v31  ;;  %v1892_v37 = vadd.f32 %v3984_v41, %v1891_v33  ;;  %v1564_v38 = vpop.f32.mrf.mxu0  ;;  %v1729_v39 = vpop.f32.mrf.mxu1  ;;  %v2057_v42 = vadd.f32 %v3984_v41, %v2056_v36 }
 0x10a   : > { %2919 = vst.msk [vmem:[%s3999_s4 + $0x348] sm:$0xf] %vm2708_vm3, %v2656_v32  ;;  %v1565_v44 = vadd.f32 %v3984_v41, %v1564_v38  ;;  %v1730_v45 = vadd.f32 %v3984_v41, %v1729_v39 }
 0x10b   : > { %v2329_v46 = vmax.f32 %v1892_v37, 0.0  ;;  %v2395_v47 = vmax.f32 %v2057_v42, 0.0 }
 0x10c   : > { %v2198_v48 = vmax.f32 %v1565_v44, 0.0  ;;  %v2264_v49 = vmax.f32 %v1730_v45, 0.0  ;;  %3585 = vmatmul.msk.bf16.gmra.mxu0 %vm1119_vm2, %v3718_v34  ;;  %3618 = vmatmul.msk.bf16.gmra.mxu1 %vm1119_vm2, %v3751_v35  ;;  %v3720_v44 = vld [vmem:[%s3915_s26 + $0x88] sm:$0xff]  ;;  %v3753_v45 = vld [vmem:[%s3915_s26 + $0x190] sm:$0xff] }
 0x10d   : > { %v2591_v50 = vpack.c.bf16 %v2329_v46, %v2329_v46  ;;  %3651 = vmatmul.msk.bf16.gmra.mxu2 %vm1119_vm2, %v3784_v40  ;;  %3684 = vmatmul.msk.bf16.gmra.mxu3 %vm1119_vm2, %v3817_v43  ;;  %v2657_v53 = vpack.c.bf16 %v2395_v47, %v2395_v47 }
 0x10e   : > { %v2460_v51 = vpack.c.bf16 %v2198_v48, %v2198_v48  ;;  %v2526_v52 = vpack.c.bf16 %v2264_v49, %v2264_v49 }
 0x10f   : > { %2854 = vst.msk [vmem:[%s3999_s4 + $0x244] sm:$0xf] %vm2708_vm3, %v2591_v50  ;;  %v3786_v50 = vld [vmem:[%s3915_s26 + $0x298] sm:$0xff] }
 0x110   : > { %2723 = vst.msk [vmem:[%s3999_s4 + $0x38] sm:$0xf] %vm2708_vm3, %v2460_v51  ;;  %v1894_v54 = vpop.f32.mrf.mxu2  ;;  %v2059_v55 = vpop.f32.mrf.mxu3 }
 0x111   : > { %2789 = vst.msk [vmem:[%s3999_s4 + $0x140] sm:$0xf] %vm2708_vm3, %v2526_v52  ;;  %v1895_v56 = vadd.f32 %v3984_v41, %v1894_v54  ;;  %v1566_v57 = vpop.f32.mrf.mxu0  ;;  %v1731_v58 = vpop.f32.mrf.mxu1  ;;  %v2060_v59 = vadd.f32 %v3984_v41, %v2059_v55  ;;  %v3819_v52 = vld [vmem:[%s3915_s26 + $0x3a0] sm:$0xff] }
 0x112   : > { %2920 = vst.msk [vmem:[%s3999_s4 + $0x34c] sm:$0xf] %vm2708_vm3, %v2657_v53  ;;  %v1567_v60 = vadd.f32 %v3984_v41, %v1566_v57  ;;  %v1732_v61 = vadd.f32 %v3984_v41, %v1731_v58 }
 0x113   : > { %v2330_v62 = vmax.f32 %v1895_v56, 0.0  ;;  %v2396_v63 = vmax.f32 %v2060_v59, 0.0 }
 0x114   : > { %v2199_v0 = vmax.f32 %v1567_v60, 0.0  ;;  %v2265_v1 = vmax.f32 %v1732_v61, 0.0 }
 0x115   : > { %v2592_v2 = vpack.c.bf16 %v2330_v62, %v2330_v62  ;;  %v2658_v5 = vpack.c.bf16 %v2396_v63, %v2396_v63 }
 0x116   : > { %v2461_v3 = vpack.c.bf16 %v2199_v0, %v2199_v0  ;;  %v2527_v4 = vpack.c.bf16 %v2265_v1, %v2265_v1 }
 0x117   : > { %2855 = vst.msk [vmem:[%s3999_s4 + $0x248] sm:$0xf] %vm2708_vm3, %v2592_v2 }
 0x118   : > { %2724 = vst.msk [vmem:[%s3999_s4 + $0x3c] sm:$0xf] %vm2708_vm3, %v2461_v3  ;;  %v1896_v6 = vpop.f32.mrf.mxu2  ;;  %v2061_v9 = vpop.f32.mrf.mxu3 }
 0x119   : > { %2790 = vst.msk [vmem:[%s3999_s4 + $0x144] sm:$0xf] %vm2708_vm3, %v2527_v4  ;;  %v1897_v10 = vadd.f32 %v3984_v41, %v1896_v6  ;;  %v1569_v11 = vpop.f32.mrf.mxu0  ;;  %v1734_v12 = vpop.f32.mrf.mxu1  ;;  %v2062_v14 = vadd.f32 %v3984_v41, %v2061_v9 }
 0x11a   : > { %2921 = vst.msk [vmem:[%s3999_s4 + $0x350] sm:$0xf] %vm2708_vm3, %v2658_v5  ;;  %v1570_v16 = vadd.f32 %v3984_v41, %v1569_v11  ;;  %v1735_v17 = vadd.f32 %v3984_v41, %v1734_v12 }
 0x11b   : > { %v2331_v18 = vmax.f32 %v1897_v10, 0.0  ;;  %v2397_v19 = vmax.f32 %v2062_v14, 0.0 }
 0x11c   : > { %v2200_v20 = vmax.f32 %v1570_v16, 0.0  ;;  %v2266_v21 = vmax.f32 %v1735_v17, 0.0  ;;  %3586 = vmatmul.msk.bf16.gmra.mxu0 %vm1119_vm2, %v3719_v7  ;;  %3619 = vmatmul.msk.bf16.gmra.mxu1 %vm1119_vm2, %v3752_v8  ;;  %v3721_v16 = vld [vmem:[%s3915_s26 + $0x90] sm:$0xff]  ;;  %v3754_v17 = vld [vmem:[%s3915_s26 + $0x198] sm:$0xff] }
 0x11d   : > { %v2593_v22 = vpack.c.bf16 %v2331_v18, %v2331_v18  ;;  %3652 = vmatmul.msk.bf16.gmra.mxu2 %vm1119_vm2, %v3785_v13  ;;  %3685 = vmatmul.msk.bf16.gmra.mxu3 %vm1119_vm2, %v3818_v15  ;;  %v2659_v25 = vpack.c.bf16 %v2397_v19, %v2397_v19 }
 0x11e   : > { %v2462_v23 = vpack.c.bf16 %v2200_v20, %v2200_v20  ;;  %v2528_v24 = vpack.c.bf16 %v2266_v21, %v2266_v21 }
 0x11f   : > { %2856 = vst.msk [vmem:[%s3999_s4 + $0x24c] sm:$0xf] %vm2708_vm3, %v2593_v22  ;;  %v3787_v22 = vld [vmem:[%s3915_s26 + $0x2a0] sm:$0xff] }
 0x120   : > { %2725 = vst.msk [vmem:[%s3999_s4 + $0x40] sm:$0xf] %vm2708_vm3, %v2462_v23  ;;  %v1899_v26 = vpop.f32.mrf.mxu2  ;;  %v2064_v27 = vpop.f32.mrf.mxu3 }
 0x121   : > { %2791 = vst.msk [vmem:[%s3999_s4 + $0x148] sm:$0xf] %vm2708_vm3, %v2528_v24  ;;  %v1900_v28 = vadd.f32 %v3984_v41, %v1899_v26  ;;  %v1571_v29 = vpop.f32.mrf.mxu0  ;;  %v1736_v30 = vpop.f32.mrf.mxu1  ;;  %v2065_v31 = vadd.f32 %v3984_v41, %v2064_v27  ;;  %v3820_v24 = vld [vmem:[%s3915_s26 + $0x3a8] sm:$0xff] }
 0x122   : > { %2922 = vst.msk [vmem:[%s3999_s4 + $0x354] sm:$0xf] %vm2708_vm3, %v2659_v25  ;;  %v1572_v32 = vadd.f32 %v3984_v41, %v1571_v29  ;;  %v1737_v33 = vadd.f32 %v3984_v41, %v1736_v30 }
 0x123   : > { %v2332_v34 = vmax.f32 %v1900_v28, 0.0  ;;  %v2398_v35 = vmax.f32 %v2065_v31, 0.0 }
 0x124   : > { %v2201_v36 = vmax.f32 %v1572_v32, 0.0  ;;  %v2267_v37 = vmax.f32 %v1737_v33, 0.0 }
 0x125   : > { %v2594_v38 = vpack.c.bf16 %v2332_v34, %v2332_v34  ;;  %v2660_v42 = vpack.c.bf16 %v2398_v35, %v2398_v35 }
 0x126   : > { %v2463_v39 = vpack.c.bf16 %v2201_v36, %v2201_v36  ;;  %v2529_v40 = vpack.c.bf16 %v2267_v37, %v2267_v37 }
 0x127   : > { %2857 = vst.msk [vmem:[%s3999_s4 + $0x250] sm:$0xf] %vm2708_vm3, %v2594_v38 }
 0x128   : > { %2726 = vst.msk [vmem:[%s3999_s4 + $0x44] sm:$0xf] %vm2708_vm3, %v2463_v39  ;;  %v1901_v43 = vpop.f32.mrf.mxu2  ;;  %v2066_v46 = vpop.f32.mrf.mxu3 }
 0x129   : > { %2792 = vst.msk [vmem:[%s3999_s4 + $0x14c] sm:$0xf] %vm2708_vm3, %v2529_v40  ;;  %v1902_v47 = vadd.f32 %v3984_v41, %v1901_v43  ;;  %v1574_v48 = vpop.f32.mrf.mxu0  ;;  %v1739_v49 = vpop.f32.mrf.mxu1  ;;  %v2067_v51 = vadd.f32 %v3984_v41, %v2066_v46 }
 0x12a   : > { %2923 = vst.msk [vmem:[%s3999_s4 + $0x358] sm:$0xf] %vm2708_vm3, %v2660_v42  ;;  %v1575_v53 = vadd.f32 %v3984_v41, %v1574_v48  ;;  %v1740_v54 = vadd.f32 %v3984_v41, %v1739_v49 }
 0x12b   : > { %v2333_v55 = vmax.f32 %v1902_v47, 0.0  ;;  %v2399_v56 = vmax.f32 %v2067_v51, 0.0 }
 0x12c   : > { %v2202_v57 = vmax.f32 %v1575_v53, 0.0  ;;  %v2268_v58 = vmax.f32 %v1740_v54, 0.0  ;;  %3587 = vmatmul.msk.bf16.gmra.mxu0 %vm1119_vm2, %v3720_v44  ;;  %3620 = vmatmul.msk.bf16.gmra.mxu1 %vm1119_vm2, %v3753_v45  ;;  %v3722_v53 = vld [vmem:[%s3915_s26 + $0x98] sm:$0xff]  ;;  %v3755_v54 = vld [vmem:[%s3915_s26 + $0x1a0] sm:$0xff] }
 0x12d   : > { %v2595_v59 = vpack.c.bf16 %v2333_v55, %v2333_v55  ;;  %3653 = vmatmul.msk.bf16.gmra.mxu2 %vm1119_vm2, %v3786_v50  ;;  %3686 = vmatmul.msk.bf16.gmra.mxu3 %vm1119_vm2, %v3819_v52  ;;  %v2661_v62 = vpack.c.bf16 %v2399_v56, %v2399_v56 }
 0x12e   : > { %v2464_v60 = vpack.c.bf16 %v2202_v57, %v2202_v57  ;;  %v2530_v61 = vpack.c.bf16 %v2268_v58, %v2268_v58 }
 0x12f   : > { %2858 = vst.msk [vmem:[%s3999_s4 + $0x254] sm:$0xf] %vm2708_vm3, %v2595_v59  ;;  %v3788_v59 = vld [vmem:[%s3915_s26 + $0x2a8] sm:$0xff] }
 0x130   : > { %2727 = vst.msk [vmem:[%s3999_s4 + $0x48] sm:$0xf] %vm2708_vm3, %v2464_v60  ;;  %v1904_v63 = vpop.f32.mrf.mxu2  ;;  %v2069_v0 = vpop.f32.mrf.mxu3 }
 0x131   : > { %2793 = vst.msk [vmem:[%s3999_s4 + $0x150] sm:$0xf] %vm2708_vm3, %v2530_v61  ;;  %v1905_v1 = vadd.f32 %v3984_v41, %v1904_v63  ;;  %v1576_v2 = vpop.f32.mrf.mxu0  ;;  %v1741_v3 = vpop.f32.mrf.mxu1  ;;  %v2070_v4 = vadd.f32 %v3984_v41, %v2069_v0  ;;  %v3821_v61 = vld [vmem:[%s3915_s26 + $0x3b0] sm:$0xff] }
 0x132   : > { %2924 = vst.msk [vmem:[%s3999_s4 + $0x35c] sm:$0xf] %vm2708_vm3, %v2661_v62  ;;  %v1577_v5 = vadd.f32 %v3984_v41, %v1576_v2  ;;  %v1742_v6 = vadd.f32 %v3984_v41, %v1741_v3 }
 0x133   : > { %v2334_v7 = vmax.f32 %v1905_v1, 0.0  ;;  %v2400_v8 = vmax.f32 %v2070_v4, 0.0 }
 0x134   : > { %v2203_v9 = vmax.f32 %v1577_v5, 0.0  ;;  %v2269_v10 = vmax.f32 %v1742_v6, 0.0 }
 0x135   : > { %v2596_v11 = vpack.c.bf16 %v2334_v7, %v2334_v7  ;;  %v2662_v14 = vpack.c.bf16 %v2400_v8, %v2400_v8 }
 0x136   : > { %v2465_v12 = vpack.c.bf16 %v2203_v9, %v2203_v9  ;;  %v2531_v13 = vpack.c.bf16 %v2269_v10, %v2269_v10 }
 0x137   : > { %2859 = vst.msk [vmem:[%s3999_s4 + $0x258] sm:$0xf] %vm2708_vm3, %v2596_v11 }
 0x138   : > { %2728 = vst.msk [vmem:[%s3999_s4 + $0x4c] sm:$0xf] %vm2708_vm3, %v2465_v12  ;;  %v1906_v15 = vpop.f32.mrf.mxu2  ;;  %v2071_v18 = vpop.f32.mrf.mxu3 }
 0x139   : > { %2794 = vst.msk [vmem:[%s3999_s4 + $0x154] sm:$0xf] %vm2708_vm3, %v2531_v13  ;;  %v1907_v19 = vadd.f32 %v3984_v41, %v1906_v15  ;;  %v1579_v20 = vpop.f32.mrf.mxu0  ;;  %v1744_v21 = vpop.f32.mrf.mxu1  ;;  %v2072_v23 = vadd.f32 %v3984_v41, %v2071_v18 }
 0x13a   : > { %2925 = vst.msk [vmem:[%s3999_s4 + $0x360] sm:$0xf] %vm2708_vm3, %v2662_v14  ;;  %v1580_v25 = vadd.f32 %v3984_v41, %v1579_v20  ;;  %v1745_v26 = vadd.f32 %v3984_v41, %v1744_v21 }
 0x13b   : > { %v2335_v27 = vmax.f32 %v1907_v19, 0.0  ;;  %v2401_v28 = vmax.f32 %v2072_v23, 0.0 }
 0x13c   : > { %v2204_v29 = vmax.f32 %v1580_v25, 0.0  ;;  %v2270_v30 = vmax.f32 %v1745_v26, 0.0  ;;  %3588 = vmatmul.msk.bf16.gmra.mxu0 %vm1119_vm2, %v3721_v16  ;;  %3621 = vmatmul.msk.bf16.gmra.mxu1 %vm1119_vm2, %v3754_v17  ;;  %v3723_v25 = vld [vmem:[%s3915_s26 + $0xa0] sm:$0xff]  ;;  %v3756_v26 = vld [vmem:[%s3915_s26 + $0x1a8] sm:$0xff] }
 0x13d   : > { %v2597_v31 = vpack.c.bf16 %v2335_v27, %v2335_v27  ;;  %3654 = vmatmul.msk.bf16.gmra.mxu2 %vm1119_vm2, %v3787_v22  ;;  %3687 = vmatmul.msk.bf16.gmra.mxu3 %vm1119_vm2, %v3820_v24  ;;  %v2663_v34 = vpack.c.bf16 %v2401_v28, %v2401_v28 }
 0x13e   : > { %v2466_v32 = vpack.c.bf16 %v2204_v29, %v2204_v29  ;;  %v2532_v33 = vpack.c.bf16 %v2270_v30, %v2270_v30 }
 0x13f   : > { %2860 = vst.msk [vmem:[%s3999_s4 + $0x25c] sm:$0xf] %vm2708_vm3, %v2597_v31  ;;  %v3789_v31 = vld [vmem:[%s3915_s26 + $0x2b0] sm:$0xff] }
 0x140   : > { %2729 = vst.msk [vmem:[%s3999_s4 + $0x50] sm:$0xf] %vm2708_vm3, %v2466_v32  ;;  %v1909_v35 = vpop.f32.mrf.mxu2  ;;  %v2074_v36 = vpop.f32.mrf.mxu3 }
 0x141   : > { %2795 = vst.msk [vmem:[%s3999_s4 + $0x158] sm:$0xf] %vm2708_vm3, %v2532_v33  ;;  %v1910_v37 = vadd.f32 %v3984_v41, %v1909_v35  ;;  %v1581_v38 = vpop.f32.mrf.mxu0  ;;  %v1746_v39 = vpop.f32.mrf.mxu1  ;;  %v2075_v40 = vadd.f32 %v3984_v41, %v2074_v36  ;;  %v3822_v33 = vld [vmem:[%s3915_s26 + $0x3b8] sm:$0xff] }
 0x142   : > { %2926 = vst.msk [vmem:[%s3999_s4 + $0x364] sm:$0xf] %vm2708_vm3, %v2663_v34  ;;  %v1582_v42 = vadd.f32 %v3984_v41, %v1581_v38  ;;  %v1747_v43 = vadd.f32 %v3984_v41, %v1746_v39  ;;  %v4342_v41 = vld [vmem:[%s4992_s2] ss:$0 sm:$0xff] }
 0x143   : > { %v2336_v44 = vmax.f32 %v1910_v37, 0.0  ;;  %v2402_v45 = vmax.f32 %v2075_v40, 0.0 }
 0x144   : > { %v2205_v46 = vmax.f32 %v1582_v42, 0.0  ;;  %v2271_v47 = vmax.f32 %v1747_v43, 0.0 }
 0x145   : > { %v2598_v48 = vpack.c.bf16 %v2336_v44, %v2336_v44  ;;  %v2664_v51 = vpack.c.bf16 %v2402_v45, %v2402_v45 }
 0x146   : > { %v2467_v49 = vpack.c.bf16 %v2205_v46, %v2205_v46  ;;  %v2533_v50 = vpack.c.bf16 %v2271_v47, %v2271_v47 }
 0x147   : > { %2861 = vst.msk [vmem:[%s3999_s4 + $0x260] sm:$0xf] %vm2708_vm3, %v2598_v48 }
 0x148   : > { %2730 = vst.msk [vmem:[%s3999_s4 + $0x54] sm:$0xf] %vm2708_vm3, %v2467_v49  ;;  %v1911_v52 = vpop.f32.mrf.mxu2  ;;  %v2076_v55 = vpop.f32.mrf.mxu3 }
 0x149   : > { %2796 = vst.msk [vmem:[%s3999_s4 + $0x15c] sm:$0xf] %vm2708_vm3, %v2533_v50  ;;  %v1912_v56 = vadd.f32 %v4342_v41, %v1911_v52  ;;  %v1584_v57 = vpop.f32.mrf.mxu0  ;;  %v1749_v58 = vpop.f32.mrf.mxu1  ;;  %v2077_v60 = vadd.f32 %v4342_v41, %v2076_v55 }
 0x14a   : > { %2927 = vst.msk [vmem:[%s3999_s4 + $0x368] sm:$0xf] %vm2708_vm3, %v2664_v51  ;;  %v1585_v62 = vadd.f32 %v4342_v41, %v1584_v57  ;;  %v1750_v63 = vadd.f32 %v4342_v41, %v1749_v58 }
 0x14b   : > { %v2337_v0 = vmax.f32 %v1912_v56, 0.0  ;;  %v2403_v1 = vmax.f32 %v2077_v60, 0.0 }
 0x14c   : > { %v2206_v2 = vmax.f32 %v1585_v62, 0.0  ;;  %v2272_v3 = vmax.f32 %v1750_v63, 0.0  ;;  %3589 = vmatmul.msk.bf16.gmra.mxu0 %vm1119_vm2, %v3722_v53  ;;  %3622 = vmatmul.msk.bf16.gmra.mxu1 %vm1119_vm2, %v3755_v54  ;;  %v3724_v62 = vld [vmem:[%s3915_s26 + $0xa8] sm:$0xff]  ;;  %v3757_v63 = vld [vmem:[%s3915_s26 + $0x1b0] sm:$0xff] }
 0x14d   : > { %v2599_v4 = vpack.c.bf16 %v2337_v0, %v2337_v0  ;;  %3655 = vmatmul.msk.bf16.gmra.mxu2 %vm1119_vm2, %v3788_v59  ;;  %3688 = vmatmul.msk.bf16.gmra.mxu3 %vm1119_vm2, %v3821_v61  ;;  %v2665_v7 = vpack.c.bf16 %v2403_v1, %v2403_v1 }
 0x14e   : > { %v2468_v5 = vpack.c.bf16 %v2206_v2, %v2206_v2  ;;  %v2534_v6 = vpack.c.bf16 %v2272_v3, %v2272_v3 }
 0x14f   : > { %2862 = vst.msk [vmem:[%s3999_s4 + $0x264] sm:$0xf] %vm2708_vm3, %v2599_v4  ;;  %v3790_v4 = vld [vmem:[%s3915_s26 + $0x2b8] sm:$0xff] }
 0x150   : > { %2731 = vst.msk [vmem:[%s3999_s4 + $0x58] sm:$0xf] %vm2708_vm3, %v2468_v5  ;;  %v1914_v8 = vpop.f32.mrf.mxu2  ;;  %v2079_v9 = vpop.f32.mrf.mxu3 }
 0x151   : > { %2797 = vst.msk [vmem:[%s3999_s4 + $0x160] sm:$0xf] %vm2708_vm3, %v2534_v6  ;;  %v1915_v10 = vadd.f32 %v4342_v41, %v1914_v8  ;;  %v1586_v11 = vpop.f32.mrf.mxu0  ;;  %v1751_v12 = vpop.f32.mrf.mxu1  ;;  %v2080_v13 = vadd.f32 %v4342_v41, %v2079_v9  ;;  %v3823_v6 = vld [vmem:[%s3915_s26 + $0x3c0] sm:$0xff] }
 0x152   : > { %2928 = vst.msk [vmem:[%s3999_s4 + $0x36c] sm:$0xf] %vm2708_vm3, %v2665_v7  ;;  %v1587_v14 = vadd.f32 %v4342_v41, %v1586_v11  ;;  %v1752_v15 = vadd.f32 %v4342_v41, %v1751_v12 }
 0x153   : > { %v2338_v16 = vmax.f32 %v1915_v10, 0.0  ;;  %v2404_v17 = vmax.f32 %v2080_v13, 0.0 }
 0x154   : > { %v2207_v18 = vmax.f32 %v1587_v14, 0.0  ;;  %v2273_v19 = vmax.f32 %v1752_v15, 0.0 }
 0x155   : > { %v2600_v20 = vpack.c.bf16 %v2338_v16, %v2338_v16  ;;  %v2666_v23 = vpack.c.bf16 %v2404_v17, %v2404_v17 }
 0x156   : > { %v2469_v21 = vpack.c.bf16 %v2207_v18, %v2207_v18  ;;  %v2535_v22 = vpack.c.bf16 %v2273_v19, %v2273_v19 }
 0x157   : > { %2863 = vst.msk [vmem:[%s3999_s4 + $0x268] sm:$0xf] %vm2708_vm3, %v2600_v20 }
 0x158   : > { %2732 = vst.msk [vmem:[%s3999_s4 + $0x5c] sm:$0xf] %vm2708_vm3, %v2469_v21  ;;  %v1916_v24 = vpop.f32.mrf.mxu2  ;;  %v2081_v27 = vpop.f32.mrf.mxu3 }
 0x159   : > { %2798 = vst.msk [vmem:[%s3999_s4 + $0x164] sm:$0xf] %vm2708_vm3, %v2535_v22  ;;  %v1917_v28 = vadd.f32 %v4342_v41, %v1916_v24  ;;  %v1589_v29 = vpop.f32.mrf.mxu0  ;;  %v1754_v30 = vpop.f32.mrf.mxu1  ;;  %v2082_v32 = vadd.f32 %v4342_v41, %v2081_v27 }
 0x15a   : > { %2929 = vst.msk [vmem:[%s3999_s4 + $0x370] sm:$0xf] %vm2708_vm3, %v2666_v23  ;;  %v1590_v34 = vadd.f32 %v4342_v41, %v1589_v29  ;;  %v1755_v35 = vadd.f32 %v4342_v41, %v1754_v30 }
 0x15b   : > { %v2339_v36 = vmax.f32 %v1917_v28, 0.0  ;;  %v2405_v37 = vmax.f32 %v2082_v32, 0.0 }
 0x15c   : > { %v2208_v38 = vmax.f32 %v1590_v34, 0.0  ;;  %v2274_v39 = vmax.f32 %v1755_v35, 0.0  ;;  %3590 = vmatmul.msk.bf16.gmra.mxu0 %vm1119_vm2, %v3723_v25  ;;  %3623 = vmatmul.msk.bf16.gmra.mxu1 %vm1119_vm2, %v3756_v26  ;;  %v3725_v34 = vld [vmem:[%s3915_s26 + $0xb0] sm:$0xff]  ;;  %v3758_v35 = vld [vmem:[%s3915_s26 + $0x1b8] sm:$0xff] }
 0x15d   : > { %v2601_v40 = vpack.c.bf16 %v2339_v36, %v2339_v36  ;;  %3656 = vmatmul.msk.bf16.gmra.mxu2 %vm1119_vm2, %v3789_v31  ;;  %3689 = vmatmul.msk.bf16.gmra.mxu3 %vm1119_vm2, %v3822_v33  ;;  %v2667_v44 = vpack.c.bf16 %v2405_v37, %v2405_v37 }
 0x15e   : > { %v2470_v42 = vpack.c.bf16 %v2208_v38, %v2208_v38  ;;  %v2536_v43 = vpack.c.bf16 %v2274_v39, %v2274_v39 }
 0x15f   : > { %2864 = vst.msk [vmem:[%s3999_s4 + $0x26c] sm:$0xf] %vm2708_vm3, %v2601_v40  ;;  %v3791_v40 = vld [vmem:[%s3915_s26 + $0x2c0] sm:$0xff] }
 0x160   : > { %2733 = vst.msk [vmem:[%s3999_s4 + $0x60] sm:$0xf] %vm2708_vm3, %v2470_v42  ;;  %v1919_v45 = vpop.f32.mrf.mxu2  ;;  %v2084_v46 = vpop.f32.mrf.mxu3 }
 0x161   : > { %2799 = vst.msk [vmem:[%s3999_s4 + $0x168] sm:$0xf] %vm2708_vm3, %v2536_v43  ;;  %v1920_v47 = vadd.f32 %v4342_v41, %v1919_v45  ;;  %v1591_v48 = vpop.f32.mrf.mxu0  ;;  %v1756_v49 = vpop.f32.mrf.mxu1  ;;  %v2085_v50 = vadd.f32 %v4342_v41, %v2084_v46  ;;  %v3824_v43 = vld [vmem:[%s3915_s26 + $0x3c8] sm:$0xff] }
 0x162   : > { %2930 = vst.msk [vmem:[%s3999_s4 + $0x374] sm:$0xf] %vm2708_vm3, %v2667_v44  ;;  %v1592_v51 = vadd.f32 %v4342_v41, %v1591_v48  ;;  %v1757_v52 = vadd.f32 %v4342_v41, %v1756_v49 }
 0x163   : > { %v2340_v53 = vmax.f32 %v1920_v47, 0.0  ;;  %v2406_v54 = vmax.f32 %v2085_v50, 0.0 }
 0x164   : > { %v2209_v55 = vmax.f32 %v1592_v51, 0.0  ;;  %v2275_v56 = vmax.f32 %v1757_v52, 0.0 }
 0x165   : > { %v2602_v57 = vpack.c.bf16 %v2340_v53, %v2340_v53  ;;  %v2668_v60 = vpack.c.bf16 %v2406_v54, %v2406_v54 }
 0x166   : > { %v2471_v58 = vpack.c.bf16 %v2209_v55, %v2209_v55  ;;  %v2537_v59 = vpack.c.bf16 %v2275_v56, %v2275_v56 }
 0x167   : > { %2865 = vst.msk [vmem:[%s3999_s4 + $0x270] sm:$0xf] %vm2708_vm3, %v2602_v57 }
 0x168   : > { %2734 = vst.msk [vmem:[%s3999_s4 + $0x64] sm:$0xf] %vm2708_vm3, %v2471_v58  ;;  %v1921_v61 = vpop.f32.mrf.mxu2  ;;  %v2086_v0 = vpop.f32.mrf.mxu3 }
 0x169   : > { %2800 = vst.msk [vmem:[%s3999_s4 + $0x16c] sm:$0xf] %vm2708_vm3, %v2537_v59  ;;  %v1922_v1 = vadd.f32 %v4342_v41, %v1921_v61  ;;  %v1594_v2 = vpop.f32.mrf.mxu0  ;;  %v1759_v3 = vpop.f32.mrf.mxu1  ;;  %v2087_v5 = vadd.f32 %v4342_v41, %v2086_v0 }
 0x16a   : > { %2931 = vst.msk [vmem:[%s3999_s4 + $0x378] sm:$0xf] %vm2708_vm3, %v2668_v60  ;;  %v1595_v7 = vadd.f32 %v4342_v41, %v1594_v2  ;;  %v1760_v8 = vadd.f32 %v4342_v41, %v1759_v3 }
 0x16b   : > { %v2341_v9 = vmax.f32 %v1922_v1, 0.0  ;;  %v2407_v10 = vmax.f32 %v2087_v5, 0.0 }
 0x16c   : > { %v2210_v11 = vmax.f32 %v1595_v7, 0.0  ;;  %v2276_v12 = vmax.f32 %v1760_v8, 0.0  ;;  %3591 = vmatmul.msk.bf16.gmra.mxu0 %vm1119_vm2, %v3724_v62  ;;  %3624 = vmatmul.msk.bf16.gmra.mxu1 %vm1119_vm2, %v3757_v63  ;;  %v3726_v7 = vld [vmem:[%s3915_s26 + $0xb8] sm:$0xff]  ;;  %v3759_v8 = vld [vmem:[%s3915_s26 + $0x1c0] sm:$0xff] }
 0x16d   : > { %v2603_v13 = vpack.c.bf16 %v2341_v9, %v2341_v9  ;;  %3657 = vmatmul.msk.bf16.gmra.mxu2 %vm1119_vm2, %v3790_v4  ;;  %3690 = vmatmul.msk.bf16.gmra.mxu3 %vm1119_vm2, %v3823_v6  ;;  %v2669_v16 = vpack.c.bf16 %v2407_v10, %v2407_v10 }
 0x16e   : > { %v2472_v14 = vpack.c.bf16 %v2210_v11, %v2210_v11  ;;  %v2538_v15 = vpack.c.bf16 %v2276_v12, %v2276_v12 }
 0x16f   : > { %2866 = vst.msk [vmem:[%s3999_s4 + $0x274] sm:$0xf] %vm2708_vm3, %v2603_v13  ;;  %v3792_v13 = vld [vmem:[%s3915_s26 + $0x2c8] sm:$0xff] }
 0x170   : > { %2735 = vst.msk [vmem:[%s3999_s4 + $0x68] sm:$0xf] %vm2708_vm3, %v2472_v14  ;;  %v1924_v17 = vpop.f32.mrf.mxu2  ;;  %v2089_v18 = vpop.f32.mrf.mxu3 }
 0x171   : > { %2801 = vst.msk [vmem:[%s3999_s4 + $0x170] sm:$0xf] %vm2708_vm3, %v2538_v15  ;;  %v1925_v19 = vadd.f32 %v4342_v41, %v1924_v17  ;;  %v1596_v20 = vpop.f32.mrf.mxu0  ;;  %v1761_v21 = vpop.f32.mrf.mxu1  ;;  %v2090_v22 = vadd.f32 %v4342_v41, %v2089_v18  ;;  %v3825_v15 = vld [vmem:[%s3915_s26 + $0x3d0] sm:$0xff] }
 0x172   : > { %2932 = vst.msk [vmem:[%s3999_s4 + $0x37c] sm:$0xf] %vm2708_vm3, %v2669_v16  ;;  %v1597_v23 = vadd.f32 %v4342_v41, %v1596_v20  ;;  %v1762_v24 = vadd.f32 %v4342_v41, %v1761_v21 }
 0x173   : > { %v2342_v25 = vmax.f32 %v1925_v19, 0.0  ;;  %v2408_v26 = vmax.f32 %v2090_v22, 0.0 }
 0x174   : > { %v2211_v27 = vmax.f32 %v1597_v23, 0.0  ;;  %v2277_v28 = vmax.f32 %v1762_v24, 0.0 }
 0x175   : > { %v2604_v29 = vpack.c.bf16 %v2342_v25, %v2342_v25  ;;  %v2670_v32 = vpack.c.bf16 %v2408_v26, %v2408_v26 }
 0x176   : > { %v2473_v30 = vpack.c.bf16 %v2211_v27, %v2211_v27  ;;  %v2539_v31 = vpack.c.bf16 %v2277_v28, %v2277_v28 }
 0x177   : > { %2867 = vst.msk [vmem:[%s3999_s4 + $0x278] sm:$0xf] %vm2708_vm3, %v2604_v29 }
 0x178   : > { %2736 = vst.msk [vmem:[%s3999_s4 + $0x6c] sm:$0xf] %vm2708_vm3, %v2473_v30  ;;  %v1926_v33 = vpop.f32.mrf.mxu2  ;;  %v2091_v36 = vpop.f32.mrf.mxu3 }
 0x179   : > { %2802 = vst.msk [vmem:[%s3999_s4 + $0x174] sm:$0xf] %vm2708_vm3, %v2539_v31  ;;  %v1927_v37 = vadd.f32 %v4342_v41, %v1926_v33  ;;  %v1599_v38 = vpop.f32.mrf.mxu0  ;;  %v1764_v39 = vpop.f32.mrf.mxu1  ;;  %v2092_v42 = vadd.f32 %v4342_v41, %v2091_v36 }
 0x17a   : > { %2933 = vst.msk [vmem:[%s3999_s4 + $0x380] sm:$0xf] %vm2708_vm3, %v2670_v32  ;;  %v1600_v44 = vadd.f32 %v4342_v41, %v1599_v38  ;;  %v1765_v45 = vadd.f32 %v4342_v41, %v1764_v39 }
 0x17b   : > { %v2343_v46 = vmax.f32 %v1927_v37, 0.0  ;;  %v2409_v47 = vmax.f32 %v2092_v42, 0.0 }
 0x17c   : > { %v2212_v48 = vmax.f32 %v1600_v44, 0.0  ;;  %v2278_v49 = vmax.f32 %v1765_v45, 0.0  ;;  %3592 = vmatmul.msk.bf16.gmra.mxu0 %vm1119_vm2, %v3725_v34  ;;  %3625 = vmatmul.msk.bf16.gmra.mxu1 %vm1119_vm2, %v3758_v35  ;;  %v3727_v44 = vld [vmem:[%s3915_s26 + $0xc0] sm:$0xff]  ;;  %v3760_v45 = vld [vmem:[%s3915_s26 + $0x1c8] sm:$0xff] }
 0x17d   : > { %v2605_v50 = vpack.c.bf16 %v2343_v46, %v2343_v46  ;;  %3658 = vmatmul.msk.bf16.gmra.mxu2 %vm1119_vm2, %v3791_v40  ;;  %3691 = vmatmul.msk.bf16.gmra.mxu3 %vm1119_vm2, %v3824_v43  ;;  %v2671_v53 = vpack.c.bf16 %v2409_v47, %v2409_v47 }
 0x17e   : > { %v2474_v51 = vpack.c.bf16 %v2212_v48, %v2212_v48  ;;  %v2540_v52 = vpack.c.bf16 %v2278_v49, %v2278_v49 }
 0x17f   : > { %2868 = vst.msk [vmem:[%s3999_s4 + $0x27c] sm:$0xf] %vm2708_vm3, %v2605_v50  ;;  %v3793_v50 = vld [vmem:[%s3915_s26 + $0x2d0] sm:$0xff] }
 0x180   : > { %2737 = vst.msk [vmem:[%s3999_s4 + $0x70] sm:$0xf] %vm2708_vm3, %v2474_v51  ;;  %v1929_v54 = vpop.f32.mrf.mxu2  ;;  %v2094_v55 = vpop.f32.mrf.mxu3 }
 0x181   : > { %2803 = vst.msk [vmem:[%s3999_s4 + $0x178] sm:$0xf] %vm2708_vm3, %v2540_v52  ;;  %v1930_v56 = vadd.f32 %v4342_v41, %v1929_v54  ;;  %v1601_v57 = vpop.f32.mrf.mxu0  ;;  %v1766_v58 = vpop.f32.mrf.mxu1  ;;  %v2095_v59 = vadd.f32 %v4342_v41, %v2094_v55  ;;  %v3826_v52 = vld [vmem:[%s3915_s26 + $0x3d8] sm:$0xff] }
 0x182   : > { %2934 = vst.msk [vmem:[%s3999_s4 + $0x384] sm:$0xf] %vm2708_vm3, %v2671_v53  ;;  %v1602_v60 = vadd.f32 %v4342_v41, %v1601_v57  ;;  %v1767_v61 = vadd.f32 %v4342_v41, %v1766_v58 }
 0x183   : > { %v2344_v62 = vmax.f32 %v1930_v56, 0.0  ;;  %v2410_v63 = vmax.f32 %v2095_v59, 0.0 }
 0x184   : > { %v2213_v0 = vmax.f32 %v1602_v60, 0.0  ;;  %v2279_v1 = vmax.f32 %v1767_v61, 0.0 }
 0x185   : > { %v2606_v2 = vpack.c.bf16 %v2344_v62, %v2344_v62  ;;  %v2672_v5 = vpack.c.bf16 %v2410_v63, %v2410_v63 }
 0x186   : > { %v2475_v3 = vpack.c.bf16 %v2213_v0, %v2213_v0  ;;  %v2541_v4 = vpack.c.bf16 %v2279_v1, %v2279_v1 }
 0x187   : > { %2869 = vst.msk [vmem:[%s3999_s4 + $0x280] sm:$0xf] %vm2708_vm3, %v2606_v2 }
 0x188   : > { %2738 = vst.msk [vmem:[%s3999_s4 + $0x74] sm:$0xf] %vm2708_vm3, %v2475_v3  ;;  %v1931_v6 = vpop.f32.mrf.mxu2  ;;  %v2096_v9 = vpop.f32.mrf.mxu3 }
 0x189   : > { %2804 = vst.msk [vmem:[%s3999_s4 + $0x17c] sm:$0xf] %vm2708_vm3, %v2541_v4  ;;  %v1932_v10 = vadd.f32 %v4342_v41, %v1931_v6  ;;  %v1604_v11 = vpop.f32.mrf.mxu0  ;;  %v1769_v12 = vpop.f32.mrf.mxu1  ;;  %v2097_v14 = vadd.f32 %v4342_v41, %v2096_v9 }
 0x18a   : > { %2935 = vst.msk [vmem:[%s3999_s4 + $0x388] sm:$0xf] %vm2708_vm3, %v2672_v5  ;;  %v1605_v16 = vadd.f32 %v4342_v41, %v1604_v11  ;;  %v1770_v17 = vadd.f32 %v4342_v41, %v1769_v12 }
 0x18b   : > { %v2345_v18 = vmax.f32 %v1932_v10, 0.0  ;;  %v2411_v19 = vmax.f32 %v2097_v14, 0.0 }
 0x18c   : > { %v2214_v20 = vmax.f32 %v1605_v16, 0.0  ;;  %v2280_v21 = vmax.f32 %v1770_v17, 0.0  ;;  %3593 = vmatmul.msk.bf16.gmra.mxu0 %vm1119_vm2, %v3726_v7  ;;  %3626 = vmatmul.msk.bf16.gmra.mxu1 %vm1119_vm2, %v3759_v8  ;;  %v3728_v16 = vld [vmem:[%s3915_s26 + $0xc8] sm:$0xff]  ;;  %v3761_v17 = vld [vmem:[%s3915_s26 + $0x1d0] sm:$0xff] }
 0x18d   : > { %v2607_v22 = vpack.c.bf16 %v2345_v18, %v2345_v18  ;;  %3659 = vmatmul.msk.bf16.gmra.mxu2 %vm1119_vm2, %v3792_v13  ;;  %3692 = vmatmul.msk.bf16.gmra.mxu3 %vm1119_vm2, %v3825_v15  ;;  %v2673_v25 = vpack.c.bf16 %v2411_v19, %v2411_v19 }
 0x18e   : > { %v2476_v23 = vpack.c.bf16 %v2214_v20, %v2214_v20  ;;  %v2542_v24 = vpack.c.bf16 %v2280_v21, %v2280_v21 }
 0x18f   : > { %2870 = vst.msk [vmem:[%s3999_s4 + $0x284] sm:$0xf] %vm2708_vm3, %v2607_v22  ;;  %v3794_v22 = vld [vmem:[%s3915_s26 + $0x2d8] sm:$0xff] }
 0x190   : > { %2739 = vst.msk [vmem:[%s3999_s4 + $0x78] sm:$0xf] %vm2708_vm3, %v2476_v23  ;;  %v1934_v26 = vpop.f32.mrf.mxu2  ;;  %v2099_v27 = vpop.f32.mrf.mxu3 }
 0x191   : > { %2805 = vst.msk [vmem:[%s3999_s4 + $0x180] sm:$0xf] %vm2708_vm3, %v2542_v24  ;;  %v1935_v28 = vadd.f32 %v4342_v41, %v1934_v26  ;;  %v1606_v29 = vpop.f32.mrf.mxu0  ;;  %v1771_v30 = vpop.f32.mrf.mxu1  ;;  %v2100_v31 = vadd.f32 %v4342_v41, %v2099_v27  ;;  %v3827_v24 = vld [vmem:[%s3915_s26 + $0x3e0] sm:$0xff] }
 0x192   : > { %2936 = vst.msk [vmem:[%s3999_s4 + $0x38c] sm:$0xf] %vm2708_vm3, %v2673_v25  ;;  %v1607_v32 = vadd.f32 %v4342_v41, %v1606_v29  ;;  %v1772_v33 = vadd.f32 %v4342_v41, %v1771_v30 }
 0x193   : > { %v2346_v34 = vmax.f32 %v1935_v28, 0.0  ;;  %v2412_v35 = vmax.f32 %v2100_v31, 0.0 }
 0x194   : > { %v2215_v36 = vmax.f32 %v1607_v32, 0.0  ;;  %v2281_v37 = vmax.f32 %v1772_v33, 0.0 }
 0x195   : > { %v2608_v38 = vpack.c.bf16 %v2346_v34, %v2346_v34  ;;  %v2674_v42 = vpack.c.bf16 %v2412_v35, %v2412_v35 }
 0x196   : > { %v2477_v39 = vpack.c.bf16 %v2215_v36, %v2215_v36  ;;  %v2543_v40 = vpack.c.bf16 %v2281_v37, %v2281_v37 }
 0x197   : > { %2871 = vst.msk [vmem:[%s3999_s4 + $0x288] sm:$0xf] %vm2708_vm3, %v2608_v38 }
 0x198   : > { %2740 = vst.msk [vmem:[%s3999_s4 + $0x7c] sm:$0xf] %vm2708_vm3, %v2477_v39  ;;  %v1936_v43 = vpop.f32.mrf.mxu2  ;;  %v2101_v46 = vpop.f32.mrf.mxu3 }
 0x199   : > { %2806 = vst.msk [vmem:[%s3999_s4 + $0x184] sm:$0xf] %vm2708_vm3, %v2543_v40  ;;  %v1937_v47 = vadd.f32 %v4342_v41, %v1936_v43  ;;  %v1609_v48 = vpop.f32.mrf.mxu0  ;;  %v1774_v49 = vpop.f32.mrf.mxu1  ;;  %v2102_v51 = vadd.f32 %v4342_v41, %v2101_v46 }
 0x19a   : > { %2937 = vst.msk [vmem:[%s3999_s4 + $0x390] sm:$0xf] %vm2708_vm3, %v2674_v42  ;;  %v1610_v53 = vadd.f32 %v4342_v41, %v1609_v48  ;;  %v1775_v54 = vadd.f32 %v4342_v41, %v1774_v49 }
 0x19b   : > { %v2347_v55 = vmax.f32 %v1937_v47, 0.0  ;;  %v2413_v56 = vmax.f32 %v2102_v51, 0.0 }
 0x19c   : > { %v2216_v57 = vmax.f32 %v1610_v53, 0.0  ;;  %v2282_v58 = vmax.f32 %v1775_v54, 0.0  ;;  %3594 = vmatmul.msk.bf16.gmra.mxu0 %vm1119_vm2, %v3727_v44  ;;  %3627 = vmatmul.msk.bf16.gmra.mxu1 %vm1119_vm2, %v3760_v45  ;;  %v3729_v53 = vld [vmem:[%s3915_s26 + $0xd0] sm:$0xff]  ;;  %v3762_v54 = vld [vmem:[%s3915_s26 + $0x1d8] sm:$0xff] }
 0x19d   : > { %v2609_v59 = vpack.c.bf16 %v2347_v55, %v2347_v55  ;;  %3660 = vmatmul.msk.bf16.gmra.mxu2 %vm1119_vm2, %v3793_v50  ;;  %3693 = vmatmul.msk.bf16.gmra.mxu3 %vm1119_vm2, %v3826_v52  ;;  %v2675_v62 = vpack.c.bf16 %v2413_v56, %v2413_v56 }
 0x19e   : > { %v2478_v60 = vpack.c.bf16 %v2216_v57, %v2216_v57  ;;  %v2544_v61 = vpack.c.bf16 %v2282_v58, %v2282_v58 }
 0x19f   : > { %2872 = vst.msk [vmem:[%s3999_s4 + $0x28c] sm:$0xf] %vm2708_vm3, %v2609_v59  ;;  %v3795_v59 = vld [vmem:[%s3915_s26 + $0x2e0] sm:$0xff] }
 0x1a0   : > { %2741 = vst.msk [vmem:[%s3999_s4 + $0x80] sm:$0xf] %vm2708_vm3, %v2478_v60  ;;  %v1939_v63 = vpop.f32.mrf.mxu2  ;;  %v2104_v0 = vpop.f32.mrf.mxu3 }
 0x1a1   : > { %2807 = vst.msk [vmem:[%s3999_s4 + $0x188] sm:$0xf] %vm2708_vm3, %v2544_v61  ;;  %v1940_v1 = vadd.f32 %v4342_v41, %v1939_v63  ;;  %v1611_v2 = vpop.f32.mrf.mxu0  ;;  %v1776_v3 = vpop.f32.mrf.mxu1  ;;  %v2105_v4 = vadd.f32 %v4342_v41, %v2104_v0  ;;  %v3828_v61 = vld [vmem:[%s3915_s26 + $0x3e8] sm:$0xff] }
 0x1a2   : > { %2938 = vst.msk [vmem:[%s3999_s4 + $0x394] sm:$0xf] %vm2708_vm3, %v2675_v62  ;;  %v1612_v5 = vadd.f32 %v4342_v41, %v1611_v2  ;;  %v1777_v6 = vadd.f32 %v4342_v41, %v1776_v3 }
 0x1a3   : > { %v2348_v7 = vmax.f32 %v1940_v1, 0.0  ;;  %v2414_v8 = vmax.f32 %v2105_v4, 0.0 }
 0x1a4   : > { %v2217_v9 = vmax.f32 %v1612_v5, 0.0  ;;  %v2283_v10 = vmax.f32 %v1777_v6, 0.0 }
 0x1a5   : > { %v2610_v11 = vpack.c.bf16 %v2348_v7, %v2348_v7  ;;  %v2676_v14 = vpack.c.bf16 %v2414_v8, %v2414_v8 }
 0x1a6   : > { %v2479_v12 = vpack.c.bf16 %v2217_v9, %v2217_v9  ;;  %v2545_v13 = vpack.c.bf16 %v2283_v10, %v2283_v10 }
 0x1a7   : > { %2873 = vst.msk [vmem:[%s3999_s4 + $0x290] sm:$0xf] %vm2708_vm3, %v2610_v11 }
 0x1a8   : > { %2742 = vst.msk [vmem:[%s3999_s4 + $0x84] sm:$0xf] %vm2708_vm3, %v2479_v12  ;;  %v1941_v15 = vpop.f32.mrf.mxu2  ;;  %v2106_v18 = vpop.f32.mrf.mxu3 }
 0x1a9   : > { %2808 = vst.msk [vmem:[%s3999_s4 + $0x18c] sm:$0xf] %vm2708_vm3, %v2545_v13  ;;  %v1942_v19 = vadd.f32 %v4342_v41, %v1941_v15  ;;  %v1614_v20 = vpop.f32.mrf.mxu0  ;;  %v1779_v21 = vpop.f32.mrf.mxu1  ;;  %v2107_v23 = vadd.f32 %v4342_v41, %v2106_v18 }
 0x1aa   : > { %2939 = vst.msk [vmem:[%s3999_s4 + $0x398] sm:$0xf] %vm2708_vm3, %v2676_v14  ;;  %v1615_v25 = vadd.f32 %v4342_v41, %v1614_v20  ;;  %v1780_v26 = vadd.f32 %v4342_v41, %v1779_v21 }
 0x1ab   : > { %v2349_v27 = vmax.f32 %v1942_v19, 0.0  ;;  %v2415_v28 = vmax.f32 %v2107_v23, 0.0 }
 0x1ac   : > { %v2218_v29 = vmax.f32 %v1615_v25, 0.0  ;;  %v2284_v30 = vmax.f32 %v1780_v26, 0.0  ;;  %3595 = vmatmul.msk.bf16.gmra.mxu0 %vm1119_vm2, %v3728_v16  ;;  %3628 = vmatmul.msk.bf16.gmra.mxu1 %vm1119_vm2, %v3761_v17  ;;  %v3730_v25 = vld [vmem:[%s3915_s26 + $0xd8] sm:$0xff]  ;;  %v3763_v26 = vld [vmem:[%s3915_s26 + $0x1e0] sm:$0xff] }
 0x1ad   : > { %v2611_v31 = vpack.c.bf16 %v2349_v27, %v2349_v27  ;;  %3661 = vmatmul.msk.bf16.gmra.mxu2 %vm1119_vm2, %v3794_v22  ;;  %3694 = vmatmul.msk.bf16.gmra.mxu3 %vm1119_vm2, %v3827_v24  ;;  %v2677_v34 = vpack.c.bf16 %v2415_v28, %v2415_v28 }
 0x1ae   : > { %v2480_v32 = vpack.c.bf16 %v2218_v29, %v2218_v29  ;;  %v2546_v33 = vpack.c.bf16 %v2284_v30, %v2284_v30 }
 0x1af   : > { %2874 = vst.msk [vmem:[%s3999_s4 + $0x294] sm:$0xf] %vm2708_vm3, %v2611_v31  ;;  %v3796_v31 = vld [vmem:[%s3915_s26 + $0x2e8] sm:$0xff] }
 0x1b0   : > { %2743 = vst.msk [vmem:[%s3999_s4 + $0x88] sm:$0xf] %vm2708_vm3, %v2480_v32  ;;  %v1944_v35 = vpop.f32.mrf.mxu2  ;;  %v2109_v36 = vpop.f32.mrf.mxu3 }
 0x1b1   : > { %2809 = vst.msk [vmem:[%s3999_s4 + $0x190] sm:$0xf] %vm2708_vm3, %v2546_v33  ;;  %v1945_v37 = vadd.f32 %v4342_v41, %v1944_v35  ;;  %v1616_v38 = vpop.f32.mrf.mxu0  ;;  %v1781_v39 = vpop.f32.mrf.mxu1  ;;  %v2110_v40 = vadd.f32 %v4342_v41, %v2109_v36  ;;  %v3829_v33 = vld [vmem:[%s3915_s26 + $0x3f0] sm:$0xff] }
 0x1b2   : > { %2940 = vst.msk [vmem:[%s3999_s4 + $0x39c] sm:$0xf] %vm2708_vm3, %v2677_v34  ;;  %v1617_v42 = vadd.f32 %v4342_v41, %v1616_v38  ;;  %v1782_v43 = vadd.f32 %v4342_v41, %v1781_v39 }
 0x1b3   : > { %v2350_v44 = vmax.f32 %v1945_v37, 0.0  ;;  %v2416_v45 = vmax.f32 %v2110_v40, 0.0 }
 0x1b4   : > { %v2219_v46 = vmax.f32 %v1617_v42, 0.0  ;;  %v2285_v47 = vmax.f32 %v1782_v43, 0.0 }
 0x1b5   : > { %v2612_v48 = vpack.c.bf16 %v2350_v44, %v2350_v44  ;;  %v2678_v51 = vpack.c.bf16 %v2416_v45, %v2416_v45 }
 0x1b6   : > { %v2481_v49 = vpack.c.bf16 %v2219_v46, %v2219_v46  ;;  %v2547_v50 = vpack.c.bf16 %v2285_v47, %v2285_v47 }
 0x1b7   : > { %2875 = vst.msk [vmem:[%s3999_s4 + $0x298] sm:$0xf] %vm2708_vm3, %v2612_v48 }
 0x1b8   : > { %2744 = vst.msk [vmem:[%s3999_s4 + $0x8c] sm:$0xf] %vm2708_vm3, %v2481_v49  ;;  %v1946_v52 = vpop.f32.mrf.mxu2  ;;  %v2111_v55 = vpop.f32.mrf.mxu3 }
 0x1b9   : > { %2810 = vst.msk [vmem:[%s3999_s4 + $0x194] sm:$0xf] %vm2708_vm3, %v2547_v50  ;;  %v1947_v56 = vadd.f32 %v4342_v41, %v1946_v52  ;;  %v1619_v57 = vpop.f32.mrf.mxu0  ;;  %v1784_v58 = vpop.f32.mrf.mxu1  ;;  %v2112_v60 = vadd.f32 %v4342_v41, %v2111_v55 }
 0x1ba   : > { %2941 = vst.msk [vmem:[%s3999_s4 + $0x3a0] sm:$0xf] %vm2708_vm3, %v2678_v51  ;;  %v1620_v62 = vadd.f32 %v4342_v41, %v1619_v57  ;;  %v1785_v63 = vadd.f32 %v4342_v41, %v1784_v58 }
 0x1bb   : > { %v2351_v0 = vmax.f32 %v1947_v56, 0.0  ;;  %v2417_v1 = vmax.f32 %v2112_v60, 0.0 }
 0x1bc   : > { %v2220_v2 = vmax.f32 %v1620_v62, 0.0  ;;  %v2286_v3 = vmax.f32 %v1785_v63, 0.0  ;;  %3596 = vmatmul.msk.bf16.gmra.mxu0 %vm1119_vm2, %v3729_v53  ;;  %3629 = vmatmul.msk.bf16.gmra.mxu1 %vm1119_vm2, %v3762_v54  ;;  %v3731_v62 = vld [vmem:[%s3915_s26 + $0xe0] sm:$0xff]  ;;  %v3764_v63 = vld [vmem:[%s3915_s26 + $0x1e8] sm:$0xff] }
 0x1bd   : > { %v2613_v4 = vpack.c.bf16 %v2351_v0, %v2351_v0  ;;  %3662 = vmatmul.msk.bf16.gmra.mxu2 %vm1119_vm2, %v3795_v59  ;;  %3695 = vmatmul.msk.bf16.gmra.mxu3 %vm1119_vm2, %v3828_v61  ;;  %v2679_v7 = vpack.c.bf16 %v2417_v1, %v2417_v1 }
 0x1be   : > { %v2482_v5 = vpack.c.bf16 %v2220_v2, %v2220_v2  ;;  %v2548_v6 = vpack.c.bf16 %v2286_v3, %v2286_v3 }
 0x1bf   : > { %2876 = vst.msk [vmem:[%s3999_s4 + $0x29c] sm:$0xf] %vm2708_vm3, %v2613_v4  ;;  %v3797_v4 = vld [vmem:[%s3915_s26 + $0x2f0] sm:$0xff] }
 0x1c0   : > { %2745 = vst.msk [vmem:[%s3999_s4 + $0x90] sm:$0xf] %vm2708_vm3, %v2482_v5  ;;  %v1949_v8 = vpop.f32.mrf.mxu2  ;;  %v2114_v9 = vpop.f32.mrf.mxu3 }
 0x1c1   : > { %2811 = vst.msk [vmem:[%s3999_s4 + $0x198] sm:$0xf] %vm2708_vm3, %v2548_v6  ;;  %v1950_v10 = vadd.f32 %v4342_v41, %v1949_v8  ;;  %v1621_v11 = vpop.f32.mrf.mxu0  ;;  %v1786_v12 = vpop.f32.mrf.mxu1  ;;  %v2115_v13 = vadd.f32 %v4342_v41, %v2114_v9  ;;  %v3830_v6 = vld [vmem:[%s3915_s26 + $0x3f8] sm:$0xff] }
 0x1c2   : > { %2942 = vst.msk [vmem:[%s3999_s4 + $0x3a4] sm:$0xf] %vm2708_vm3, %v2679_v7  ;;  %v1622_v14 = vadd.f32 %v4342_v41, %v1621_v11  ;;  %v1787_v15 = vadd.f32 %v4342_v41, %v1786_v12 }
 0x1c3   : > { %v2352_v16 = vmax.f32 %v1950_v10, 0.0  ;;  %v2418_v17 = vmax.f32 %v2115_v13, 0.0 }
 0x1c4   : > { %v2221_v18 = vmax.f32 %v1622_v14, 0.0  ;;  %v2287_v19 = vmax.f32 %v1787_v15, 0.0 }
 0x1c5   : > { %v2614_v20 = vpack.c.bf16 %v2352_v16, %v2352_v16  ;;  %v2680_v23 = vpack.c.bf16 %v2418_v17, %v2418_v17 }
 0x1c6   : > { %v2483_v21 = vpack.c.bf16 %v2221_v18, %v2221_v18  ;;  %v2549_v22 = vpack.c.bf16 %v2287_v19, %v2287_v19 }
 0x1c7   : > { %2877 = vst.msk [vmem:[%s3999_s4 + $0x2a0] sm:$0xf] %vm2708_vm3, %v2614_v20 }
 0x1c8   : > { %2746 = vst.msk [vmem:[%s3999_s4 + $0x94] sm:$0xf] %vm2708_vm3, %v2483_v21  ;;  %v1951_v24 = vpop.f32.mrf.mxu2  ;;  %v2116_v27 = vpop.f32.mrf.mxu3 }
 0x1c9   : > { %2812 = vst.msk [vmem:[%s3999_s4 + $0x19c] sm:$0xf] %vm2708_vm3, %v2549_v22  ;;  %v1952_v28 = vadd.f32 %v4342_v41, %v1951_v24  ;;  %v1624_v29 = vpop.f32.mrf.mxu0  ;;  %v1789_v30 = vpop.f32.mrf.mxu1  ;;  %v2117_v32 = vadd.f32 %v4342_v41, %v2116_v27 }
 0x1ca   : > { %2943 = vst.msk [vmem:[%s3999_s4 + $0x3a8] sm:$0xf] %vm2708_vm3, %v2680_v23  ;;  %v1625_v34 = vadd.f32 %v4342_v41, %v1624_v29  ;;  %v1790_v35 = vadd.f32 %v4342_v41, %v1789_v30 }
 0x1cb   : > { %v2353_v36 = vmax.f32 %v1952_v28, 0.0  ;;  %v2419_v37 = vmax.f32 %v2117_v32, 0.0 }
 0x1cc   : > { %v2222_v38 = vmax.f32 %v1625_v34, 0.0  ;;  %v2288_v39 = vmax.f32 %v1790_v35, 0.0  ;;  %3597 = vmatmul.msk.bf16.gmra.mxu0 %vm1119_vm2, %v3730_v25  ;;  %3630 = vmatmul.msk.bf16.gmra.mxu1 %vm1119_vm2, %v3763_v26  ;;  %v3732_v34 = vld [vmem:[%s3915_s26 + $0xe8] sm:$0xff]  ;;  %v3765_v35 = vld [vmem:[%s3915_s26 + $0x1f0] sm:$0xff] }
 0x1cd   : > { %v2615_v40 = vpack.c.bf16 %v2353_v36, %v2353_v36  ;;  %3663 = vmatmul.msk.bf16.gmra.mxu2 %vm1119_vm2, %v3796_v31  ;;  %3696 = vmatmul.msk.bf16.gmra.mxu3 %vm1119_vm2, %v3829_v33  ;;  %v2681_v44 = vpack.c.bf16 %v2419_v37, %v2419_v37 }
 0x1ce   : > { %v2484_v42 = vpack.c.bf16 %v2222_v38, %v2222_v38  ;;  %v2550_v43 = vpack.c.bf16 %v2288_v39, %v2288_v39 }
 0x1cf   : > { %2878 = vst.msk [vmem:[%s3999_s4 + $0x2a4] sm:$0xf] %vm2708_vm3, %v2615_v40  ;;  %v3798_v40 = vld [vmem:[%s3915_s26 + $0x2f8] sm:$0xff] }
 0x1d0   : > { %2747 = vst.msk [vmem:[%s3999_s4 + $0x98] sm:$0xf] %vm2708_vm3, %v2484_v42  ;;  %v1954_v45 = vpop.f32.mrf.mxu2  ;;  %v2119_v46 = vpop.f32.mrf.mxu3 }
 0x1d1   : > { %2813 = vst.msk [vmem:[%s3999_s4 + $0x1a0] sm:$0xf] %vm2708_vm3, %v2550_v43  ;;  %v1955_v47 = vadd.f32 %v4342_v41, %v1954_v45  ;;  %v1626_v48 = vpop.f32.mrf.mxu0  ;;  %v1791_v49 = vpop.f32.mrf.mxu1  ;;  %v2120_v50 = vadd.f32 %v4342_v41, %v2119_v46  ;;  %v3831_v43 = vld [vmem:[%s3915_s26 + $0x400] sm:$0xff] }
 0x1d2   : > { %2944 = vst.msk [vmem:[%s3999_s4 + $0x3ac] sm:$0xf] %vm2708_vm3, %v2681_v44  ;;  %v1627_v51 = vadd.f32 %v4342_v41, %v1626_v48  ;;  %v1792_v52 = vadd.f32 %v4342_v41, %v1791_v49 }
 0x1d3   : > { %v2354_v53 = vmax.f32 %v1955_v47, 0.0  ;;  %v2420_v54 = vmax.f32 %v2120_v50, 0.0 }
 0x1d4   : > { %v2223_v55 = vmax.f32 %v1627_v51, 0.0  ;;  %v2289_v56 = vmax.f32 %v1792_v52, 0.0 }
 0x1d5   : > { %v2616_v57 = vpack.c.bf16 %v2354_v53, %v2354_v53  ;;  %v2682_v60 = vpack.c.bf16 %v2420_v54, %v2420_v54 }
 0x1d6   : > { %v2485_v58 = vpack.c.bf16 %v2223_v55, %v2223_v55  ;;  %v2551_v59 = vpack.c.bf16 %v2289_v56, %v2289_v56 }
 0x1d7   : > { %2879 = vst.msk [vmem:[%s3999_s4 + $0x2a8] sm:$0xf] %vm2708_vm3, %v2616_v57 }
 0x1d8   : > { %2748 = vst.msk [vmem:[%s3999_s4 + $0x9c] sm:$0xf] %vm2708_vm3, %v2485_v58  ;;  %v1956_v61 = vpop.f32.mrf.mxu2  ;;  %v2121_v0 = vpop.f32.mrf.mxu3 }
 0x1d9   : > { %2814 = vst.msk [vmem:[%s3999_s4 + $0x1a4] sm:$0xf] %vm2708_vm3, %v2551_v59  ;;  %v1957_v1 = vadd.f32 %v4342_v41, %v1956_v61  ;;  %v1629_v2 = vpop.f32.mrf.mxu0  ;;  %v1794_v3 = vpop.f32.mrf.mxu1  ;;  %v2122_v5 = vadd.f32 %v4342_v41, %v2121_v0  ;;  %v4690_v61 = vld [vmem:[%s4992_s2] ss:$0 sm:$0xff] }
 0x1da   : > { %2945 = vst.msk [vmem:[%s3999_s4 + $0x3b0] sm:$0xf] %vm2708_vm3, %v2682_v60  ;;  %v1630_v7 = vadd.f32 %v4342_v41, %v1629_v2  ;;  %v1795_v8 = vadd.f32 %v4342_v41, %v1794_v3 }
 0x1db   : > { %v2355_v9 = vmax.f32 %v1957_v1, 0.0  ;;  %v2421_v10 = vmax.f32 %v2122_v5, 0.0 }
 0x1dc   : > { %v2224_v11 = vmax.f32 %v1630_v7, 0.0  ;;  %v2290_v12 = vmax.f32 %v1795_v8, 0.0  ;;  %3598 = vmatmul.msk.bf16.gmra.mxu0 %vm1119_vm2, %v3731_v62  ;;  %3631 = vmatmul.msk.bf16.gmra.mxu1 %vm1119_vm2, %v3764_v63  ;;  %v3733_v7 = vld [vmem:[%s3915_s26 + $0xf0] sm:$0xff]  ;;  %v3766_v8 = vld [vmem:[%s3915_s26 + $0x1f8] sm:$0xff] }
 0x1dd   : > { %v2617_v13 = vpack.c.bf16 %v2355_v9, %v2355_v9  ;;  %3664 = vmatmul.msk.bf16.gmra.mxu2 %vm1119_vm2, %v3797_v4  ;;  %3697 = vmatmul.msk.bf16.gmra.mxu3 %vm1119_vm2, %v3830_v6  ;;  %v2683_v16 = vpack.c.bf16 %v2421_v10, %v2421_v10 }
 0x1de   : > { %v2486_v14 = vpack.c.bf16 %v2224_v11, %v2224_v11  ;;  %v2552_v15 = vpack.c.bf16 %v2290_v12, %v2290_v12 }
 0x1df   : > { %2880 = vst.msk [vmem:[%s3999_s4 + $0x2ac] sm:$0xf] %vm2708_vm3, %v2617_v13  ;;  %v3799_v13 = vld [vmem:[%s3915_s26 + $0x300] sm:$0xff] }
 0x1e0   : > { %2749 = vst.msk [vmem:[%s3999_s4 + $0xa0] sm:$0xf] %vm2708_vm3, %v2486_v14  ;;  %v1959_v17 = vpop.f32.mrf.mxu2  ;;  %v2124_v18 = vpop.f32.mrf.mxu3 }
 0x1e1   : > { %2815 = vst.msk [vmem:[%s3999_s4 + $0x1a8] sm:$0xf] %vm2708_vm3, %v2552_v15  ;;  %v1960_v19 = vadd.f32 %v4342_v41, %v1959_v17  ;;  %v1631_v20 = vpop.f32.mrf.mxu0  ;;  %v1796_v21 = vpop.f32.mrf.mxu1  ;;  %v2125_v22 = vadd.f32 %v4342_v41, %v2124_v18  ;;  %v3832_v15 = vld [vmem:[%s3915_s26 + $0x408] sm:$0xff] }
 0x1e2   : > { %2946 = vst.msk [vmem:[%s3999_s4 + $0x3b4] sm:$0xf] %vm2708_vm3, %v2683_v16  ;;  %v1632_v23 = vadd.f32 %v4342_v41, %v1631_v20  ;;  %v1797_v24 = vadd.f32 %v4342_v41, %v1796_v21 }
 0x1e3   : > { %v2356_v25 = vmax.f32 %v1960_v19, 0.0  ;;  %v2422_v26 = vmax.f32 %v2125_v22, 0.0 }
 0x1e4   : > { %v2225_v27 = vmax.f32 %v1632_v23, 0.0  ;;  %v2291_v28 = vmax.f32 %v1797_v24, 0.0 }
 0x1e5   : > { %v2618_v29 = vpack.c.bf16 %v2356_v25, %v2356_v25  ;;  %v2684_v32 = vpack.c.bf16 %v2422_v26, %v2422_v26 }
 0x1e6   : > { %v2487_v30 = vpack.c.bf16 %v2225_v27, %v2225_v27  ;;  %v2553_v31 = vpack.c.bf16 %v2291_v28, %v2291_v28 }
 0x1e7   : > { %2881 = vst.msk [vmem:[%s3999_s4 + $0x2b0] sm:$0xf] %vm2708_vm3, %v2618_v29 }
 0x1e8   : > { %2750 = vst.msk [vmem:[%s3999_s4 + $0xa4] sm:$0xf] %vm2708_vm3, %v2487_v30  ;;  %v1961_v33 = vpop.f32.mrf.mxu2  ;;  %v2126_v36 = vpop.f32.mrf.mxu3 }
 0x1e9   : > { %2816 = vst.msk [vmem:[%s3999_s4 + $0x1ac] sm:$0xf] %vm2708_vm3, %v2553_v31  ;;  %v1962_v37 = vadd.f32 %v4342_v41, %v1961_v33  ;;  %v1634_v38 = vpop.f32.mrf.mxu0  ;;  %v1799_v39 = vpop.f32.mrf.mxu1  ;;  %v2127_v42 = vadd.f32 %v4342_v41, %v2126_v36 }
 0x1ea   : > { %2947 = vst.msk [vmem:[%s3999_s4 + $0x3b8] sm:$0xf] %vm2708_vm3, %v2684_v32  ;;  %v1635_v44 = vadd.f32 %v4342_v41, %v1634_v38  ;;  %v1800_v45 = vadd.f32 %v4342_v41, %v1799_v39 }
 0x1eb   : > { %v2357_v46 = vmax.f32 %v1962_v37, 0.0  ;;  %v2423_v47 = vmax.f32 %v2127_v42, 0.0 }
 0x1ec   : > { %v2226_v48 = vmax.f32 %v1635_v44, 0.0  ;;  %v2292_v49 = vmax.f32 %v1800_v45, 0.0  ;;  %3599 = vmatmul.msk.bf16.gmra.mxu0 %vm1119_vm2, %v3732_v34  ;;  %3632 = vmatmul.msk.bf16.gmra.mxu1 %vm1119_vm2, %v3765_v35  ;;  %v3734_v44 = vld [vmem:[%s3915_s26 + $0xf8] sm:$0xff]  ;;  %v3767_v45 = vld [vmem:[%s3915_s26 + $0x200] sm:$0xff] }
 0x1ed   : > { %v2619_v50 = vpack.c.bf16 %v2357_v46, %v2357_v46  ;;  %3665 = vmatmul.msk.bf16.gmra.mxu2 %vm1119_vm2, %v3798_v40  ;;  %3698 = vmatmul.msk.bf16.gmra.mxu3 %vm1119_vm2, %v3831_v43  ;;  %v2685_v53 = vpack.c.bf16 %v2423_v47, %v2423_v47 }
 0x1ee   : > { %v2488_v51 = vpack.c.bf16 %v2226_v48, %v2226_v48  ;;  %v2554_v52 = vpack.c.bf16 %v2292_v49, %v2292_v49 }
 0x1ef   : > { %2882 = vst.msk [vmem:[%s3999_s4 + $0x2b4] sm:$0xf] %vm2708_vm3, %v2619_v50  ;;  %v3800_v50 = vld [vmem:[%s3915_s26 + $0x308] sm:$0xff] }
 0x1f0   : > { %2751 = vst.msk [vmem:[%s3999_s4 + $0xa8] sm:$0xf] %vm2708_vm3, %v2488_v51  ;;  %v1964_v54 = vpop.f32.mrf.mxu2  ;;  %v2129_v55 = vpop.f32.mrf.mxu3 }
 0x1f1   : > { %2817 = vst.msk [vmem:[%s3999_s4 + $0x1b0] sm:$0xf] %vm2708_vm3, %v2554_v52  ;;  %v1965_v56 = vadd.f32 %v4342_v41, %v1964_v54  ;;  %v1636_v57 = vpop.f32.mrf.mxu0  ;;  %v1801_v58 = vpop.f32.mrf.mxu1  ;;  %v2130_v59 = vadd.f32 %v4342_v41, %v2129_v55  ;;  %v3833_v52 = vld [vmem:[%s3915_s26 + $0x410] sm:$0xff] }
 0x1f2   : > { %2948 = vst.msk [vmem:[%s3999_s4 + $0x3bc] sm:$0xf] %vm2708_vm3, %v2685_v53  ;;  %v1637_v60 = vadd.f32 %v4342_v41, %v1636_v57  ;;  %v1802_v62 = vadd.f32 %v4690_v61, %v1801_v58 }
 0x1f3   : > { %v2358_v63 = vmax.f32 %v1965_v56, 0.0  ;;  %v2424_v0 = vmax.f32 %v2130_v59, 0.0 }
 0x1f4   : > { %v2227_v1 = vmax.f32 %v1637_v60, 0.0  ;;  %v2293_v2 = vmax.f32 %v1802_v62, 0.0 }
 0x1f5   : > { %v2620_v3 = vpack.c.bf16 %v2358_v63, %v2358_v63  ;;  %v2686_v6 = vpack.c.bf16 %v2424_v0, %v2424_v0 }
 0x1f6   : > { %v2489_v4 = vpack.c.bf16 %v2227_v1, %v2227_v1  ;;  %v2555_v5 = vpack.c.bf16 %v2293_v2, %v2293_v2 }
 0x1f7   : > { %2883 = vst.msk [vmem:[%s3999_s4 + $0x2b8] sm:$0xf] %vm2708_vm3, %v2620_v3 }
 0x1f8   : > { %2752 = vst.msk [vmem:[%s3999_s4 + $0xac] sm:$0xf] %vm2708_vm3, %v2489_v4  ;;  %v1966_v41 = vpop.f32.mrf.mxu2  ;;  %v2131_v9 = vpop.f32.mrf.mxu3 }
 0x1f9   : > { %2818 = vst.msk [vmem:[%s3999_s4 + $0x1b4] sm:$0xf] %vm2708_vm3, %v2555_v5  ;;  %v1967_v10 = vadd.f32 %v4690_v61, %v1966_v41  ;;  %v1639_v11 = vpop.f32.mrf.mxu0  ;;  %v1804_v12 = vpop.f32.mrf.mxu1  ;;  %v2132_v14 = vadd.f32 %v4690_v61, %v2131_v9 }
 0x1fa   : > { %2949 = vst.msk [vmem:[%s3999_s4 + $0x3c0] sm:$0xf] %vm2708_vm3, %v2686_v6  ;;  %v1640_v16 = vadd.f32 %v4690_v61, %v1639_v11  ;;  %v1805_v17 = vadd.f32 %v4690_v61, %v1804_v12 }
 0x1fb   : > { %v2359_v18 = vmax.f32 %v1967_v10, 0.0  ;;  %v2425_v19 = vmax.f32 %v2132_v14, 0.0 }
 0x1fc   : > { %v2228_v20 = vmax.f32 %v1640_v16, 0.0  ;;  %v2294_v21 = vmax.f32 %v1805_v17, 0.0  ;;  %3600 = vmatmul.msk.bf16.gmra.mxu0 %vm1119_vm2, %v3733_v7  ;;  %3633 = vmatmul.msk.bf16.gmra.mxu1 %vm1119_vm2, %v3766_v8  ;;  %v3735_v16 = vld [vmem:[%s3915_s26 + $0x100] sm:$0xff]  ;;  %v3768_v17 = vld [vmem:[%s3915_s26 + $0x208] sm:$0xff] }
 0x1fd   : > { %v2621_v22 = vpack.c.bf16 %v2359_v18, %v2359_v18  ;;  %3666 = vmatmul.msk.bf16.gmra.mxu2 %vm1119_vm2, %v3799_v13  ;;  %3699 = vmatmul.msk.bf16.gmra.mxu3 %vm1119_vm2, %v3832_v15  ;;  %v2687_v25 = vpack.c.bf16 %v2425_v19, %v2425_v19 }
 0x1fe   : > { %v2490_v23 = vpack.c.bf16 %v2228_v20, %v2228_v20  ;;  %v2556_v24 = vpack.c.bf16 %v2294_v21, %v2294_v21 }
 0x1ff   : > { %2884 = vst.msk [vmem:[%s3999_s4 + $0x2bc] sm:$0xf] %vm2708_vm3, %v2621_v22  ;;  %v3801_v22 = vld [vmem:[%s3915_s26 + $0x310] sm:$0xff] }
 0x200   : > { %2753 = vst.msk [vmem:[%s3999_s4 + $0xb0] sm:$0xf] %vm2708_vm3, %v2490_v23  ;;  %v1969_v26 = vpop.f32.mrf.mxu2  ;;  %v2134_v27 = vpop.f32.mrf.mxu3 }
 0x201   : > { %2819 = vst.msk [vmem:[%s3999_s4 + $0x1b8] sm:$0xf] %vm2708_vm3, %v2556_v24  ;;  %v1970_v28 = vadd.f32 %v4690_v61, %v1969_v26  ;;  %v1641_v29 = vpop.f32.mrf.mxu0  ;;  %v1806_v30 = vpop.f32.mrf.mxu1  ;;  %v2135_v31 = vadd.f32 %v4690_v61, %v2134_v27 }
 0x202   : > { %2950 = vst.msk [vmem:[%s3999_s4 + $0x3c4] sm:$0xf] %vm2708_vm3, %v2687_v25  ;;  %v1642_v32 = vadd.f32 %v4690_v61, %v1641_v29  ;;  %v1807_v33 = vadd.f32 %v4690_v61, %v1806_v30 }
 0x203   : > { %v2360_v34 = vmax.f32 %v1970_v28, 0.0  ;;  %v2426_v35 = vmax.f32 %v2135_v31, 0.0 }
 0x204   : > { %v2229_v36 = vmax.f32 %v1642_v32, 0.0  ;;  %v2295_v37 = vmax.f32 %v1807_v33, 0.0 }
 0x205   : > { %v2622_v38 = vpack.c.bf16 %v2360_v34, %v2360_v34  ;;  %v2688_v42 = vpack.c.bf16 %v2426_v35, %v2426_v35 }
 0x206   : > { %v2491_v39 = vpack.c.bf16 %v2229_v36, %v2229_v36  ;;  %v2557_v40 = vpack.c.bf16 %v2295_v37, %v2295_v37 }
 0x207   : > { %2885 = vst.msk [vmem:[%s3999_s4 + $0x2c0] sm:$0xf] %vm2708_vm3, %v2622_v38 }
 0x208   : > { %2754 = vst.msk [vmem:[%s3999_s4 + $0xb4] sm:$0xf] %vm2708_vm3, %v2491_v39  ;;  %v1971_v43 = vpop.f32.mrf.mxu2  ;;  %v2136_v46 = vpop.f32.mrf.mxu3 }
 0x209   : > { %2820 = vst.msk [vmem:[%s3999_s4 + $0x1bc] sm:$0xf] %vm2708_vm3, %v2557_v40  ;;  %v1972_v47 = vadd.f32 %v4690_v61, %v1971_v43  ;;  %v1644_v48 = vpop.f32.mrf.mxu0  ;;  %v1809_v49 = vpop.f32.mrf.mxu1  ;;  %v2137_v51 = vadd.f32 %v4690_v61, %v2136_v46 }
 0x20a   : > { %2951 = vst.msk [vmem:[%s3999_s4 + $0x3c8] sm:$0xf] %vm2708_vm3, %v2688_v42  ;;  %v1645_v53 = vadd.f32 %v4690_v61, %v1644_v48  ;;  %v1810_v54 = vadd.f32 %v4690_v61, %v1809_v49 }
 0x20b   : > { %v2361_v55 = vmax.f32 %v1972_v47, 0.0  ;;  %v2427_v56 = vmax.f32 %v2137_v51, 0.0 }
 0x20c   : > { %v2230_v57 = vmax.f32 %v1645_v53, 0.0  ;;  %v2296_v58 = vmax.f32 %v1810_v54, 0.0  ;;  %3601 = vmatmul.msk.bf16.gmra.mxu0 %vm1119_vm2, %v3734_v44  ;;  %3634 = vmatmul.msk.bf16.gmra.mxu1 %vm1119_vm2, %v3767_v45 }
 0x20d   : > { %v2623_v59 = vpack.c.bf16 %v2361_v55, %v2361_v55  ;;  %3667 = vmatmul.msk.bf16.gmra.mxu2 %vm1119_vm2, %v3800_v50  ;;  %3700 = vmatmul.msk.bf16.gmra.mxu3 %vm1119_vm2, %v3833_v52  ;;  %v2689_v63 = vpack.c.bf16 %v2427_v56, %v2427_v56 }
 0x20e   : > { %v2492_v60 = vpack.c.bf16 %v2230_v57, %v2230_v57  ;;  %v2558_v62 = vpack.c.bf16 %v2296_v58, %v2296_v58 }
 0x20f   : > { %2886 = vst.msk [vmem:[%s3999_s4 + $0x2c4] sm:$0xf] %vm2708_vm3, %v2623_v59 }
 0x210   : > { %2755 = vst.msk [vmem:[%s3999_s4 + $0xb8] sm:$0xf] %vm2708_vm3, %v2492_v60  ;;  %v1974_v0 = vpop.f32.mrf.mxu2  ;;  %v2139_v1 = vpop.f32.mrf.mxu3 }
 0x211   : > { %2821 = vst.msk [vmem:[%s3999_s4 + $0x1c0] sm:$0xf] %vm2708_vm3, %v2558_v62  ;;  %v1975_v2 = vadd.f32 %v4690_v61, %v1974_v0  ;;  %v1646_v3 = vpop.f32.mrf.mxu0  ;;  %v1811_v4 = vpop.f32.mrf.mxu1  ;;  %v2140_v5 = vadd.f32 %v4690_v61, %v2139_v1 }
 0x212   : > { %2952 = vst.msk [vmem:[%s3999_s4 + $0x3cc] sm:$0xf] %vm2708_vm3, %v2689_v63  ;;  %v1647_v6 = vadd.f32 %v4690_v61, %v1646_v3  ;;  %v1812_v41 = vadd.f32 %v4690_v61, %v1811_v4 }
 0x213   : > { %v2362_v7 = vmax.f32 %v1975_v2, 0.0  ;;  %v2428_v8 = vmax.f32 %v2140_v5, 0.0 }
 0x214   : > { %v2231_v9 = vmax.f32 %v1647_v6, 0.0  ;;  %v2297_v10 = vmax.f32 %v1812_v41, 0.0 }
 0x215   : > { %v2624_v11 = vpack.c.bf16 %v2362_v7, %v2362_v7  ;;  %v2690_v14 = vpack.c.bf16 %v2428_v8, %v2428_v8 }
 0x216   : > { %v2493_v12 = vpack.c.bf16 %v2231_v9, %v2231_v9  ;;  %v2559_v13 = vpack.c.bf16 %v2297_v10, %v2297_v10 }
 0x217   : > { %2887 = vst.msk [vmem:[%s3999_s4 + $0x2c8] sm:$0xf] %vm2708_vm3, %v2624_v11 }
 0x218   : > { %2756 = vst.msk [vmem:[%s3999_s4 + $0xbc] sm:$0xf] %vm2708_vm3, %v2493_v12  ;;  %v1976_v15 = vpop.f32.mrf.mxu2  ;;  %v2141_v18 = vpop.f32.mrf.mxu3 }
 0x219   : > { %2822 = vst.msk [vmem:[%s3999_s4 + $0x1c4] sm:$0xf] %vm2708_vm3, %v2559_v13  ;;  %v1977_v19 = vadd.f32 %v4690_v61, %v1976_v15  ;;  %v1649_v20 = vpop.f32.mrf.mxu0  ;;  %v1814_v21 = vpop.f32.mrf.mxu1  ;;  %v2142_v23 = vadd.f32 %v4690_v61, %v2141_v18 }
 0x21a   : > { %2953 = vst.msk [vmem:[%s3999_s4 + $0x3d0] sm:$0xf] %vm2708_vm3, %v2690_v14  ;;  %v1650_v24 = vadd.f32 %v4690_v61, %v1649_v20  ;;  %v1815_v25 = vadd.f32 %v4690_v61, %v1814_v21 }
 0x21b   : > { %v2363_v26 = vmax.f32 %v1977_v19, 0.0  ;;  %v2429_v27 = vmax.f32 %v2142_v23, 0.0 }
 0x21c   : > { %v2232_v28 = vmax.f32 %v1650_v24, 0.0  ;;  %v2298_v29 = vmax.f32 %v1815_v25, 0.0  ;;  %3602 = vmatmul.msk.bf16.gmra.mxu0 %vm1119_vm2, %v3735_v16  ;;  %3635 = vmatmul.msk.bf16.gmra.mxu1 %vm1119_vm2, %v3768_v17 }
 0x21d   : > { %v2625_v30 = vpack.c.bf16 %v2363_v26, %v2363_v26  ;;  %3668 = vmatmul.msk.bf16.gmra.mxu2 %vm1119_vm2, %v3801_v22  ;;  %v2691_v33 = vpack.c.bf16 %v2429_v27, %v2429_v27 }
 0x21e   : > { %v2494_v31 = vpack.c.bf16 %v2232_v28, %v2232_v28  ;;  %v2560_v32 = vpack.c.bf16 %v2298_v29, %v2298_v29 }
 0x21f   : > { %2888 = vst.msk [vmem:[%s3999_s4 + $0x2cc] sm:$0xf] %vm2708_vm3, %v2625_v30 }
 0x220   : > { %2757 = vst.msk [vmem:[%s3999_s4 + $0xc0] sm:$0xf] %vm2708_vm3, %v2494_v31  ;;  %v1979_v34 = vpop.f32.mrf.mxu2  ;;  %v2144_v35 = vpop.f32.mrf.mxu3 }
 0x221   : > { %2823 = vst.msk [vmem:[%s3999_s4 + $0x1c8] sm:$0xf] %vm2708_vm3, %v2560_v32  ;;  %v1980_v36 = vadd.f32 %v4690_v61, %v1979_v34  ;;  %v1651_v37 = vpop.f32.mrf.mxu0  ;;  %v1816_v38 = vpop.f32.mrf.mxu1  ;;  %v2145_v39 = vadd.f32 %v4690_v61, %v2144_v35 }
 0x222   : > { %2954 = vst.msk [vmem:[%s3999_s4 + $0x3d4] sm:$0xf] %vm2708_vm3, %v2691_v33  ;;  %v1652_v40 = vadd.f32 %v4690_v61, %v1651_v37  ;;  %v1817_v42 = vadd.f32 %v4690_v61, %v1816_v38 }
 0x223   : > { %v2364_v43 = vmax.f32 %v1980_v36, 0.0  ;;  %v2430_v44 = vmax.f32 %v2145_v39, 0.0 }
 0x224   : > { %v2233_v45 = vmax.f32 %v1652_v40, 0.0  ;;  %v2299_v46 = vmax.f32 %v1817_v42, 0.0 }
 0x225   : > { %v2626_v47 = vpack.c.bf16 %v2364_v43, %v2364_v43  ;;  %v2692_v50 = vpack.c.bf16 %v2430_v44, %v2430_v44 }
 0x226   : > { %v2495_v48 = vpack.c.bf16 %v2233_v45, %v2233_v45  ;;  %v2561_v49 = vpack.c.bf16 %v2299_v46, %v2299_v46 }
 0x227   : > { %2889 = vst.msk [vmem:[%s3999_s4 + $0x2d0] sm:$0xf] %vm2708_vm3, %v2626_v47 }
 0x228   : > { %2758 = vst.msk [vmem:[%s3999_s4 + $0xc4] sm:$0xf] %vm2708_vm3, %v2495_v48  ;;  %v1981_v51 = vpop.f32.mrf.mxu2  ;;  %v2146_v52 = vpop.f32.mrf.mxu3 }
 0x229   : > { %2824 = vst.msk [vmem:[%s3999_s4 + $0x1cc] sm:$0xf] %vm2708_vm3, %v2561_v49  ;;  %v1982_v53 = vadd.f32 %v4690_v61, %v1981_v51  ;;  %v1654_v54 = vpop.f32.mrf.mxu0  ;;  %v1819_v55 = vpop.f32.mrf.mxu1  ;;  %v2147_v56 = vadd.f32 %v4690_v61, %v2146_v52 }
 0x22a   : > { %2955 = vst.msk [vmem:[%s3999_s4 + $0x3d8] sm:$0xf] %vm2708_vm3, %v2692_v50  ;;  %v1655_v57 = vadd.f32 %v4690_v61, %v1654_v54  ;;  %v1820_v58 = vadd.f32 %v4690_v61, %v1819_v55 }
 0x22b   : > { %v2365_v59 = vmax.f32 %v1982_v53, 0.0  ;;  %v2431_v60 = vmax.f32 %v2147_v56, 0.0 }
 0x22c   : > { %v2234_v62 = vmax.f32 %v1655_v57, 0.0  ;;  %v2300_v63 = vmax.f32 %v1820_v58, 0.0 }
 0x22d   : > { %v2627_v0 = vpack.c.bf16 %v2365_v59, %v2365_v59  ;;  %v2693_v3 = vpack.c.bf16 %v2431_v60, %v2431_v60 }
 0x22e   : > { %v2496_v1 = vpack.c.bf16 %v2234_v62, %v2234_v62  ;;  %v2562_v2 = vpack.c.bf16 %v2300_v63, %v2300_v63 }
 0x22f   : > { %2890 = vst.msk [vmem:[%s3999_s4 + $0x2d4] sm:$0xf] %vm2708_vm3, %v2627_v0 }
 0x230   : > { %2759 = vst.msk [vmem:[%s3999_s4 + $0xc8] sm:$0xf] %vm2708_vm3, %v2496_v1  ;;  %v1984_v4 = vpop.f32.mrf.mxu2  ;;  %v2149_v5 = vpop.f32.mrf.mxu3 }
 0x231   : > { %2825 = vst.msk [vmem:[%s3999_s4 + $0x1d0] sm:$0xf] %vm2708_vm3, %v2562_v2  ;;  %v1985_v6 = vadd.f32 %v4690_v61, %v1984_v4  ;;  %v1656_v41 = vpop.f32.mrf.mxu0  ;;  %v1821_v7 = vpop.f32.mrf.mxu1  ;;  %v2150_v8 = vadd.f32 %v4690_v61, %v2149_v5 }
 0x232   : > { %2956 = vst.msk [vmem:[%s3999_s4 + $0x3dc] sm:$0xf] %vm2708_vm3, %v2693_v3  ;;  %v1657_v9 = vadd.f32 %v4690_v61, %v1656_v41  ;;  %v1822_v10 = vadd.f32 %v4690_v61, %v1821_v7 }
 0x233   : > { %v2366_v11 = vmax.f32 %v1985_v6, 0.0  ;;  %v2432_v12 = vmax.f32 %v2150_v8, 0.0 }
 0x234   : > { %v2235_v13 = vmax.f32 %v1657_v9, 0.0  ;;  %v2301_v14 = vmax.f32 %v1822_v10, 0.0 }
 0x235   : > { %v2628_v15 = vpack.c.bf16 %v2366_v11, %v2366_v11  ;;  %v2694_v18 = vpack.c.bf16 %v2432_v12, %v2432_v12 }
 0x236   : > { %v2497_v16 = vpack.c.bf16 %v2235_v13, %v2235_v13  ;;  %v2563_v17 = vpack.c.bf16 %v2301_v14, %v2301_v14 }
 0x237   : > { %2891 = vst.msk [vmem:[%s3999_s4 + $0x2d8] sm:$0xf] %vm2708_vm3, %v2628_v15 }
 0x238   : > { %2760 = vst.msk [vmem:[%s3999_s4 + $0xcc] sm:$0xf] %vm2708_vm3, %v2497_v16  ;;  %v1986_v19 = vpop.f32.mrf.mxu2  ;;  %v2151_v20 = vpop.f32.mrf.mxu3 }
 0x239   : > { %2826 = vst.msk [vmem:[%s3999_s4 + $0x1d4] sm:$0xf] %vm2708_vm3, %v2563_v17  ;;  %v1987_v21 = vadd.f32 %v4690_v61, %v1986_v19  ;;  %v1659_v22 = vpop.f32.mrf.mxu0  ;;  %v1824_v23 = vpop.f32.mrf.mxu1  ;;  %v2152_v24 = vadd.f32 %v4690_v61, %v2151_v20 }
 0x23a   : > { %2957 = vst.msk [vmem:[%s3999_s4 + $0x3e0] sm:$0xf] %vm2708_vm3, %v2694_v18  ;;  %v1660_v25 = vadd.f32 %v4690_v61, %v1659_v22  ;;  %v1825_v26 = vadd.f32 %v4690_v61, %v1824_v23 }
 0x23b   : > { %v2367_v27 = vmax.f32 %v1987_v21, 0.0  ;;  %v2433_v28 = vmax.f32 %v2152_v24, 0.0 }
 0x23c   : > { %v2236_v29 = vmax.f32 %v1660_v25, 0.0  ;;  %v2302_v30 = vmax.f32 %v1825_v26, 0.0 }
 0x23d   : > { %v2629_v31 = vpack.c.bf16 %v2367_v27, %v2367_v27  ;;  %v2695_v34 = vpack.c.bf16 %v2433_v28, %v2433_v28 }
 0x23e   : > { %v2498_v32 = vpack.c.bf16 %v2236_v29, %v2236_v29  ;;  %v2564_v33 = vpack.c.bf16 %v2302_v30, %v2302_v30 }
 0x23f   : > { %2892 = vst.msk [vmem:[%s3999_s4 + $0x2dc] sm:$0xf] %vm2708_vm3, %v2629_v31 }
 0x240   : > { %2761 = vst.msk [vmem:[%s3999_s4 + $0xd0] sm:$0xf] %vm2708_vm3, %v2498_v32  ;;  %v1989_v35 = vpop.f32.mrf.mxu2  ;;  %v2154_v36 = vpop.f32.mrf.mxu3 }
 0x241   : > { %2827 = vst.msk [vmem:[%s3999_s4 + $0x1d8] sm:$0xf] %vm2708_vm3, %v2564_v33  ;;  %v1990_v37 = vadd.f32 %v4690_v61, %v1989_v35  ;;  %v1661_v38 = vpop.f32.mrf.mxu0  ;;  %v1826_v39 = vpop.f32.mrf.mxu1  ;;  %v2155_v40 = vadd.f32 %v4690_v61, %v2154_v36 }
 0x242   : > { %2958 = vst.msk [vmem:[%s3999_s4 + $0x3e4] sm:$0xf] %vm2708_vm3, %v2695_v34  ;;  %v1662_v42 = vadd.f32 %v4690_v61, %v1661_v38  ;;  %v1827_v43 = vadd.f32 %v4690_v61, %v1826_v39 }
 0x243   : > { %v2368_v44 = vmax.f32 %v1990_v37, 0.0  ;;  %v2434_v45 = vmax.f32 %v2155_v40, 0.0 }
 0x244   : > { %v2237_v46 = vmax.f32 %v1662_v42, 0.0  ;;  %v2303_v47 = vmax.f32 %v1827_v43, 0.0 }
 0x245   : > { %v2630_v48 = vpack.c.bf16 %v2368_v44, %v2368_v44  ;;  %v2696_v51 = vpack.c.bf16 %v2434_v45, %v2434_v45 }
 0x246   : > { %v2499_v49 = vpack.c.bf16 %v2237_v46, %v2237_v46  ;;  %v2565_v50 = vpack.c.bf16 %v2303_v47, %v2303_v47 }
 0x247   : > { %2893 = vst.msk [vmem:[%s3999_s4 + $0x2e0] sm:$0xf] %vm2708_vm3, %v2630_v48 }
 0x248   : > { %2762 = vst.msk [vmem:[%s3999_s4 + $0xd4] sm:$0xf] %vm2708_vm3, %v2499_v49  ;;  %v1991_v52 = vpop.f32.mrf.mxu2  ;;  %v2156_v53 = vpop.f32.mrf.mxu3 }
 0x249   : > { %2828 = vst.msk [vmem:[%s3999_s4 + $0x1dc] sm:$0xf] %vm2708_vm3, %v2565_v50  ;;  %v1992_v54 = vadd.f32 %v4690_v61, %v1991_v52  ;;  %v1664_v55 = vpop.f32.mrf.mxu0  ;;  %v1829_v56 = vpop.f32.mrf.mxu1  ;;  %v2157_v57 = vadd.f32 %v4690_v61, %v2156_v53 }
 0x24a   : > { %2959 = vst.msk [vmem:[%s3999_s4 + $0x3e8] sm:$0xf] %vm2708_vm3, %v2696_v51  ;;  %v1665_v58 = vadd.f32 %v4690_v61, %v1664_v55  ;;  %v1830_v59 = vadd.f32 %v4690_v61, %v1829_v56 }
 0x24b   : > { %v2369_v60 = vmax.f32 %v1992_v54, 0.0  ;;  %v2435_v62 = vmax.f32 %v2157_v57, 0.0 }
 0x24c   : > { %v2238_v63 = vmax.f32 %v1665_v58, 0.0  ;;  %v2304_v0 = vmax.f32 %v1830_v59, 0.0 }
 0x24d   : > { %v2631_v1 = vpack.c.bf16 %v2369_v60, %v2369_v60  ;;  %v2697_v4 = vpack.c.bf16 %v2435_v62, %v2435_v62 }
 0x24e   : > { %v2500_v2 = vpack.c.bf16 %v2238_v63, %v2238_v63  ;;  %v2566_v3 = vpack.c.bf16 %v2304_v0, %v2304_v0 }
 0x24f   : > { %2894 = vst.msk [vmem:[%s3999_s4 + $0x2e4] sm:$0xf] %vm2708_vm3, %v2631_v1 }
 0x250   : > { %2763 = vst.msk [vmem:[%s3999_s4 + $0xd8] sm:$0xf] %vm2708_vm3, %v2500_v2  ;;  %v1994_v5 = vpop.f32.mrf.mxu2  ;;  %v2159_v6 = vpop.f32.mrf.mxu3 }
 0x251   : > { %2829 = vst.msk [vmem:[%s3999_s4 + $0x1e0] sm:$0xf] %vm2708_vm3, %v2566_v3  ;;  %v1995_v41 = vadd.f32 %v4690_v61, %v1994_v5  ;;  %v1666_v7 = vpop.f32.mrf.mxu0  ;;  %v1831_v8 = vpop.f32.mrf.mxu1  ;;  %v2160_v9 = vadd.f32 %v4690_v61, %v2159_v6 }
 0x252   : > { %2960 = vst.msk [vmem:[%s3999_s4 + $0x3ec] sm:$0xf] %vm2708_vm3, %v2697_v4  ;;  %v1667_v10 = vadd.f32 %v4690_v61, %v1666_v7  ;;  %v1832_v11 = vadd.f32 %v4690_v61, %v1831_v8 }
 0x253   : > { %v2370_v12 = vmax.f32 %v1995_v41, 0.0  ;;  %v2436_v13 = vmax.f32 %v2160_v9, 0.0 }
 0x254   : > { %v2239_v14 = vmax.f32 %v1667_v10, 0.0  ;;  %v2305_v15 = vmax.f32 %v1832_v11, 0.0 }
 0x255   : > { %v2632_v16 = vpack.c.bf16 %v2370_v12, %v2370_v12  ;;  %v2698_v19 = vpack.c.bf16 %v2436_v13, %v2436_v13 }
 0x256   : > { %v2501_v17 = vpack.c.bf16 %v2239_v14, %v2239_v14  ;;  %v2567_v18 = vpack.c.bf16 %v2305_v15, %v2305_v15 }
 0x257   : > { %2895 = vst.msk [vmem:[%s3999_s4 + $0x2e8] sm:$0xf] %vm2708_vm3, %v2632_v16 }
 0x258   : > { %2764 = vst.msk [vmem:[%s3999_s4 + $0xdc] sm:$0xf] %vm2708_vm3, %v2501_v17  ;;  %v1996_v20 = vpop.f32.mrf.mxu2  ;;  %v2161_v21 = vpop.f32.mrf.mxu3 }
 0x259   : > { %2830 = vst.msk [vmem:[%s3999_s4 + $0x1e4] sm:$0xf] %vm2708_vm3, %v2567_v18  ;;  %v1997_v22 = vadd.f32 %v4690_v61, %v1996_v20  ;;  %v1669_v23 = vpop.f32.mrf.mxu0  ;;  %v1834_v24 = vpop.f32.mrf.mxu1  ;;  %v2162_v25 = vadd.f32 %v4690_v61, %v2161_v21 }
 0x25a   : > { %2961 = vst.msk [vmem:[%s3999_s4 + $0x3f0] sm:$0xf] %vm2708_vm3, %v2698_v19  ;;  %v1670_v26 = vadd.f32 %v4690_v61, %v1669_v23  ;;  %v1835_v27 = vadd.f32 %v4690_v61, %v1834_v24 }
 0x25b   : > { %v2371_v28 = vmax.f32 %v1997_v22, 0.0  ;;  %v2437_v29 = vmax.f32 %v2162_v25, 0.0 }
 0x25c   : > { %v2240_v30 = vmax.f32 %v1670_v26, 0.0  ;;  %v2306_v31 = vmax.f32 %v1835_v27, 0.0 }
 0x25d   : > { %v2633_v32 = vpack.c.bf16 %v2371_v28, %v2371_v28  ;;  %v2699_v35 = vpack.c.bf16 %v2437_v29, %v2437_v29 }
 0x25e   : > { %v2502_v33 = vpack.c.bf16 %v2240_v30, %v2240_v30  ;;  %v2568_v34 = vpack.c.bf16 %v2306_v31, %v2306_v31 }
 0x25f   : > { %2896 = vst.msk [vmem:[%s3999_s4 + $0x2ec] sm:$0xf] %vm2708_vm3, %v2633_v32 }
 0x260   : > { %2765 = vst.msk [vmem:[%s3999_s4 + $0xe0] sm:$0xf] %vm2708_vm3, %v2502_v33  ;;  %v1999_v36 = vpop.f32.mrf.mxu2  ;;  %v2164_v37 = vpop.f32.mrf.mxu3 }
 0x261   : > { %2831 = vst.msk [vmem:[%s3999_s4 + $0x1e8] sm:$0xf] %vm2708_vm3, %v2568_v34  ;;  %v2000_v38 = vadd.f32 %v4690_v61, %v1999_v36  ;;  %v1671_v39 = vpop.f32.mrf.mxu0  ;;  %v1836_v40 = vpop.f32.mrf.mxu1  ;;  %v2165_v42 = vadd.f32 %v4690_v61, %v2164_v37 }
 0x262   : > { %2962 = vst.msk [vmem:[%s3999_s4 + $0x3f4] sm:$0xf] %vm2708_vm3, %v2699_v35  ;;  %v1672_v43 = vadd.f32 %v4690_v61, %v1671_v39  ;;  %v1837_v44 = vadd.f32 %v4690_v61, %v1836_v40 }
 0x263   : > { %v2372_v45 = vmax.f32 %v2000_v38, 0.0  ;;  %v2438_v46 = vmax.f32 %v2165_v42, 0.0 }
 0x264   : > { %v2241_v47 = vmax.f32 %v1672_v43, 0.0  ;;  %v2307_v48 = vmax.f32 %v1837_v44, 0.0 }
 0x265   : > { %v2634_v49 = vpack.c.bf16 %v2372_v45, %v2372_v45  ;;  %v2700_v52 = vpack.c.bf16 %v2438_v46, %v2438_v46 }
 0x266   : > { %v2503_v50 = vpack.c.bf16 %v2241_v47, %v2241_v47  ;;  %v2569_v51 = vpack.c.bf16 %v2307_v48, %v2307_v48 }
 0x267   : > { %2897 = vst.msk [vmem:[%s3999_s4 + $0x2f0] sm:$0xf] %vm2708_vm3, %v2634_v49 }
 0x268   : > { %2766 = vst.msk [vmem:[%s3999_s4 + $0xe4] sm:$0xf] %vm2708_vm3, %v2503_v50  ;;  %v2001_v53 = vpop.f32.mrf.mxu2  ;;  %v2166_v54 = vpop.f32.mrf.mxu3 }
 0x269   : > { %2832 = vst.msk [vmem:[%s3999_s4 + $0x1ec] sm:$0xf] %vm2708_vm3, %v2569_v51  ;;  %v2002_v55 = vadd.f32 %v4690_v61, %v2001_v53  ;;  %v1674_v56 = vpop.f32.mrf.mxu0  ;;  %v1839_v57 = vpop.f32.mrf.mxu1  ;;  %v2167_v58 = vadd.f32 %v4690_v61, %v2166_v54 }
 0x26a   : > { %2963 = vst.msk [vmem:[%s3999_s4 + $0x3f8] sm:$0xf] %vm2708_vm3, %v2700_v52  ;;  %v1675_v59 = vadd.f32 %v4690_v61, %v1674_v56  ;;  %v1840_v60 = vadd.f32 %v4690_v61, %v1839_v57 }
 0x26b   : > { %v2373_v62 = vmax.f32 %v2002_v55, 0.0  ;;  %v2439_v63 = vmax.f32 %v2167_v58, 0.0 }
 0x26c   : > { %v2242_v0 = vmax.f32 %v1675_v59, 0.0  ;;  %v2308_v1 = vmax.f32 %v1840_v60, 0.0 }
 0x26d   : > { %v2635_v2 = vpack.c.bf16 %v2373_v62, %v2373_v62  ;;  %v2701_v5 = vpack.c.bf16 %v2439_v63, %v2439_v63 }
 0x26e   : > { %v2504_v3 = vpack.c.bf16 %v2242_v0, %v2242_v0  ;;  %v2570_v4 = vpack.c.bf16 %v2308_v1, %v2308_v1 }
 0x26f   : > { %2898 = vst.msk [vmem:[%s3999_s4 + $0x2f4] sm:$0xf] %vm2708_vm3, %v2635_v2 }
 0x270   : > { %2767 = vst.msk [vmem:[%s3999_s4 + $0xe8] sm:$0xf] %vm2708_vm3, %v2504_v3  ;;  %v2004_v6 = vpop.f32.mrf.mxu2  ;;  %v2169_v41 = vpop.f32.mrf.mxu3 }
 0x271   : > { %2833 = vst.msk [vmem:[%s3999_s4 + $0x1f0] sm:$0xf] %vm2708_vm3, %v2570_v4  ;;  %v2005_v7 = vadd.f32 %v4690_v61, %v2004_v6  ;;  %v1676_v8 = vpop.f32.mrf.mxu0  ;;  %v1841_v9 = vpop.f32.mrf.mxu1  ;;  %v2170_v10 = vadd.f32 %v4690_v61, %v2169_v41 }
 0x272   : > { %2964 = vst.msk [vmem:[%s3999_s4 + $0x3fc] sm:$0xf] %vm2708_vm3, %v2701_v5  ;;  %v1677_v11 = vadd.f32 %v4690_v61, %v1676_v8  ;;  %v1842_v12 = vadd.f32 %v4690_v61, %v1841_v9 }
 0x273   : > { %v2374_v13 = vmax.f32 %v2005_v7, 0.0  ;;  %v2440_v14 = vmax.f32 %v2170_v10, 0.0 }
 0x274   : > { %v2243_v15 = vmax.f32 %v1677_v11, 0.0  ;;  %v2309_v16 = vmax.f32 %v1842_v12, 0.0 }
 0x275   : > { %v2636_v17 = vpack.c.bf16 %v2374_v13, %v2374_v13  ;;  %v2702_v20 = vpack.c.bf16 %v2440_v14, %v2440_v14 }
 0x276   : > { %v2505_v18 = vpack.c.bf16 %v2243_v15, %v2243_v15  ;;  %v2571_v19 = vpack.c.bf16 %v2309_v16, %v2309_v16 }
 0x277   : > { %2899 = vst.msk [vmem:[%s3999_s4 + $0x2f8] sm:$0xf] %vm2708_vm3, %v2636_v17 }
 0x278   : > { %2768 = vst.msk [vmem:[%s3999_s4 + $0xec] sm:$0xf] %vm2708_vm3, %v2505_v18  ;;  %v2006_v21 = vpop.f32.mrf.mxu2  ;;  %v2171_v22 = vpop.f32.mrf.mxu3 }
 0x279   : > { %2834 = vst.msk [vmem:[%s3999_s4 + $0x1f4] sm:$0xf] %vm2708_vm3, %v2571_v19  ;;  %v2007_v23 = vadd.f32 %v4690_v61, %v2006_v21  ;;  %v1679_v24 = vpop.f32.mrf.mxu0  ;;  %v1844_v25 = vpop.f32.mrf.mxu1  ;;  %v2172_v26 = vadd.f32 %v4690_v61, %v2171_v22 }
 0x27a   : > { %2965 = vst.msk [vmem:[%s3999_s4 + $0x400] sm:$0xf] %vm2708_vm3, %v2702_v20  ;;  %v1680_v27 = vadd.f32 %v4690_v61, %v1679_v24  ;;  %v1845_v28 = vadd.f32 %v4690_v61, %v1844_v25 }
 0x27b   : > { %v2375_v29 = vmax.f32 %v2007_v23, 0.0  ;;  %v2441_v30 = vmax.f32 %v2172_v26, 0.0 }
 0x27c   : > { %v2244_v31 = vmax.f32 %v1680_v27, 0.0  ;;  %v2310_v32 = vmax.f32 %v1845_v28, 0.0 }
 0x27d   : > { %v2637_v33 = vpack.c.bf16 %v2375_v29, %v2375_v29  ;;  %v2703_v36 = vpack.c.bf16 %v2441_v30, %v2441_v30 }
 0x27e   : > { %v2506_v34 = vpack.c.bf16 %v2244_v31, %v2244_v31  ;;  %v2572_v35 = vpack.c.bf16 %v2310_v32, %v2310_v32 }
 0x27f   : > { %2900 = vst.msk [vmem:[%s3999_s4 + $0x2fc] sm:$0xf] %vm2708_vm3, %v2637_v33 }
 0x280   : > { %2769 = vst.msk [vmem:[%s3999_s4 + $0xf0] sm:$0xf] %vm2708_vm3, %v2506_v34  ;;  %v2009_v37 = vpop.f32.mrf.mxu2  ;;  %v2174_v38 = vpop.f32.mrf.mxu3 }
 0x281   : > { %2835 = vst.msk [vmem:[%s3999_s4 + $0x1f8] sm:$0xf] %vm2708_vm3, %v2572_v35  ;;  %v2010_v39 = vadd.f32 %v4690_v61, %v2009_v37  ;;  %v1681_v40 = vpop.f32.mrf.mxu0  ;;  %v1846_v42 = vpop.f32.mrf.mxu1  ;;  %v2175_v43 = vadd.f32 %v4690_v61, %v2174_v38 }
 0x282   : > { %2966 = vst.msk [vmem:[%s3999_s4 + $0x404] sm:$0xf] %vm2708_vm3, %v2703_v36  ;;  %v1682_v44 = vadd.f32 %v4690_v61, %v1681_v40  ;;  %v1847_v45 = vadd.f32 %v4690_v61, %v1846_v42 }
 0x283   : > { %v2376_v46 = vmax.f32 %v2010_v39, 0.0  ;;  %v2442_v47 = vmax.f32 %v2175_v43, 0.0 }
 0x284   : > { %v2245_v48 = vmax.f32 %v1682_v44, 0.0  ;;  %v2311_v49 = vmax.f32 %v1847_v45, 0.0 }
 0x285   : > { %v2638_v50 = vpack.c.bf16 %v2376_v46, %v2376_v46  ;;  %v2704_v53 = vpack.c.bf16 %v2442_v47, %v2442_v47 }
 0x286   : > { %v2507_v51 = vpack.c.bf16 %v2245_v48, %v2245_v48  ;;  %v2573_v52 = vpack.c.bf16 %v2311_v49, %v2311_v49 }
 0x287   : > { %2901 = vst.msk [vmem:[%s3999_s4 + $0x300] sm:$0xf] %vm2708_vm3, %v2638_v50 }
 0x288   : > { %2770 = vst.msk [vmem:[%s3999_s4 + $0xf4] sm:$0xf] %vm2708_vm3, %v2507_v51  ;;  %v2011_v54 = vpop.f32.mrf.mxu2  ;;  %v2176_v55 = vpop.f32.mrf.mxu3 }
 0x289   : > { %2836 = vst.msk [vmem:[%s3999_s4 + $0x1fc] sm:$0xf] %vm2708_vm3, %v2573_v52  ;;  %v2012_v56 = vadd.f32 %v4690_v61, %v2011_v54  ;;  %v1684_v57 = vpop.f32.mrf.mxu0  ;;  %v1849_v58 = vpop.f32.mrf.mxu1  ;;  %v2177_v59 = vadd.f32 %v4690_v61, %v2176_v55 }
 0x28a   : > { %2967 = vst.msk [vmem:[%s3999_s4 + $0x408] sm:$0xf] %vm2708_vm3, %v2704_v53  ;;  %v1685_v60 = vadd.f32 %v4690_v61, %v1684_v57  ;;  %v1850_v62 = vadd.f32 %v4690_v61, %v1849_v58 }
 0x28b   : > { %v2377_v63 = vmax.f32 %v2012_v56, 0.0  ;;  %v2443_v0 = vmax.f32 %v2177_v59, 0.0 }
 0x28c   : > { %v2246_v1 = vmax.f32 %v1685_v60, 0.0  ;;  %v2312_v2 = vmax.f32 %v1850_v62, 0.0 }
 0x28d   : > { %v2639_v3 = vpack.c.bf16 %v2377_v63, %v2377_v63  ;;  %v2705_v6 = vpack.c.bf16 %v2443_v0, %v2443_v0 }
 0x28e   : > { %v2508_v4 = vpack.c.bf16 %v2246_v1, %v2246_v1  ;;  %v2574_v5 = vpack.c.bf16 %v2312_v2, %v2312_v2 }
 0x28f   : > { %2902 = vst.msk [vmem:[%s3999_s4 + $0x304] sm:$0xf] %vm2708_vm3, %v2639_v3 }
 0x290   : > { %2771 = vst.msk [vmem:[%s3999_s4 + $0xf8] sm:$0xf] %vm2708_vm3, %v2508_v4  ;;  %v2014_v41 = vpop.f32.mrf.mxu2  ;;  %v2179_v7 = vpop.f32.mrf.mxu3 }
 0x291   : > { %2837 = vst.msk [vmem:[%s3999_s4 + $0x200] sm:$0xf] %vm2708_vm3, %v2574_v5  ;;  %v2015_v8 = vadd.f32 %v4690_v61, %v2014_v41  ;;  %v1686_v9 = vpop.f32.mrf.mxu0  ;;  %v1851_v10 = vpop.f32.mrf.mxu1  ;;  %v2180_v11 = vadd.f32 %v4690_v61, %v2179_v7 }
 0x292   : > { %2968 = vst.msk [vmem:[%s3999_s4 + $0x40c] sm:$0xf] %vm2708_vm3, %v2705_v6  ;;  %v1687_v12 = vadd.f32 %v4690_v61, %v1686_v9  ;;  %v1852_v13 = vadd.f32 %v4690_v61, %v1851_v10 }
 0x293   : > { %v2378_v14 = vmax.f32 %v2015_v8, 0.0  ;;  %v2444_v15 = vmax.f32 %v2180_v11, 0.0 }
 0x294   : > { %v2247_v16 = vmax.f32 %v1687_v12, 0.0  ;;  %v2313_v17 = vmax.f32 %v1852_v13, 0.0 }
 0x295   : > { %v2640_v18 = vpack.c.bf16 %v2378_v14, %v2378_v14  ;;  %v2706_v21 = vpack.c.bf16 %v2444_v15, %v2444_v15 }
 0x296   : > { %v2509_v19 = vpack.c.bf16 %v2247_v16, %v2247_v16  ;;  %v2575_v20 = vpack.c.bf16 %v2313_v17, %v2313_v17 }
 0x297   : > { %2903 = vst.msk [vmem:[%s3999_s4 + $0x308] sm:$0xf] %vm2708_vm3, %v2640_v18 }
 0x298   : > { %2772 = vst.msk [vmem:[%s3999_s4 + $0xfc] sm:$0xf] %vm2708_vm3, %v2509_v19  ;;  %v2016_v22 = vpop.f32.mrf.mxu2  ;;  %v2181_v23 = vpop.f32.mrf.mxu3 }
 0x299   : > { %2838 = vst.msk [vmem:[%s3999_s4 + $0x204] sm:$0xf] %vm2708_vm3, %v2575_v20  ;;  %v2017_v24 = vadd.f32 %v4690_v61, %v2016_v22  ;;  %v1689_v25 = vpop.f32.mrf.mxu0  ;;  %v1854_v26 = vpop.f32.mrf.mxu1  ;;  %v2182_v27 = vadd.f32 %v4690_v61, %v2181_v23 }
 0x29a   : > { %2969 = vst.msk [vmem:[%s3999_s4 + $0x410] sm:$0xf] %vm2708_vm3, %v2706_v21  ;;  %v1690_v28 = vadd.f32 %v4690_v61, %v1689_v25  ;;  %v1855_v29 = vadd.f32 %v4690_v61, %v1854_v26 }
 0x29b   : > { %v2379_v30 = vmax.f32 %v2017_v24, 0.0  ;;  %v2445_v31 = vmax.f32 %v2182_v27, 0.0 }
 0x29c   : > { %v2248_v32 = vmax.f32 %v1690_v28, 0.0  ;;  %v2314_v33 = vmax.f32 %v1855_v29, 0.0 }
 0x29d   : > { %v2641_v34 = vpack.c.bf16 %v2379_v30, %v2379_v30  ;;  %v2707_v37 = vpack.c.bf16 %v2445_v31, %v2445_v31 }
 0x29e   : > { %v2510_v35 = vpack.c.bf16 %v2248_v32, %v2248_v32  ;;  %v2576_v36 = vpack.c.bf16 %v2314_v33, %v2314_v33 }
 0x29f   : > { %2904 = vst.msk [vmem:[%s3999_s4 + $0x30c] sm:$0xf] %vm2708_vm3, %v2641_v34 }
 0x2a0   : > { %2773 = vst.msk [vmem:[%s3999_s4 + $0x100] sm:$0xf] %vm2708_vm3, %v2510_v35  ;;  %v2019_v38 = vpop.f32.mrf.mxu2 }
 0x2a1   : > { %2839 = vst.msk [vmem:[%s3999_s4 + $0x208] sm:$0xf] %vm2708_vm3, %v2576_v36  ;;  %v2020_v39 = vadd.f32 %v4690_v61, %v2019_v38  ;;  %v1691_v40 = vpop.f32.mrf.mxu0  ;;  %v1856_v42 = vpop.f32.mrf.mxu1 }
 0x2a2   : > { %2970 = vst.msk [vmem:[%s3999_s4 + $0x414] sm:$0xf] %vm2708_vm3, %v2707_v37  ;;  %v1692_v43 = vadd.f32 %v4690_v61, %v1691_v40  ;;  %v1857_v44 = vadd.f32 %v4690_v61, %v1856_v42 }
 0x2a3   : > { %v2380_v45 = vmax.f32 %v2020_v39, 0.0 }
 0x2a4   : > { %v2249_v46 = vmax.f32 %v1692_v43, 0.0  ;;  %v2315_v47 = vmax.f32 %v1857_v44, 0.0 }
 0x2a5   : > { %v2642_v48 = vpack.c.bf16 %v2380_v45, %v2380_v45 }
 0x2a6   : > { %v2511_v49 = vpack.c.bf16 %v2249_v46, %v2249_v46  ;;  %v2577_v50 = vpack.c.bf16 %v2315_v47, %v2315_v47 }
 0x2a7   : > { %2905 = vst.msk [vmem:[%s3999_s4 + $0x310] sm:$0xf] %vm2708_vm3, %v2642_v48 }
 0x2a8   : > { %2774 = vst.msk [vmem:[%s3999_s4 + $0x104] sm:$0xf] %vm2708_vm3, %v2511_v49  ;;  %v2021_v51 = vpop.f32.mrf.mxu2 }
 0x2a9   : > { %2840 = vst.msk [vmem:[%s3999_s4 + $0x20c] sm:$0xf] %vm2708_vm3, %v2577_v50  ;;  %v2022_v52 = vadd.f32 %v4690_v61, %v2021_v51 }
 0x2ab   : > { %v2381_v53 = vmax.f32 %v2022_v52, 0.0 }
 0x2ad   : > { %v2643_v54 = vpack.c.bf16 %v2381_v53, %v2381_v53 }
 0x2af   : > { %2906 = vst.msk [vmem:[%s3999_s4 + $0x314] sm:$0xf] %vm2708_vm3, %v2643_v54 }
 0x2b0 PF: > { %s13_s12 = sadd.s32 1, %s3864_s12  }
 0x2b1   : > { %p10_p4 = scmp.ge.s32.totalorder %s13_s12, 4  }
 0x2b3   :  { %12 = sbr.rel (!%p10_p4) target bundleno = 1 (0x1), region = 62 }

// kernel: integrated_nn2_forward.4
= control target key start
LH: loop header
LB: loop body
LE: loop exit
PB: predicated region body
PF: predicated region fallthrough
CT: control target
= control target key end

     0   :  { %s2458_s12 = smov 0   ;;  %s3058_s0 = inlined_call_operand.vmem [shape: bf16[990,288], index: 0, kind: input, shape index: {}]   ;;  %s3059_s1 = inlined_call_operand.vmem [shape: bf16[288,48], index: 1, kind: input, shape index: {}]   ;;  %s3060_s2 = inlined_call_operand.vmem [shape: f32[1,48], index: 2, kind: input, shape index: {}]   ;;  %s3061_s3 = inlined_call_operand.vmem [shape: bf16[990,48], index: 3, kind: output, shape index: {}]  }
   0x1 LB: > { %s1806_s13 = sadd.s32 4294967295, %s2436_s12   ;;  %p1810_p0 = scmp.ge.s32.totalorder %s2436_s12, 1  ;;  %s2436_s12 = sphi %s2458_s12, %s13_s12  }
   0x2   : > { %p139_p1 = scmp.lt.s32.totalorder %s2436_s12, 3 }
   0x4   : > { %p140_p2 = pnand %p1810_p0, %p139_p1 }
   0x5   : > { %s164_s20 = smul.u32 (!%p140_p2), 62, %s1806_s13 }
   0x6   : > { %143 = sbr.rel (%p140_p2) target bundleno = 554 (0x22a), region = 32 }
   0x7   : > { %p165_p3 = scmp.lt.s32.totalorder (!%p140_p2), %s164_s20, 123 }
   0xb   : > { %v2390_v0 = vld [vmem:[%s3059_s1 + $0x38] sm:$0xff]  ;;  %v2477_v2 = vld [vmem:[%s3059_s1 + $0x88] sm:$0xff]  ;;  %v2389_v3 = vld [vmem:[%s3059_s1 + $0x30] sm:$0xff]  ;;  %s3063_s20 = smov (!%p165_p3, %s164_s20), 123  ;;  %vm915_vm0 = vcmask 261120   ;;  %vm1687_vm1 = vcmask 388096  }
   0xc   : > { %v2472_v1 = vld [vmem:[%s3059_s1 + $0x78] sm:$0xff]  ;;  %1009 = vmatpush.bf16.msra.mxu0 %v2390_v0  ;;  %2401 = vmatpush.bf16.msra.mxu3 %v2390_v0  ;;  %v2397_v4 = vld [vmem:[%s3059_s1 + $0x70] sm:$0xff]  ;;  %v2490_v5 = vld [vmem:[%s3059_s1 + $0x80] sm:$0xff]  ;;  %s2419_s29 = smul.u32 12, %s3063_s20  ;;  %s1812_s5 = sshll.u32 %s3063_s20, 2 }
   0xd   : > { %1173 = vmatpush.bf16.msra.mxu1 %v2472_v1  ;;  %1343 = vmatpush.bf16.msra.mxu2 %v2477_v2  ;;  %v2388_v6 = vld [vmem:[%s3059_s1 + $0x28] sm:$0xff]  ;;  %v2387_v11 = vld [vmem:[%s3059_s1 + $0x20] sm:$0xff]  ;;  %v2386_v13 = vld [vmem:[%s3059_s1 + $0x18] sm:$0xff]  ;;  %s2639_s20 = scalar_lea.vmem %s3061_s3, %s1812_s5 }
   0xe   : > { %v2396_v7 = vld [vmem:[%s3059_s1 + $0x68] sm:$0xff]  ;;  %s2505_s7 = scalar_lea.vmem %s3058_s0, %s2419_s29  ;;  %v2395_v12 = vld [vmem:[%s3059_s1 + $0x60] sm:$0xff]  ;;  %v2394_v14 = vld [vmem:[%s3059_s1 + $0x58] sm:$0xff] }
   0xf   : > { %v1823_v8 = vld [vmem:[%s2505_s7 + $0x8] sm:$0xf]  ;;  %v2292_v9 = vld [vmem:[%s2505_s7 + $0x10] sm:$0xf0]  ;;  %v1835_v17 = vld [vmem:[%s2505_s7 + $0x20] sm:$0xf] }
  0x10   : > { %1010 = vmatpush.bf16.msra.mxu0 %v2389_v3  ;;  %2402 = vmatpush.bf16.msra.mxu3 %v2389_v3  ;;  %v1824_v10 = vor.u32 %v2292_v9, %v1823_v8  ;;  %v2385_v15 = vld [vmem:[%s3059_s1 + $0x10] sm:$0xff]  ;;  %v2295_v18 = vld [vmem:[%s2505_s7 + $0x28] sm:$0xf0]  ;;  %v2383_v22 = vld [vmem:[%s3059_s1] sm:$0xff] }
  0x11   : > { %1174 = vmatpush.bf16.msra.mxu1 %v2397_v4  ;;  %1344 = vmatpush.bf16.msra.mxu2 %v2490_v5  ;;  %v2393_v16 = vld [vmem:[%s3059_s1 + $0x50] sm:$0xff]  ;;  %v2384_v19 = vld [vmem:[%s3059_s1 + $0x8] sm:$0xff]  ;;  %v1836_v21 = vor.u32 %v2295_v18, %v1835_v17  ;;  %v1815_v23 = vld [vmem:[%s2505_s7] sm:$0xf] }
  0x12   : > { %v2392_v20 = vld [vmem:[%s3059_s1 + $0x48] sm:$0xff]  ;;  %v2360_v26 = vld [vmem:[%s2505_s7 + $0x230] sm:$0xf0]  ;;  %v2391_v27 = vld [vmem:[%s3059_s1 + $0x40] sm:$0xff] }
  0x13   : > { %v2291_v24 = vld [vmem:[%s2505_s7 + $0x8] sm:$0xf0]  ;;  %v2091_v25 = vld [vmem:[%s2505_s7 + $0x228] sm:$0xf]  ;;  %v2290_v28 = vld [vmem:[%s2505_s7 + $0x4] sm:$0xf] }
  0x14   : > { %1011 = vmatpush.bf16.msra.mxu0 %v2388_v6  ;;  %2403 = vmatpush.bf16.msra.mxu3 %v2388_v6  ;;  %v1817_v29 = vld [vmem:[%s2505_s7 + $0xc] sm:$0xf0]  ;;  %v1816_v30 = vor.u32 %v2291_v24, %v1815_v23  ;;  %v2092_v31 = vor.u32 %v2360_v26, %v2091_v25  ;;  %v1847_v33 = vld [vmem:[%s2505_s7 + $0x38] sm:$0xf]  ;;  %v2298_v34 = vld [vmem:[%s2505_s7 + $0x40] sm:$0xf0] }
  0x15   : > { %1175 = vmatpush.bf16.msra.mxu1 %v2396_v7  ;;  %2257 = vmatmul.msk.bf16.vlgmr.msra.gmra.mxu2 %vm915_vm0, %v1824_v10  ;;  %v1820_v32 = vor.u32 %v2290_v28, %v1817_v29  ;;  %v1848_v35 = vor.u32 %v2298_v34, %v1847_v33  ;;  %v1827_v36 = vld [vmem:[%s2505_s7 + $0x18] sm:$0xf]  ;;  %v2294_v37 = vld [vmem:[%s2505_s7 + $0x20] sm:$0xf0]  ;;  %v2103_v38 = vld [vmem:[%s2505_s7 + $0x240] sm:$0xf] }
  0x16   : > { %v2363_v39 = vld [vmem:[%s2505_s7 + $0x248] sm:$0xf0]  ;;  %v2293_v40 = vld [vmem:[%s2505_s7 + $0x1c] sm:$0xf]  ;;  %v1829_v41 = vld [vmem:[%s2505_s7 + $0x24] sm:$0xf0]  ;;  %v1828_v42 = vor.u32 %v2294_v37, %v1827_v36 }
  0x17   : > { %v2104_v43 = vor.u32 %v2363_v39, %v2103_v38  ;;  %v1832_v44 = vor.u32 %v2293_v40, %v1829_v41  ;;  %v1859_v45 = vld [vmem:[%s2505_s7 + $0x50] sm:$0xf]  ;;  %v2301_v46 = vld [vmem:[%s2505_s7 + $0x58] sm:$0xf0]  ;;  %v2115_v50 = vld [vmem:[%s2505_s7 + $0x258] sm:$0xf] }
  0x18   : > { %1012 = vmatpush.bf16.msra.mxu0 %v2387_v11  ;;  %2404 = vmatpush.bf16.msra.mxu3 %v2387_v11  ;;  %v1860_v47 = vor.u32 %v2301_v46, %v1859_v45  ;;  %v1839_v48 = vld [vmem:[%s2505_s7 + $0x30] sm:$0xf]  ;;  %v2297_v49 = vld [vmem:[%s2505_s7 + $0x38] sm:$0xf0]  ;;  %v2366_v51 = vld [vmem:[%s2505_s7 + $0x260] sm:$0xf0] }
  0x19   : > { %1176 = vmatpush.bf16.msra.mxu1 %v2395_v12  ;;  %v2296_v52 = vld [vmem:[%s2505_s7 + $0x34] sm:$0xf]  ;;  %v1841_v53 = vld [vmem:[%s2505_s7 + $0x3c] sm:$0xf0]  ;;  %v1840_v54 = vor.u32 %v2297_v49, %v1839_v48  ;;  %v2116_v55 = vor.u32 %v2366_v51, %v2115_v50  ;;  %v1871_v57 = vld [vmem:[%s2505_s7 + $0x68] sm:$0xf] }
  0x1a   : > { %v1844_v56 = vor.u32 %v2296_v52, %v1841_v53  ;;  %v2304_v58 = vld [vmem:[%s2505_s7 + $0x70] sm:$0xf0]  ;;  %v1851_v60 = vld [vmem:[%s2505_s7 + $0x48] sm:$0xf]  ;;  %v2127_v62 = vld [vmem:[%s2505_s7 + $0x270] sm:$0xf] }
  0x1b   : > { %v1872_v59 = vor.u32 %v2304_v58, %v1871_v57  ;;  %v2300_v61 = vld [vmem:[%s2505_s7 + $0x50] sm:$0xf0]  ;;  %v2369_v63 = vld [vmem:[%s2505_s7 + $0x278] sm:$0xf0]  ;;  %v2299_v0 = vld [vmem:[%s2505_s7 + $0x4c] sm:$0xf] }
  0x1c   : > { %1013 = vmatpush.bf16.msra.mxu0 %v2386_v13  ;;  %2405 = vmatpush.bf16.msra.mxu3 %v2386_v13  ;;  %v2128_v3 = vor.u32 %v2369_v63, %v2127_v62  ;;  %v2307_v6 = vld [vmem:[%s2505_s7 + $0x88] sm:$0xf0]  ;;  %v1863_v8 = vld [vmem:[%s2505_s7 + $0x60] sm:$0xf]  ;;  %v2139_v10 = vld [vmem:[%s2505_s7 + $0x288] sm:$0xf] }
  0x1d   : > { %1177 = vmatpush.bf16.msra.mxu1 %v2394_v14  ;;  %v2303_v9 = vld [vmem:[%s2505_s7 + $0x68] sm:$0xf0]  ;;  %v2372_v11 = vld [vmem:[%s2505_s7 + $0x290] sm:$0xf0]  ;;  %v1865_v13 = vld [vmem:[%s2505_s7 + $0x6c] sm:$0xf0] }
  0x1e   : > { %v1895_v17 = vld [vmem:[%s2505_s7 + $0x98] sm:$0xf]  ;;  %v2310_v18 = vld [vmem:[%s2505_s7 + $0xa0] sm:$0xf0]  ;;  %v2375_v23 = vld [vmem:[%s2505_s7 + $0x2a8] sm:$0xf0] }
  0x1f   : > { %v2305_v24 = vld [vmem:[%s2505_s7 + $0x7c] sm:$0xf]  ;;  %v1877_v25 = vld [vmem:[%s2505_s7 + $0x84] sm:$0xf0]  ;;  %v1907_v29 = vld [vmem:[%s2505_s7 + $0xb0] sm:$0xf] }
  0x20   : > { %1014 = vmatpush.bf16.msra.mxu0 %v2385_v15  ;;  %2406 = vmatpush.bf16.msra.mxu3 %v2385_v15  ;;  %v2140_v15 = vor.u32 %v2372_v11, %v2139_v10  ;;  %v1880_v28 = vor.u32 %v2305_v24, %v1877_v25  ;;  %v2309_v33 = vld [vmem:[%s2505_s7 + $0x98] sm:$0xf0]  ;;  %v2163_v34 = vld [vmem:[%s2505_s7 + $0x2b8] sm:$0xf]  ;;  %v2308_v36 = vld [vmem:[%s2505_s7 + $0x94] sm:$0xf] }
  0x21   : > { %1178 = vmatpush.bf16.msra.mxu1 %v2393_v16  ;;  %v1889_v37 = vld [vmem:[%s2505_s7 + $0x9c] sm:$0xf0]  ;;  %v1919_v41 = vld [vmem:[%s2505_s7 + $0xc8] sm:$0xf]  ;;  %v2312_v45 = vld [vmem:[%s2505_s7 + $0xb0] sm:$0xf0] }
  0x22   : > { %v1892_v40 = vor.u32 %v2308_v36, %v1889_v37  ;;  %v2175_v46 = vld [vmem:[%s2505_s7 + $0x2d0] sm:$0xf]  ;;  %v2311_v48 = vld [vmem:[%s2505_s7 + $0xac] sm:$0xf]  ;;  %v1901_v49 = vld [vmem:[%s2505_s7 + $0xb4] sm:$0xf0] }
  0x23   : > { %v1904_v52 = vor.u32 %v2311_v48, %v1901_v49  ;;  %v1911_v58 = vld [vmem:[%s2505_s7 + $0xc0] sm:$0xf]  ;;  %v2314_v63 = vld [vmem:[%s2505_s7 + $0xc4] sm:$0xf]  ;;  %v2105_v25 = vld [vmem:[%s2505_s7 + $0x24c] sm:$0xf0] }
  0x24   : > { %1015 = vmatpush.bf16.msra.mxu0 %v2384_v19  ;;  %2407 = vmatpush.bf16.msra.mxu3 %v2384_v19  ;;  %v1896_v19 = vor.u32 %v2310_v18, %v1895_v17  ;;  %v2624_v62 = vld [vmem:[%s3060_s2] ss:$0 sm:$0xff]  ;;  %v2362_v24 = vld [vmem:[%s2505_s7 + $0x244] sm:$0xf] }
  0x25   : > { %1179 = vmatpush.bf16.msra.mxu1 %v2392_v20  ;;  %2258 = vmatmul.msk.bf16.gmra.mxu2 %vm915_vm0, %v1836_v21  ;;  %v2306_v21 = vld [vmem:[%s2505_s7 + $0x80] sm:$0xf0] }
  0x28   : > { %1016 = vmatpush.bf16.msra.mxu0 %v2383_v22  ;;  %2408 = vmatpush.bf16.msra.mxu3 %v2383_v22  ;;  %v2151_v22 = vld [vmem:[%s2505_s7 + $0x2a0] sm:$0xf] }
  0x29   : > { %1180 = vmatpush.bf16.msra.mxu1 %v2391_v27 }
  0x2b   : > { %1017 = vmatmul.bf16.vlgmr.msra.gmra.mxu0 %v1816_v30  ;;  %1132 = vmatmul.bf16.vlgmr.msra.gmra.mxu3 %v2092_v31  ;;  %v2313_v30 = vld [vmem:[%s2505_s7 + $0xb8] sm:$0xf0] }
  0x2c   : > { %2409 = vmatpush.bf16.msrb.mxu3 %v2472_v1  ;;  %1181 = vmatmul.bf16.vlgmr.msra.gmra.mxu1 %v1820_v32  ;;  %v1853_v1 = vld [vmem:[%s2505_s7 + $0x54] sm:$0xf0]  ;;  %v1908_v31 = vor.u32 %v2313_v30, %v1907_v29  ;;  %v1887_v32 = vld [vmem:[%s2505_s7 + $0x90] sm:$0xf] }
  0x2d   : > { %v1888_v38 = vor.u32 %v2309_v33, %v1887_v32  ;;  %v2108_v32 = vor.u32 %v2362_v24, %v2105_v25  ;;  %v1947_v24 = vld [vmem:[%s2505_s7 + $0x108] sm:$0xf]  ;;  %v2324_v25 = vld [vmem:[%s2505_s7 + $0x110] sm:$0xf0] }
  0x30   : > { %2410 = vmatpush.bf16.msrb.mxu3 %v2397_v4  ;;  %v1856_v4 = vor.u32 %v2299_v0, %v1853_v1  ;;  %v1913_v0 = vld [vmem:[%s2505_s7 + $0xcc] sm:$0xf0] }
  0x34   : > { %2411 = vmatpush.bf16.msrb.mxu3 %v2396_v7 }
  0x35   : > { %2259 = vmatmul.msk.bf16.gmra.mxu2 %vm915_vm0, %v1848_v35  ;;  %v2378_v35 = vld [vmem:[%s2505_s7 + $0x2c0] sm:$0xf0] }
  0x36   : > { %v2164_v39 = vor.u32 %v2378_v35, %v2163_v34 }
  0x38   : > { %2412 = vmatpush.bf16.msrb.mxu3 %v2395_v12  ;;  %v2302_v12 = vld [vmem:[%s2505_s7 + $0x64] sm:$0xf] }
  0x3b   : > { %1022 = vmatmul.bf16.gmra.mxu0 %v1828_v42  ;;  %1137 = vmatmul.bf16.gmra.mxu3 %v2104_v43  ;;  %v2316_v42 = vld [vmem:[%s2505_s7 + $0xd0] sm:$0xf0] }
  0x3c   : > { %2413 = vmatpush.bf16.msrb.mxu3 %v2394_v14  ;;  %1186 = vmatmul.bf16.gmra.mxu1 %v1832_v44  ;;  %v1864_v14 = vor.u32 %v2303_v9, %v1863_v8  ;;  %v1920_v43 = vor.u32 %v2316_v42, %v1919_v41  ;;  %v1899_v44 = vld [vmem:[%s2505_s7 + $0xa8] sm:$0xf] }
  0x3d   : > { %v1900_v50 = vor.u32 %v2312_v45, %v1899_v44  ;;  %v1955_v44 = vld [vmem:[%s2505_s7 + $0x110] sm:$0xf]  ;;  %v2325_v45 = vld [vmem:[%s2505_s7 + $0x118] sm:$0xf0] }
  0x40   : > { %2414 = vmatpush.bf16.msrb.mxu3 %v2393_v16  ;;  %v1868_v16 = vor.u32 %v2302_v12, %v1865_v13  ;;  %v1943_v12 = vld [vmem:[%s2505_s7 + $0xf8] sm:$0xf]  ;;  %v2322_v13 = vld [vmem:[%s2505_s7 + $0x100] sm:$0xf0] }
  0x44   : > { %2415 = vmatpush.bf16.msrb.mxu3 %v2392_v20  ;;  %v1875_v20 = vld [vmem:[%s2505_s7 + $0x78] sm:$0xf] }
  0x45   : > { %2260 = vmatmul.msk.bf16.gmra.mxu2 %vm915_vm0, %v1860_v47  ;;  %v1876_v26 = vor.u32 %v2306_v21, %v1875_v20  ;;  %v2381_v47 = vld [vmem:[%s2505_s7 + $0x2d8] sm:$0xf0] }
  0x46   : > { %v2176_v51 = vor.u32 %v2381_v47, %v2175_v46 }
  0x48   : > { %2416 = vmatpush.bf16.msrb.mxu3 %v2391_v27  ;;  %v2152_v27 = vor.u32 %v2375_v23, %v2151_v22  ;;  %v1923_v22 = vld [vmem:[%s2505_s7 + $0xd8] sm:$0xf]  ;;  %v2318_v23 = vld [vmem:[%s2505_s7 + $0xe0] sm:$0xf0] }
  0x4b   : > { %1027 = vmatmul.bf16.gmra.mxu0 %v1840_v54  ;;  %1142 = vmatmul.bf16.gmra.mxu3 %v2116_v55  ;;  %v1931_v54 = vld [vmem:[%s2505_s7 + $0xe0] sm:$0xf]  ;;  %v2319_v55 = vld [vmem:[%s2505_s7 + $0xe8] sm:$0xf0] }
  0x4c   : > { %2417 = vmatpush.bf16.msra.mxu3 %v2477_v2  ;;  %1191 = vmatmul.bf16.gmra.mxu1 %v1844_v56  ;;  %v1852_v2 = vor.u32 %v2300_v61, %v1851_v60  ;;  %v1932_v57 = vor.u32 %v2319_v55, %v1931_v54  ;;  %v2359_v60 = vld [vmem:[%s2505_s7 + $0x22c] sm:$0xf]  ;;  %v2093_v61 = vld [vmem:[%s2505_s7 + $0x234] sm:$0xf0]  ;;  %v1935_v54 = vld [vmem:[%s2505_s7 + $0xf0] sm:$0xf] }
  0x4d   : > { %v2321_v55 = vld [vmem:[%s2505_s7 + $0xf8] sm:$0xf0] }
  0x50   : > { %2418 = vmatpush.bf16.msra.mxu3 %v2490_v5  ;;  %v1883_v5 = vld [vmem:[%s2505_s7 + $0x80] sm:$0xf] }
  0x51   : > { %v1884_v7 = vor.u32 %v2307_v6, %v1883_v5 }
  0x55   : > { %2261 = vmatmul.msk.bf16.gmra.mxu2 %vm915_vm0, %v1872_v59  ;;  %v2315_v59 = vld [vmem:[%s2505_s7 + $0xc8] sm:$0xf0] }
  0x56   : > { %v1912_v1 = vor.u32 %v2315_v59, %v1911_v58  ;;  %v2320_v59 = vld [vmem:[%s2505_s7 + $0xf4] sm:$0xf] }
  0x5b   : > { %1032 = vmatmul.bf16.gmra.mxu0 %v1852_v2  ;;  %1147 = vmatmul.bf16.gmra.mxu3 %v2128_v3  ;;  %v2096_v2 = vor.u32 %v2359_v60, %v2093_v61  ;;  %v1937_v60 = vld [vmem:[%s2505_s7 + $0xfc] sm:$0xf0] }
  0x5c   : > { %1196 = vmatmul.bf16.gmra.mxu1 %v1856_v4  ;;  %v1916_v4 = vor.u32 %v2314_v63, %v1913_v0  ;;  %v1936_v0 = vor.u32 %v2321_v55, %v1935_v54 }
  0x65   : > { %2262 = vmatmul.msk.bf16.gmra.mxu2 %vm915_vm0, %v1884_v7 }
  0x6b   : > { %1037 = vmatmul.bf16.gmra.mxu0 %v1864_v14  ;;  %1152 = vmatmul.bf16.gmra.mxu3 %v2140_v15 }
  0x6c   : > { %1201 = vmatmul.bf16.gmra.mxu1 %v1868_v16 }
  0x75   : > { %2263 = vmatmul.msk.bf16.gmra.mxu2 %vm915_vm0, %v1896_v19  ;;  %v1944_v19 = vor.u32 %v2322_v13, %v1943_v12 }
  0x7b   : > { %1042 = vmatmul.bf16.gmra.mxu0 %v1876_v26  ;;  %1157 = vmatmul.bf16.gmra.mxu3 %v2152_v27  ;;  %v2317_v27 = vld [vmem:[%s2505_s7 + $0xdc] sm:$0xf] }
  0x7c   : > { %1206 = vmatmul.bf16.gmra.mxu1 %v1880_v28  ;;  %v1925_v28 = vld [vmem:[%s2505_s7 + $0xe4] sm:$0xf0] }
  0x7d   : > { %v1928_v34 = vor.u32 %v2317_v27, %v1925_v28  ;;  %v2129_v27 = vld [vmem:[%s2505_s7 + $0x27c] sm:$0xf0] }
  0x85   : > { %2264 = vmatmul.msk.bf16.gmra.mxu2 %vm915_vm0, %v1908_v31  ;;  %v1924_v31 = vor.u32 %v2318_v23, %v1923_v22 }
  0x8b   : > { %1047 = vmatmul.bf16.gmra.mxu0 %v1888_v38  ;;  %1162 = vmatmul.bf16.gmra.mxu3 %v2164_v39 }
  0x8c   : > { %1211 = vmatmul.bf16.gmra.mxu1 %v1892_v40 }
  0x95   : > { %2265 = vmatmul.msk.bf16.gmra.mxu2 %vm915_vm0, %v1920_v43 }
  0x98   : > { %v1346_v53 = vpop.f32.mrf.mxu2 }
  0x9b   : > { %1052 = vmatmul.bf16.gmra.mxu0 %v1900_v50  ;;  %1167 = vmatmul.bf16.gmra.mxu3 %v2176_v51  ;;  %v1956_v51 = vor.u32 %v2325_v45, %v1955_v44 }
  0x9c   : > { %1216 = vmatmul.bf16.gmra.mxu1 %v1904_v52 }
  0xa0   : > { %v1348_v56 = vpop.f32.mrf.mxu2 }
  0xa5   : > { %2266 = vmatmul.msk.bf16.gmra.mxu2 %vm915_vm0, %v1932_v57  ;;  %v2117_v57 = vld [vmem:[%s2505_s7 + $0x264] sm:$0xf0] }
  0xa8   : > { %v1018_v3 = vpop.f32.mrf.mxu0  ;;  %v1351_v6 = vpop.f32.mrf.mxu2 }
  0xa9   : > { %v1019_v5 = vadd.f32 %v2624_v62, %v1018_v3  ;;  %v1182_v7 = vpop.f32.mrf.mxu1  ;;  %v1940_v3 = vor.u32 %v2320_v59, %v1937_v60  ;;  %v2327_v59 = vld [vmem:[%s2505_s7 + $0x128] sm:$0xf0] }
  0xaa   : > { %v2371_v60 = vld [vmem:[%s2505_s7 + $0x28c] sm:$0xf] }
  0xab   : > { %v1183_v8 = vadd.f32 %v1182_v7, %v1019_v5  ;;  %1057 = vmatmul.bf16.gmra.mxu0 %v1912_v1  ;;  %1296 = vmatmul.bf16.vlgmr.msrb.gmra.mxu3 %v2096_v2 }
  0xac   : > { %1221 = vmatmul.bf16.gmra.mxu1 %v1916_v4 }
  0xad   : > { %v1347_v9 = vadd.f32 %v1346_v53, %v1183_v8 }
  0xae   : > { %v2631_v10 = vpop.f32.mrf.mxu3 }
  0xaf   : > { %v1501_v11 = vmul.f32 0.01, %v1347_v9 }
  0xb0   : > { %v1020_v14 = vpop.f32.mrf.mxu0  ;;  %v1353_v17 = vpop.f32.mrf.mxu2 }
  0xb1   : > { %v1563_v15 = vmax.f32 %v1347_v9, %v1501_v11  ;;  %v1021_v16 = vadd.f32 %v2624_v62, %v1020_v14  ;;  %v1184_v18 = vpop.f32.mrf.mxu1  ;;  %v1967_v14 = vld [vmem:[%s2505_s7 + $0x128] sm:$0xf] }
  0xb3   : > { %v1625_v20 = vpack.c.bf16 %v1563_v15, %v1563_v15  ;;  %v1185_v21 = vadd.f32 %v1184_v18, %v1021_v16  ;;  %v2328_v15 = vld [vmem:[%s2505_s7 + $0x130] sm:$0xf0] }
  0xb5   : > { %1688 = vst.msk [vmem:[%s2639_s20] sm:$0xf] %vm1687_vm1, %v1625_v20  ;;  %v1349_v26 = vadd.f32 %v1348_v56, %v1185_v21  ;;  %2267 = vmatmul.msk.bf16.gmra.mxu2 %vm915_vm0, %v1944_v19  ;;  %v2365_v56 = vld [vmem:[%s2505_s7 + $0x25c] sm:$0xf]  ;;  %v1968_v21 = vor.u32 %v2328_v15, %v1967_v14 }
  0xb6   : > { %v2650_v29 = vpop.f32.mrf.mxu3  ;;  %v2120_v1 = vor.u32 %v2365_v56, %v2117_v57 }
  0xb7   : > { %v1502_v30 = vmul.f32 0.01, %v1349_v26 }
  0xb8   : > { %v1023_v33 = vpop.f32.mrf.mxu0  ;;  %v1356_v37 = vpop.f32.mrf.mxu2 }
  0xb9   : > { %v1564_v35 = vmax.f32 %v1349_v26, %v1502_v30  ;;  %v1024_v36 = vadd.f32 %v2624_v62, %v1023_v33  ;;  %v1187_v38 = vpop.f32.mrf.mxu1  ;;  %v2368_v26 = vld [vmem:[%s2505_s7 + $0x274] sm:$0xf]  ;;  %v2323_v30 = vld [vmem:[%s2505_s7 + $0x10c] sm:$0xf] }
  0xbb   : > { %v1626_v39 = vpack.c.bf16 %v1564_v35, %v1564_v35  ;;  %v1188_v40 = vadd.f32 %v1187_v38, %v1024_v36  ;;  %1062 = vmatmul.bf16.gmra.mxu0 %v1924_v31  ;;  %1301 = vmatmul.bf16.gmra.mxu3 %v2108_v32  ;;  %v1949_v31 = vld [vmem:[%s2505_s7 + $0x114] sm:$0xf0]  ;;  %v2132_v35 = vor.u32 %v2368_v26, %v2129_v27 }
  0xbc   : > { %1226 = vmatmul.bf16.gmra.mxu1 %v1928_v34  ;;  %v1948_v34 = vor.u32 %v2324_v25, %v1947_v24 }
  0xbd   : > { %1689 = vst.msk [vmem:[%s2639_s20 + $0x4] sm:$0xf] %vm1687_vm1, %v1626_v39  ;;  %v1352_v41 = vadd.f32 %v1351_v6, %v1188_v40 }
  0xbe   : > { %v2655_v42 = vpop.f32.mrf.mxu3 }
  0xbf   : > { %v1503_v43 = vmul.f32 0.01, %v1352_v41 }
  0xc0   : > { %v1025_v46 = vpop.f32.mrf.mxu0  ;;  %v1358_v49 = vpop.f32.mrf.mxu2 }
  0xc1   : > { %v1565_v47 = vmax.f32 %v1352_v41, %v1503_v43  ;;  %v1026_v48 = vadd.f32 %v2624_v62, %v1025_v46  ;;  %v1189_v50 = vpop.f32.mrf.mxu1 }
  0xc3   : > { %v1627_v52 = vpack.c.bf16 %v1565_v47, %v1565_v47  ;;  %v1190_v53 = vadd.f32 %v1189_v50, %v1026_v48  ;;  %v1979_v48 = vld [vmem:[%s2505_s7 + $0x140] sm:$0xf] }
  0xc5   : > { %1690 = vst.msk [vmem:[%s2639_s20 + $0x8] sm:$0xf] %vm1687_vm1, %v1627_v52  ;;  %v1354_v58 = vadd.f32 %v1353_v17, %v1190_v53  ;;  %2268 = vmatmul.msk.bf16.gmra.mxu2 %vm915_vm0, %v1956_v51 }
  0xc6   : > { %v2669_v61 = vpop.f32.mrf.mxu3 }
  0xc7   : > { %v1504_v63 = vmul.f32 0.01, %v1354_v58 }
  0xc8   : > { %v1028_v2 = vpop.f32.mrf.mxu0  ;;  %v1361_v6 = vpop.f32.mrf.mxu2 }
  0xc9   : > { %v1566_v4 = vmax.f32 %v1354_v58, %v1504_v63  ;;  %v1029_v5 = vadd.f32 %v2624_v62, %v1028_v2  ;;  %v1192_v7 = vpop.f32.mrf.mxu1  ;;  %v1959_v58 = vld [vmem:[%s2505_s7 + $0x120] sm:$0xf]  ;;  %v2141_v63 = vld [vmem:[%s2505_s7 + $0x294] sm:$0xf0]  ;;  %v1961_v2 = vld [vmem:[%s2505_s7 + $0x12c] sm:$0xf0] }
  0xcb   : > { %v1628_v8 = vpack.c.bf16 %v1566_v4, %v1566_v4  ;;  %v1193_v9 = vadd.f32 %v1192_v7, %v1029_v5  ;;  %1067 = vmatmul.bf16.gmra.mxu0 %v1936_v0  ;;  %1306 = vmatmul.bf16.gmra.mxu3 %v2120_v1  ;;  %v2326_v1 = vld [vmem:[%s2505_s7 + $0x124] sm:$0xf]  ;;  %v1960_v5 = vor.u32 %v2327_v59, %v1959_v58 }
  0xcc   : > { %1231 = vmatmul.bf16.gmra.mxu1 %v1940_v3 }
  0xcd   : > { %1691 = vst.msk [vmem:[%s2639_s20 + $0xc] sm:$0xf] %vm1687_vm1, %v1628_v8  ;;  %v1357_v11 = vadd.f32 %v1356_v37, %v1193_v9  ;;  %v1952_v37 = vor.u32 %v2323_v30, %v1949_v31  ;;  %v1964_v8 = vor.u32 %v2326_v1, %v1961_v2  ;;  %v1971_v31 = vld [vmem:[%s2505_s7 + $0x138] sm:$0xf] }
  0xce   : > { %v2674_v12 = vpop.f32.mrf.mxu3 }
  0xcf   : > { %v1505_v13 = vmul.f32 0.01, %v1357_v11 }
  0xd0   : > { %v1030_v16 = vpop.f32.mrf.mxu0  ;;  %v1363_v19 = vpop.f32.mrf.mxu2 }
  0xd1   : > { %v1567_v17 = vmax.f32 %v1357_v11, %v1505_v13  ;;  %v1031_v18 = vadd.f32 %v2624_v62, %v1030_v16  ;;  %v1194_v20 = vpop.f32.mrf.mxu1 }
  0xd3   : > { %v1629_v22 = vpack.c.bf16 %v1567_v17, %v1567_v17  ;;  %v1195_v23 = vadd.f32 %v1194_v20, %v1031_v18  ;;  %v1991_v20 = vld [vmem:[%s2505_s7 + $0x158] sm:$0xf] }
  0xd5   : > { %1692 = vst.msk [vmem:[%s2639_s20 + $0x10] sm:$0xf] %vm1687_vm1, %v1629_v22  ;;  %v1359_v28 = vadd.f32 %v1358_v49, %v1195_v23  ;;  %2269 = vmatmul.msk.bf16.gmra.mxu2 %vm915_vm0, %v1968_v21  ;;  %v2331_v49 = vld [vmem:[%s2505_s7 + $0x148] sm:$0xf0]  ;;  %v2334_v21 = vld [vmem:[%s2505_s7 + $0x160] sm:$0xf0] }
  0xd6   : > { %v2688_v32 = vpop.f32.mrf.mxu3  ;;  %v1980_v55 = vor.u32 %v2331_v49, %v1979_v48  ;;  %v1992_v27 = vor.u32 %v2334_v21, %v1991_v20 }
  0xd7   : > { %v1506_v33 = vmul.f32 0.01, %v1359_v28 }
  0xd8   : > { %v1033_v36 = vpop.f32.mrf.mxu0  ;;  %v1366_v40 = vpop.f32.mrf.mxu2 }
  0xd9   : > { %v1568_v38 = vmax.f32 %v1359_v28, %v1506_v33  ;;  %v1034_v39 = vadd.f32 %v2624_v62, %v1033_v36  ;;  %v1197_v41 = vpop.f32.mrf.mxu1  ;;  %v2330_v33 = vld [vmem:[%s2505_s7 + $0x140] sm:$0xf0] }
  0xdb   : > { %v1630_v43 = vpack.c.bf16 %v1568_v38, %v1568_v38  ;;  %v1198_v44 = vadd.f32 %v1197_v41, %v1034_v39  ;;  %1072 = vmatmul.bf16.gmra.mxu0 %v1948_v34  ;;  %1311 = vmatmul.bf16.gmra.mxu3 %v2132_v35  ;;  %v2374_v34 = vld [vmem:[%s2505_s7 + $0x2a4] sm:$0xf]  ;;  %v2153_v35 = vld [vmem:[%s2505_s7 + $0x2ac] sm:$0xf0]  ;;  %v1973_v38 = vld [vmem:[%s2505_s7 + $0x144] sm:$0xf0]  ;;  %v1972_v41 = vor.u32 %v2330_v33, %v1971_v31 }
  0xdc   : > { %1236 = vmatmul.bf16.gmra.mxu1 %v1952_v37  ;;  %v2329_v37 = vld [vmem:[%s2505_s7 + $0x13c] sm:$0xf]  ;;  %v2015_v31 = vld [vmem:[%s2505_s7 + $0x188] sm:$0xf]  ;;  %v2340_v33 = vld [vmem:[%s2505_s7 + $0x190] sm:$0xf0] }
  0xdd   : > { %1693 = vst.msk [vmem:[%s2639_s20 + $0x14] sm:$0xf] %vm1687_vm1, %v1630_v43  ;;  %v1362_v45 = vadd.f32 %v1361_v6, %v1198_v44  ;;  %v2144_v6 = vor.u32 %v2371_v60, %v2141_v63  ;;  %v2156_v43 = vor.u32 %v2374_v34, %v2153_v35 }
  0xde   : > { %v2693_v46 = vpop.f32.mrf.mxu3 }
  0xdf   : > { %v1507_v47 = vmul.f32 0.01, %v1362_v45 }
  0xe0   : > { %v1035_v50 = vpop.f32.mrf.mxu0  ;;  %v1368_v53 = vpop.f32.mrf.mxu2 }
  0xe1   : > { %v1569_v51 = vmax.f32 %v1362_v45, %v1507_v47  ;;  %v1036_v52 = vadd.f32 %v2624_v62, %v1035_v50  ;;  %v1199_v54 = vpop.f32.mrf.mxu1  ;;  %v1976_v45 = vor.u32 %v2329_v37, %v1973_v38 }
  0xe3   : > { %v1631_v56 = vpack.c.bf16 %v1569_v51, %v1569_v51  ;;  %v1200_v57 = vadd.f32 %v1199_v54, %v1036_v52 }
  0xe5   : > { %1694 = vst.msk [vmem:[%s2639_s20 + $0x18] sm:$0xf] %vm1687_vm1, %v1631_v56  ;;  %v1364_v0 = vadd.f32 %v1363_v19, %v1200_v57  ;;  %2270 = vmatmul.msk.bf16.gmra.mxu2 %vm915_vm0, %v1980_v55  ;;  %v2003_v56 = vld [vmem:[%s2505_s7 + $0x170] sm:$0xf]  ;;  %v2337_v57 = vld [vmem:[%s2505_s7 + $0x178] sm:$0xf0] }
  0xe6   : > { %v2707_v3 = vpop.f32.mrf.mxu3  ;;  %v2004_v1 = vor.u32 %v2337_v57, %v2003_v56 }
  0xe7   : > { %v1508_v4 = vmul.f32 0.01, %v1364_v0 }
  0xe8   : > { %v1038_v7 = vpop.f32.mrf.mxu0  ;;  %v1371_v13 = vpop.f32.mrf.mxu2 }
  0xe9   : > { %v1570_v9 = vmax.f32 %v1364_v0, %v1508_v4  ;;  %v1039_v11 = vadd.f32 %v2624_v62, %v1038_v7  ;;  %v1202_v14 = vpop.f32.mrf.mxu1  ;;  %v2377_v7 = vld [vmem:[%s2505_s7 + $0x2bc] sm:$0xf] }
  0xeb   : > { %v1632_v15 = vpack.c.bf16 %v1570_v9, %v1570_v9  ;;  %v1203_v16 = vadd.f32 %v1202_v14, %v1039_v11  ;;  %1077 = vmatmul.bf16.gmra.mxu0 %v1960_v5  ;;  %1316 = vmatmul.bf16.gmra.mxu3 %v2144_v6  ;;  %v1983_v5 = vld [vmem:[%s2505_s7 + $0x150] sm:$0xf]  ;;  %v2333_v6 = vld [vmem:[%s2505_s7 + $0x158] sm:$0xf0]  ;;  %v2332_v11 = vld [vmem:[%s2505_s7 + $0x154] sm:$0xf] }
  0xec   : > { %1241 = vmatmul.bf16.gmra.mxu1 %v1964_v8  ;;  %v2165_v8 = vld [vmem:[%s2505_s7 + $0x2c4] sm:$0xf0] }
  0xed   : > { %1695 = vst.msk [vmem:[%s2639_s20 + $0x1c] sm:$0xf] %vm1687_vm1, %v1632_v15  ;;  %v1367_v17 = vadd.f32 %v1366_v40, %v1203_v16  ;;  %v1984_v16 = vor.u32 %v2333_v6, %v1983_v5 }
  0xee   : > { %v2712_v18 = vpop.f32.mrf.mxu3 }
  0xef   : > { %v1509_v19 = vmul.f32 0.01, %v1367_v17 }
  0xf0   : > { %v1040_v22 = vpop.f32.mrf.mxu0  ;;  %v1373_v25 = vpop.f32.mrf.mxu2 }
  0xf1   : > { %v1571_v23 = vmax.f32 %v1367_v17, %v1509_v19  ;;  %v1041_v24 = vadd.f32 %v2624_v62, %v1040_v22  ;;  %v1204_v26 = vpop.f32.mrf.mxu1  ;;  %v2168_v17 = vor.u32 %v2377_v7, %v2165_v8  ;;  %v2027_v7 = vld [vmem:[%s2505_s7 + $0x1a0] sm:$0xf]  ;;  %v2343_v8 = vld [vmem:[%s2505_s7 + $0x1a8] sm:$0xf0] }
  0xf3   : > { %v1633_v28 = vpack.c.bf16 %v1571_v23, %v1571_v23  ;;  %v1205_v30 = vadd.f32 %v1204_v26, %v1041_v24 }
  0xf5   : > { %1696 = vst.msk [vmem:[%s2639_s20 + $0x20] sm:$0xf] %vm1687_vm1, %v1633_v28  ;;  %v1369_v36 = vadd.f32 %v1368_v53, %v1205_v30  ;;  %2271 = vmatmul.msk.bf16.gmra.mxu2 %vm915_vm0, %v1992_v27 }
  0xf6   : > { %v2726_v39 = vpop.f32.mrf.mxu3 }
  0xf7   : > { %v1510_v40 = vmul.f32 0.01, %v1369_v36 }
  0xf8   : > { %v1043_v44 = vpop.f32.mrf.mxu0  ;;  %v1376_v49 = vpop.f32.mrf.mxu2 }
  0xf9   : > { %v1572_v47 = vmax.f32 %v1369_v36, %v1510_v40  ;;  %v1044_v48 = vadd.f32 %v2624_v62, %v1043_v44  ;;  %v1207_v50 = vpop.f32.mrf.mxu1  ;;  %v2016_v40 = vor.u32 %v2340_v33, %v2015_v31  ;;  %v1995_v44 = vld [vmem:[%s2505_s7 + $0x168] sm:$0xf] }
  0xfb   : > { %v1634_v51 = vpack.c.bf16 %v1572_v47, %v1572_v47  ;;  %v1208_v52 = vadd.f32 %v1207_v50, %v1044_v48  ;;  %1082 = vmatmul.bf16.gmra.mxu0 %v1972_v41  ;;  %1321 = vmatmul.bf16.gmra.mxu3 %v2156_v43  ;;  %v2380_v47 = vld [vmem:[%s2505_s7 + $0x2d4] sm:$0xf]  ;;  %v2177_v48 = vld [vmem:[%s2505_s7 + $0x2dc] sm:$0xf0]  ;;  %v2335_v50 = vld [vmem:[%s2505_s7 + $0x16c] sm:$0xf] }
  0xfc   : > { %1246 = vmatmul.bf16.gmra.mxu1 %v1976_v45  ;;  %v2336_v45 = vld [vmem:[%s2505_s7 + $0x170] sm:$0xf0]  ;;  %v2180_v56 = vor.u32 %v2380_v47, %v2177_v48 }
  0xfd   : > { %1697 = vst.msk [vmem:[%s2639_s20 + $0x24] sm:$0xf] %vm1687_vm1, %v1634_v51  ;;  %v1372_v53 = vadd.f32 %v1371_v13, %v1208_v52  ;;  %v1985_v13 = vld [vmem:[%s2505_s7 + $0x15c] sm:$0xf0]  ;;  %v1997_v51 = vld [vmem:[%s2505_s7 + $0x174] sm:$0xf0] }
  0xfe   : > { %v2731_v54 = vpop.f32.mrf.mxu3  ;;  %v1988_v20 = vor.u32 %v2332_v11, %v1985_v13 }
  0xff   : > { %v1511_v55 = vmul.f32 0.01, %v1372_v53 }
 0x100   : > { %v1045_v58 = vpop.f32.mrf.mxu0  ;;  %v1378_v63 = vpop.f32.mrf.mxu2 }
 0x101   : > { %v1573_v59 = vmax.f32 %v1372_v53, %v1511_v55  ;;  %v1046_v60 = vadd.f32 %v2624_v62, %v1045_v58  ;;  %v1209_v0 = vpop.f32.mrf.mxu1  ;;  %v1996_v55 = vor.u32 %v2336_v45, %v1995_v44  ;;  %v2000_v58 = vor.u32 %v2335_v50, %v1997_v51  ;;  %v2039_v51 = vld [vmem:[%s2505_s7 + $0x1b8] sm:$0xf] }
 0x102   : > { %v1134_v45 = vadd.f32 %v2624_v62, %v2631_v10 }
 0x103   : > { %v1635_v2 = vpack.c.bf16 %v1573_v59, %v1573_v59  ;;  %v1210_v4 = vadd.f32 %v1209_v0, %v1046_v60 }
 0x105   : > { %1698 = vst.msk [vmem:[%s2639_s20 + $0x28] sm:$0xf] %vm1687_vm1, %v1635_v2  ;;  %v1374_v9 = vadd.f32 %v1373_v25, %v1210_v4  ;;  %2272 = vmatmul.msk.bf16.gmra.mxu2 %vm915_vm0, %v2004_v1 }
 0x106   : > { %v2745_v14 = vpop.f32.mrf.mxu3 }
 0x107   : > { %v1512_v15 = vmul.f32 0.01, %v1374_v9 }
 0x108   : > { %v1048_v19 = vpop.f32.mrf.mxu0  ;;  %v1381_v23 = vpop.f32.mrf.mxu2 }
 0x109   : > { %v1574_v21 = vmax.f32 %v1374_v9, %v1512_v15  ;;  %v1049_v22 = vadd.f32 %v2624_v62, %v1048_v19  ;;  %v1212_v24 = vpop.f32.mrf.mxu1 }
 0x10b   : > { %v1636_v25 = vpack.c.bf16 %v1574_v21, %v1574_v21  ;;  %v1213_v26 = vadd.f32 %v1212_v24, %v1049_v22  ;;  %1087 = vmatmul.bf16.gmra.mxu0 %v1984_v16  ;;  %1326 = vmatmul.bf16.gmra.mxu3 %v2168_v17  ;;  %v2028_v17 = vor.u32 %v2343_v8, %v2027_v7  ;;  %v2007_v21 = vld [vmem:[%s2505_s7 + $0x180] sm:$0xf]  ;;  %v2339_v22 = vld [vmem:[%s2505_s7 + $0x188] sm:$0xf0]  ;;  %v2341_v8 = vld [vmem:[%s2505_s7 + $0x19c] sm:$0xf] }
 0x10c   : > { %1251 = vmatmul.bf16.gmra.mxu1 %v1988_v20  ;;  %v2367_v24 = vld [vmem:[%s2505_s7 + $0x268] sm:$0xf0]  ;;  %v2008_v33 = vor.u32 %v2339_v22, %v2007_v21 }
 0x10d   : > { %1699 = vst.msk [vmem:[%s2639_s20 + $0x2c] sm:$0xf] %vm1687_vm1, %v1636_v25  ;;  %v1377_v27 = vadd.f32 %v1376_v49, %v1213_v26  ;;  %v2338_v26 = vld [vmem:[%s2505_s7 + $0x184] sm:$0xf] }
 0x10e   : > { %v2750_v28 = vpop.f32.mrf.mxu3 }
 0x10f   : > { %v1513_v30 = vmul.f32 0.01, %v1377_v27 }
 0x110   : > { %v1050_v34 = vpop.f32.mrf.mxu0  ;;  %v1383_v37 = vpop.f32.mrf.mxu2 }
 0x111   : > { %v1575_v35 = vmax.f32 %v1377_v27, %v1513_v30  ;;  %v1051_v36 = vadd.f32 %v2624_v62, %v1050_v34  ;;  %v1214_v38 = vpop.f32.mrf.mxu1  ;;  %v2009_v27 = vld [vmem:[%s2505_s7 + $0x18c] sm:$0xf0] }
 0x113   : > { %v1637_v41 = vpack.c.bf16 %v1575_v35, %v1575_v35  ;;  %v1215_v43 = vadd.f32 %v1214_v38, %v1051_v36  ;;  %v2012_v36 = vor.u32 %v2338_v26, %v2009_v27  ;;  %v1139_v26 = vadd.f32 %v2624_v62, %v2655_v42 }
 0x115   : > { %1700 = vst.msk [vmem:[%s2639_s20 + $0x30] sm:$0xf] %vm1687_vm1, %v1637_v41  ;;  %v1379_v49 = vadd.f32 %v1378_v63, %v1215_v43  ;;  %2273 = vmatmul.msk.bf16.gmra.mxu2 %vm915_vm0, %v2016_v40 }
 0x116   : > { %v2764_v52 = vpop.f32.mrf.mxu3 }
 0x117   : > { %v1514_v53 = vmul.f32 0.01, %v1379_v49 }
 0x118   : > { %v1053_v57 = vpop.f32.mrf.mxu0  ;;  %v1386_v0 = vpop.f32.mrf.mxu2 }
 0x119   : > { %v1576_v59 = vmax.f32 %v1379_v49, %v1514_v53  ;;  %v1054_v60 = vadd.f32 %v2624_v62, %v1053_v57  ;;  %v1217_v1 = vpop.f32.mrf.mxu1  ;;  %v2346_v53 = vld [vmem:[%s2505_s7 + $0x1c0] sm:$0xf0] }
 0x11b   : > { %v1638_v63 = vpack.c.bf16 %v1576_v59, %v1576_v59  ;;  %v1218_v2 = vadd.f32 %v1217_v1, %v1054_v60  ;;  %1092 = vmatmul.bf16.gmra.mxu0 %v1996_v55  ;;  %1331 = vmatmul.bf16.gmra.mxu3 %v2180_v56  ;;  %v2040_v59 = vor.u32 %v2346_v53, %v2039_v51  ;;  %v2019_v1 = vld [vmem:[%s2505_s7 + $0x198] sm:$0xf]  ;;  %v2373_v51 = vld [vmem:[%s2505_s7 + $0x298] sm:$0xf0] }
 0x11c   : > { %1256 = vmatmul.bf16.gmra.mxu1 %v2000_v58  ;;  %v1141_v53 = vadd.f32 %v2624_v62, %v2669_v61 }
 0x11d   : > { %1701 = vst.msk [vmem:[%s2639_s20 + $0x34] sm:$0xf] %vm1687_vm1, %v1638_v63  ;;  %v1382_v4 = vadd.f32 %v1381_v23, %v1218_v2  ;;  %v2123_v23 = vld [vmem:[%s2505_s7 + $0x260] sm:$0xf]  ;;  %v2342_v63 = vld [vmem:[%s2505_s7 + $0x1a0] sm:$0xf0] }
 0x11e   : > { %v2769_v5 = vpop.f32.mrf.mxu3  ;;  %v2124_v34 = vor.u32 %v2367_v24, %v2123_v23  ;;  %v2135_v2 = vld [vmem:[%s2505_s7 + $0x278] sm:$0xf] }
 0x11f   : > { %v1515_v6 = vmul.f32 0.01, %v1382_v4 }
 0x120   : > { %v1055_v9 = vpop.f32.mrf.mxu0  ;;  %v1388_v15 = vpop.f32.mrf.mxu2 }
 0x121   : > { %v1577_v11 = vmax.f32 %v1382_v4, %v1515_v6  ;;  %v1056_v13 = vadd.f32 %v2624_v62, %v1055_v9  ;;  %v1219_v16 = vpop.f32.mrf.mxu1  ;;  %v2370_v4 = vld [vmem:[%s2505_s7 + $0x280] sm:$0xf0]  ;;  %v1136_v6 = vadd.f32 %v2624_v62, %v2650_v29  ;;  %v2021_v9 = vld [vmem:[%s2505_s7 + $0x1a4] sm:$0xf0] }
 0x122   : > { %v2024_v21 = vor.u32 %v2341_v8, %v2021_v9  ;;  %v1144_v9 = vadd.f32 %v2624_v62, %v2674_v12 }
 0x123   : > { %v1639_v19 = vpack.c.bf16 %v1577_v11, %v1577_v11  ;;  %v1220_v20 = vadd.f32 %v1219_v16, %v1056_v13 }
 0x125   : > { %1702 = vst.msk [vmem:[%s2639_s20 + $0x38] sm:$0xf] %vm1687_vm1, %v1639_v19  ;;  %v1384_v25 = vadd.f32 %v1383_v37, %v1220_v20  ;;  %2274 = vmatmul.msk.bf16.gmra.mxu2 %vm915_vm0, %v2028_v17  ;;  %v2020_v17 = vor.u32 %v2342_v63, %v2019_v1  ;;  %v2136_v19 = vor.u32 %v2370_v4, %v2135_v2 }
 0x126   : > { %v2783_v30 = vpop.f32.mrf.mxu3 }
 0x127   : > { %v1516_v31 = vmul.f32 0.01, %v1384_v25 }
 0x128   : > { %v1058_v35 = vpop.f32.mrf.mxu0  ;;  %v1391_v41 = vpop.f32.mrf.mxu2 }
 0x129   : > { %v1578_v38 = vmax.f32 %v1384_v25, %v1516_v31  ;;  %v1059_v40 = vadd.f32 %v2624_v62, %v1058_v35  ;;  %v1222_v43 = vpop.f32.mrf.mxu1  ;;  %v2051_v35 = vld [vmem:[%s2505_s7 + $0x1d0] sm:$0xf] }
 0x12b   : > { %v1640_v37 = vpack.c.bf16 %v1578_v38, %v1578_v38  ;;  %v1223_v44 = vadd.f32 %v1222_v43, %v1059_v40  ;;  %1097 = vmatmul.bf16.gmra.mxu0 %v2008_v33  ;;  %2282 = vmatmul.msk.bf16.vlgmr.msra.gmra.mxu3 %vm915_vm0, %v2124_v34 }
 0x12c   : > { %1261 = vmatmul.bf16.gmra.mxu1 %v2012_v36  ;;  %v2349_v36 = vld [vmem:[%s2505_s7 + $0x1d8] sm:$0xf0] }
 0x12d   : > { %1703 = vst.msk [vmem:[%s2639_s20 + $0x3c] sm:$0xf] %vm1687_vm1, %v1640_v37  ;;  %v1387_v47 = vadd.f32 %v1386_v0, %v1223_v44  ;;  %v2052_v44 = vor.u32 %v2349_v36, %v2051_v35  ;;  %v2376_v35 = vld [vmem:[%s2505_s7 + $0x2b0] sm:$0xf0]  ;;  %v1146_v36 = vadd.f32 %v2624_v62, %v2688_v32 }
 0x12e   : > { %v1297_v48 = vpop.f32.mrf.mxu3 }
 0x12f   : > { %v1517_v49 = vmul.f32 0.01, %v1387_v47  ;;  %v2791_v50 = vadd.f32 %v1297_v48, %v1134_v45  ;;  %v2345_v48 = vld [vmem:[%s2505_s7 + $0x1b8] sm:$0xf0] }
 0x130   : > { %v1060_v55 = vpop.f32.mrf.mxu0  ;;  %v1393_v57 = vpop.f32.mrf.mxu2 }
 0x131   : > { %v1579_v56 = vmax.f32 %v1387_v47, %v1517_v49  ;;  %v1061_v10 = vadd.f32 %v2624_v62, %v1060_v55  ;;  %v1224_v58 = vpop.f32.mrf.mxu1  ;;  %v2031_v47 = vld [vmem:[%s2505_s7 + $0x1b0] sm:$0xf] }
 0x132   : > { %v2147_v49 = vld [vmem:[%s2505_s7 + $0x290] sm:$0xf] }
 0x133   : > { %v1641_v60 = vpack.c.bf16 %v1579_v56, %v1579_v56  ;;  %v1225_v0 = vadd.f32 %v1224_v58, %v1061_v10  ;;  %v2344_v56 = vld [vmem:[%s2505_s7 + $0x1b4] sm:$0xf]  ;;  %v2033_v10 = vld [vmem:[%s2505_s7 + $0x1bc] sm:$0xf0]  ;;  %v2148_v1 = vor.u32 %v2373_v51, %v2147_v49 }
 0x134   : > { %v2036_v2 = vor.u32 %v2344_v56, %v2033_v10  ;;  %v1149_v10 = vadd.f32 %v2624_v62, %v2693_v46 }
 0x135   : > { %1704 = vst.msk [vmem:[%s2639_s20 + $0x40] sm:$0xf] %vm1687_vm1, %v1641_v60  ;;  %v1389_v7 = vadd.f32 %v1388_v15, %v1225_v0  ;;  %2275 = vmatmul.msk.bf16.gmra.mxu2 %vm915_vm0, %v2040_v59  ;;  %v2032_v0 = vor.u32 %v2345_v48, %v2031_v47 }
 0x136   : > { %v1299_v11 = vpop.f32.mrf.mxu3 }
 0x137   : > { %v1518_v13 = vmul.f32 0.01, %v1389_v7  ;;  %v2807_v16 = vadd.f32 %v1299_v11, %v1136_v6 }
 0x138   : > { %v1063_v20 = vpop.f32.mrf.mxu0  ;;  %v1396_v23 = vpop.f32.mrf.mxu2 }
 0x139   : > { %v1580_v22 = vmax.f32 %v1389_v7, %v1518_v13  ;;  %v1064_v29 = vadd.f32 %v2624_v62, %v1063_v20  ;;  %v1227_v15 = vpop.f32.mrf.mxu1  ;;  %v2063_v20 = vld [vmem:[%s2505_s7 + $0x1e8] sm:$0xf] }
 0x13b   : > { %v1642_v24 = vpack.c.bf16 %v1580_v22, %v1580_v22  ;;  %v1228_v25 = vadd.f32 %v1227_v15, %v1064_v29  ;;  %1102 = vmatmul.bf16.gmra.mxu0 %v2020_v17  ;;  %2283 = vmatmul.msk.bf16.gmra.mxu3 %vm915_vm0, %v2136_v19 }
 0x13c   : > { %1266 = vmatmul.bf16.gmra.mxu1 %v2024_v21  ;;  %v2352_v21 = vld [vmem:[%s2505_s7 + $0x1f0] sm:$0xf0] }
 0x13d   : > { %1705 = vst.msk [vmem:[%s2639_s20 + $0x44] sm:$0xf] %vm1687_vm1, %v1642_v24  ;;  %v1392_v27 = vadd.f32 %v1391_v41, %v1228_v25  ;;  %v2064_v25 = vor.u32 %v2352_v21, %v2063_v20  ;;  %v2379_v20 = vld [vmem:[%s2505_s7 + $0x2c8] sm:$0xf0]  ;;  %v1151_v21 = vadd.f32 %v2624_v62, %v2707_v3 }
 0x13e   : > { %v1302_v31 = vpop.f32.mrf.mxu3 }
 0x13f   : > { %v1519_v33 = vmul.f32 0.01, %v1392_v27  ;;  %v2815_v34 = vadd.f32 %v1302_v31, %v1139_v26  ;;  %v2348_v31 = vld [vmem:[%s2505_s7 + $0x1d0] sm:$0xf0] }
 0x140   : > { %v1065_v38 = vpop.f32.mrf.mxu0  ;;  %v1398_v43 = vpop.f32.mrf.mxu2 }
 0x141   : > { %v1581_v40 = vmax.f32 %v1392_v27, %v1519_v33  ;;  %v1066_v42 = vadd.f32 %v2624_v62, %v1065_v38  ;;  %v1229_v37 = vpop.f32.mrf.mxu1  ;;  %v2043_v27 = vld [vmem:[%s2505_s7 + $0x1c8] sm:$0xf] }
 0x142   : > { %v2159_v33 = vld [vmem:[%s2505_s7 + $0x2a8] sm:$0xf] }
 0x143   : > { %v1643_v45 = vpack.c.bf16 %v1581_v40, %v1581_v40  ;;  %v1230_v41 = vadd.f32 %v1229_v37, %v1066_v42  ;;  %v2347_v40 = vld [vmem:[%s2505_s7 + $0x1cc] sm:$0xf]  ;;  %v2045_v42 = vld [vmem:[%s2505_s7 + $0x1d4] sm:$0xf0]  ;;  %v2160_v47 = vor.u32 %v2376_v35, %v2159_v33 }
 0x144   : > { %v2048_v49 = vor.u32 %v2347_v40, %v2045_v42  ;;  %v1154_v42 = vadd.f32 %v2624_v62, %v2712_v18 }
 0x145   : > { %1706 = vst.msk [vmem:[%s2639_s20 + $0x48] sm:$0xf] %vm1687_vm1, %v1643_v45  ;;  %v1394_v55 = vadd.f32 %v1393_v57, %v1230_v41  ;;  %2276 = vmatmul.msk.bf16.gmra.mxu2 %vm915_vm0, %v2052_v44  ;;  %v2044_v41 = vor.u32 %v2348_v31, %v2043_v27 }
 0x146   : > { %v1304_v58 = vpop.f32.mrf.mxu3 }
 0x147   : > { %v1520_v59 = vmul.f32 0.01, %v1394_v55  ;;  %v2831_v60 = vadd.f32 %v1304_v58, %v1141_v53 }
 0x148   : > { %v1068_v63 = vpop.f32.mrf.mxu0  ;;  %v1401_v6 = vpop.f32.mrf.mxu2 }
 0x149   : > { %v1582_v4 = vmax.f32 %v1394_v55, %v1520_v59  ;;  %v1069_v61 = vadd.f32 %v2624_v62, %v1068_v63  ;;  %v1232_v57 = vpop.f32.mrf.mxu1  ;;  %v2075_v63 = vld [vmem:[%s2505_s7 + $0x200] sm:$0xf] }
 0x14b   : > { %v1644_v7 = vpack.c.bf16 %v1582_v4, %v1582_v4  ;;  %v1233_v8 = vadd.f32 %v1232_v57, %v1069_v61  ;;  %1107 = vmatmul.bf16.gmra.mxu0 %v2032_v0  ;;  %2284 = vmatmul.msk.bf16.gmra.mxu3 %vm915_vm0, %v2148_v1 }
 0x14c   : > { %1271 = vmatmul.bf16.gmra.mxu1 %v2036_v2  ;;  %v2355_v2 = vld [vmem:[%s2505_s7 + $0x208] sm:$0xf0] }
 0x14d   : > { %1707 = vst.msk [vmem:[%s2639_s20 + $0x4c] sm:$0xf] %vm1687_vm1, %v1644_v7  ;;  %v1397_v11 = vadd.f32 %v1396_v23, %v1233_v8  ;;  %v2076_v8 = vor.u32 %v2355_v2, %v2075_v63  ;;  %v2382_v63 = vld [vmem:[%s2505_s7 + $0x2e0] sm:$0xf0]  ;;  %v1156_v2 = vadd.f32 %v2624_v62, %v2726_v39 }
 0x14e   : > { %v1307_v13 = vpop.f32.mrf.mxu3 }
 0x14f   : > { %v1521_v17 = vmul.f32 0.01, %v1397_v11  ;;  %v2839_v19 = vadd.f32 %v1307_v13, %v1144_v9  ;;  %v2351_v13 = vld [vmem:[%s2505_s7 + $0x1e8] sm:$0xf0] }
 0x150   : > { %v1070_v22 = vpop.f32.mrf.mxu0  ;;  %v1403_v15 = vpop.f32.mrf.mxu2 }
 0x151   : > { %v1583_v29 = vmax.f32 %v1397_v11, %v1521_v17  ;;  %v1071_v12 = vadd.f32 %v2624_v62, %v1070_v22  ;;  %v1234_v24 = vpop.f32.mrf.mxu1  ;;  %v2055_v11 = vld [vmem:[%s2505_s7 + $0x1e0] sm:$0xf] }
 0x152   : > { %v2171_v17 = vld [vmem:[%s2505_s7 + $0x2c0] sm:$0xf] }
 0x153   : > { %v1645_v26 = vpack.c.bf16 %v1583_v29, %v1583_v29  ;;  %v1235_v23 = vadd.f32 %v1234_v24, %v1071_v12  ;;  %v2350_v29 = vld [vmem:[%s2505_s7 + $0x1e4] sm:$0xf]  ;;  %v2057_v12 = vld [vmem:[%s2505_s7 + $0x1ec] sm:$0xf0]  ;;  %v2172_v27 = vor.u32 %v2379_v20, %v2171_v17 }
 0x154   : > { %v2060_v33 = vor.u32 %v2350_v29, %v2057_v12 }
 0x155   : > { %1708 = vst.msk [vmem:[%s2639_s20 + $0x50] sm:$0xf] %vm1687_vm1, %v1645_v26  ;;  %v1399_v38 = vadd.f32 %v1398_v43, %v1235_v23  ;;  %2277 = vmatmul.msk.bf16.gmra.mxu2 %vm915_vm0, %v2064_v25  ;;  %v2056_v23 = vor.u32 %v2351_v13, %v2055_v11 }
 0x156   : > { %v1309_v37 = vpop.f32.mrf.mxu3 }
 0x157   : > { %v1522_v44 = vmul.f32 0.01, %v1399_v38  ;;  %v2855_v45 = vadd.f32 %v1309_v37, %v1146_v36 }
 0x158   : > { %v1073_v48 = vpop.f32.mrf.mxu0  ;;  %v1406_v53 = vpop.f32.mrf.mxu2 }
 0x159   : > { %v1584_v51 = vmax.f32 %v1399_v38, %v1522_v44  ;;  %v1074_v32 = vadd.f32 %v2624_v62, %v1073_v48  ;;  %v1237_v43 = vpop.f32.mrf.mxu1  ;;  %v2087_v48 = vld [vmem:[%s2505_s7 + $0x218] sm:$0xf] }
 0x15b   : > { %v1646_v55 = vpack.c.bf16 %v1584_v51, %v1584_v51  ;;  %v1238_v56 = vadd.f32 %v1237_v43, %v1074_v32  ;;  %1112 = vmatmul.bf16.gmra.mxu0 %v2044_v41  ;;  %2285 = vmatmul.msk.bf16.gmra.mxu3 %vm915_vm0, %v2160_v47 }
 0x15c   : > { %1276 = vmatmul.bf16.gmra.mxu1 %v2048_v49  ;;  %v2358_v49 = vld [vmem:[%s2505_s7 + $0x220] sm:$0xf0] }
 0x15d   : > { %1709 = vst.msk [vmem:[%s2639_s20 + $0x54] sm:$0xf] %vm1687_vm1, %v1646_v55  ;;  %v1402_v58 = vadd.f32 %v1401_v6, %v1238_v56  ;;  %v2088_v56 = vor.u32 %v2358_v49, %v2087_v48  ;;  %v2356_v49 = vld [vmem:[%s2505_s7 + $0x214] sm:$0xf] }
 0x15e   : > { %v1312_v59 = vpop.f32.mrf.mxu3 }
 0x15f   : > { %v1523_v0 = vmul.f32 0.01, %v1402_v58  ;;  %v2863_v1 = vadd.f32 %v1312_v59, %v1149_v10  ;;  %v2354_v59 = vld [vmem:[%s2505_s7 + $0x200] sm:$0xf0] }
 0x160   : > { %v1075_v4 = vpop.f32.mrf.mxu0  ;;  %v1408_v57 = vpop.f32.mrf.mxu2 }
 0x161   : > { %v1585_v61 = vmax.f32 %v1402_v58, %v1523_v0  ;;  %v1076_v46 = vadd.f32 %v2624_v62, %v1075_v4  ;;  %v1239_v7 = vpop.f32.mrf.mxu1  ;;  %v2067_v58 = vld [vmem:[%s2505_s7 + $0x1f8] sm:$0xf] }
 0x162   : > { %v2183_v0 = vld [vmem:[%s2505_s7 + $0x2d8] sm:$0xf] }
 0x163   : > { %v1647_v9 = vpack.c.bf16 %v1585_v61, %v1585_v61  ;;  %v1240_v6 = vadd.f32 %v1239_v7, %v1076_v46  ;;  %v2353_v61 = vld [vmem:[%s2505_s7 + $0x1fc] sm:$0xf]  ;;  %v2069_v46 = vld [vmem:[%s2505_s7 + $0x204] sm:$0xf0]  ;;  %v2184_v11 = vor.u32 %v2382_v63, %v2183_v0 }
 0x164   : > { %v2072_v17 = vor.u32 %v2353_v61, %v2069_v46 }
 0x165   : > { %1710 = vst.msk [vmem:[%s2639_s20 + $0x58] sm:$0xf] %vm1687_vm1, %v1647_v9  ;;  %v1404_v22 = vadd.f32 %v1403_v15, %v1240_v6  ;;  %2278 = vmatmul.msk.bf16.gmra.mxu2 %vm915_vm0, %v2076_v8  ;;  %v2068_v6 = vor.u32 %v2354_v59, %v2067_v58 }
 0x166   : > { %v1314_v24 = vpop.f32.mrf.mxu3 }
 0x167   : > { %v1524_v25 = vmul.f32 0.01, %v1404_v22  ;;  %v2879_v26 = vadd.f32 %v1314_v24, %v1151_v21 }
 0x168   : > { %v1078_v31 = vpop.f32.mrf.mxu0  ;;  %v1411_v36 = vpop.f32.mrf.mxu2 }
 0x169   : > { %v1586_v35 = vmax.f32 %v1404_v22, %v1524_v25  ;;  %v1079_v3 = vadd.f32 %v2624_v62, %v1078_v31  ;;  %v1242_v15 = vpop.f32.mrf.mxu1  ;;  %v2099_v31 = vld [vmem:[%s2505_s7 + $0x230] sm:$0xf] }
 0x16b   : > { %v1648_v38 = vpack.c.bf16 %v1586_v35, %v1586_v35  ;;  %v1243_v40 = vadd.f32 %v1242_v15, %v1079_v3  ;;  %1117 = vmatmul.bf16.gmra.mxu0 %v2056_v23  ;;  %2286 = vmatmul.msk.bf16.gmra.mxu3 %vm915_vm0, %v2172_v27 }
 0x16c   : > { %1281 = vmatmul.bf16.gmra.mxu1 %v2060_v33  ;;  %v2361_v33 = vld [vmem:[%s2505_s7 + $0x238] sm:$0xf0] }
 0x16d   : > { %1711 = vst.msk [vmem:[%s2639_s20 + $0x5c] sm:$0xf] %vm1687_vm1, %v1648_v38  ;;  %v1407_v37 = vadd.f32 %v1406_v53, %v1243_v40  ;;  %v2100_v40 = vor.u32 %v2361_v33, %v2099_v31 }
 0x16e   : > { %v1317_v44 = vpop.f32.mrf.mxu3 }
 0x16f   : > { %v1525_v41 = vmul.f32 0.01, %v1407_v37  ;;  %v2887_v47 = vadd.f32 %v1317_v44, %v1154_v42  ;;  %v2079_v44 = vld [vmem:[%s2505_s7 + $0x210] sm:$0xf] }
 0x170   : > { %v1080_v51 = vpop.f32.mrf.mxu0  ;;  %v1413_v43 = vpop.f32.mrf.mxu2 }
 0x171   : > { %v1587_v32 = vmax.f32 %v1407_v37, %v1525_v41  ;;  %v1081_v18 = vadd.f32 %v2624_v62, %v1080_v51  ;;  %v1244_v55 = vpop.f32.mrf.mxu1  ;;  %v2908_v62 = vld [vmem:[%s3060_s2] ss:$0 sm:$0xff] }
 0x172   : > { %v1159_v12 = vadd.f32 %v2908_v62, %v2731_v54  ;;  %v1161_v41 = vadd.f32 %v2908_v62, %v2745_v14  ;;  %v2081_v51 = vld [vmem:[%s2505_s7 + $0x21c] sm:$0xf0] }
 0x173   : > { %v1649_v10 = vpack.c.bf16 %v1587_v32, %v1587_v32  ;;  %v1245_v53 = vadd.f32 %v1244_v55, %v1081_v18 }
 0x175   : > { %1712 = vst.msk [vmem:[%s2639_s20 + $0x60] sm:$0xf] %vm1687_vm1, %v1649_v10  ;;  %v1409_v4 = vadd.f32 %v1408_v57, %v1245_v53  ;;  %2279 = vmatmul.msk.bf16.gmra.mxu2 %vm915_vm0, %v2088_v56  ;;  %v2084_v53 = vor.u32 %v2356_v49, %v2081_v51 }
 0x176   : > { %v1319_v7 = vpop.f32.mrf.mxu3 }
 0x177   : > { %v1526_v8 = vmul.f32 0.01, %v1409_v4  ;;  %v2903_v9 = vadd.f32 %v1319_v7, %v1156_v2  ;;  %v1164_v2 = vadd.f32 %v2908_v62, %v2750_v28  ;;  %v1166_v28 = vadd.f32 %v2908_v62, %v2764_v52 }
 0x178   : > { %v1083_v13 = vpop.f32.mrf.mxu0  ;;  %v1416_v57 = vpop.f32.mrf.mxu2  ;;  %v1169_v52 = vadd.f32 %v2908_v62, %v2769_v5 }
 0x179   : > { %v1588_v20 = vmax.f32 %v1409_v4, %v1526_v8  ;;  %v1084_v39 = vadd.f32 %v2908_v62, %v1083_v13  ;;  %v1247_v21 = vpop.f32.mrf.mxu1  ;;  %v2111_v8 = vld [vmem:[%s2505_s7 + $0x248] sm:$0xf] }
 0x17b   : > { %v1650_v22 = vpack.c.bf16 %v1588_v20, %v1588_v20  ;;  %v1248_v29 = vadd.f32 %v1247_v21, %v1084_v39  ;;  %1122 = vmatmul.bf16.gmra.mxu0 %v2068_v6  ;;  %2287 = vmatmul.msk.bf16.gmra.mxu3 %vm915_vm0, %v2184_v11  ;;  %v2364_v6 = vld [vmem:[%s2505_s7 + $0x250] sm:$0xf0] }
 0x17c   : > { %1286 = vmatmul.bf16.gmra.mxu1 %v2072_v17  ;;  %v2112_v21 = vor.u32 %v2364_v6, %v2111_v8 }
 0x17d   : > { %1713 = vst.msk [vmem:[%s2639_s20 + $0x64] sm:$0xf] %vm1687_vm1, %v1650_v22  ;;  %v1412_v24 = vadd.f32 %v1411_v36, %v1248_v29  ;;  %v2357_v36 = vld [vmem:[%s2505_s7 + $0x218] sm:$0xf0] }
 0x17e   : > { %v1322_v25 = vpop.f32.mrf.mxu3  ;;  %v2080_v56 = vor.u32 %v2357_v36, %v2079_v44 }
 0x17f   : > { %v1527_v23 = vmul.f32 0.01, %v1412_v24  ;;  %v2916_v27 = vadd.f32 %v1322_v25, %v1159_v12 }
 0x180   : > { %v1085_v35 = vpop.f32.mrf.mxu0  ;;  %v1418_v38 = vpop.f32.mrf.mxu2 }
 0x181   : > { %v1589_v3 = vmax.f32 %v1412_v24, %v1527_v23  ;;  %v1086_v15 = vadd.f32 %v2908_v62, %v1085_v35  ;;  %v1249_v54 = vpop.f32.mrf.mxu1 }
 0x183   : > { %v1651_v42 = vpack.c.bf16 %v1589_v3, %v1589_v3  ;;  %v1250_v37 = vadd.f32 %v1249_v54, %v1086_v15 }
 0x185   : > { %1714 = vst.msk [vmem:[%s2639_s20 + $0x68] sm:$0xf] %vm1687_vm1, %v1651_v42  ;;  %v1414_v48 = vadd.f32 %v1413_v43, %v1250_v37  ;;  %2280 = vmatmul.msk.bf16.gmra.mxu2 %vm915_vm0, %v2100_v40 }
 0x186   : > { %v1324_v32 = vpop.f32.mrf.mxu3 }
 0x187   : > { %v1528_v18 = vmul.f32 0.01, %v1414_v48  ;;  %v2930_v55 = vadd.f32 %v1324_v32, %v1161_v41 }
 0x188   : > { %v1088_v10 = vpop.f32.mrf.mxu0  ;;  %v1421_v59 = vpop.f32.mrf.mxu2 }
 0x189   : > { %v1590_v58 = vmax.f32 %v1414_v48, %v1528_v18  ;;  %v1089_v14 = vadd.f32 %v2908_v62, %v1088_v10  ;;  %v1252_v0 = vpop.f32.mrf.mxu1  ;;  %v1171_v18 = vadd.f32 %v2908_v62, %v2783_v30 }
 0x18b   : > { %v1652_v43 = vpack.c.bf16 %v1590_v58, %v1590_v58  ;;  %v1253_v63 = vadd.f32 %v1252_v0, %v1089_v14  ;;  %1127 = vmatmul.bf16.gmra.mxu0 %v2080_v56 }
 0x18c   : > { %1291 = vmatmul.bf16.gmra.mxu1 %v2084_v53 }
 0x18d   : > { %1715 = vst.msk [vmem:[%s2639_s20 + $0x6c] sm:$0xf] %vm1687_vm1, %v1652_v43  ;;  %v1417_v4 = vadd.f32 %v1416_v57, %v1253_v63 }
 0x18e   : > { %v1327_v61 = vpop.f32.mrf.mxu3 }
 0x18f   : > { %v1529_v46 = vmul.f32 0.01, %v1417_v4  ;;  %v2937_v7 = vadd.f32 %v1327_v61, %v1164_v2 }
 0x190   : > { %v1090_v11 = vpop.f32.mrf.mxu0  ;;  %v1423_v20 = vpop.f32.mrf.mxu2 }
 0x191   : > { %v1591_v13 = vmax.f32 %v1417_v4, %v1529_v46  ;;  %v1091_v17 = vadd.f32 %v2908_v62, %v1090_v11  ;;  %v1254_v39 = vpop.f32.mrf.mxu1 }
 0x193   : > { %v1653_v22 = vpack.c.bf16 %v1591_v13, %v1591_v13  ;;  %v1255_v29 = vadd.f32 %v1254_v39, %v1091_v17 }
 0x195   : > { %1716 = vst.msk [vmem:[%s2639_s20 + $0x70] sm:$0xf] %vm1687_vm1, %v1653_v22  ;;  %v1419_v57 = vadd.f32 %v1418_v38, %v1255_v29  ;;  %2281 = vmatmul.msk.bf16.gmra.mxu2 %vm915_vm0, %v2112_v21 }
 0x196   : > { %v1329_v12 = vpop.f32.mrf.mxu3 }
 0x197   : > { %v1530_v24 = vmul.f32 0.01, %v1419_v57  ;;  %v2947_v25 = vadd.f32 %v1329_v12, %v1166_v28 }
 0x198   : > { %v1093_v23 = vpop.f32.mrf.mxu0  ;;  %v1426_v35 = vpop.f32.mrf.mxu2 }
 0x199   : > { %v1592_v31 = vmax.f32 %v1419_v57, %v1530_v24  ;;  %v1094_v33 = vadd.f32 %v2908_v62, %v1093_v23  ;;  %v1257_v3 = vpop.f32.mrf.mxu1 }
 0x19b   : > { %v1654_v15 = vpack.c.bf16 %v1592_v31, %v1592_v31  ;;  %v1258_v54 = vadd.f32 %v1257_v3, %v1094_v33 }
 0x19d   : > { %1717 = vst.msk [vmem:[%s2639_s20 + $0x74] sm:$0xf] %vm1687_vm1, %v1654_v15  ;;  %v1422_v38 = vadd.f32 %v1421_v59, %v1258_v54 }
 0x19e   : > { %v1332_v40 = vpop.f32.mrf.mxu3 }
 0x19f   : > { %v1531_v42 = vmul.f32 0.01, %v1422_v38  ;;  %v2954_v37 = vadd.f32 %v1332_v40, %v1169_v52 }
 0x1a0   : > { %v1095_v44 = vpop.f32.mrf.mxu0  ;;  %v1428_v48 = vpop.f32.mrf.mxu2 }
 0x1a1   : > { %v1593_v36 = vmax.f32 %v1422_v38, %v1531_v42  ;;  %v1096_v41 = vadd.f32 %v2908_v62, %v1095_v44  ;;  %v1259_v49 = vpop.f32.mrf.mxu1 }
 0x1a3   : > { %v1655_v51 = vpack.c.bf16 %v1593_v36, %v1593_v36  ;;  %v1260_v32 = vadd.f32 %v1259_v49, %v1096_v41 }
 0x1a5   : > { %1718 = vst.msk [vmem:[%s2639_s20 + $0x78] sm:$0xf] %vm1687_vm1, %v1655_v51  ;;  %v1424_v5 = vadd.f32 %v1423_v20, %v1260_v32 }
 0x1a6   : > { %v1334_v56 = vpop.f32.mrf.mxu3 }
 0x1a7   : > { %v1532_v10 = vmul.f32 0.01, %v1424_v5  ;;  %v2961_v53 = vadd.f32 %v1334_v56, %v1171_v18 }
 0x1a8   : > { %v1098_v58 = vpop.f32.mrf.mxu0  ;;  %v1431_v0 = vpop.f32.mrf.mxu2 }
 0x1a9   : > { %v1594_v14 = vmax.f32 %v1424_v5, %v1532_v10  ;;  %v1099_v59 = vadd.f32 %v2908_v62, %v1098_v58  ;;  %v1262_v43 = vpop.f32.mrf.mxu1 }
 0x1ab   : > { %v1656_v63 = vpack.c.bf16 %v1594_v14, %v1594_v14  ;;  %v1263_v2 = vadd.f32 %v1262_v43, %v1099_v59 }
 0x1ad   : > { %1719 = vst.msk [vmem:[%s2639_s20 + $0x7c] sm:$0xf] %vm1687_vm1, %v1656_v63  ;;  %v1427_v4 = vadd.f32 %v1426_v35, %v1263_v2 }
 0x1ae   : > { %v1471_v30 = vpop.f32.mrf.mxu3 }
 0x1af   : > { %v1533_v61 = vmul.f32 0.01, %v1427_v4  ;;  %v1472_v46 = vadd.f32 %v1471_v30, %v2839_v19 }
 0x1b0   : > { %v1100_v8 = vpop.f32.mrf.mxu0  ;;  %v1433_v17 = vpop.f32.mrf.mxu2 }
 0x1b1   : > { %v1595_v6 = vmax.f32 %v1427_v4, %v1533_v61  ;;  %v1551_v11 = vmul.f32 0.01, %v1472_v46  ;;  %v1101_v13 = vadd.f32 %v2908_v62, %v1100_v8  ;;  %v1264_v20 = vpop.f32.mrf.mxu1 }
 0x1b3   : > { %v1657_v39 = vpack.c.bf16 %v1595_v6, %v1595_v6  ;;  %v1613_v21 = vmax.f32 %v1472_v46, %v1551_v11  ;;  %v1265_v22 = vadd.f32 %v1264_v20, %v1101_v13 }
 0x1b5   : > { %1720 = vst.msk [vmem:[%s2639_s20 + $0x80] sm:$0xf] %vm1687_vm1, %v1657_v39  ;;  %v1675_v29 = vpack.c.bf16 %v1613_v21, %v1613_v21  ;;  %v1429_v28 = vadd.f32 %v1428_v48, %v1265_v22 }
 0x1b6   : > { %v1473_v57 = vpop.f32.mrf.mxu3 }
 0x1b7   : > { %1738 = vst.msk [vmem:[%s2639_s20 + $0xc8] sm:$0xf] %vm1687_vm1, %v1675_v29  ;;  %v1534_v19 = vmul.f32 0.01, %v1429_v28  ;;  %v1474_v12 = vadd.f32 %v1473_v57, %v2855_v45 }
 0x1b8   : > { %v1103_v24 = vpop.f32.mrf.mxu0  ;;  %v1436_v35 = vpop.f32.mrf.mxu2 }
 0x1b9   : > { %v1596_v23 = vmax.f32 %v1429_v28, %v1534_v19  ;;  %v1552_v31 = vmul.f32 0.01, %v1474_v12  ;;  %v1104_v33 = vadd.f32 %v2908_v62, %v1103_v24  ;;  %v1267_v3 = vpop.f32.mrf.mxu1 }
 0x1bb   : > { %v1658_v15 = vpack.c.bf16 %v1596_v23, %v1596_v23  ;;  %v1614_v54 = vmax.f32 %v1474_v12, %v1552_v31  ;;  %v1268_v52 = vadd.f32 %v1267_v3, %v1104_v33 }
 0x1bd   : > { %1721 = vst.msk [vmem:[%s2639_s20 + $0x84] sm:$0xf] %vm1687_vm1, %v1658_v15  ;;  %v1676_v38 = vpack.c.bf16 %v1614_v54, %v1614_v54  ;;  %v1432_v40 = vadd.f32 %v1431_v0, %v1268_v52 }
 0x1be   : > { %v1476_v42 = vpop.f32.mrf.mxu3 }
 0x1bf   : > { %1739 = vst.msk [vmem:[%s2639_s20 + $0xcc] sm:$0xf] %vm1687_vm1, %v1676_v38  ;;  %v1535_v45 = vmul.f32 0.01, %v1432_v40  ;;  %v1477_v44 = vadd.f32 %v1476_v42, %v2863_v1 }
 0x1c0   : > { %v1105_v36 = vpop.f32.mrf.mxu0  ;;  %v1438_v51 = vpop.f32.mrf.mxu2 }
 0x1c1   : > { %v1597_v41 = vmax.f32 %v1432_v40, %v1535_v45  ;;  %v1553_v48 = vmul.f32 0.01, %v1477_v44  ;;  %v1106_v49 = vadd.f32 %v2908_v62, %v1105_v36  ;;  %v1269_v32 = vpop.f32.mrf.mxu1 }
 0x1c3   : > { %v1659_v18 = vpack.c.bf16 %v1597_v41, %v1597_v41  ;;  %v1615_v5 = vmax.f32 %v1477_v44, %v1553_v48  ;;  %v1270_v56 = vadd.f32 %v1269_v32, %v1106_v49 }
 0x1c5   : > { %1722 = vst.msk [vmem:[%s2639_s20 + $0x88] sm:$0xf] %vm1687_vm1, %v1659_v18  ;;  %v1677_v10 = vpack.c.bf16 %v1615_v5, %v1615_v5  ;;  %v1434_v58 = vadd.f32 %v1433_v17, %v1270_v56 }
 0x1c6   : > { %v1478_v14 = vpop.f32.mrf.mxu3 }
 0x1c7   : > { %1740 = vst.msk [vmem:[%s2639_s20 + $0xd0] sm:$0xf] %vm1687_vm1, %v1677_v10  ;;  %v1536_v1 = vmul.f32 0.01, %v1434_v58  ;;  %v1479_v59 = vadd.f32 %v1478_v14, %v2879_v26 }
 0x1c8   : > { %v1108_v0 = vpop.f32.mrf.mxu0  ;;  %v1441_v4 = vpop.f32.mrf.mxu2 }
 0x1c9   : > { %v1598_v43 = vmax.f32 %v1434_v58, %v1536_v1  ;;  %v1554_v63 = vmul.f32 0.01, %v1479_v59  ;;  %v1109_v2 = vadd.f32 %v2908_v62, %v1108_v0  ;;  %v1272_v30 = vpop.f32.mrf.mxu1 }
 0x1cb   : > { %v1660_v61 = vpack.c.bf16 %v1598_v43, %v1598_v43  ;;  %v1616_v46 = vmax.f32 %v1479_v59, %v1554_v63  ;;  %v1273_v8 = vadd.f32 %v1272_v30, %v1109_v2 }
 0x1cd   : > { %1723 = vst.msk [vmem:[%s2639_s20 + $0x8c] sm:$0xf] %vm1687_vm1, %v1660_v61  ;;  %v1678_v6 = vpack.c.bf16 %v1616_v46, %v1616_v46  ;;  %v1437_v11 = vadd.f32 %v1436_v35, %v1273_v8 }
 0x1ce   : > { %v1481_v13 = vpop.f32.mrf.mxu3 }
 0x1cf   : > { %1741 = vst.msk [vmem:[%s2639_s20 + $0xd4] sm:$0xf] %vm1687_vm1, %v1678_v6  ;;  %v1537_v26 = vmul.f32 0.01, %v1437_v11  ;;  %v1482_v17 = vadd.f32 %v1481_v13, %v2887_v47 }
 0x1d0   : > { %v1110_v20 = vpop.f32.mrf.mxu0  ;;  %v1443_v29 = vpop.f32.mrf.mxu2 }
 0x1d1   : > { %v1599_v39 = vmax.f32 %v1437_v11, %v1537_v26  ;;  %v1555_v21 = vmul.f32 0.01, %v1482_v17  ;;  %v1111_v22 = vadd.f32 %v2908_v62, %v1110_v20  ;;  %v1274_v28 = vpop.f32.mrf.mxu1 }
 0x1d3   : > { %v1661_v57 = vpack.c.bf16 %v1599_v39, %v1599_v39  ;;  %v1617_v19 = vmax.f32 %v1482_v17, %v1555_v21  ;;  %v1275_v12 = vadd.f32 %v1274_v28, %v1111_v22 }
 0x1d5   : > { %1724 = vst.msk [vmem:[%s2639_s20 + $0x90] sm:$0xf] %vm1687_vm1, %v1661_v57  ;;  %v1679_v24 = vpack.c.bf16 %v1617_v19, %v1617_v19  ;;  %v1439_v23 = vadd.f32 %v1438_v51, %v1275_v12 }
 0x1d6   : > { %v1483_v31 = vpop.f32.mrf.mxu3 }
 0x1d7   : > { %1742 = vst.msk [vmem:[%s2639_s20 + $0xd8] sm:$0xf] %vm1687_vm1, %v1679_v24  ;;  %v1538_v47 = vmul.f32 0.01, %v1439_v23  ;;  %v1484_v33 = vadd.f32 %v1483_v31, %v2903_v9 }
 0x1d8   : > { %v1113_v35 = vpop.f32.mrf.mxu0  ;;  %v1446_v52 = vpop.f32.mrf.mxu2 }
 0x1d9   : > { %v1600_v3 = vmax.f32 %v1439_v23, %v1538_v47  ;;  %v1556_v15 = vmul.f32 0.01, %v1484_v33  ;;  %v1114_v54 = vadd.f32 %v2908_v62, %v1113_v35  ;;  %v1277_v38 = vpop.f32.mrf.mxu1 }
 0x1db   : > { %v1662_v40 = vpack.c.bf16 %v1600_v3, %v1600_v3  ;;  %v1618_v42 = vmax.f32 %v1484_v33, %v1556_v15  ;;  %v1278_v45 = vadd.f32 %v1277_v38, %v1114_v54 }
 0x1dd   : > { %1725 = vst.msk [vmem:[%s2639_s20 + $0x94] sm:$0xf] %vm1687_vm1, %v1662_v40  ;;  %v1680_v44 = vpack.c.bf16 %v1618_v42, %v1618_v42  ;;  %v1442_v36 = vadd.f32 %v1441_v4, %v1278_v45 }
 0x1de   : > { %v1486_v41 = vpop.f32.mrf.mxu3 }
 0x1df   : > { %1743 = vst.msk [vmem:[%s2639_s20 + $0xdc] sm:$0xf] %vm1687_vm1, %v1680_v44  ;;  %v1539_v9 = vmul.f32 0.01, %v1442_v36  ;;  %v1487_v48 = vadd.f32 %v1486_v41, %v2916_v27 }
 0x1e0   : > { %v1115_v49 = vpop.f32.mrf.mxu0  ;;  %v1448_v5 = vpop.f32.mrf.mxu2 }
 0x1e1   : > { %v1601_v51 = vmax.f32 %v1442_v36, %v1539_v9  ;;  %v1557_v32 = vmul.f32 0.01, %v1487_v48  ;;  %v1116_v18 = vadd.f32 %v2908_v62, %v1115_v49  ;;  %v1279_v56 = vpop.f32.mrf.mxu1 }
 0x1e3   : > { %v1663_v10 = vpack.c.bf16 %v1601_v51, %v1601_v51  ;;  %v1619_v58 = vmax.f32 %v1487_v48, %v1557_v32  ;;  %v1280_v14 = vadd.f32 %v1279_v56, %v1116_v18 }
 0x1e5   : > { %1726 = vst.msk [vmem:[%s2639_s20 + $0x98] sm:$0xf] %vm1687_vm1, %v1663_v10  ;;  %v1681_v1 = vpack.c.bf16 %v1619_v58, %v1619_v58  ;;  %v1444_v59 = vadd.f32 %v1443_v29, %v1280_v14 }
 0x1e6   : > { %v1488_v0 = vpop.f32.mrf.mxu3 }
 0x1e7   : > { %1744 = vst.msk [vmem:[%s2639_s20 + $0xe0] sm:$0xf] %vm1687_vm1, %v1681_v1  ;;  %v1540_v27 = vmul.f32 0.01, %v1444_v59  ;;  %v1489_v43 = vadd.f32 %v1488_v0, %v2930_v55 }
 0x1e8   : > { %v1118_v63 = vpop.f32.mrf.mxu0  ;;  %v1451_v61 = vpop.f32.mrf.mxu2 }
 0x1e9   : > { %v1602_v2 = vmax.f32 %v1444_v59, %v1540_v27  ;;  %v1558_v4 = vmul.f32 0.01, %v1489_v43  ;;  %v1119_v30 = vadd.f32 %v2908_v62, %v1118_v63  ;;  %v1282_v46 = vpop.f32.mrf.mxu1 }
 0x1eb   : > { %v1664_v8 = vpack.c.bf16 %v1602_v2, %v1602_v2  ;;  %v1620_v6 = vmax.f32 %v1489_v43, %v1558_v4  ;;  %v1283_v11 = vadd.f32 %v1282_v46, %v1119_v30 }
 0x1ed   : > { %1727 = vst.msk [vmem:[%s2639_s20 + $0x9c] sm:$0xf] %vm1687_vm1, %v1664_v8  ;;  %v1682_v13 = vpack.c.bf16 %v1620_v6, %v1620_v6  ;;  %v1447_v26 = vadd.f32 %v1446_v52, %v1283_v11 }
 0x1ee   : > { %v1491_v17 = vpop.f32.mrf.mxu3 }
 0x1ef   : > { %1745 = vst.msk [vmem:[%s2639_s20 + $0xe4] sm:$0xf] %vm1687_vm1, %v1682_v13  ;;  %v1541_v55 = vmul.f32 0.01, %v1447_v26  ;;  %v1492_v20 = vadd.f32 %v1491_v17, %v2937_v7 }
 0x1f0   : > { %v1120_v39 = vpop.f32.mrf.mxu0  ;;  %v1453_v28 = vpop.f32.mrf.mxu2 }
 0x1f1   : > { %v1603_v21 = vmax.f32 %v1447_v26, %v1541_v55  ;;  %v1559_v22 = vmul.f32 0.01, %v1492_v20  ;;  %v1121_v29 = vadd.f32 %v2908_v62, %v1120_v39  ;;  %v1284_v57 = vpop.f32.mrf.mxu1 }
 0x1f3   : > { %v1665_v19 = vpack.c.bf16 %v1603_v21, %v1603_v21  ;;  %v1621_v12 = vmax.f32 %v1492_v20, %v1559_v22  ;;  %v1285_v24 = vadd.f32 %v1284_v57, %v1121_v29 }
 0x1f5   : > { %1728 = vst.msk [vmem:[%s2639_s20 + $0xa0] sm:$0xf] %vm1687_vm1, %v1665_v19  ;;  %v1683_v23 = vpack.c.bf16 %v1621_v12, %v1621_v12  ;;  %v1449_v31 = vadd.f32 %v1448_v5, %v1285_v24 }
 0x1f6   : > { %v1493_v47 = vpop.f32.mrf.mxu3 }
 0x1f7   : > { %1746 = vst.msk [vmem:[%s2639_s20 + $0xe8] sm:$0xf] %vm1687_vm1, %v1683_v23  ;;  %v1542_v7 = vmul.f32 0.01, %v1449_v31  ;;  %v1494_v33 = vadd.f32 %v1493_v47, %v2947_v25 }
 0x1f8   : > { %v1123_v35 = vpop.f32.mrf.mxu0  ;;  %v1456_v52 = vpop.f32.mrf.mxu2 }
 0x1f9   : > { %v1604_v3 = vmax.f32 %v1449_v31, %v1542_v7  ;;  %v1560_v15 = vmul.f32 0.01, %v1494_v33  ;;  %v1124_v54 = vadd.f32 %v2908_v62, %v1123_v35  ;;  %v1287_v38 = vpop.f32.mrf.mxu1 }
 0x1fb   : > { %v1666_v40 = vpack.c.bf16 %v1604_v3, %v1604_v3  ;;  %v1622_v42 = vmax.f32 %v1494_v33, %v1560_v15  ;;  %v1288_v45 = vadd.f32 %v1287_v38, %v1124_v54 }
 0x1fd   : > { %1729 = vst.msk [vmem:[%s2639_s20 + $0xa4] sm:$0xf] %vm1687_vm1, %v1666_v40  ;;  %v1684_v44 = vpack.c.bf16 %v1622_v42, %v1622_v42  ;;  %v1452_v36 = vadd.f32 %v1451_v61, %v1288_v45 }
 0x1fe   : > { %v1496_v41 = vpop.f32.mrf.mxu3 }
 0x1ff   : > { %1747 = vst.msk [vmem:[%s2639_s20 + $0xec] sm:$0xf] %vm1687_vm1, %v1684_v44  ;;  %v1543_v25 = vmul.f32 0.01, %v1452_v36  ;;  %v1497_v9 = vadd.f32 %v1496_v41, %v2954_v37 }
 0x200   : > { %v1125_v48 = vpop.f32.mrf.mxu0  ;;  %v1458_v18 = vpop.f32.mrf.mxu2 }
 0x201   : > { %v1605_v49 = vmax.f32 %v1452_v36, %v1543_v25  ;;  %v1561_v51 = vmul.f32 0.01, %v1497_v9  ;;  %v1126_v32 = vadd.f32 %v2908_v62, %v1125_v48  ;;  %v1289_v5 = vpop.f32.mrf.mxu1 }
 0x203   : > { %v1667_v56 = vpack.c.bf16 %v1605_v49, %v1605_v49  ;;  %v1623_v10 = vmax.f32 %v1497_v9, %v1561_v51  ;;  %v1290_v58 = vadd.f32 %v1289_v5, %v1126_v32 }
 0x205   : > { %1730 = vst.msk [vmem:[%s2639_s20 + $0xa8] sm:$0xf] %vm1687_vm1, %v1667_v56  ;;  %v1685_v14 = vpack.c.bf16 %v1623_v10, %v1623_v10  ;;  %v1454_v1 = vadd.f32 %v1453_v28, %v1290_v58 }
 0x206   : > { %v1498_v59 = vpop.f32.mrf.mxu3 }
 0x207   : > { %1748 = vst.msk [vmem:[%s2639_s20 + $0xf0] sm:$0xf] %vm1687_vm1, %v1685_v14  ;;  %v1544_v0 = vmul.f32 0.01, %v1454_v1  ;;  %v1499_v37 = vadd.f32 %v1498_v59, %v2961_v53 }
 0x208   : > { %v1128_v27 = vpop.f32.mrf.mxu0  ;;  %v1461_v4 = vpop.f32.mrf.mxu2 }
 0x209   : > { %v1606_v43 = vmax.f32 %v1454_v1, %v1544_v0  ;;  %v1562_v63 = vmul.f32 0.01, %v1499_v37  ;;  %v1129_v2 = vadd.f32 %v2908_v62, %v1128_v27  ;;  %v1292_v30 = vpop.f32.mrf.mxu1  ;;  %v1462_v61 = vadd.f32 %v1461_v4, %v2791_v50 }
 0x20b   : > { %v1668_v46 = vpack.c.bf16 %v1606_v43, %v1606_v43  ;;  %v1624_v8 = vmax.f32 %v1499_v37, %v1562_v63  ;;  %v1293_v6 = vadd.f32 %v1292_v30, %v1129_v2  ;;  %v1547_v11 = vmul.f32 0.01, %v1462_v61 }
 0x20d   : > { %1731 = vst.msk [vmem:[%s2639_s20 + $0xac] sm:$0xf] %vm1687_vm1, %v1668_v46  ;;  %v1686_v13 = vpack.c.bf16 %v1624_v8, %v1624_v8  ;;  %v1457_v53 = vadd.f32 %v1456_v52, %v1293_v6  ;;  %v1609_v26 = vmax.f32 %v1462_v61, %v1547_v11 }
 0x20f   : > { %1749 = vst.msk [vmem:[%s2639_s20 + $0xf4] sm:$0xf] %vm1687_vm1, %v1686_v13  ;;  %v1545_v17 = vmul.f32 0.01, %v1457_v53  ;;  %v1671_v55 = vpack.c.bf16 %v1609_v26, %v1609_v26 }
 0x210   : > { %v1130_v20 = vpop.f32.mrf.mxu0  ;;  %v1463_v21 = vpop.f32.mrf.mxu2 }
 0x211   : > { %v1607_v39 = vmax.f32 %v1457_v53, %v1545_v17  ;;  %v1131_v50 = vadd.f32 %v2908_v62, %v1130_v20  ;;  %v1294_v22 = vpop.f32.mrf.mxu1  ;;  %1734 = vst.msk [vmem:[%s2639_s20 + $0xb8] sm:$0xf] %vm1687_vm1, %v1671_v55  ;;  %v1464_v29 = vadd.f32 %v1463_v21, %v2807_v16 }
 0x213   : > { %v1669_v28 = vpack.c.bf16 %v1607_v39, %v1607_v39  ;;  %v1295_v57 = vadd.f32 %v1294_v22, %v1131_v50  ;;  %v1548_v19 = vmul.f32 0.01, %v1464_v29 }
 0x215   : > { %1732 = vst.msk [vmem:[%s2639_s20 + $0xb0] sm:$0xf] %vm1687_vm1, %v1669_v28  ;;  %v1459_v12 = vadd.f32 %v1458_v18, %v1295_v57  ;;  %v1610_v24 = vmax.f32 %v1464_v29, %v1548_v19 }
 0x217   : > { %v1546_v23 = vmul.f32 0.01, %v1459_v12  ;;  %v1672_v31 = vpack.c.bf16 %v1610_v24, %v1610_v24 }
 0x218   : > { %v1466_v62 = vpop.f32.mrf.mxu2 }
 0x219   : > { %v1608_v47 = vmax.f32 %v1459_v12, %v1546_v23  ;;  %1735 = vst.msk [vmem:[%s2639_s20 + $0xbc] sm:$0xf] %vm1687_vm1, %v1672_v31  ;;  %v1467_v7 = vadd.f32 %v1466_v62, %v2815_v34 }
 0x21b   : > { %v1670_v33 = vpack.c.bf16 %v1608_v47, %v1608_v47  ;;  %v1549_v35 = vmul.f32 0.01, %v1467_v7 }
 0x21d   : > { %1733 = vst.msk [vmem:[%s2639_s20 + $0xb4] sm:$0xf] %vm1687_vm1, %v1670_v33  ;;  %v1611_v16 = vmax.f32 %v1467_v7, %v1549_v35 }
 0x21f   : > { %v1673_v3 = vpack.c.bf16 %v1611_v16, %v1611_v16 }
 0x220   : > { %v1468_v15 = vpop.f32.mrf.mxu2 }
 0x221   : > { %1736 = vst.msk [vmem:[%s2639_s20 + $0xc0] sm:$0xf] %vm1687_vm1, %v1673_v3  ;;  %v1469_v54 = vadd.f32 %v1468_v15, %v2831_v60 }
 0x223   : > { %v1550_v52 = vmul.f32 0.01, %v1469_v54 }
 0x225   : > { %v1612_v38 = vmax.f32 %v1469_v54, %v1550_v52 }
 0x227   : > { %v1674_v40 = vpack.c.bf16 %v1612_v38, %v1612_v38 }
 0x229   : > { %1737 = vst.msk [vmem:[%s2639_s20 + $0xc4] sm:$0xf] %vm1687_vm1, %v1674_v40 }
 0x22a PF: > { %s13_s12 = sadd.s32 1, %s2436_s12  }
 0x22b   : > { %p10_p4 = scmp.ge.s32.totalorder %s13_s12, 4  }
 0x22d   :  { %12 = sbr.rel (!%p10_p4) target bundleno = 1 (0x1), region = 62 }

// kernel: integrated_nn2_forward.5
= control target key start
LH: loop header
LB: loop body
LE: loop exit
PB: predicated region body
PF: predicated region fallthrough
CT: control target
= control target key end

     0   :  { %s8549_s18 = smov 0   ;;  %s11459_s0 = inlined_call_operand.vmem [shape: bf16[2,110,432], index: 0, kind: input, shape index: {}]   ;;  %s11460_s1 = inlined_call_operand.vmem [shape: bf16[432,64], index: 1, kind: input, shape index: {}]   ;;  %s11461_s2 = inlined_call_operand.vmem [shape: f32[1,64], index: 2, kind: input, shape index: {}]   ;;  %s11462_s3 = inlined_call_operand.vmem [shape: bf16[9,64,96], index: 3, kind: input, shape index: {}]   ;;  %s11463_s4 = inlined_call_operand.vmem [shape: f32[1,96], index: 4, kind: input, shape index: {}]   ;;  %s11464_s5 = inlined_call_operand.vmem [shape: bf16[9,96,128], index: 5, kind: input, shape index: {}]   ;;  %s11465_s6 = inlined_call_operand.vmem [shape: f32[1,128], index: 6, kind: input, shape index: {}]   ;;  %s11466_s7 = inlined_call_operand.vmem [shape: bf16[18,128,256], index: 7, kind: input, shape index: {}]   ;;  %s11467_s8 = inlined_call_operand.vmem [shape: f32[1,256], index: 8, kind: input, shape index: {}]   ;;  %s11468_s9 = inlined_call_operand.vmem [shape: bf16[256,128], index: 9, kind: input, shape index: {}]   ;;  %s11469_s10 = inlined_call_operand.vmem [shape: f32[1,128], index: 10, kind: input, shape index: {}]   ;;  %s11470_s11 = inlined_call_operand.vmem [shape: bf16[128,64], index: 11, kind: input, shape index: {}]   ;;  %s11471_s12 = inlined_call_operand.vmem [shape: f32[1,64], index: 12, kind: input, shape index: {}]   ;;  %s11472_s13 = inlined_call_operand.vmem [shape: bf16[64,128], index: 13, kind: input, shape index: {}]   ;;  %s11473_s14 = inlined_call_operand.vmem [shape: f32[1,128], index: 14, kind: input, shape index: {}]   ;;  %s11474_s15 = inlined_call_operand.vmem [shape: f32[2,1,128], index: 15, kind: output, shape index: {}]  }
   0x1 LB: > { %s5620_s19 = sadd.s32 4294967295, %s8467_s18   ;;  %p5624_p0 = scmp.ge.s32.totalorder %s8467_s18, 1  ;;  %s8467_s18 = sphi %s8549_s18, %s25_s18  }
   0x2   : > { %p437_p1 = scmp.lt.s32.totalorder %s8467_s18, 3 }
   0x4   : > { %p438_p2 = pnand %p5624_p0, %p437_p1 }
   0x5   : > { %p483_p3 = scmp.lt.s32.totalorder (!%p438_p2), %s5620_s19, 1 }
   0x6   : > { %441 = sbr.rel (%p438_p2) target bundleno = 1511 (0x5e7), region = 80 }
   0xb   : > { %v8019_v0 = vld [vmem:[%s11460_s1 + $0x38] sm:$0xff]  ;;  %v8018_v3 = vld [vmem:[%s11460_s1 + $0x30] sm:$0xff]  ;;  %s11476_s19 = smov (!%p483_p3, %s5620_s19), 1  ;;  %v8017_v7 = vld [vmem:[%s11460_s1 + $0x28] sm:$0xff]  ;;  %vm873_vm0 = vcmask 392192   ;;  %vm1164_vm1 = vcmask 523264  }
   0xc   : > { %v8027_v1 = vld [vmem:[%s11460_s1 + $0x78] sm:$0xff]  ;;  %895 = vmatpush.bf16.msra.mxu0 %v8019_v0  ;;  %v8026_v4 = vld [vmem:[%s11460_s1 + $0x70] sm:$0xff]  ;;  %s8449_s21 = smul.u32 224, %s11476_s19  ;;  %v8025_v8 = vld [vmem:[%s11460_s1 + $0x68] sm:$0xff]  ;;  %vm1244_vm2 = vcmask 1046528   ;;  %vm1316_vm4 = vcmask 1044480   ;;  %s490_s28 = scalar_lea.vmem %s11474_s15, %s11476_s19 }
   0xd   : > { %v8035_v2 = vld [vmem:[%s11460_s1 + $0xb8] sm:$0xff]  ;;  %939 = vmatpush.bf16.msra.mxu1 %v8027_v1  ;;  %v8034_v5 = vld [vmem:[%s11460_s1 + $0xb0] sm:$0xff]  ;;  %v8033_v9 = vld [vmem:[%s11460_s1 + $0xa8] sm:$0xff]  ;;  %vm1124_vm3 = vsmask.f32 7424  ;;  %vm1526_vm5 = vcmask 1045504  }
   0xe   : > { %983 = vmatpush.bf16.msra.mxu2 %v8035_v2  ;;  %v8038_v6 = vld [vmem:[%s11460_s1 + $0xd0] sm:$0xff]  ;;  %v8037_v10 = vld [vmem:[%s11460_s1 + $0xc8] sm:$0xff]  ;;  %s8596_s17 = scalar_lea.vmem %s11459_s0, %s8449_s21  ;;  %v8016_v11 = vld [vmem:[%s11460_s1 + $0x20] sm:$0xff]  ;;  %vm1380_vm6 = vsmask.f32 4352  ;;  %vm2305_vm9 = vcmask 785408  }
   0xf   : > { %1032 = vmatpush.bf16.msra.mxu3 %v8038_v6  ;;  %v8024_v12 = vld [vmem:[%s11460_s1 + $0x60] sm:$0xff]  ;;  %v7985_v15 = vld [vmem:[%s8596_s17 + $0xc] sm:$0xf]  ;;  %v5638_v16 = vld [vmem:[%s8596_s17 + $0x18] sm:$0xf0] }
  0x10   : > { %896 = vmatpush.bf16.msra.mxu0 %v8018_v3  ;;  %v8032_v13 = vld [vmem:[%s11460_s1 + $0xa0] sm:$0xff]  ;;  %v8015_v17 = vld [vmem:[%s11460_s1 + $0x18] sm:$0xff]  ;;  %v5641_v20 = vor.u32 %v7985_v15, %v5638_v16  ;;  %v8014_v21 = vld [vmem:[%s11460_s1 + $0x10] sm:$0xff]  ;;  %vm1593_vm7 = vsmask.f32 5376 }
  0x11   : > { %940 = vmatpush.bf16.msra.mxu1 %v8026_v4  ;;  %v8036_v14 = vld [vmem:[%s11460_s1 + $0xc0] sm:$0xff]  ;;  %v8023_v18 = vld [vmem:[%s11460_s1 + $0x58] sm:$0xff]  ;;  %v8022_v22 = vld [vmem:[%s11460_s1 + $0x50] sm:$0xff]  ;;  %vm1897_vm8 = vsmask.f32 6400 }
  0x12   : > { %984 = vmatpush.bf16.msra.mxu2 %v8034_v5  ;;  %v8031_v19 = vld [vmem:[%s11460_s1 + $0x98] sm:$0xff]  ;;  %v8030_v23 = vld [vmem:[%s11460_s1 + $0x90] sm:$0xff]  ;;  %v8013_v24 = vld [vmem:[%s11460_s1 + $0x8] sm:$0xff] }
  0x13   : > { %1033 = vmatpush.bf16.msra.mxu3 %v8037_v10  ;;  %v8021_v25 = vld [vmem:[%s11460_s1 + $0x48] sm:$0xff]  ;;  %v8012_v27 = vld [vmem:[%s11460_s1] sm:$0xff]  ;;  %v7986_v30 = vld [vmem:[%s8596_s17 + $0xc] sm:$0xf0] }
  0x14   : > { %897 = vmatpush.bf16.msra.mxu0 %v8017_v7  ;;  %v8029_v26 = vld [vmem:[%s11460_s1 + $0x88] sm:$0xff]  ;;  %v8020_v28 = vld [vmem:[%s11460_s1 + $0x40] sm:$0xff]  ;;  %v5630_v32 = vld [vmem:[%s8596_s17 + $0x10] sm:$0xf0] }
  0x15   : > { %941 = vmatpush.bf16.msra.mxu1 %v8025_v8  ;;  %v5628_v29 = vld [vmem:[%s8596_s17] sm:$0xf]  ;;  %v7984_v31 = vld [vmem:[%s8596_s17 + $0x4] sm:$0xf]  ;;  %v5636_v34 = vld [vmem:[%s8596_s17 + $0x8] sm:$0xf] }
  0x16   : > { %985 = vmatpush.bf16.msra.mxu2 %v8033_v9  ;;  %v8028_v33 = vld [vmem:[%s11460_s1 + $0x80] sm:$0xff]  ;;  %v7987_v35 = vld [vmem:[%s8596_s17 + $0x14] sm:$0xf0]  ;;  %v7989_v36 = vld [vmem:[%s8596_s17 + $0x2c] sm:$0xf]  ;;  %v5629_v38 = vor.u32 %v7986_v30, %v5628_v29  ;;  %v5633_v39 = vor.u32 %v7984_v31, %v5630_v32 }
  0x17   : > { %1034 = vmatpush.bf16.msra.mxu3 %v8036_v14  ;;  %v5654_v37 = vld [vmem:[%s8596_s17 + $0x38] sm:$0xf0]  ;;  %v5637_v40 = vor.u32 %v7987_v35, %v5636_v34  ;;  %v5644_v42 = vld [vmem:[%s8596_s17 + $0x20] sm:$0xf]  ;;  %v7990_v43 = vld [vmem:[%s8596_s17 + $0x2c] sm:$0xf0] }
  0x18   : > { %898 = vmatpush.bf16.msra.mxu0 %v8016_v11  ;;  %v5657_v41 = vor.u32 %v7989_v36, %v5654_v37  ;;  %v7988_v44 = vld [vmem:[%s8596_s17 + $0x24] sm:$0xf]  ;;  %v5646_v45 = vld [vmem:[%s8596_s17 + $0x30] sm:$0xf0]  ;;  %v5652_v46 = vld [vmem:[%s8596_s17 + $0x28] sm:$0xf]  ;;  %v5645_v50 = vor.u32 %v7990_v43, %v5644_v42 }
  0x19   : > { %942 = vmatpush.bf16.msra.mxu1 %v8024_v12  ;;  %v7991_v47 = vld [vmem:[%s8596_s17 + $0x34] sm:$0xf0]  ;;  %v7993_v48 = vld [vmem:[%s8596_s17 + $0x4c] sm:$0xf]  ;;  %v5670_v49 = vld [vmem:[%s8596_s17 + $0x58] sm:$0xf0]  ;;  %v5649_v51 = vor.u32 %v7988_v44, %v5646_v45 }
  0x1a   : > { %986 = vmatpush.bf16.msra.mxu2 %v8032_v13  ;;  %5846 = vmatmul.msk.bf16.vlgmr.msra.gmra.mxu3 %vm873_vm0, %v5641_v20  ;;  %v5653_v52 = vor.u32 %v7991_v47, %v5652_v46  ;;  %v5673_v53 = vor.u32 %v7993_v48, %v5670_v49  ;;  %v5660_v54 = vld [vmem:[%s8596_s17 + $0x40] sm:$0xf]  ;;  %v7994_v55 = vld [vmem:[%s8596_s17 + $0x4c] sm:$0xf0]  ;;  %v7992_v56 = vld [vmem:[%s8596_s17 + $0x44] sm:$0xf] }
  0x1b   : > { %v5662_v57 = vld [vmem:[%s8596_s17 + $0x50] sm:$0xf0]  ;;  %v5668_v58 = vld [vmem:[%s8596_s17 + $0x48] sm:$0xf]  ;;  %v7995_v59 = vld [vmem:[%s8596_s17 + $0x54] sm:$0xf0]  ;;  %v5661_v62 = vor.u32 %v7994_v55, %v5660_v54 }
  0x1c   : > { %899 = vmatpush.bf16.msra.mxu0 %v8015_v17  ;;  %v7997_v60 = vld [vmem:[%s8596_s17 + $0x6c] sm:$0xf]  ;;  %v5686_v61 = vld [vmem:[%s8596_s17 + $0x78] sm:$0xf0]  ;;  %v5665_v63 = vor.u32 %v7992_v56, %v5662_v57  ;;  %v5669_v0 = vor.u32 %v7995_v59, %v5668_v58  ;;  %v5676_v2 = vld [vmem:[%s8596_s17 + $0x60] sm:$0xf] }
  0x1d   : > { %943 = vmatpush.bf16.msra.mxu1 %v8023_v18  ;;  %v5689_v1 = vor.u32 %v7997_v60, %v5686_v61  ;;  %v7998_v3 = vld [vmem:[%s8596_s17 + $0x6c] sm:$0xf0]  ;;  %v7996_v4 = vld [vmem:[%s8596_s17 + $0x64] sm:$0xf]  ;;  %v5678_v5 = vld [vmem:[%s8596_s17 + $0x70] sm:$0xf0] }
  0x1e   : > { %987 = vmatpush.bf16.msra.mxu2 %v8031_v19  ;;  %v5684_v6 = vld [vmem:[%s8596_s17 + $0x68] sm:$0xf]  ;;  %v7999_v7 = vld [vmem:[%s8596_s17 + $0x74] sm:$0xf0]  ;;  %v8001_v8 = vld [vmem:[%s8596_s17 + $0x8c] sm:$0xf]  ;;  %v5677_v10 = vor.u32 %v7998_v3, %v5676_v2  ;;  %v5681_v11 = vor.u32 %v7996_v4, %v5678_v5 }
  0x1f   : > { %v5702_v9 = vld [vmem:[%s8596_s17 + $0x98] sm:$0xf0]  ;;  %v5685_v12 = vor.u32 %v7999_v7, %v5684_v6  ;;  %v5692_v14 = vld [vmem:[%s8596_s17 + $0x80] sm:$0xf]  ;;  %v8002_v15 = vld [vmem:[%s8596_s17 + $0x8c] sm:$0xf0] }
  0x20   : > { %900 = vmatpush.bf16.msra.mxu0 %v8014_v21  ;;  %v5705_v13 = vor.u32 %v8001_v8, %v5702_v9  ;;  %v8000_v16 = vld [vmem:[%s8596_s17 + $0x84] sm:$0xf]  ;;  %v5694_v17 = vld [vmem:[%s8596_s17 + $0x90] sm:$0xf0]  ;;  %v5700_v18 = vld [vmem:[%s8596_s17 + $0x88] sm:$0xf] }
  0x21   : > { %944 = vmatpush.bf16.msra.mxu1 %v8022_v22  ;;  %v8003_v19 = vld [vmem:[%s8596_s17 + $0x94] sm:$0xf0]  ;;  %v8005_v20 = vld [vmem:[%s8596_s17 + $0xac] sm:$0xf]  ;;  %v5718_v21 = vld [vmem:[%s8596_s17 + $0xb8] sm:$0xf0]  ;;  %v5693_v22 = vor.u32 %v8002_v15, %v5692_v14 }
  0x22   : > { %988 = vmatpush.bf16.msra.mxu2 %v8030_v23  ;;  %v5697_v23 = vor.u32 %v8000_v16, %v5694_v17  ;;  %v5710_v29 = vld [vmem:[%s8596_s17 + $0xb0] sm:$0xf0]  ;;  %v5716_v30 = vld [vmem:[%s8596_s17 + $0xa8] sm:$0xf]  ;;  %v8007_v31 = vld [vmem:[%s8596_s17 + $0xb4] sm:$0xf0] }
  0x23   : > { %v5717_v34 = vor.u32 %v8007_v31, %v5716_v30  ;;  %v5732_v35 = vld [vmem:[%s8596_s17 + $0xc8] sm:$0xf]  ;;  %v8011_v36 = vld [vmem:[%s8596_s17 + $0xd4] sm:$0x70]  ;;  %v5724_v37 = vld [vmem:[%s8596_s17 + $0xc0] sm:$0xf] }
  0x24   : > { %901 = vmatpush.bf16.msra.mxu0 %v8013_v24  ;;  %v5701_v24 = vor.u32 %v8003_v19, %v5700_v18  ;;  %v5733_v42 = vor.u32 %v8011_v36, %v5732_v35  ;;  %v8008_v44 = vld [vmem:[%s8596_s17 + $0xc4] sm:$0xf]  ;;  %v5726_v45 = vld [vmem:[%s8596_s17 + $0xd0] sm:$0x70]  ;;  %v8712_v47 = vld [vmem:[%s11462_s3 + $0x38] sm:$0xff] }
  0x25   : > { %945 = vmatpush.bf16.msra.mxu1 %v8021_v25  ;;  %v5721_v25 = vor.u32 %v8005_v20, %v5718_v21  ;;  %v5729_v46 = vor.u32 %v8008_v44, %v5726_v45  ;;  %1175 = vmatpush.bf16.msrb.mxu3 %v8712_v47  ;;  %v8718_v48 = vld [vmem:[%s11462_s3 + $0x18] sm:$0xff]  ;;  %v8724_v49 = vld [vmem:[%s11462_s3 + $0x10] sm:$0xff]  ;;  %v8759_v56 = vld [vmem:[%s11461_s2] ss:$0 sm:$0xff] }
  0x26   : > { %989 = vmatpush.bf16.msra.mxu2 %v8029_v26  ;;  %v5708_v26 = vld [vmem:[%s8596_s17 + $0xa0] sm:$0xf]  ;;  %v8748_v54 = vld [vmem:[%s11462_s3 + $0x50] sm:$0xff]  ;;  %v8765_v57 = vld [vmem:[%s11462_s3 + $0x48] sm:$0xff] }
  0x27   : > { %v8754_v55 = vld [vmem:[%s11462_s3 + $0x30] sm:$0xff]  ;;  %v8771_v60 = vld [vmem:[%s11462_s3 + $0x28] sm:$0xff]  ;;  %v8789_v2 = vld [vmem:[%s11462_s3 + $0x20] sm:$0xff] }
  0x28   : > { %902 = vmatpush.bf16.msra.mxu0 %v8012_v27  ;;  %v8006_v27 = vld [vmem:[%s8596_s17 + $0xac] sm:$0xf0]  ;;  %v8804_v9 = vld [vmem:[%s11462_s3 + $0xa8] sm:$0xff]  ;;  %v8816_v15 = vld [vmem:[%s11462_s3 + $0xa0] sm:$0xff] }
  0x29   : > { %946 = vmatpush.bf16.msra.mxu1 %v8020_v28  ;;  %v8004_v28 = vld [vmem:[%s8596_s17 + $0xa4] sm:$0xf]  ;;  %v5709_v32 = vor.u32 %v8006_v27, %v5708_v26  ;;  %1176 = vmatpush.bf16.msrb.mxu3 %v8754_v55  ;;  %v8796_v4 = vld [vmem:[%s11462_s3 + $0xb0] sm:$0xff]  ;;  %v8832_v27 = vld [vmem:[%s11462_s3 + $0x68] sm:$0xff] }
  0x2a   : > { %990 = vmatpush.bf16.msra.mxu2 %v8028_v33  ;;  %5847 = vmatmul.msk.bf16.gmra.mxu3 %vm873_vm0, %v5657_v41  ;;  %v5713_v33 = vor.u32 %v8004_v28, %v5710_v29  ;;  %v5734_v41 = vld [vmem:[%s8596_s17 + $0xd8] sm:$0x70] }
  0x2b   : > { %903 = vmatmul.bf16.vlgmr.msra.gmra.mxu0 %v5629_v38  ;;  %v8010_v38 = vld [vmem:[%s8596_s17 + $0xcc] sm:$0x70] }
  0x2c   : > { %947 = vmatmul.bf16.vlgmr.msra.gmra.mxu1 %v5633_v39  ;;  %v8009_v39 = vld [vmem:[%s8596_s17 + $0xcc] sm:$0xf]  ;;  %1221 = vmatpush.bf16.msrb.mxu0 %v8718_v48 }
  0x2d   : > { %991 = vmatmul.bf16.vlgmr.msra.gmra.mxu2 %v5637_v40  ;;  %v5725_v40 = vor.u32 %v8010_v38, %v5724_v37  ;;  %v5737_v43 = vor.u32 %v8009_v39, %v5734_v41  ;;  %1177 = vmatpush.bf16.msrb.mxu3 %v8771_v60  ;;  %v8839_v38 = vld [vmem:[%s11462_s3 + $0x60] sm:$0xff] }
  0x30   : > { %1222 = vmatpush.bf16.msrb.mxu0 %v8724_v49 }
  0x31   : > { %1178 = vmatpush.bf16.msrb.mxu3 %v8789_v2 }
  0x35   : > { %8445 = vmatpush.bf16.msra.mxu3 %v8718_v48 }
  0x39   : > { %8446 = vmatpush.bf16.msra.mxu3 %v8724_v49 }
  0x3a   : > { %5848 = vmatmul.msk.bf16.gmra.mxu3 %vm873_vm0, %v5673_v53 }
  0x3b   : > { %908 = vmatmul.bf16.gmra.mxu0 %v5645_v50  ;;  %v8730_v50 = vld [vmem:[%s11462_s3 + $0x8] sm:$0xff] }
  0x3c   : > { %952 = vmatmul.bf16.gmra.mxu1 %v5649_v51  ;;  %1223 = vmatpush.bf16.msrb.mxu0 %v8730_v50  ;;  %v8736_v51 = vld [vmem:[%s11462_s3 + $0x58] sm:$0xff] }
  0x3d   : > { %996 = vmatmul.bf16.gmra.mxu2 %v5653_v52  ;;  %v8741_v52 = vld [vmem:[%s11462_s3] sm:$0xff]  ;;  %1282 = vmatpush.bf16.msrb.mxu1 %v8736_v51 }
  0x3e   : > { %8447 = vmatpush.bf16.msra.mxu3 %v8730_v50 }
  0x40   : > { %1224 = vmatpush.bf16.msrb.mxu0 %v8741_v52 }
  0x41   : > { %1283 = vmatpush.bf16.msrb.mxu1 %v8748_v54 }
  0x42   : > { %8448 = vmatpush.bf16.msra.mxu3 %v8741_v52 }
  0x45   : > { %1284 = vmatpush.bf16.msrb.mxu1 %v8765_v57 }
  0x4a   : > { %5849 = vmatmul.msk.bf16.gmra.mxu3 %vm873_vm0, %v5689_v1 }
  0x4b   : > { %913 = vmatmul.bf16.gmra.mxu0 %v5661_v62  ;;  %v8778_v62 = vld [vmem:[%s11462_s3 + $0x40] sm:$0xff] }
  0x4c   : > { %957 = vmatmul.bf16.gmra.mxu1 %v5665_v63 }
  0x4d   : > { %1001 = vmatmul.bf16.gmra.mxu2 %v5669_v0  ;;  %v8783_v0 = vld [vmem:[%s11462_s3 + $0xb8] sm:$0xff]  ;;  %1285 = vmatpush.bf16.msrb.mxu1 %v8778_v62 }
  0x4e   : > { %1494 = vmatpush.bf16.msra.mxu0 %v8783_v0 }
  0x52   : > { %1495 = vmatpush.bf16.msra.mxu0 %v8796_v4 }
  0x56   : > { %1496 = vmatpush.bf16.msra.mxu0 %v8804_v9 }
  0x5a   : > { %5850 = vmatmul.msk.bf16.gmra.mxu3 %vm873_vm0, %v5705_v13  ;;  %v8811_v13 = vld [vmem:[%s11462_s3 + $0x78] sm:$0xff]  ;;  %1497 = vmatpush.bf16.msra.mxu0 %v8816_v15 }
  0x5b   : > { %918 = vmatmul.bf16.gmra.mxu0 %v5677_v10  ;;  %1354 = vmatpush.bf16.msrb.mxu2 %v8811_v13 }
  0x5c   : > { %962 = vmatmul.bf16.gmra.mxu1 %v5681_v11 }
  0x5d   : > { %1006 = vmatmul.bf16.gmra.mxu2 %v5685_v12 }
  0x6a   : > { %5851 = vmatmul.msk.bf16.gmra.mxu3 %vm873_vm0, %v5721_v25 }
  0x6b   : > { %923 = vmatmul.bf16.gmra.mxu0 %v5693_v22  ;;  %v8825_v22 = vld [vmem:[%s11462_s3 + $0x70] sm:$0xff] }
  0x6c   : > { %967 = vmatmul.bf16.gmra.mxu1 %v5697_v23  ;;  %1355 = vmatpush.bf16.msrb.mxu2 %v8825_v22 }
  0x6d   : > { %1011 = vmatmul.bf16.gmra.mxu2 %v5701_v24 }
  0x70   : > { %1356 = vmatpush.bf16.msrb.mxu2 %v8832_v27 }
  0x74   : > { %1357 = vmatpush.bf16.msrb.mxu2 %v8839_v38 }
  0x7a   : > { %5852 = vmatmul.msk.bf16.gmra.mxu3 %vm873_vm0, %v5737_v43  ;;  %v8847_v43 = vld [vmem:[%s11462_s3 + $0xd8] sm:$0xff] }
  0x7b   : > { %928 = vmatmul.bf16.gmra.mxu0 %v5709_v32  ;;  %1564 = vmatpush.bf16.msra.mxu1 %v8847_v43 }
  0x7c   : > { %972 = vmatmul.bf16.gmra.mxu1 %v5713_v33 }
  0x7d   : > { %1016 = vmatmul.bf16.gmra.mxu2 %v5717_v34 }
  0x8b   : > { %933 = vmatmul.bf16.gmra.mxu0 %v5725_v40 }
  0x8c   : > { %977 = vmatmul.bf16.gmra.mxu1 %v5729_v46 }
  0x8d   : > { %1021 = vmatmul.bf16.gmra.mxu2 %v5733_v42 }
  0x9d   : > { %v1036_v53 = vpop.f32.mrf.mxu3 }
  0xa5   : > { %v1038_v63 = vpop.f32.mrf.mxu3 }
  0xa8   : > { %v904_v58 = vpop.f32.mrf.mxu0 }
  0xa9   : > { %v948_v59 = vpop.f32.mrf.mxu1  ;;  %v905_v61 = vadd.f32 %v8759_v56, %v904_v58 }
  0xab   : > { %v949_v1 = vadd.f32 %v948_v59, %v905_v61 }
  0xad   : > { %v1041_v11 = vpop.f32.mrf.mxu3 }
  0xb0   : > { %v992_v3 = vpop.f32.mrf.mxu2  ;;  %v906_v6 = vpop.f32.mrf.mxu0 }
  0xb1   : > { %v993_v5 = vadd.f32 %v992_v3, %v949_v1  ;;  %v950_v7 = vpop.f32.mrf.mxu1  ;;  %v907_v8 = vadd.f32 %v8759_v56, %v906_v6  ;;  %v8861_v3 = vld [vmem:[%s11462_s3 + $0xd0] sm:$0xff] }
  0xb2   : > { %1565 = vmatpush.bf16.msra.mxu1 %v8861_v3 }
  0xb3   : > { %v1037_v10 = vadd.f32 %v1036_v53, %v993_v5  ;;  %v951_v12 = vadd.f32 %v950_v7, %v907_v8 }
  0xb5   : > { %v1071_v16 = vmax.f32 %v1037_v10, 0.0  ;;  %v1043_v29 = vpop.f32.mrf.mxu3 }
  0xb7   : > { %v1085_v23 = vpack.c.bf16 %v1071_v16, %v1071_v16 }
  0xb8   : > { %v994_v14 = vpop.f32.mrf.mxu2  ;;  %v909_v18 = vpop.f32.mrf.mxu0 }
  0xb9   : > { %v995_v17 = vadd.f32 %v994_v14, %v951_v12  ;;  %v953_v19 = vpop.f32.mrf.mxu1  ;;  %v910_v20 = vadd.f32 %v8759_v56, %v909_v18  ;;  %v1119_v30 = vunpack.c.l.b16 %v1085_v23 }
  0xbb   : > { %v1039_v21 = vadd.f32 %v1038_v63, %v995_v17  ;;  %v954_v25 = vadd.f32 %v953_v19, %v910_v20  ;;  %v8871_v17 = vld [vmem:[%s11462_s3 + $0xc8] sm:$0xff] }
  0xbc   : > { %1566 = vmatpush.bf16.msra.mxu1 %v8871_v17 }
  0xbd   : > { %v1072_v24 = vmax.f32 %v1039_v21, 0.0  ;;  %v1046_v45 = vpop.f32.mrf.mxu3 }
  0xbf   : > { %v1086_v26 = vpack.c.bf16 %v1072_v24, %v1072_v24 }
  0xc0   : > { %v997_v28 = vpop.f32.mrf.mxu2  ;;  %v911_v33 = vpop.f32.mrf.mxu0 }
  0xc1   : > { %v1120_v31 = vunpack.c.l.b16 %v1086_v26  ;;  %v998_v32 = vadd.f32 %v997_v28, %v954_v25  ;;  %v955_v34 = vpop.f32.mrf.mxu1  ;;  %v912_v37 = vadd.f32 %v8759_v56, %v911_v33  ;;  %v8879_v25 = vld [vmem:[%s11462_s3 + $0x98] sm:$0xff] }
  0xc3   : > { %v1122_v35 = vpack.c.b16 %v1120_v31, %v1119_v30  ;;  %v1042_v36 = vadd.f32 %v1041_v11, %v998_v32  ;;  %v956_v41 = vadd.f32 %v955_v34, %v912_v37  ;;  %v8888_v30 = vld [vmem:[%s11462_s3 + $0xc0] sm:$0xff]  ;;  %v8894_v34 = vld [vmem:[%s11462_s3 + $0x90] sm:$0xff] }
  0xc4   : > { %1567 = vmatpush.bf16.msra.mxu1 %v8888_v30 }
  0xc5   : > { %v1073_v39 = vmax.f32 %v1042_v36, 0.0  ;;  %5895 = vmatmul.msk.bf16.vlgmr.msrb.gmra.mxu0 %vm1164_vm1, %v1122_v35  ;;  %v1128_v42 = vshll.u32 %v1122_v35, 16  ;;  %v1245_v5 = vrot.slane %v1122_v35, 1  ;;  %v1126_v6 = vshrl.u32 %v1122_v35, 16  ;;  %v1048_v28 = vpop.f32.mrf.mxu3  ;;  %v8901_v36 = vld [vmem:[%s11462_s3 + $0xf8] sm:$0xff] }
  0xc6   : > { %1745 = vmatpush.bf16.msrb.mxu0 %v8712_v47  ;;  %1645 = vmatpush.bf16.msra.mxu2 %v8901_v36 }
  0xc7   : > { %v1087_v40 = vpack.c.bf16 %v1073_v39, %v1073_v39  ;;  %v1130_v1 = vrot.slane %v1128_v42, 1 }
  0xc8   : > { %v999_v44 = vpop.f32.mrf.mxu2  ;;  %v914_v58 = vpop.f32.mrf.mxu0 }
  0xc9   : > { %v8849_v46 = vunpack.c.l.b16 %v1087_v40  ;;  %v1000_v53 = vadd.f32 %v999_v44, %v956_v41  ;;  %v958_v59 = vpop.f32.mrf.mxu1  ;;  %v915_v61 = vadd.f32 %v8759_v56, %v914_v58  ;;  %v1131_v14 = vor.u32 %v1130_v1, %v1126_v6 }
  0xca   : > { %1746 = vmatpush.bf16.msrb.mxu0 %v8754_v55 }
  0xcb   : > { %v8856_v63 = vpack.c.b16 %v8849_v46, %v8849_v46  ;;  %v1044_v7 = vadd.f32 %v1043_v29, %v1000_v53  ;;  %v959_v8 = vadd.f32 %v958_v59, %v915_v61  ;;  %v8917_v61 = vld [vmem:[%s11462_s3 + $0xf0] sm:$0xff] }
  0xcc   : > { %1646 = vmatpush.bf16.msra.mxu2 %v8917_v61 }
  0xcd   : > { %v1246_v10 = vrot.slane %v8856_v63, 1  ;;  %v1133_v11 = vshll.u32 %v8856_v63, 16  ;;  %v1074_v19 = vmax.f32 %v1044_v7, 0.0  ;;  %v1051_v1 = vpop.f32.mrf.mxu3  ;;  %v8925_v7 = vld [vmem:[%s11462_s3 + $0x80] sm:$0xff] }
  0xce   : > { %1747 = vmatpush.bf16.msrb.mxu0 %v8771_v60 }
  0xcf   : > { %v1247_v12 = vsel %vm1244_vm2, %v1245_v5, %v1246_v10  ;;  %v1135_v16 = vrot.slane %v1133_v11, 1  ;;  %v1088_v31 = vpack.c.bf16 %v1074_v19, %v1074_v19 }
  0xd0   : > { %v1002_v18 = vpop.f32.mrf.mxu2  ;;  %5921 = vmatmul.msk.bf16.vlgmr.msrb.gmra.mxu1 %vm1164_vm1, %v1247_v12  ;;  %v916_v23 = vpop.f32.mrf.mxu0  ;;  %v8934_v12 = vld [vmem:[%s11462_s3 + $0xe8] sm:$0xff] }
  0xd1   : > { %v1003_v20 = vadd.f32 %v1002_v18, %v959_v8  ;;  %v1136_v21 = vsel %vm1124_vm3, %v1131_v14, %v1135_v16  ;;  %v960_v24 = vpop.f32.mrf.mxu1  ;;  %v917_v26 = vadd.f32 %v8759_v56, %v916_v23  ;;  %1763 = vmatpush.bf16.msrb.mxu1 %v8718_v48  ;;  %v1311_v39 = vunpack.c.l.b16 %v1088_v31  ;;  %1647 = vmatpush.bf16.msra.mxu2 %v8934_v12 }
  0xd2   : > { %5877 = vmatmul.msk.bf16.vlgmr.msrb.gmra.mxu3 %vm1164_vm1, %v1136_v21  ;;  %1748 = vmatpush.bf16.msrb.mxu0 %v8789_v2  ;;  %v1137_v8 = vshrl.u32 %v8856_v63, 16 }
  0xd3   : > { %v1047_v29 = vadd.f32 %v1046_v45, %v1003_v20  ;;  %1432 = vmatpush.bf16.msrb.mxu3 %v8879_v25  ;;  %v961_v33 = vadd.f32 %v960_v24, %v917_v26  ;;  %v8907_v45 = vld [vmem:[%s11462_s3 + $0x88] sm:$0xff]  ;;  %v8938_v19 = vpack.c.b16 %v1311_v39, %v8849_v46 }
  0xd4   : > { %v1139_v18 = vor.u32 %v1137_v8, %v1135_v16 }
  0xd5   : > { %v1075_v32 = vmax.f32 %v1047_v29, 0.0  ;;  %1764 = vmatpush.bf16.msrb.mxu1 %v8724_v49  ;;  %v1317_v31 = vrot.slane %v8938_v19, 3 }
  0xd7   : > { %v1089_v35 = vpack.c.bf16 %v1075_v32, %v1075_v32  ;;  %1433 = vmatpush.bf16.msrb.mxu3 %v8894_v34 }
  0xd8   : > { %v1004_v37 = vpop.f32.mrf.mxu2  ;;  %v919_v42 = vpop.f32.mrf.mxu0 }
  0xd9   : > { %v1312_v40 = vunpack.c.l.b16 %v1089_v35  ;;  %v1005_v41 = vadd.f32 %v1004_v37, %v961_v33  ;;  %v963_v44 = vpop.f32.mrf.mxu1  ;;  %v920_v53 = vadd.f32 %v8759_v56, %v919_v42  ;;  %1765 = vmatpush.bf16.msrb.mxu1 %v8730_v50  ;;  %v1053_v33 = vpop.f32.mrf.mxu3 }
  0xdb   : > { %v8911_v58 = vpack.c.b16 %v1312_v40, %v1311_v39  ;;  %v1049_v59 = vadd.f32 %v1048_v28, %v1005_v41  ;;  %1434 = vmatpush.bf16.msrb.mxu3 %v8907_v45  ;;  %v964_v6 = vadd.f32 %v963_v44, %v920_v53  ;;  %v8946_v28 = vld [vmem:[%s11462_s3 + $0xe0] sm:$0xff] }
  0xdc   : > { %1648 = vmatpush.bf16.msra.mxu2 %v8946_v28 }
  0xdd   : > { %v1076_v5 = vmax.f32 %v1049_v59, 0.0  ;;  %5999 = vmatmul.msk.bf16.vlgmr.msra.gmra.mxu0 %vm1164_vm1, %v8911_v58  ;;  %1766 = vmatpush.bf16.msrb.mxu1 %v8741_v52 }
  0xde   : > { %1823 = vmatpush.bf16.msra.mxu0 %v8879_v25 }
  0xdf   : > { %v1090_v11 = vpack.c.bf16 %v1076_v5, %v1076_v5  ;;  %1435 = vmatpush.bf16.msrb.mxu3 %v8925_v7 }
  0xe0   : > { %v1007_v14 = vpop.f32.mrf.mxu2  ;;  %5922 = vmatmul.msk.bf16.gmra.mxu1 %vm1164_vm1, %v1246_v10  ;;  %v921_v23 = vpop.f32.mrf.mxu0 }
  0xe1   : > { %v1313_v20 = vunpack.c.l.b16 %v1090_v11  ;;  %v1008_v21 = vadd.f32 %v1007_v14, %v964_v6  ;;  %v965_v24 = vpop.f32.mrf.mxu1  ;;  %v922_v26 = vadd.f32 %v8759_v56, %v921_v23 }
  0xe2   : > { %5878 = vmatmul.msk.bf16.gmra.mxu3 %vm1164_vm1, %v1139_v18  ;;  %1824 = vmatpush.bf16.msra.mxu0 %v8894_v34 }
  0xe3   : > { %v1315_v10 = vpack.c.b16 %v1313_v20, %v1312_v40  ;;  %v1052_v46 = vadd.f32 %v1051_v1, %v1008_v21  ;;  %v966_v29 = vadd.f32 %v965_v24, %v922_v26  ;;  %v8961_v42 = vpack.c.b16 %v1313_v20, %v1313_v20  ;;  %v1056_v21 = vpop.f32.mrf.mxu3 }
  0xe5   : > { %v1077_v16 = vmax.f32 %v1052_v46, 0.0  ;;  %v8951_v32 = vrot.slane %v1315_v10, 3  ;;  %v1390_v11 = vshrl.u32 %v1315_v10, 16  ;;  %v1393_v14 = vshll.u32 %v1315_v10, 16  ;;  %v8974_v46 = vld [vmem:[%s11462_s3 + $0x118] sm:$0xff] }
  0xe6   : > { %1825 = vmatpush.bf16.msra.mxu0 %v8907_v45 }
  0xe7   : > { %v8957_v35 = vsel %vm1316_vm4, %v1317_v31, %v8951_v32  ;;  %v1091_v39 = vpack.c.bf16 %v1077_v16, %v1077_v16  ;;  %v1382_v16 = vshrl.u32 %v8938_v19, 16 }
  0xe8   : > { %v1009_v37 = vpop.f32.mrf.mxu2  ;;  %5947 = vmatmul.msk.bf16.vlgmr.msrb.gmra.mxu2 %vm1164_vm1, %v8957_v35  ;;  %v924_v41 = vpop.f32.mrf.mxu0 }
  0xe9   : > { %v1010_v40 = vadd.f32 %v1009_v37, %v966_v29  ;;  %1781 = vmatpush.bf16.msrb.mxu2 %v8736_v51  ;;  %v925_v44 = vadd.f32 %v8759_v56, %v924_v41  ;;  %v968_v53 = vpop.f32.mrf.mxu1  ;;  %v1522_v1 = vunpack.c.l.b16 %v1091_v39  ;;  %v1385_v29 = vshll.u32 %v8938_v19, 16 }
  0xea   : > { %1826 = vmatpush.bf16.msra.mxu0 %v8925_v7  ;;  %v1395_v37 = vrot.slane %v1393_v14, 4 }
  0xeb   : > { %v1054_v59 = vadd.f32 %v1053_v33, %v1010_v40  ;;  %v969_v6 = vadd.f32 %v968_v53, %v925_v44  ;;  %v8969_v23 = vpack.c.b16 %v1522_v1, %v1313_v20  ;;  %v8985_v20 = vld [vmem:[%s11462_s3 + $0x110] sm:$0xff]  ;;  %v1392_v33 = vrot.slane %v1390_v11, 3  ;;  %v9005_v1 = vld [vmem:[%s11462_s3 + $0x108] sm:$0xff] }
  0xec   : > { %v1387_v41 = vrot.slane %v1385_v29, 4 }
  0xed   : > { %v1078_v5 = vmax.f32 %v1054_v59, 0.0  ;;  %6000 = vmatmul.msk.bf16.gmra.mxu0 %vm1164_vm1, %v8961_v42  ;;  %1782 = vmatpush.bf16.msrb.mxu2 %v8748_v54  ;;  %v1527_v19 = vrot.slane %v8969_v23, 2  ;;  %v1396_v59 = vor.u32 %v1395_v37, %v1392_v33  ;;  %v1595_v14 = vshrl.u32 %v8969_v23, 16 }
  0xef   : > { %v1092_v8 = vpack.c.bf16 %v1078_v5, %v1078_v5 }
  0xf0   : > { %v1012_v18 = vpop.f32.mrf.mxu2 }
  0xf1   : > { %v1523_v24 = vunpack.c.l.b16 %v1092_v8  ;;  %v1013_v26 = vadd.f32 %v1012_v18, %v969_v6  ;;  %1783 = vmatpush.bf16.msrb.mxu2 %v8765_v57  ;;  %v1598_v18 = vshll.u32 %v8969_v23, 16 }
  0xf2   : > { %5896 = vmatmul.msk.bf16.vlgmr.msra.gmra.mxu3 %vm1164_vm1, %v8856_v63  ;;  %v1384_v63 = vrot.slane %v1382_v16, 3  ;;  %v9018_v16 = vld [vmem:[%s11462_s3 + $0x100] sm:$0xff] }
  0xf3   : > { %v1525_v10 = vpack.c.b16 %v1523_v24, %v1523_v24  ;;  %v1057_v31 = vadd.f32 %v1056_v21, %v1013_v26  ;;  %1708 = vmatpush.bf16.msra.mxu3 %v8974_v46 }
  0xf4   : > { %v1388_v6 = vor.u32 %v1387_v41, %v1384_v63  ;;  %v970_v63 = vpop.f32.mrf.mxu1 }
  0xf5   : > { %v8987_v39 = vrot.slane %v1525_v10, 2  ;;  %v1079_v40 = vmax.f32 %v1057_v31, 0.0  ;;  %1784 = vmatpush.bf16.msrb.mxu2 %v8778_v62  ;;  %v1597_v10 = vrot.slane %v1595_v14, 2  ;;  %v1600_v31 = vrot.slane %v1598_v18, 3 }
  0xf6   : > { %v1397_v11 = vsel %vm1380_vm6, %v1388_v6, %v1396_v59 }
  0xf7   : > { %v8991_v44 = vpack.c.bf16 %v1079_v40, %v1079_v40  ;;  %v8995_v53 = vsel %vm1526_vm5, %v1527_v19, %v8987_v39  ;;  %1709 = vmatpush.bf16.msra.mxu3 %v8985_v20  ;;  %v1601_v37 = vor.u32 %v1600_v31, %v1597_v10  ;;  %v926_v19 = vpop.f32.mrf.mxu0  ;;  %v1671_v10 = vrot.slane %v8969_v23, 3 }
  0xf8   : > { %5948 = vmatmul.msk.bf16.gmra.mxu2 %vm1164_vm1, %v8951_v32  ;;  %6025 = vmatmul.msk.bf16.vlgmr.msra.gmra.mxu1 %vm1164_vm1, %v8995_v53  ;;  %v1014_v41 = vpop.f32.mrf.mxu2  ;;  %v927_v14 = vadd.f32 %v8759_v56, %v926_v19 }
  0xf9   : > { %v1591_v5 = vunpack.c.l.b16 %v8991_v44  ;;  %1844 = vmatpush.bf16.msra.mxu1 %v8783_v0 }
  0xfb   : > { %v1592_v8 = vpack.c.b16 %v1591_v5, %v1523_v24  ;;  %1710 = vmatpush.bf16.msra.mxu3 %v9005_v1 }
  0xfd   : > { %v1603_v21 = vshrl.u32 %v1592_v8, 16  ;;  %v1606_v26 = vshll.u32 %v1592_v8, 16  ;;  %6079 = vmatmul.msk.bf16.vlgmr.msrb.gmra.mxu0 %vm1164_vm1, %v1397_v11  ;;  %1845 = vmatpush.bf16.msra.mxu1 %v8796_v4 }
  0xfe   : > { %1955 = vmatpush.bf16.msrb.mxu0 %v8974_v46 }
  0xff   : > { %v1605_v24 = vrot.slane %v1603_v21, 2  ;;  %v1608_v29 = vrot.slane %v1606_v26, 3  ;;  %1711 = vmatpush.bf16.msra.mxu3 %v9018_v16  ;;  %v929_v6 = vpop.f32.mrf.mxu0  ;;  %v973_v21 = vpop.f32.mrf.mxu1  ;;  %v971_v26 = vadd.f32 %v970_v63, %v927_v14 }
 0x100   : > { %v930_v18 = vadd.f32 %v8759_v56, %v929_v6 }
 0x101   : > { %1846 = vmatpush.bf16.msra.mxu1 %v8804_v9  ;;  %v9026_v33 = vor.u32 %v1608_v29, %v1605_v24  ;;  %v9055_v24 = vrot.slane %v1592_v8, 3  ;;  %v1017_v29 = vpop.f32.mrf.mxu2  ;;  %v1015_v31 = vadd.f32 %v1014_v41, %v971_v26 }
 0x102   : > { %5973 = vmatmul.msk.bf16.vlgmr.msrb.gmra.mxu3 %vm1164_vm1, %v1397_v11  ;;  %1956 = vmatpush.bf16.msrb.mxu0 %v8985_v20  ;;  %v1058_v11 = vpop.f32.mrf.mxu3 }
 0x103   : > { %1802 = vmatpush.bf16.msrb.mxu3 %v8811_v13  ;;  %v9032_v40 = vsel %vm1593_vm7, %v1601_v37, %v9026_v33 }
 0x105   : > { %1847 = vmatpush.bf16.msra.mxu1 %v8816_v15 }
 0x106   : > { %1957 = vmatpush.bf16.msrb.mxu0 %v9005_v1 }
 0x107   : > { %1803 = vmatpush.bf16.msrb.mxu3 %v8825_v22  ;;  %v975_v19 = vpop.f32.mrf.mxu1 }
 0x108   : > { %6026 = vmatmul.msk.bf16.gmra.mxu1 %vm1164_vm1, %v8987_v39  ;;  %6051 = vmatmul.msk.bf16.vlgmr.msra.gmra.mxu2 %vm1164_vm1, %v9032_v40 }
 0x109   : > { %1880 = vmatpush.bf16.msra.mxu2 %v8847_v43  ;;  %v1019_v6 = vpop.f32.mrf.mxu2 }
 0x10a   : > { %1958 = vmatpush.bf16.msrb.mxu0 %v9018_v16 }
 0x10b   : > { %1804 = vmatpush.bf16.msrb.mxu3 %v8832_v27 }
 0x10d   : > { %6080 = vmatmul.msk.bf16.gmra.mxu0 %vm1164_vm1, %v1396_v59  ;;  %1881 = vmatpush.bf16.msra.mxu2 %v8861_v3 }
 0x10f   : > { %1805 = vmatpush.bf16.msrb.mxu3 %v8839_v38  ;;  %v978_v44 = vpop.f32.mrf.mxu1 }
 0x111   : > { %1882 = vmatpush.bf16.msra.mxu2 %v8871_v17 }
 0x112   : > { %5974 = vmatmul.msk.bf16.gmra.mxu3 %vm1164_vm1, %v1396_v59  ;;  %v974_v59 = vadd.f32 %v973_v21, %v930_v18 }
 0x114   : > { %v1018_v37 = vadd.f32 %v1017_v29, %v974_v59 }
 0x115   : > { %1883 = vmatpush.bf16.msra.mxu2 %v8888_v30 }
 0x118   : > { %6052 = vmatmul.msk.bf16.gmra.mxu2 %vm1164_vm1, %v9026_v33  ;;  %6081 = vmatmul.msk.bf16.vlgmr.msrb.gmra.mxu1 %vm1164_vm1, %v8957_v35  ;;  %v1061_v35 = vpop.f32.mrf.mxu3 }
 0x119   : > { %1988 = vmatpush.bf16.msrb.mxu1 %v8712_v47  ;;  %v9064_v47 = vsel %vm1316_vm4, %v1671_v10, %v9055_v24 }
 0x11d   : > { %6087 = vmatmul.msk.bf16.vlgmr.msra.gmra.mxu0 %vm1164_vm1, %v9032_v40  ;;  %1989 = vmatpush.bf16.msrb.mxu1 %v8754_v55  ;;  %v1059_v55 = vadd.f32 %v1058_v11, %v1015_v31 }
 0x11e   : > { %2045 = vmatpush.bf16.msra.mxu0 %v8811_v13  ;;  %v1062_v13 = vadd.f32 %v1061_v35, %v1018_v37 }
 0x11f   : > { %v1080_v23 = vmax.f32 %v1059_v55, 0.0 }
 0x120   : > { %v1081_v8 = vmax.f32 %v1062_v13, 0.0  ;;  %v1063_v63 = vpop.f32.mrf.mxu3 }
 0x121   : > { %1990 = vmatpush.bf16.msrb.mxu1 %v8771_v60  ;;  %v1094_v60 = vpack.c.bf16 %v1080_v23, %v1080_v23 }
 0x122   : > { %6077 = vmatmul.msk.bf16.vlgmr.msra.gmra.mxu3 %vm1164_vm1, %v9064_v47  ;;  %2046 = vmatpush.bf16.msra.mxu0 %v8825_v22  ;;  %v931_v22 = vpop.f32.mrf.mxu0 }
 0x123   : > { %1925 = vmatpush.bf16.msra.mxu3 %v8901_v36 }
 0x125   : > { %1991 = vmatpush.bf16.msrb.mxu1 %v8789_v2  ;;  %v1095_v2 = vpack.c.bf16 %v1081_v8, %v1081_v8 }
 0x126   : > { %2047 = vmatpush.bf16.msra.mxu0 %v8832_v27  ;;  %v1863_v27 = vunpack.c.l.b16 %v1094_v60 }
 0x127   : > { %1926 = vmatpush.bf16.msra.mxu3 %v8917_v61 }
 0x128   : > { %6082 = vmatmul.msk.bf16.gmra.mxu1 %vm1164_vm1, %v8951_v32  ;;  %6083 = vmatmul.msk.bf16.vlgmr.msrb.gmra.mxu2 %vm1164_vm1, %v8911_v58  ;;  %v1864_v32 = vunpack.c.l.b16 %v1095_v2 }
 0x129   : > { %2006 = vmatpush.bf16.msrb.mxu2 %v8718_v48  ;;  %v9090_v48 = vpack.c.b16 %v1863_v27, %v1591_v5 }
 0x12a   : > { %2048 = vmatpush.bf16.msra.mxu0 %v8839_v38  ;;  %v9092_v38 = vpack.c.b16 %v1864_v32, %v1864_v32  ;;  %v934_v58 = vpop.f32.mrf.mxu0 }
 0x12b   : > { %1927 = vmatpush.bf16.msra.mxu3 %v8934_v12  ;;  %v1867_v41 = vrot.slane %v9090_v48, 1  ;;  %v1899_v14 = vshrl.u32 %v9090_v48, 16 }
 0x12c   : > { %v1907_v18 = vshrl.u32 %v9092_v38, 16 }
 0x12d   : > { %6088 = vmatmul.msk.bf16.gmra.mxu0 %vm1164_vm1, %v9026_v33  ;;  %2007 = vmatpush.bf16.msrb.mxu2 %v8724_v49  ;;  %v9096_v49 = vrot.slane %v9092_v38, 2  ;;  %v1901_v31 = vrot.slane %v1899_v14, 1 }
 0x12e   : > { %v1909_v35 = vrot.slane %v1907_v18, 1 }
 0x12f   : > { %1928 = vmatpush.bf16.msra.mxu3 %v8946_v28 }
 0x131   : > { %2008 = vmatpush.bf16.msrb.mxu2 %v8730_v50  ;;  %v1942_v50 = vrot.slane %v9090_v48, 2 }
 0x132   : > { %6078 = vmatmul.msk.bf16.gmra.mxu3 %vm1164_vm1, %v9055_v24 }
 0x133   : > { %v9106_v5 = vsel %vm1526_vm5, %v1942_v50, %v9096_v49 }
 0x135   : > { %2009 = vmatpush.bf16.msrb.mxu2 %v8741_v52  ;;  %v936_v52 = vpop.f32.mrf.mxu0 }
 0x136   : > { %v937_v11 = vadd.f32 %v8759_v56, %v936_v52 }
 0x138   : > { %6084 = vmatmul.msk.bf16.gmra.mxu2 %vm1164_vm1, %v8961_v42  ;;  %6089 = vmatmul.msk.bf16.vlgmr.msra.gmra.mxu1 %vm1164_vm1, %v9064_v47  ;;  %v1066_v42 = vpop.f32.mrf.mxu3 }
 0x139   : > { %2066 = vmatpush.bf16.msra.mxu1 %v8879_v25  ;;  %v9117_v25 = vrot.slane %v9092_v38, 1 }
 0x13d   : > { %6095 = vmatmul.msk.bf16.vlgmr.msrb.gmra.mxu0 %vm1164_vm1, %v9106_v5  ;;  %2067 = vmatpush.bf16.msra.mxu1 %v8894_v34  ;;  %v980_v34 = vpop.f32.mrf.mxu1 }
 0x13e   : > { %2162 = vmatpush.bf16.msrb.mxu0 %v8901_v36  ;;  %v1869_v36 = vsel %vm1244_vm2, %v1867_v41, %v9117_v25  ;;  %v981_v10 = vadd.f32 %v980_v34, %v937_v11 }
 0x141   : > { %2068 = vmatpush.bf16.msra.mxu1 %v8907_v45 }
 0x142   : > { %6085 = vmatmul.msk.bf16.vlgmr.msrb.gmra.mxu3 %vm1164_vm1, %v8995_v53  ;;  %2163 = vmatpush.bf16.msrb.mxu0 %v8917_v61  ;;  %v1226_v45 = vpop.f32.mrf.mxu0 }
 0x143   : > { %2024 = vmatpush.bf16.msrb.mxu3 %v8736_v51  ;;  %v1068_v51 = vpop.f32.mrf.mxu3 }
 0x145   : > { %2069 = vmatpush.bf16.msra.mxu1 %v8925_v7  ;;  %v1022_v7 = vpop.f32.mrf.mxu2 }
 0x146   : > { %2164 = vmatpush.bf16.msrb.mxu0 %v8934_v12  ;;  %v935_v12 = vadd.f32 %v8759_v56, %v934_v58 }
 0x147   : > { %2025 = vmatpush.bf16.msrb.mxu3 %v8748_v54  ;;  %v932_v54 = vadd.f32 %v8759_v56, %v931_v22 }
 0x148   : > { %6090 = vmatmul.msk.bf16.gmra.mxu1 %vm1164_vm1, %v9055_v24  ;;  %6091 = vmatmul.msk.bf16.vlgmr.msra.gmra.mxu2 %vm1164_vm1, %v1869_v36 }
 0x149   : > { %2087 = vmatpush.bf16.msra.mxu2 %v8783_v0 }
 0x14a   : > { %2165 = vmatpush.bf16.msrb.mxu0 %v8946_v28  ;;  %v1228_v0 = vpop.f32.mrf.mxu0  ;;  %v979_v28 = vadd.f32 %v978_v44, %v935_v12 }
 0x14b   : > { %2026 = vmatpush.bf16.msrb.mxu3 %v8765_v57  ;;  %v976_v57 = vadd.f32 %v975_v19, %v932_v54 }
 0x14c   : > { %v1023_v29 = vadd.f32 %v1022_v7, %v979_v28 }
 0x14d   : > { %v1287_v61 = vpop.f32.mrf.mxu1  ;;  %6096 = vmatmul.msk.bf16.gmra.mxu0 %vm1164_vm1, %v9096_v49  ;;  %2088 = vmatpush.bf16.msra.mxu2 %v8796_v4  ;;  %v1902_v4 = vshll.u32 %v9090_v48, 16  ;;  %v1020_v59 = vadd.f32 %v1019_v6, %v976_v57  ;;  %v1024_v13 = vpop.f32.mrf.mxu2 }
 0x14e   : > { %v1067_v8 = vadd.f32 %v1066_v42, %v1023_v29  ;;  %v1025_v60 = vadd.f32 %v1024_v13, %v981_v10  ;;  %v8079_v13 = vld [vmem:[%s11464_s5 + $0x20] sm:$0xff] }
 0x14f   : > { %2027 = vmatpush.bf16.msrb.mxu3 %v8778_v62  ;;  %v1910_v62 = vshll.u32 %v9092_v38, 16  ;;  %v1904_v37 = vrot.slane %v1902_v4, 2  ;;  %v1064_v23 = vadd.f32 %v1063_v63, %v1020_v59 }
 0x150   : > { %v1083_v48 = vmax.f32 %v1067_v8, 0.0  ;;  %v1069_v38 = vadd.f32 %v1068_v51, %v1025_v60  ;;  %v8091_v60 = vld [vmem:[%s11464_s5 + $0x80] sm:$0xff] }
 0x151   : > { %2089 = vmatpush.bf16.msra.mxu2 %v8804_v9  ;;  %v1912_v55 = vrot.slane %v1910_v62, 2  ;;  %v1905_v27 = vor.u32 %v1904_v37, %v1901_v31  ;;  %v1082_v19 = vmax.f32 %v1064_v23, 0.0  ;;  %v8078_v23 = vld [vmem:[%s11464_s5 + $0x18] sm:$0xff] }
 0x152   : > { %6086 = vmatmul.msk.bf16.gmra.mxu3 %vm1164_vm1, %v8987_v39  ;;  %v1097_v44 = vpack.c.bf16 %v1083_v48, %v1083_v48 }
 0x153   : > { %v1096_v63 = vpack.c.bf16 %v1082_v19, %v1082_v19 }
 0x154   : > { %v2108_v6 = vunpack.c.l.b16 %v1097_v44 }
 0x155   : > { %v1180_v21 = vpop.f32.mrf.mxu3  ;;  %v1289_v26 = vpop.f32.mrf.mxu1  ;;  %2090 = vmatpush.bf16.msra.mxu2 %v8816_v15  ;;  %v2107_v41 = vunpack.c.l.b16 %v1096_v63  ;;  %v8090_v63 = vld [vmem:[%s11464_s5 + $0x78] sm:$0xff] }
 0x156   : > { %v1227_v9 = vadd.f32 %v1226_v45, %v1180_v21 }
 0x158   : > { %6092 = vmatmul.msk.bf16.gmra.mxu2 %vm1164_vm1, %v9117_v25  ;;  %6097 = vmatmul.msk.bf16.vlgmr.msrb.gmra.mxu1 %vm1164_vm1, %v9032_v40  ;;  %v9151_v56 = vadd.f32 %v1287_v61, %v1227_v9  ;;  %v9157_v40 = vor.u32 %v1912_v55, %v1909_v35 }
 0x159   : > { %2192 = vmatpush.bf16.msrb.mxu1 %v8974_v46 }
 0x15a   : > { %v9154_v15 = vpop.f32.mrf.mxu0  ;;  %v1914_v58 = vsel %vm1897_vm8, %v1905_v27, %v9157_v40 }
 0x15d   : > { %v1182_v2 = vpop.f32.mrf.mxu3  ;;  %v1292_v22 = vpop.f32.mrf.mxu1  ;;  %6103 = vmatmul.msk.bf16.vlgmr.msra.gmra.mxu0 %vm1164_vm1, %v1869_v36  ;;  %2193 = vmatpush.bf16.msrb.mxu1 %v8985_v20  ;;  %v1084_v20 = vmax.f32 %v1069_v38, 0.0  ;;  %v9177_v36 = vpack.c.b16 %v2108_v6, %v2107_v41  ;;  %v8089_v6 = vld [vmem:[%s11464_s5 + $0x70] sm:$0xff] }
 0x15e   : > { %v1229_v32 = vadd.f32 %v1228_v0, %v1182_v2 }
 0x15f   : > { %v1098_v34 = vpack.c.bf16 %v1084_v20, %v1084_v20  ;;  %v2179_v2 = vrot.slane %v9177_v36, 1 }
 0x160   : > { %v9160_v46 = vadd.f32 %v1289_v26, %v1229_v32  ;;  %v8085_v32 = vld [vmem:[%s11464_s5 + $0x50] sm:$0xff] }
 0x161   : > { %2194 = vmatpush.bf16.msrb.mxu1 %v9005_v1  ;;  %v2109_v45 = vunpack.c.l.b16 %v1098_v34 }
 0x162   : > { %v9164_v50 = vpop.f32.mrf.mxu0  ;;  %6093 = vmatmul.msk.bf16.vlgmr.msra.gmra.mxu3 %vm1164_vm1, %v1914_v58 }
 0x163   : > { %2122 = vmatpush.bf16.msra.mxu3 %v8847_v43 }
 0x165   : > { %v1185_v52 = vpop.f32.mrf.mxu3  ;;  %v1294_v42 = vpop.f32.mrf.mxu1  ;;  %2195 = vmatpush.bf16.msrb.mxu1 %v9018_v16 }
 0x166   : > { %v8076_v42 = vld [vmem:[%s11464_s5 + $0x8] sm:$0xff] }
 0x167   : > { %2123 = vmatpush.bf16.msra.mxu3 %v8861_v3  ;;  %v2141_v3 = vshll.u32 %v9177_v36, 16 }
 0x168   : > { %6098 = vmatmul.msk.bf16.gmra.mxu1 %vm1164_vm1, %v9026_v33  ;;  %6099 = vmatmul.msk.bf16.vlgmr.msrb.gmra.mxu2 %vm1164_vm1, %v8995_v53  ;;  %v9183_v33 = vpack.c.b16 %v2109_v45, %v2109_v45  ;;  %v8075_v45 = vld [vmem:[%s11464_s5] sm:$0xff] }
 0x169   : > { %v2143_v61 = vrot.slane %v2141_v3, 1  ;;  %v8088_v3 = vld [vmem:[%s11464_s5 + $0x68] sm:$0xff] }
 0x16a   : > { %v9174_v1 = vpop.f32.mrf.mxu0  ;;  %v2145_v54 = vshll.u32 %v9183_v33, 16  ;;  %v2149_v29 = vshrl.u32 %v9183_v33, 16 }
 0x16b   : > { %v1359_v43 = vpop.f32.mrf.mxu2  ;;  %2124 = vmatpush.bf16.msra.mxu3 %v8871_v17  ;;  %v2139_v17 = vshrl.u32 %v9177_v36, 16 }
 0x16d   : > { %v1187_v16 = vpop.f32.mrf.mxu3  ;;  %6104 = vmatmul.msk.bf16.gmra.mxu0 %vm1164_vm1, %v9117_v25  ;;  %v2144_v57 = vor.u32 %v2143_v61, %v2139_v17  ;;  %v8082_v61 = vld [vmem:[%s11464_s5 + $0x38] sm:$0xff] }
 0x16f   : > { %2125 = vmatpush.bf16.msra.mxu3 %v8888_v30  ;;  %v2147_v30 = vrot.slane %v2145_v54, 1 }
 0x171   : > { %v2148_v14 = vsel %vm1124_vm3, %v2144_v57, %v2147_v30  ;;  %v2151_v37 = vor.u32 %v2149_v29, %v2147_v30  ;;  %v8081_v30 = vld [vmem:[%s11464_s5 + $0x30] sm:$0xff] }
 0x172   : > { %v1506_v51 = vpop.f32.mrf.mxu0  ;;  %6094 = vmatmul.msk.bf16.gmra.mxu3 %vm1164_vm1, %v9157_v40 }
 0x173   : > { %v9187_v53 = vpop.f32.mrf.mxu2 }
 0x174   : > { %v1369_v16 = vadd.f32 %v9187_v53, %v9160_v46  ;;  %v8087_v46 = vld [vmem:[%s11464_s5 + $0x60] sm:$0xff] }
 0x175   : > { %v1231_v7 = vpop.f32.mrf.mxu3  ;;  %v9191_v12 = vpop.f32.mrf.mxu1 }
 0x176   : > { %v1232_v25 = vadd.f32 %v1231_v7, %v1185_v52  ;;  %v8084_v52 = vld [vmem:[%s11464_s5 + $0x48] sm:$0xff] }
 0x178   : > { %6100 = vmatmul.msk.bf16.gmra.mxu2 %vm1164_vm1, %v8987_v39  ;;  %6105 = vmatmul.msk.bf16.vlgmr.msra.gmra.mxu1 %vm1164_vm1, %v1914_v58  ;;  %v1298_v0 = vadd.f32 %v1292_v22, %v1232_v25  ;;  %v1368_v39 = vadd.f32 %v1359_v43, %v9151_v56  ;;  %v2180_v22 = vrot.slane %v9183_v33, 1  ;;  %v9293_v25 = vld [vmem:[%s11463_s4] ss:$0 sm:$0xff] }
 0x17a   : > { %v1750_v28 = vpop.f32.mrf.mxu0  ;;  %v2181_v44 = vsel %vm1244_vm2, %v2179_v2, %v2180_v22 }
 0x17b   : > { %v1364_v11 = vpop.f32.mrf.mxu2 }
 0x17d   : > { %v1233_v4 = vpop.f32.mrf.mxu3  ;;  %v9197_v18 = vpop.f32.mrf.mxu1  ;;  %6111 = vmatmul.msk.bf16.vlgmr.msrb.gmra.mxu0 %vm1164_vm1, %v2148_v14 }
 0x182   : > { %v9200_v62 = vpop.f32.mrf.mxu0  ;;  %6101 = vmatmul.msk.bf16.vlgmr.msrb.gmra.mxu3 %vm1164_vm1, %v9064_v47  ;;  %v8080_v47 = vld [vmem:[%s11464_s5 + $0x28] sm:$0xff] }
 0x183   : > { %v1366_v21 = vpop.f32.mrf.mxu2  ;;  %2372 = vmatpush.bf16.msrb.mxu3 %v8080_v47 }
 0x185   : > { %v1437_v26 = vpop.f32.mrf.mxu3  ;;  %v9205_v9 = vpop.f32.mrf.mxu1 }
 0x186   : > { %v1446_v59 = vadd.f32 %v1437_v26, %v1368_v39 }
 0x187   : > { %2373 = vmatpush.bf16.msrb.mxu3 %v8079_v13 }
 0x188   : > { %v1508_v10 = vadd.f32 %v9154_v15, %v1446_v59  ;;  %6106 = vmatmul.msk.bf16.gmra.mxu1 %vm1164_vm1, %v9157_v40  ;;  %6107 = vmatmul.msk.bf16.vlgmr.msra.gmra.mxu2 %vm1164_vm1, %v9106_v5  ;;  %v8092_v5 = vld [vmem:[%s11464_s5 + $0x88] sm:$0xff]  ;;  %v8086_v15 = vld [vmem:[%s11464_s5 + $0x58] sm:$0xff]  ;;  %v1370_v40 = vadd.f32 %v1364_v11, %v1298_v0 }
 0x189   : > { %2448 = vmatpush.bf16.msra.mxu0 %v8092_v5  ;;  %2314 = vmatpush.bf16.msrb.mxu2 %v8086_v15 }
 0x18a   : > { %v9216_v31 = vpop.f32.mrf.mxu0  ;;  %v1578_v51 = vadd.f32 %v9191_v12, %v1508_v10 }
 0x18b   : > { %v1650_v56 = vpop.f32.mrf.mxu2  ;;  %2374 = vmatpush.bf16.msrb.mxu3 %v8078_v23 }
 0x18c   : > { %v1659_v7 = vadd.f32 %v1650_v56, %v1578_v51 }
 0x18d   : > { %v1439_v35 = vpop.f32.mrf.mxu3  ;;  %v1576_v55 = vpop.f32.mrf.mxu1  ;;  %6112 = vmatmul.msk.bf16.gmra.mxu0 %vm1164_vm1, %v2151_v37  ;;  %2315 = vmatpush.bf16.msrb.mxu2 %v8085_v32 }
 0x18e   : > { %2449 = vmatpush.bf16.msra.mxu0 %v8091_v60  ;;  %v1447_v17 = vadd.f32 %v1439_v35, %v1369_v16 }
 0x190   : > { %v1509_v12 = vadd.f32 %v9164_v50, %v1447_v17 }
 0x191   : > { %2316 = vmatpush.bf16.msrb.mxu2 %v8084_v52 }
 0x192   : > { %v1757_v8 = vpop.f32.mrf.mxu0  ;;  %6102 = vmatmul.msk.bf16.gmra.mxu3 %vm1164_vm1, %v9055_v24  ;;  %v8077_v24 = vld [vmem:[%s11464_s5 + $0x10] sm:$0xff]  ;;  %2450 = vmatpush.bf16.msra.mxu0 %v8090_v63  ;;  %v1579_v11 = vadd.f32 %v9197_v18, %v1509_v12 }
 0x193   : > { %v1652_v27 = vpop.f32.mrf.mxu2  ;;  %2375 = vmatpush.bf16.msrb.mxu3 %v8077_v24 }
 0x194   : > { %v1660_v21 = vadd.f32 %v1652_v27, %v1579_v11  ;;  %v8096_v11 = vld [vmem:[%s11464_s5 + $0xa8] sm:$0xff] }
 0x195   : > { %v1442_v19 = vpop.f32.mrf.mxu3  ;;  %v1768_v48 = vpop.f32.mrf.mxu1 }
 0x196   : > { %v1448_v38 = vadd.f32 %v1442_v19, %v1370_v40  ;;  %v9244_v58 = vadd.f32 %v1768_v48, %v1750_v28  ;;  %2451 = vmatpush.bf16.msra.mxu0 %v8089_v6 }
 0x197   : > { %2376 = vmatpush.bf16.msrb.mxu3 %v8076_v42 }
 0x198   : > { %v1510_v20 = vadd.f32 %v9174_v1, %v1448_v38  ;;  %6108 = vmatmul.msk.bf16.gmra.mxu2 %vm1164_vm1, %v9096_v49  ;;  %6113 = vmatmul.msk.bf16.vlgmr.msrb.gmra.mxu1 %vm1164_vm1, %v2181_v44  ;;  %v8083_v49 = vld [vmem:[%s11464_s5 + $0x40] sm:$0xff] }
 0x199   : > { %2317 = vmatpush.bf16.msrb.mxu2 %v8083_v49 }
 0x19a   : > { %v9260_v41 = vpop.f32.mrf.mxu0  ;;  %2452 = vmatpush.bf16.msra.mxu0 %v8088_v3  ;;  %v1580_v10 = vadd.f32 %v9205_v9, %v1510_v20 }
 0x19b   : > { %v1655_v34 = vpop.f32.mrf.mxu2  ;;  %2377 = vmatpush.bf16.msrb.mxu3 %v8075_v45 }
 0x19c   : > { %v1661_v35 = vadd.f32 %v1655_v34, %v1580_v10 }
 0x19d   : > { %v1444_v1 = vpop.f32.mrf.mxu3  ;;  %v9268_v43 = vpop.f32.mrf.mxu1  ;;  %2318 = vmatpush.bf16.msrb.mxu2 %v8082_v61 }
 0x19e   : > { %2453 = vmatpush.bf16.msra.mxu0 %v8087_v46 }
 0x1a1   : > { %2319 = vmatpush.bf16.msrb.mxu2 %v8081_v30  ;;  %v8097_v30 = vld [vmem:[%s11464_s5 + $0xb0] sm:$0xff] }
 0x1a2   : > { %v9282_v54 = vpop.f32.mrf.mxu0  ;;  %6109 = vmatmul.msk.bf16.vlgmr.msra.gmra.mxu3 %vm1164_vm1, %v9177_v36 }
 0x1a3   : > { %v1657_v53 = vpop.f32.mrf.mxu2 }
 0x1a4   : > { %v8098_v53 = vld [vmem:[%s11464_s5 + $0xb8] sm:$0xff] }
 0x1a5   : > { %v1713_v0 = vpop.f32.mrf.mxu3  ;;  %v1773_v36 = vpop.f32.mrf.mxu1  ;;  %2532 = vmatpush.bf16.msra.mxu1 %v8098_v53 }
 0x1a6   : > { %v1722_v57 = vadd.f32 %v1713_v0, %v1659_v7  ;;  %v9299_v28 = vadd.f32 %v1773_v36, %v9216_v31 }
 0x1a8   : > { %v1729_v50 = vadd.f32 %v9293_v25, %v1722_v57  ;;  %6114 = vmatmul.msk.bf16.gmra.mxu1 %vm1164_vm1, %v2180_v22 }
 0x1a9   : > { %2533 = vmatpush.bf16.msra.mxu1 %v8097_v30 }
 0x1aa   : > { %v9304_v14 = vpop.f32.mrf.mxu0  ;;  %v1732_v39 = vmul.f32 0.01, %v1729_v50 }
 0x1ab   : > { %v1786_v4 = vpop.f32.mrf.mxu2 }
 0x1ac   : > { %v1735_v47 = vmax.f32 %v1729_v50, %v1732_v39  ;;  %v1795_v42 = vadd.f32 %v1786_v4, %v9244_v58  ;;  %v8095_v4 = vld [vmem:[%s11464_s5 + $0xa0] sm:$0xff]  ;;  %v8104_v39 = vld [vmem:[%s11464_s5 + $0xe8] sm:$0xff] }
 0x1ad   : > { %v1715_v26 = vpop.f32.mrf.mxu3  ;;  %v1775_v59 = vpop.f32.mrf.mxu1  ;;  %2534 = vmatpush.bf16.msra.mxu1 %v8096_v11  ;;  %2621 = vmatpush.bf16.msra.mxu2 %v8104_v39 }
 0x1ae   : > { %v1723_v29 = vadd.f32 %v1715_v26, %v1660_v21  ;;  %v1738_v55 = vpack.c.bf16 %v1735_v47, %v1735_v47  ;;  %v8109_v47 = vld [vmem:[%s11464_s5 + $0x110] sm:$0xff] }
 0x1b0   : > { %v1730_v31 = vadd.f32 %v9293_v25, %v1723_v29  ;;  %v2249_v60 = vunpack.c.l.b16 %v1738_v55  ;;  %v8108_v55 = vld [vmem:[%s11464_s5 + $0x108] sm:$0xff] }
 0x1b1   : > { %2535 = vmatpush.bf16.msra.mxu1 %v8095_v4 }
 0x1b2   : > { %v1733_v56 = vmul.f32 0.01, %v1730_v31  ;;  %v1835_v37 = vpop.f32.mrf.mxu0  ;;  %6110 = vmatmul.msk.bf16.gmra.mxu3 %vm1164_vm1, %v9183_v33 }
 0x1b3   : > { %v9310_v18 = vpop.f32.mrf.mxu2 }
 0x1b4   : > { %v1736_v13 = vmax.f32 %v1730_v31, %v1733_v56  ;;  %v8094_v56 = vld [vmem:[%s11464_s5 + $0x98] sm:$0xff] }
 0x1b5   : > { %v1718_v5 = vpop.f32.mrf.mxu3  ;;  %v9312_v15 = vpop.f32.mrf.mxu1  ;;  %2536 = vmatpush.bf16.msra.mxu1 %v8094_v56 }
 0x1b6   : > { %v1739_v23 = vpack.c.bf16 %v1736_v13, %v1736_v13  ;;  %v1724_v8 = vadd.f32 %v1718_v5, %v1661_v35  ;;  %v8093_v5 = vld [vmem:[%s11464_s5 + $0x90] sm:$0xff] }
 0x1b8   : > { %v2250_v9 = vunpack.c.l.b16 %v1739_v23  ;;  %v1731_v2 = vadd.f32 %v9293_v25, %v1724_v8  ;;  %v1771_v8 = vadd.f32 %v9268_v43, %v9200_v62  ;;  %v8106_v62 = vld [vmem:[%s11464_s5 + $0xf8] sm:$0xff] }
 0x1b9   : > { %2537 = vmatpush.bf16.msra.mxu1 %v8093_v5 }
 0x1ba   : > { %v2252_v22 = vpack.c.b16 %v2250_v9, %v2249_v60  ;;  %v1734_v27 = vmul.f32 0.01, %v1731_v2  ;;  %v9315_v40 = vpop.f32.mrf.mxu0 }
 0x1bb   : > { %v1791_v32 = vpop.f32.mrf.mxu2 }
 0x1bc   : > { %v1737_v33 = vmax.f32 %v1731_v2, %v1734_v27  ;;  %v2257_v38 = vshll.u32 %v2252_v22, 16  ;;  %v2401_v34 = vrot.slane %v2252_v22, 1  ;;  %v2255_v1 = vshrl.u32 %v2252_v22, 16  ;;  %v8107_v2 = vld [vmem:[%s11464_s5 + $0x100] sm:$0xff]  ;;  %v8101_v27 = vld [vmem:[%s11464_s5 + $0xd0] sm:$0xff] }
 0x1bd   : > { %v1720_v19 = vpop.f32.mrf.mxu3  ;;  %v9317_v48 = vpop.f32.mrf.mxu1  ;;  %v1797_v26 = vadd.f32 %v1791_v32, %v9299_v28  ;;  %v8103_v28 = vld [vmem:[%s11464_s5 + $0xe0] sm:$0xff] }
 0x1be   : > { %v1740_v24 = vpack.c.bf16 %v1737_v33, %v1737_v33  ;;  %v2259_v52 = vrot.slane %v2257_v38, 1  ;;  %2622 = vmatpush.bf16.msra.mxu2 %v8103_v28 }
 0x1c0   : > { %v2251_v63 = vunpack.c.l.b16 %v1740_v24  ;;  %v2260_v61 = vor.u32 %v2259_v52, %v2255_v1 }
 0x1c2   : > { %v2253_v44 = vpack.c.b16 %v2251_v63, %v2251_v63  ;;  %v9319_v20 = vpop.f32.mrf.mxu0  ;;  %6177 = vmatmul.msk.bf16.vlgmr.msrb.gmra.mxu3 %vm2305_vm9, %v2252_v22  ;;  %v1796_v22 = vadd.f32 %v9310_v18, %v1771_v8  ;;  %v8100_v18 = vld [vmem:[%s11464_s5 + $0xc8] sm:$0xff] }
 0x1c3   : > { %v1793_v6 = vpop.f32.mrf.mxu2 }
 0x1c4   : > { %v2402_v49 = vrot.slane %v2253_v44, 1  ;;  %v2262_v45 = vshll.u32 %v2253_v44, 16  ;;  %v2266_v10 = vshrl.u32 %v2253_v44, 16 }
 0x1c5   : > { %v1807_v16 = vpop.f32.mrf.mxu3  ;;  %v9323_v3 = vpop.f32.mrf.mxu1 }
 0x1c6   : > { %v1816_v51 = vadd.f32 %v1807_v16, %v1795_v42  ;;  %v2403_v17 = vsel %vm1244_vm2, %v2401_v34, %v2402_v49  ;;  %v2264_v46 = vrot.slane %v2262_v45, 1  ;;  %v8099_v42 = vld [vmem:[%s11464_s5 + $0xc0] sm:$0xff] }
 0x1c7   : > { %6215 = vmatmul.msk.bf16.vlgmr.msra.gmra.mxu0 %vm2305_vm9, %v2403_v17 }
 0x1c8   : > { %v1837_v58 = vadd.f32 %v9260_v41, %v1816_v51  ;;  %v2265_v7 = vsel %vm1124_vm3, %v2260_v61, %v2264_v46  ;;  %v8110_v41 = vld [vmem:[%s11464_s5 + $0x118] sm:$0xff]  ;;  %v2268_v37 = vor.u32 %v2266_v10, %v2264_v46 }
 0x1c9   : > { %6151 = vmatmul.msk.bf16.vlgmr.msrb.gmra.mxu2 %vm2305_vm9, %v2265_v7  ;;  %2700 = vmatpush.bf16.msra.mxu3 %v8110_v41 }
 0x1ca   : > { %v9333_v12 = vpop.f32.mrf.mxu0  ;;  %v1858_v32 = vadd.f32 %v9312_v15, %v1837_v58  ;;  %v8105_v15 = vld [vmem:[%s11464_s5 + $0xf0] sm:$0xff] }
 0x1cb   : > { %v1885_v0 = vpop.f32.mrf.mxu2 }
 0x1cc   : > { %v1894_v24 = vadd.f32 %v1885_v0, %v1858_v32 }
 0x1cd   : > { %v1809_v36 = vpop.f32.mrf.mxu3  ;;  %v1856_v57 = vpop.f32.mrf.mxu1  ;;  %2701 = vmatpush.bf16.msra.mxu3 %v8109_v47 }
 0x1ce   : > { %v1817_v33 = vadd.f32 %v1809_v36, %v1796_v22 }
 0x1d0   : > { %v1838_v38 = vadd.f32 %v9282_v54, %v1817_v33 }
 0x1d1   : > { %2702 = vmatpush.bf16.msra.mxu3 %v8108_v55 }
 0x1d2   : > { %v1967_v50 = vpop.f32.mrf.mxu0  ;;  %6178 = vmatmul.msk.bf16.gmra.mxu3 %vm2305_vm9, %v2253_v44  ;;  %v1859_v6 = vadd.f32 %v9317_v48, %v1838_v38 }
 0x1d3   : > { %v1887_v21 = vpop.f32.mrf.mxu2 }
 0x1d4   : > { %v1895_v45 = vadd.f32 %v1887_v21, %v1859_v6 }
 0x1d5   : > { %v1812_v59 = vpop.f32.mrf.mxu3  ;;  %v9352_v29 = vpop.f32.mrf.mxu1  ;;  %2703 = vmatpush.bf16.msra.mxu3 %v8107_v2 }
 0x1d6   : > { %v1818_v31 = vadd.f32 %v1812_v59, %v1797_v26 }
 0x1d7   : > { %6216 = vmatmul.msk.bf16.gmra.mxu0 %vm2305_vm9, %v2402_v49 }
 0x1d8   : > { %v1839_v35 = vadd.f32 %v9304_v14, %v1818_v31  ;;  %v8102_v14 = vld [vmem:[%s11464_s5 + $0xd8] sm:$0xff] }
 0x1d9   : > { %6152 = vmatmul.msk.bf16.gmra.mxu2 %vm2305_vm9, %v2268_v37  ;;  %2704 = vmatpush.bf16.msra.mxu3 %v8106_v62 }
 0x1da   : > { %v9369_v13 = vpop.f32.mrf.mxu0  ;;  %2623 = vmatpush.bf16.msra.mxu2 %v8102_v14  ;;  %v1860_v46 = vadd.f32 %v9323_v3, %v1839_v35 }
 0x1db   : > { %v1890_v23 = vpop.f32.mrf.mxu2 }
 0x1dc   : > { %v1896_v30 = vadd.f32 %v1890_v23, %v1860_v46  ;;  %v8122_v46 = vld [vmem:[%s11464_s5 + $0x178] sm:$0xff] }
 0x1dd   : > { %v1814_v60 = vpop.f32.mrf.mxu3  ;;  %v9379_v9 = vpop.f32.mrf.mxu1  ;;  %2705 = vmatpush.bf16.msra.mxu3 %v8105_v15  ;;  %2873 = vmatpush.bf16.msrb.mxu1 %v8122_v46 }
 0x1de   : > { %2624 = vmatpush.bf16.msra.mxu2 %v8101_v27 }
 0x1e2   : > { %v9392_v43 = vpop.f32.mrf.mxu0  ;;  %2625 = vmatpush.bf16.msra.mxu2 %v8100_v18 }
 0x1e3   : > { %v1892_v19 = vpop.f32.mrf.mxu2 }
 0x1e5   : > { %v1930_v63 = vpop.f32.mrf.mxu3  ;;  %v9398_v44 = vpop.f32.mrf.mxu1 }
 0x1e6   : > { %v1939_v52 = vadd.f32 %v1930_v63, %v1894_v24  ;;  %2626 = vmatpush.bf16.msra.mxu2 %v8099_v42 }
 0x1e8   : > { %v1969_v34 = vadd.f32 %v9315_v40, %v1939_v52 }
 0x1ea   : > { %v1972_v54 = vadd.f32 %v9293_v25, %v1969_v34  ;;  %v9409_v49 = vpop.f32.mrf.mxu0  ;;  %v8114_v34 = vld [vmem:[%s11464_s5 + $0x138] sm:$0xff] }
 0x1eb   : > { %v2011_v1 = vpop.f32.mrf.mxu2 }
 0x1ec   : > { %v1975_v17 = vmul.f32 0.01, %v1972_v54  ;;  %v2012_v23 = vadd.f32 %v2011_v1, %v9352_v29  ;;  %v8116_v29 = vld [vmem:[%s11464_s5 + $0x148] sm:$0xff] }
 0x1ed   : > { %v1932_v16 = vpop.f32.mrf.mxu3  ;;  %v2000_v51 = vpop.f32.mrf.mxu1  ;;  %2784 = vmatpush.bf16.msrb.mxu0 %v8116_v29 }
 0x1ee   : > { %v1940_v61 = vadd.f32 %v1932_v16, %v1895_v45  ;;  %v1978_v58 = vmax.f32 %v1972_v54, %v1975_v17  ;;  %v8128_v45 = vld [vmem:[%s11464_s5 + $0x1a8] sm:$0xff]  ;;  %v8113_v51 = vld [vmem:[%s11464_s5 + $0x130] sm:$0xff] }
 0x1ef   : > { %2952 = vmatpush.bf16.msrb.mxu2 %v8128_v45 }
 0x1f0   : > { %v1970_v53 = vadd.f32 %v9319_v20, %v1940_v61  ;;  %v1981_v11 = vpack.c.bf16 %v1978_v58, %v1978_v58 }
 0x1f2   : > { %v1973_v48 = vadd.f32 %v9293_v25, %v1970_v53  ;;  %v2057_v7 = vpop.f32.mrf.mxu0  ;;  %v2483_v3 = vunpack.c.l.b16 %v1981_v11  ;;  %v8111_v11 = vld [vmem:[%s11464_s5 + $0x120] sm:$0xff] }
 0x1f3   : > { %v9414_v40 = vpop.f32.mrf.mxu2  ;;  %v8112_v7 = vld [vmem:[%s11464_s5 + $0x128] sm:$0xff] }
 0x1f4   : > { %v1976_v0 = vmul.f32 0.01, %v1973_v48 }
 0x1f5   : > { %v1935_v36 = vpop.f32.mrf.mxu3  ;;  %v9416_v57 = vpop.f32.mrf.mxu1 }
 0x1f6   : > { %v1979_v41 = vmax.f32 %v1973_v48, %v1976_v0  ;;  %v1941_v50 = vadd.f32 %v1935_v36, %v1896_v30  ;;  %v8127_v48 = vld [vmem:[%s11464_s5 + $0x1a0] sm:$0xff]  ;;  %v8121_v0 = vld [vmem:[%s11464_s5 + $0x170] sm:$0xff] }
 0x1f7   : > { %2953 = vmatpush.bf16.msrb.mxu2 %v8127_v48  ;;  %2874 = vmatpush.bf16.msrb.mxu1 %v8121_v0 }
 0x1f8   : > { %v1982_v4 = vpack.c.bf16 %v1979_v41, %v1979_v41  ;;  %v1971_v21 = vadd.f32 %v9333_v12, %v1941_v50 }
 0x1fa   : > { %v2484_v39 = vunpack.c.l.b16 %v1982_v4  ;;  %v1974_v20 = vadd.f32 %v9293_v25, %v1971_v21  ;;  %v9420_v26 = vpop.f32.mrf.mxu0  ;;  %v8120_v4 = vld [vmem:[%s11464_s5 + $0x168] sm:$0xff]  ;;  %v2014_v21 = vadd.f32 %v9414_v40, %v9379_v9 }
 0x1fb   : > { %v2016_v59 = vpop.f32.mrf.mxu2  ;;  %2875 = vmatpush.bf16.msrb.mxu1 %v8120_v4  ;;  %v8124_v9 = vld [vmem:[%s11464_s5 + $0x188] sm:$0xff] }
 0x1fc   : > { %v2486_v10 = vpack.c.b16 %v2484_v39, %v2483_v3  ;;  %v1977_v47 = vmul.f32 0.01, %v1974_v20  ;;  %v2017_v16 = vadd.f32 %v2016_v59, %v9398_v44  ;;  %v8125_v3 = vld [vmem:[%s11464_s5 + $0x190] sm:$0xff]  ;;  %v8119_v59 = vld [vmem:[%s11464_s5 + $0x160] sm:$0xff] }
 0x1fd   : > { %v1937_v31 = vpop.f32.mrf.mxu3  ;;  %v9422_v56 = vpop.f32.mrf.mxu1 }
 0x1fe   : > { %v1980_v37 = vmax.f32 %v1974_v20, %v1977_v47  ;;  %6253 = vmatmul.msk.bf16.vlgmr.msra.gmra.mxu1 %vm2305_vm9, %v2486_v10  ;;  %v2566_v35 = vshll.u32 %v2486_v10, 16  ;;  %v2653_v22 = vrot.slane %v2486_v10, 1  ;;  %v2564_v33 = vshrl.u32 %v2486_v10, 16 }
 0x1ff   : > { %2876 = vmatpush.bf16.msrb.mxu1 %v8119_v59 }
 0x200   : > { %v1983_v28 = vpack.c.bf16 %v1980_v37, %v1980_v37  ;;  %v2568_v8 = vrot.slane %v2566_v35, 1  ;;  %v8123_v35 = vld [vmem:[%s11464_s5 + $0x180] sm:$0xff] }
 0x202   : > { %v2485_v55 = vunpack.c.l.b16 %v1983_v28  ;;  %v9425_v5 = vpop.f32.mrf.mxu0  ;;  %v2569_v24 = vor.u32 %v2568_v8, %v2564_v33 }
 0x203   : > { %v2018_v12 = vpop.f32.mrf.mxu2 }
 0x204   : > { %v2487_v14 = vpack.c.b16 %v2485_v55, %v2485_v55  ;;  %v8117_v55 = vld [vmem:[%s11464_s5 + $0x150] sm:$0xff] }
 0x205   : > { %v2029_v60 = vpop.f32.mrf.mxu3  ;;  %v9428_v2 = vpop.f32.mrf.mxu1 }
 0x206   : > { %v2038_v27 = vadd.f32 %v2029_v60, %v2012_v23  ;;  %v2654_v32 = vrot.slane %v2487_v14, 1  ;;  %v2570_v62 = vshll.u32 %v2487_v14, 16  ;;  %v2574_v58 = vshrl.u32 %v2487_v14, 16 }
 0x208   : > { %v2059_v19 = vadd.f32 %v9369_v13, %v2038_v27  ;;  %v2655_v18 = vsel %vm1244_vm2, %v2653_v22, %v2654_v32  ;;  %v2572_v38 = vrot.slane %v2570_v62, 1  ;;  %v8115_v13 = vld [vmem:[%s11464_s5 + $0x140] sm:$0xff] }
 0x209   : > { %6329 = vmatmul.msk.bf16.vlgmr.msra.gmra.mxu3 %vm2305_vm9, %v2655_v18  ;;  %2785 = vmatpush.bf16.msrb.mxu0 %v8115_v13 }
 0x20a   : > { %v9436_v63 = vpop.f32.mrf.mxu0  ;;  %v2573_v15 = vsel %vm1124_vm3, %v2569_v24, %v2572_v38  ;;  %v2576_v30 = vor.u32 %v2574_v58, %v2572_v38  ;;  %v2080_v39 = vadd.f32 %v9416_v57, %v2059_v19  ;;  %v8118_v57 = vld [vmem:[%s11464_s5 + $0x158] sm:$0xff] }
 0x20b   : > { %v2092_v52 = vpop.f32.mrf.mxu2  ;;  %6291 = vmatmul.msk.bf16.vlgmr.msra.gmra.mxu2 %vm2305_vm9, %v2573_v15  ;;  %2877 = vmatpush.bf16.msrb.mxu1 %v8118_v57 }
 0x20c   : > { %v2101_v40 = vadd.f32 %v2092_v52, %v2080_v39 }
 0x20d   : > { %v2031_v42 = vpop.f32.mrf.mxu3  ;;  %v2078_v6 = vpop.f32.mrf.mxu1  ;;  %2786 = vmatpush.bf16.msrb.mxu0 %v8114_v34 }
 0x20e   : > { %6254 = vmatmul.msk.bf16.gmra.mxu1 %vm2305_vm9, %v2487_v14  ;;  %v2039_v20 = vadd.f32 %v2031_v42, %v2014_v21 }
 0x20f   : > { %2878 = vmatpush.bf16.msrb.mxu1 %v8117_v55  ;;  %v8144_v55 = vld [vmem:[%s11466_s7 + $0x74] sm:$0xf0] }
 0x210   : > { %v2060_v47 = vadd.f32 %v9392_v43, %v2039_v20 }
 0x211   : > { %2787 = vmatpush.bf16.msrb.mxu0 %v8113_v51 }
 0x212   : > { %v2174_v54 = vpop.f32.mrf.mxu0  ;;  %v2081_v12 = vadd.f32 %v9422_v56, %v2060_v47 }
 0x213   : > { %v2094_v1 = vpop.f32.mrf.mxu2 }
 0x214   : > { %v2102_v14 = vadd.f32 %v2094_v1, %v2081_v12  ;;  %v8143_v12 = vld [vmem:[%s11466_s7 + $0x74] sm:$0xf] }
 0x215   : > { %v2034_v17 = vpop.f32.mrf.mxu3  ;;  %v2197_v61 = vpop.f32.mrf.mxu1  ;;  %2788 = vmatpush.bf16.msrb.mxu0 %v8112_v7 }
 0x216   : > { %v2040_v53 = vadd.f32 %v2034_v17, %v2017_v16 }
 0x218   : > { %v2061_v44 = vadd.f32 %v9409_v49, %v2040_v53  ;;  %v8126_v49 = vld [vmem:[%s11464_s5 + $0x198] sm:$0xff] }
 0x219   : > { %6330 = vmatmul.msk.bf16.gmra.mxu3 %vm2305_vm9, %v2654_v32  ;;  %2954 = vmatpush.bf16.msrb.mxu2 %v8126_v49 }
 0x21a   : > { %2789 = vmatpush.bf16.msrb.mxu0 %v8111_v11  ;;  %v2082_v32 = vadd.f32 %v9428_v2, %v2061_v44 }
 0x21b   : > { %v2097_v36 = vpop.f32.mrf.mxu2  ;;  %6292 = vmatmul.msk.bf16.gmra.mxu2 %vm2305_vm9, %v2576_v30 }
 0x21c   : > { %v2103_v18 = vadd.f32 %v2097_v36, %v2082_v32 }
 0x21d   : > { %v2036_v41 = vpop.f32.mrf.mxu3  ;;  %v2199_v50 = vpop.f32.mrf.mxu1  ;;  %2955 = vmatpush.bf16.msrb.mxu2 %v8125_v3 }
 0x221   : > { %2956 = vmatpush.bf16.msrb.mxu2 %v8124_v9 }
 0x223   : > { %v2099_v10 = vpop.f32.mrf.mxu2 }
 0x225   : > { %v2127_v31 = vpop.f32.mrf.mxu3  ;;  %v2202_v37 = vpop.f32.mrf.mxu1  ;;  %2957 = vmatpush.bf16.msrb.mxu2 %v8123_v35  ;;  %v6583_v35 = vld [vmem:[%s11466_s7 + $0x70] sm:$0xf] }
 0x226   : > { %v2136_v28 = vadd.f32 %v2127_v31, %v2101_v40 }
 0x228   : > { %v2176_v43 = vadd.f32 %v9420_v26, %v2136_v28 }
 0x22a   : > { %v2206_v23 = vadd.f32 %v2197_v61, %v2176_v43 }
 0x22c   : > { %v2209_v8 = vadd.f32 %v9293_v25, %v2206_v23  ;;  %v6584_v23 = vor.u32 %v8144_v55, %v6583_v35  ;;  %v8133_v35 = vld [vmem:[%s11466_s7 + $0x24] sm:$0xf]  ;;  %v6545_v55 = vld [vmem:[%s11466_s7 + $0x28] sm:$0xf0] }
 0x22d   : > { %v2129_v60 = vpop.f32.mrf.mxu3  ;;  %v2204_v22 = vpop.f32.mrf.mxu1 }
 0x22e   : > { %v2137_v27 = vadd.f32 %v2129_v60, %v2102_v14  ;;  %v2212_v33 = vmul.f32 0.01, %v2209_v8  ;;  %v6585_v14 = vld [vmem:[%s11466_s7 + $0x78] sm:$0xf0]  ;;  %3210 = vmatpush.bf16.msra.mxu1 %v6584_v23  ;;  %v6575_v60 = vld [vmem:[%s11466_s7 + $0x60] sm:$0xf] }
 0x22f   : > { %v8142_v22 = vld [vmem:[%s11466_s7 + $0x64] sm:$0xf0]  ;;  %v8152_v23 = vld [vmem:[%s11466_s7 + $0xb4] sm:$0xf0] }
 0x230   : > { %v2177_v62 = vadd.f32 %v9425_v5, %v2137_v27  ;;  %v2215_v24 = vmax.f32 %v2209_v8, %v2212_v33  ;;  %v6588_v8 = vor.u32 %v8143_v12, %v6585_v14  ;;  %v8141_v27 = vld [vmem:[%s11466_s7 + $0x64] sm:$0xf]  ;;  %v6576_v32 = vor.u32 %v8142_v22, %v6575_v60  ;;  %v6577_v33 = vld [vmem:[%s11466_s7 + $0x68] sm:$0xf0]  ;;  %v8151_v60 = vld [vmem:[%s11466_s7 + $0xb4] sm:$0xf] }
 0x231   : > { %v6489_v22 = vld [vmem:[%s11466_s7 + $0xb8] sm:$0xf0] }
 0x232   : > { %v2207_v19 = vadd.f32 %v2199_v50, %v2177_v62  ;;  %v2218_v15 = vpack.c.bf16 %v2215_v24, %v2215_v24  ;;  %3223 = vmatpush.bf16.msra.mxu2 %v6588_v8  ;;  %v6519_v62 = vld [vmem:[%s11466_s7 + $0xf0] sm:$0xf]  ;;  %3211 = vmatpush.bf16.msra.mxu1 %v6576_v32 }
 0x233   : > { %v6535_v32 = vld [vmem:[%s11466_s7 + $0x10] sm:$0xf] }
 0x234   : > { %v2210_v56 = vadd.f32 %v9293_v25, %v2207_v19  ;;  %v2735_v34 = vunpack.c.l.b16 %v2218_v15  ;;  %v8160_v19 = vld [vmem:[%s11466_s7 + $0xf4] sm:$0xf0]  ;;  %v6567_v15 = vld [vmem:[%s11466_s7 + $0x50] sm:$0xf] }
 0x235   : > { %v2132_v26 = vpop.f32.mrf.mxu3  ;;  %v6520_v24 = vor.u32 %v8160_v19, %v6519_v62  ;;  %v8131_v19 = vld [vmem:[%s11466_s7 + $0x14] sm:$0xf] }
 0x236   : > { %v2213_v38 = vmul.f32 0.01, %v2210_v56  ;;  %v2138_v29 = vadd.f32 %v2132_v26, %v2103_v18  ;;  %v6580_v18 = vor.u32 %v8141_v27, %v6577_v33  ;;  %v6521_v26 = vld [vmem:[%s11466_s7 + $0xf8] sm:$0xf0]  ;;  %v6548_v27 = vor.u32 %v8133_v35, %v6545_v55  ;;  %v8132_v33 = vld [vmem:[%s11466_s7 + $0x14] sm:$0xf0] }
 0x237   : > { %3104 = vmatpush.bf16.msrb.mxu3 %v6520_v24  ;;  %v6492_v24 = vor.u32 %v8151_v60, %v6489_v22  ;;  %v6465_v35 = vld [vmem:[%s11466_s7 + $0x88] sm:$0xf0]  ;;  %v6663_v55 = vld [vmem:[%s11466_s7 + $0x170] sm:$0xf]  ;;  %v6665_v60 = vld [vmem:[%s11466_s7 + $0x178] sm:$0xf0] }
 0x238   : > { %v2216_v52 = vmax.f32 %v2210_v56, %v2213_v38  ;;  %v2178_v13 = vadd.f32 %v9436_v63, %v2138_v29  ;;  %v8159_v56 = vld [vmem:[%s11466_s7 + $0xf4] sm:$0xf]  ;;  %3224 = vmatpush.bf16.msra.mxu2 %v6580_v18  ;;  %v6537_v18 = vld [vmem:[%s11466_s7 + $0x18] sm:$0xf0] }
 0x239   : > { %v6524_v38 = vor.u32 %v8159_v56, %v6521_v26  ;;  %v6479_v56 = vld [vmem:[%s11466_s7 + $0xa0] sm:$0xf]  ;;  %v8150_v26 = vld [vmem:[%s11466_s7 + $0xa4] sm:$0xf0] }
 0x23a   : > { %v2219_v42 = vpack.c.bf16 %v2216_v52, %v2216_v52  ;;  %v2208_v6 = vadd.f32 %v2202_v37, %v2178_v13  ;;  %v8140_v52 = vld [vmem:[%s11466_s7 + $0x54] sm:$0xf0]  ;;  %v8139_v13 = vld [vmem:[%s11466_s7 + $0x54] sm:$0xf] }
 0x23b   : > { %3117 = vmatpush.bf16.msra.mxu0 %v6524_v38  ;;  %v6536_v38 = vor.u32 %v8132_v33, %v6535_v32  ;;  %v8188_v32 = vld [vmem:[%s11466_s7 + $0x1d4] sm:$0xf0]  ;;  %v8187_v33 = vld [vmem:[%s11466_s7 + $0x1d4] sm:$0xf] }
 0x23c   : > { %v2736_v54 = vunpack.c.l.b16 %v2219_v42  ;;  %v2211_v2 = vadd.f32 %v9293_v25, %v2208_v6  ;;  %v6568_v42 = vor.u32 %v8140_v52, %v6567_v15  ;;  %v6569_v6 = vld [vmem:[%s11466_s7 + $0x58] sm:$0xf0]  ;;  %v8149_v15 = vld [vmem:[%s11466_s7 + $0xa4] sm:$0xf]  ;;  %v6481_v52 = vld [vmem:[%s11466_s7 + $0xa8] sm:$0xf0] }
 0x23d   : > { %v2134_v1 = vpop.f32.mrf.mxu3 }
 0x23e   : > { %v2738_v5 = vpack.c.b16 %v2736_v54, %v2735_v34  ;;  %v2214_v45 = vmul.f32 0.01, %v2211_v2  ;;  %v6572_v34 = vor.u32 %v8139_v13, %v6569_v6  ;;  %v6511_v54 = vld [vmem:[%s11466_s7 + $0xe0] sm:$0xf]  ;;  %v8157_v1 = vld [vmem:[%s11466_s7 + $0xe4] sm:$0xf]  ;;  %3212 = vmatpush.bf16.msra.mxu1 %v6568_v42  ;;  %v6540_v6 = vor.u32 %v8131_v19, %v6537_v18 }
 0x23f   : > { %v6527_v13 = vld [vmem:[%s11466_s7] sm:$0xf]  ;;  %v6729_v19 = vld [vmem:[%s11466_s7 + $0x1d8] sm:$0xf0] }
 0x240   : > { %v2217_v16 = vmax.f32 %v2211_v2, %v2214_v45  ;;  %6367 = vmatmul.msk.bf16.vlgmr.msrb.gmra.mxu0 %vm2305_vm9, %v2738_v5  ;;  %v2818_v17 = vshll.u32 %v2738_v5, 16  ;;  %v2905_v63 = vrot.slane %v2738_v5, 1  ;;  %v2816_v7 = vshrl.u32 %v2738_v5, 16  ;;  %v8158_v2 = vld [vmem:[%s11466_s7 + $0xe4] sm:$0xf0]  ;;  %3225 = vmatpush.bf16.msra.mxu2 %v6572_v34 }
 0x241   : > { %v6512_v5 = vor.u32 %v8158_v2, %v6511_v54  ;;  %v6513_v45 = vld [vmem:[%s11466_s7 + $0xe8] sm:$0xf0]  ;;  %v8130_v34 = vld [vmem:[%s11466_s7 + $0x4] sm:$0xf0]  ;;  %v8129_v54 = vld [vmem:[%s11466_s7 + $0x4] sm:$0xf] }
 0x242   : > { %v2220_v51 = vpack.c.bf16 %v2217_v16, %v2217_v16  ;;  %v2820_v48 = vrot.slane %v2818_v17, 1  ;;  %v6559_v16 = vld [vmem:[%s11466_s7 + $0x40] sm:$0xf]  ;;  %v6516_v17 = vor.u32 %v8157_v1, %v6513_v45  ;;  %v6529_v2 = vld [vmem:[%s11466_s7 + $0x8] sm:$0xf0] }
 0x243   : > { %3105 = vmatpush.bf16.msrb.mxu3 %v6512_v5  ;;  %v6480_v5 = vor.u32 %v8150_v26, %v6479_v56  ;;  %v6743_v45 = vld [vmem:[%s11466_s7 + $0x1f0] sm:$0xf]  ;;  %v6655_v18 = vld [vmem:[%s11466_s7 + $0x160] sm:$0xf]  ;;  %v6732_v26 = vor.u32 %v8187_v33, %v6729_v19  ;;  %v8165_v19 = vld [vmem:[%s11466_s7 + $0x124] sm:$0xf] }
 0x244   : > { %v2737_v61 = vunpack.c.l.b16 %v2220_v51  ;;  %v2455_v46 = vpop.f32.mrf.mxu0  ;;  %v2821_v25 = vor.u32 %v2820_v48, %v2816_v7  ;;  %v8138_v51 = vld [vmem:[%s11466_s7 + $0x44] sm:$0xf0]  ;;  %v6505_v7 = vld [vmem:[%s11466_s7 + $0xd8] sm:$0xf0]  ;;  %3118 = vmatpush.bf16.msra.mxu0 %v6516_v17  ;;  %v6484_v17 = vor.u32 %v8149_v15, %v6481_v52  ;;  %v8173_v15 = vld [vmem:[%s11466_s7 + $0x164] sm:$0xf] }
 0x245   : > { %v2379_v53 = vpop.f32.mrf.mxu3  ;;  %v6657_v52 = vld [vmem:[%s11466_s7 + $0x168] sm:$0xf0]  ;;  %v6623_v33 = vld [vmem:[%s11466_s7 + $0x120] sm:$0xf] }
 0x246   : > { %v2739_v58 = vpack.c.b16 %v2737_v61, %v2737_v61  ;;  %v6560_v61 = vor.u32 %v8138_v51, %v6559_v16  ;;  %v8192_v16 = vld [vmem:[%s11466_s7 + $0x1f4] sm:$0xf0]  ;;  %v8191_v51 = vld [vmem:[%s11466_s7 + $0x1f4] sm:$0xf] }
 0x248   : > { %v2906_v44 = vrot.slane %v2739_v58, 1  ;;  %v2822_v30 = vshll.u32 %v2739_v58, 16  ;;  %v2826_v59 = vshrl.u32 %v2739_v58, 16  ;;  %3213 = vmatpush.bf16.msra.mxu1 %v6560_v61  ;;  %v6745_v61 = vld [vmem:[%s11466_s7 + $0x1f8] sm:$0xf0] }
 0x24a   : > { %v2907_v0 = vsel %vm1244_vm2, %v2905_v63, %v2906_v44  ;;  %v2824_v36 = vrot.slane %v2822_v30, 1  ;;  %v8156_v63 = vld [vmem:[%s11466_s7 + $0xd4] sm:$0xf0] }
 0x24b   : > { %6443 = vmatmul.msk.bf16.vlgmr.msrb.gmra.mxu2 %vm2305_vm9, %v2907_v0 }
 0x24c   : > { %v2321_v49 = vpop.f32.mrf.mxu2  ;;  %v9511_v11 = vpop.f32.mrf.mxu0  ;;  %v2825_v41 = vsel %vm1124_vm3, %v2821_v25, %v2824_v36  ;;  %v2828_v10 = vor.u32 %v2826_v59, %v2824_v36  ;;  %v6551_v25 = vld [vmem:[%s11466_s7 + $0x30] sm:$0xf]  ;;  %v8136_v36 = vld [vmem:[%s11466_s7 + $0x34] sm:$0xf0] }
 0x24d   : > { %v2380_v50 = vadd.f32 %v2379_v53, %v2321_v49  ;;  %v9514_v4 = vpop.f32.mrf.mxu3  ;;  %6405 = vmatmul.msk.bf16.vlgmr.msrb.gmra.mxu1 %vm2305_vm9, %v2825_v41  ;;  %v6561_v53 = vld [vmem:[%s11466_s7 + $0x48] sm:$0xf0]  ;;  %v8135_v49 = vld [vmem:[%s11466_s7 + $0x34] sm:$0xf]  ;;  %v6552_v41 = vor.u32 %v8136_v36, %v6551_v25 }
 0x24f   : > { %v2464_v21 = vadd.f32 %v2455_v46, %v2380_v50  ;;  %v8137_v46 = vld [vmem:[%s11466_s7 + $0x44] sm:$0xf]  ;;  %v6553_v50 = vld [vmem:[%s11466_s7 + $0x38] sm:$0xf0]  ;;  %3214 = vmatpush.bf16.msra.mxu1 %v6552_v41  ;;  %v6735_v41 = vld [vmem:[%s11466_s7 + $0x1e0] sm:$0xf] }
 0x250   : > { %6368 = vmatmul.msk.bf16.gmra.mxu0 %vm2305_vm9, %v2739_v58  ;;  %v6503_v58 = vld [vmem:[%s11466_s7 + $0xd0] sm:$0xf]  ;;  %v6564_v48 = vor.u32 %v8137_v46, %v6561_v53  ;;  %v6556_v59 = vor.u32 %v8135_v49, %v6553_v50  ;;  %v8148_v53 = vld [vmem:[%s11466_s7 + $0x94] sm:$0xf0]  ;;  %v8190_v50 = vld [vmem:[%s11466_s7 + $0x1e4] sm:$0xf0] }
 0x251   : > { %v6504_v30 = vor.u32 %v8156_v63, %v6503_v58  ;;  %v6471_v46 = vld [vmem:[%s11466_s7 + $0x90] sm:$0xf]  ;;  %v8147_v63 = vld [vmem:[%s11466_s7 + $0x94] sm:$0xf] }
 0x252   : > { %3226 = vmatpush.bf16.msra.mxu2 %v6564_v48  ;;  %v6528_v48 = vor.u32 %v8130_v34, %v6527_v13  ;;  %v6472_v25 = vor.u32 %v8148_v53, %v6471_v46  ;;  %v6660_v13 = vor.u32 %v8173_v15, %v6657_v52  ;;  %v8186_v34 = vld [vmem:[%s11466_s7 + $0x1c4] sm:$0xf0]  ;;  %v6649_v53 = vld [vmem:[%s11466_s7 + $0x158] sm:$0xf0]  ;;  %v8177_v52 = vld [vmem:[%s11466_s7 + $0x184] sm:$0xf] }
 0x253   : > { %3106 = vmatpush.bf16.msrb.mxu3 %v6504_v30  ;;  %v6744_v30 = vor.u32 %v8192_v16, %v6743_v45  ;;  %v8178_v15 = vld [vmem:[%s11466_s7 + $0x184] sm:$0xf0] }
 0x254   : > { %v9518_v3 = vpop.f32.mrf.mxu2  ;;  %v2460_v39 = vpop.f32.mrf.mxu0 }
 0x255   : > { %v2384_v20 = vpop.f32.mrf.mxu3 }
 0x256   : > { %3227 = vmatpush.bf16.msra.mxu2 %v6556_v59  ;;  %v6463_v59 = vld [vmem:[%s11466_s7 + $0x80] sm:$0xf] }
 0x25a   : > { %3228 = vmatpush.bf16.msra.mxu2 %v6548_v27 }
 0x25b   : > { %6444 = vmatmul.msk.bf16.gmra.mxu2 %vm2305_vm9, %v2906_v44  ;;  %v8155_v44 = vld [vmem:[%s11466_s7 + $0xd4] sm:$0xf] }
 0x25c   : > { %v2326_v9 = vpop.f32.mrf.mxu2  ;;  %v2462_v40 = vpop.f32.mrf.mxu0  ;;  %v6508_v0 = vor.u32 %v8155_v44, %v6505_v7  ;;  %v6473_v44 = vld [vmem:[%s11466_s7 + $0x98] sm:$0xf0]  ;;  %v6532_v7 = vor.u32 %v8129_v54, %v6529_v2  ;;  %v8185_v54 = vld [vmem:[%s11466_s7 + $0x1c4] sm:$0xf] }
 0x25d   : > { %v2385_v47 = vadd.f32 %v2384_v20, %v2326_v9  ;;  %v2386_v31 = vpop.f32.mrf.mxu3  ;;  %6406 = vmatmul.msk.bf16.gmra.mxu1 %vm2305_vm9, %v2828_v10  ;;  %v8153_v10 = vld [vmem:[%s11466_s7 + $0xc4] sm:$0xf]  ;;  %v6497_v9 = vld [vmem:[%s11466_s7 + $0xc8] sm:$0xf0]  ;;  %v6543_v40 = vld [vmem:[%s11466_s7 + $0x20] sm:$0xf]  ;;  %v6476_v36 = vor.u32 %v8147_v63, %v6473_v44 }
 0x25e   : > { %3119 = vmatpush.bf16.msra.mxu0 %v6508_v0  ;;  %v6500_v12 = vor.u32 %v8153_v10, %v6497_v9  ;;  %3229 = vmatpush.bf16.msra.mxu2 %v6540_v6  ;;  %v6748_v0 = vor.u32 %v8191_v51, %v6745_v61  ;;  %v8146_v10 = vld [vmem:[%s11466_s7 + $0x84] sm:$0xf0]  ;;  %v6719_v6 = vld [vmem:[%s11466_s7 + $0x1c0] sm:$0xf]  ;;  %v6647_v51 = vld [vmem:[%s11466_s7 + $0x150] sm:$0xf] }
 0x25f   : > { %v9522_v37 = vadd.f32 %v2460_v39, %v2385_v47  ;;  %v8154_v39 = vld [vmem:[%s11466_s7 + $0xc4] sm:$0xf0]  ;;  %v6720_v2 = vor.u32 %v8186_v34, %v6719_v6  ;;  %v8171_v61 = vld [vmem:[%s11466_s7 + $0x154] sm:$0xf]  ;;  %v6711_v63 = vld [vmem:[%s11466_s7 + $0x1b0] sm:$0xf] }
 0x260   : > { %v8184_v44 = vld [vmem:[%s11466_s7 + $0x1b4] sm:$0xf0]  ;;  %v6615_v34 = vld [vmem:[%s11466_s7 + $0x110] sm:$0xf] }
 0x262   : > { %3120 = vmatpush.bf16.msra.mxu0 %v6500_v12  ;;  %3230 = vmatpush.bf16.msra.mxu2 %v6532_v7  ;;  %v8183_v7 = vld [vmem:[%s11466_s7 + $0x1b4] sm:$0xf] }
 0x264   : > { %v2328_v57 = vpop.f32.mrf.mxu2 }
 0x266   : > { %3121 = vmatpush.bf16.msra.mxu0 %v6492_v24  ;;  %3475 = vmatpush.bf16.msrb.mxu2 %v6748_v0  ;;  %v8174_v24 = vld [vmem:[%s11466_s7 + $0x164] sm:$0xf0]  ;;  %v6713_v0 = vld [vmem:[%s11466_s7 + $0x1b8] sm:$0xf0] }
 0x26a   : > { %3122 = vmatpush.bf16.msra.mxu0 %v6484_v17  ;;  %v8172_v17 = vld [vmem:[%s11466_s7 + $0x154] sm:$0xf0] }
 0x26b   : > { %v6648_v46 = vor.u32 %v8172_v17, %v6647_v51  ;;  %v6607_v17 = vld [vmem:[%s11466_s7 + $0x100] sm:$0xf] }
 0x26e   : > { %3123 = vmatpush.bf16.msra.mxu0 %v6476_v36  ;;  %v6639_v36 = vld [vmem:[%s11466_s7 + $0x140] sm:$0xf] }
 0x27b   : > { %v2539_v28 = vpop.f32.mrf.mxu1 }
 0x27c   : > { %v9533_v43 = vadd.f32 %v2539_v28, %v2464_v21  ;;  %v6495_v21 = vld [vmem:[%s11466_s7 + $0xc0] sm:$0xf]  ;;  %v8134_v28 = vld [vmem:[%s11466_s7 + $0x24] sm:$0xf0] }
 0x27d   : > { %v6496_v57 = vor.u32 %v8154_v39, %v6495_v21  ;;  %v6544_v8 = vor.u32 %v8134_v28, %v6543_v40  ;;  %v8189_v21 = vld [vmem:[%s11466_s7 + $0x1e4] sm:$0xf]  ;;  %v6736_v39 = vor.u32 %v8190_v50, %v6735_v41 }
 0x27e   : > { %v8145_v28 = vld [vmem:[%s11466_s7 + $0x84] sm:$0xf] }
 0x27f   : > { %3107 = vmatpush.bf16.msrb.mxu3 %v6496_v57  ;;  %3215 = vmatpush.bf16.msra.mxu1 %v6544_v8  ;;  %v6464_v57 = vor.u32 %v8146_v10, %v6463_v59  ;;  %v8175_v8 = vld [vmem:[%s11466_s7 + $0x174] sm:$0xf]  ;;  %v8169_v41 = vld [vmem:[%s11466_s7 + $0x144] sm:$0xf]  ;;  %v8182_v59 = vld [vmem:[%s11466_s7 + $0x1a4] sm:$0xf0] }
 0x280   : > { %v6668_v27 = vor.u32 %v8175_v8, %v6665_v60  ;;  %v8181_v10 = vld [vmem:[%s11466_s7 + $0x1a4] sm:$0xf]  ;;  %v6695_v8 = vld [vmem:[%s11466_s7 + $0x190] sm:$0xf]  ;;  %v8180_v60 = vld [vmem:[%s11466_s7 + $0x194] sm:$0xf0] }
 0x283   : > { %v9562_v29 = vpop.f32.mrf.mxu1  ;;  %3216 = vmatpush.bf16.msra.mxu1 %v6536_v38  ;;  %v6656_v38 = vor.u32 %v8174_v24, %v6655_v18  ;;  %v6625_v24 = vld [vmem:[%s11466_s7 + $0x128] sm:$0xf0] }
 0x287   : > { %3217 = vmatpush.bf16.msra.mxu1 %v6528_v48  ;;  %v6652_v48 = vor.u32 %v8171_v61, %v6649_v53  ;;  %v8162_v61 = vld [vmem:[%s11466_s7 + $0x104] sm:$0xf0]  ;;  %v8161_v53 = vld [vmem:[%s11466_s7 + $0x104] sm:$0xf] }
 0x28b   : > { %v2544_v20 = vpop.f32.mrf.mxu1  ;;  %3462 = vmatpush.bf16.msrb.mxu1 %v6744_v30  ;;  %v6712_v30 = vor.u32 %v8184_v44, %v6711_v63 }
 0x28c   : > { %v9640_v47 = vadd.f32 %v2544_v20, %v9522_v37  ;;  %v9642_v31 = vpop.f32.mrf.mxu3  ;;  %v6487_v37 = vld [vmem:[%s11466_s7 + $0xb0] sm:$0xf]  ;;  %v6737_v20 = vld [vmem:[%s11466_s7 + $0x1e8] sm:$0xf0] }
 0x28d   : > { %v6488_v62 = vor.u32 %v8152_v23, %v6487_v37  ;;  %v6740_v40 = vor.u32 %v8189_v21, %v6737_v20  ;;  %v6468_v37 = vor.u32 %v8145_v28, %v6465_v35  ;;  %v8176_v23 = vld [vmem:[%s11466_s7 + $0x174] sm:$0xf0]  ;;  %v6641_v21 = vld [vmem:[%s11466_s7 + $0x148] sm:$0xf0]  ;;  %v6703_v20 = vld [vmem:[%s11466_s7 + $0x1a0] sm:$0xf] }
 0x28e   : > { %v9659_v14 = vpop.f32.mrf.mxu2  ;;  %v6664_v22 = vor.u32 %v8176_v23, %v6663_v55  ;;  %v6631_v28 = vld [vmem:[%s11466_s7 + $0x130] sm:$0xf]  ;;  %v8168_v35 = vld [vmem:[%s11466_s7 + $0x134] sm:$0xf0]  ;;  %v8167_v55 = vld [vmem:[%s11466_s7 + $0x134] sm:$0xf] }
 0x28f   : > { %3108 = vmatpush.bf16.msrb.mxu3 %v6488_v62  ;;  %3463 = vmatpush.bf16.msrb.mxu1 %v6736_v39  ;;  %v6644_v39 = vor.u32 %v8169_v41, %v6641_v21 }
 0x290   : > { %3476 = vmatpush.bf16.msrb.mxu2 %v6740_v40  ;;  %3124 = vmatpush.bf16.msra.mxu0 %v6468_v37  ;;  %v6705_v40 = vld [vmem:[%s11466_s7 + $0x1a8] sm:$0xf0]  ;;  %v6633_v37 = vld [vmem:[%s11466_s7 + $0x138] sm:$0xf0] }
 0x291   : > { %v6636_v23 = vor.u32 %v8167_v55, %v6633_v37  ;;  %v8221_v37 = vld [vmem:[%s11466_s7 + $0x2e4] sm:$0xf] }
 0x293   : > { %v2546_v42 = vpop.f32.mrf.mxu1  ;;  %3109 = vmatpush.bf16.msrb.mxu3 %v6480_v5  ;;  %v6721_v5 = vld [vmem:[%s11466_s7 + $0x1c8] sm:$0xf0] }
 0x294   : > { %v9703_v1 = vpop.f32.mrf.mxu3  ;;  %3348 = vmatpush.bf16.msrb.mxu0 %v6668_v27  ;;  %3477 = vmatpush.bf16.msrb.mxu2 %v6732_v26  ;;  %v6724_v16 = vor.u32 %v8185_v54, %v6721_v5  ;;  %v6696_v27 = vor.u32 %v8180_v60, %v6695_v8  ;;  %v6628_v26 = vor.u32 %v8165_v19, %v6625_v24  ;;  %v8164_v54 = vld [vmem:[%s11466_s7 + $0x114] sm:$0xf0]  ;;  %v6617_v5 = vld [vmem:[%s11466_s7 + $0x118] sm:$0xf0]  ;;  %v6823_v60 = vld [vmem:[%s11466_s7 + $0x270] sm:$0xf] }
 0x296   : > { %v9723_v58 = vpop.f32.mrf.mxu2 }
 0x297   : > { %3110 = vmatpush.bf16.msrb.mxu3 %v6472_v25  ;;  %v6716_v25 = vor.u32 %v8183_v7, %v6713_v0  ;;  %v2637_v0 = vadd.f32 %v9659_v14, %v9533_v43  ;;  %v6903_v43 = vld [vmem:[%s11466_s7 + $0x2f0] sm:$0xf] }
 0x298   : > { %3349 = vmatpush.bf16.msrb.mxu0 %v6660_v13  ;;  %3478 = vmatpush.bf16.msrb.mxu2 %v6724_v16  ;;  %v6616_v16 = vor.u32 %v8164_v54, %v6615_v34  ;;  %v6815_v34 = vld [vmem:[%s11466_s7 + $0x260] sm:$0xf]  ;;  %v8206_v54 = vld [vmem:[%s11466_s7 + $0x264] sm:$0xf0] }
 0x29b   : > { %3111 = vmatpush.bf16.msrb.mxu3 %v6464_v57  ;;  %v6708_v57 = vor.u32 %v8181_v10, %v6705_v40 }
 0x29c   : > { %v2712_v49 = vpop.f32.mrf.mxu3  ;;  %3350 = vmatpush.bf16.msrb.mxu0 %v6652_v48  ;;  %3479 = vmatpush.bf16.msrb.mxu2 %v6716_v25 }
 0x29e   : > { %v2633_v9 = vpop.f32.mrf.mxu2 }
 0x29f   : > { %v2639_v12 = vadd.f32 %v2633_v9, %v9640_v47  ;;  %v6727_v47 = vld [vmem:[%s11466_s7 + $0x1d0] sm:$0xf]  ;;  %3335 = vmatpush.bf16.msra.mxu3 %v6664_v22  ;;  %v6704_v9 = vor.u32 %v8182_v59, %v6703_v20  ;;  %v8179_v22 = vld [vmem:[%s11466_s7 + $0x194] sm:$0xf] }
 0x2a0   : > { %v6728_v62 = vor.u32 %v8188_v32, %v6727_v47  ;;  %3351 = vmatpush.bf16.msrb.mxu0 %v6644_v39  ;;  %3480 = vmatpush.bf16.msrb.mxu2 %v6708_v57  ;;  %v6697_v47 = vld [vmem:[%s11466_s7 + $0x198] sm:$0xf0]  ;;  %v8223_v20 = vld [vmem:[%s11466_s7 + $0x2f4] sm:$0xf] }
 0x2a1   : > { %v9786_v56 = vadd.f32 %v2712_v49, %v2639_v12  ;;  %v8170_v49 = vld [vmem:[%s11466_s7 + $0x144] sm:$0xf0]  ;;  %v6632_v12 = vor.u32 %v8168_v35, %v6631_v28  ;;  %v6700_v32 = vor.u32 %v8179_v22, %v6697_v47  ;;  %v6895_v28 = vld [vmem:[%s11466_s7 + $0x2e0] sm:$0xf]  ;;  %v8208_v47 = vld [vmem:[%s11466_s7 + $0x274] sm:$0xf0] }
 0x2a2   : > { %3464 = vmatpush.bf16.msrb.mxu1 %v6728_v62  ;;  %v6640_v50 = vor.u32 %v8170_v49, %v6639_v36  ;;  %v8166_v62 = vld [vmem:[%s11466_s7 + $0x124] sm:$0xf0]  ;;  %v2716_v49 = vadd.f32 %v9642_v31, %v2637_v0  ;;  %v8224_v31 = vld [vmem:[%s11466_s7 + $0x2f4] sm:$0xf0]  ;;  %v8203_v0 = vld [vmem:[%s11466_s7 + $0x254] sm:$0xf] }
 0x2a3   : > { %3336 = vmatpush.bf16.msra.mxu3 %v6656_v38  ;;  %v6624_v18 = vor.u32 %v8166_v62, %v6623_v33  ;;  %v6687_v38 = vld [vmem:[%s11466_s7 + $0x180] sm:$0xf]  ;;  %v6904_v40 = vor.u32 %v8224_v31, %v6903_v43  ;;  %v6825_v33 = vld [vmem:[%s11466_s7 + $0x278] sm:$0xf0]  ;;  %v8201_v31 = vld [vmem:[%s11466_s7 + $0x244] sm:$0xf] }
 0x2a4   : > { %v2714_v42 = vpop.f32.mrf.mxu3  ;;  %3352 = vmatpush.bf16.msrb.mxu0 %v6636_v23  ;;  %3481 = vmatpush.bf16.msrb.mxu2 %v6700_v32  ;;  %v6688_v13 = vor.u32 %v8178_v15, %v6687_v38  ;;  %v6897_v23 = vld [vmem:[%s11466_s7 + $0x2e8] sm:$0xf0]  ;;  %v8207_v32 = vld [vmem:[%s11466_s7 + $0x274] sm:$0xf]  ;;  %v8220_v38 = vld [vmem:[%s11466_s7 + $0x2d4] sm:$0xf0] }
 0x2a5   : > { %v6689_v42 = vld [vmem:[%s11466_s7 + $0x188] sm:$0xf0]  ;;  %v6900_v19 = vor.u32 %v8221_v37, %v6897_v23  ;;  %v8219_v15 = vld [vmem:[%s11466_s7 + $0x2d4] sm:$0xf]  ;;  %v6791_v37 = vld [vmem:[%s11466_s7 + $0x230] sm:$0xf] }
 0x2a6   : > { %v2635_v45 = vpop.f32.mrf.mxu2  ;;  %3465 = vmatpush.bf16.msrb.mxu1 %v6720_v2  ;;  %v6692_v6 = vor.u32 %v8177_v52, %v6689_v42  ;;  %v8163_v2 = vld [vmem:[%s11466_s7 + $0x114] sm:$0xf]  ;;  %v6889_v52 = vld [vmem:[%s11466_s7 + $0x2d8] sm:$0xf0]  ;;  %v6824_v42 = vor.u32 %v8208_v47, %v6823_v60  ;;  %v8200_v23 = vld [vmem:[%s11466_s7 + $0x234] sm:$0xf0] }
 0x2a7   : > { %3337 = vmatpush.bf16.msra.mxu3 %v6648_v46  ;;  %v2382_v45 = vadd.f32 %v9514_v4, %v9518_v3  ;;  %v6620_v51 = vor.u32 %v8163_v2, %v6617_v5  ;;  %v6608_v46 = vor.u32 %v8162_v61, %v6607_v17  ;;  %v6609_v4 = vld [vmem:[%s11466_s7 + $0x108] sm:$0xf0]  ;;  %v6892_v17 = vor.u32 %v8219_v15, %v6889_v52  ;;  %v6879_v61 = vld [vmem:[%s11466_s7 + $0x2c0] sm:$0xf]  ;;  %v6793_v60 = vld [vmem:[%s11466_s7 + $0x238] sm:$0xf0] }
 0x2a8   : > { %3353 = vmatpush.bf16.msrb.mxu0 %v6628_v26  ;;  %3482 = vmatpush.bf16.msrb.mxu2 %v6692_v6  ;;  %v6612_v48 = vor.u32 %v8161_v53, %v6609_v4  ;;  %v6828_v6 = vor.u32 %v8207_v32, %v6825_v33  ;;  %v8217_v53 = vld [vmem:[%s11466_s7 + $0x2c4] sm:$0xf]  ;;  %v6881_v4 = vld [vmem:[%s11466_s7 + $0x2c8] sm:$0xf0]  ;;  %v6855_v47 = vld [vmem:[%s11466_s7 + $0x290] sm:$0xf] }
 0x2a9   : > { %v2465_v3 = vadd.f32 %v9511_v11, %v2382_v45  ;;  %v8205_v45 = vld [vmem:[%s11466_s7 + $0x264] sm:$0xf]  ;;  %v8212_v32 = vld [vmem:[%s11466_s7 + $0x294] sm:$0xf0]  ;;  %v8211_v33 = vld [vmem:[%s11466_s7 + $0x294] sm:$0xf] }
 0x2aa   : > { %3466 = vmatpush.bf16.msrb.mxu1 %v6712_v30  ;;  %v8198_v15 = vld [vmem:[%s11466_s7 + $0x224] sm:$0xf0] }
 0x2ab   : > { %3338 = vmatpush.bf16.msra.mxu3 %v6640_v50  ;;  %v2549_v44 = vadd.f32 %v9562_v29, %v2465_v3  ;;  %v9938_v29 = vld [vmem:[%s11465_s6] ss:$0 sm:$0xff] }
 0x2ac   : > { %3354 = vmatpush.bf16.msrb.mxu0 %v6620_v51 }
 0x2ad   : > { %v2638_v7 = vadd.f32 %v9723_v58, %v2549_v44  ;;  %v6807_v44 = vld [vmem:[%s11466_s7 + $0x250] sm:$0xf] }
 0x2ae   : > { %3467 = vmatpush.bf16.msrb.mxu1 %v6704_v9 }
 0x2af   : > { %3339 = vmatpush.bf16.msra.mxu3 %v6632_v12  ;;  %v2717_v30 = vadd.f32 %v9703_v1, %v2638_v7  ;;  %v8222_v12 = vld [vmem:[%s11466_s7 + $0x2e4] sm:$0xf0] }
 0x2b0   : > { %3355 = vmatpush.bf16.msrb.mxu0 %v6612_v48  ;;  %v6896_v62 = vor.u32 %v8222_v12, %v6895_v28  ;;  %v6816_v48 = vor.u32 %v8206_v54, %v6815_v34  ;;  %v6865_v28 = vld [vmem:[%s11466_s7 + $0x2a8] sm:$0xf0]  ;;  %v6847_v54 = vld [vmem:[%s11466_s7 + $0x280] sm:$0xf] }
 0x2b2   : > { %3468 = vmatpush.bf16.msrb.mxu1 %v6696_v27 }
 0x2b3   : > { %3340 = vmatpush.bf16.msra.mxu3 %v6624_v18  ;;  %v6887_v18 = vld [vmem:[%s11466_s7 + $0x2d0] sm:$0xf] }
 0x2b4   : > { %v6888_v51 = vor.u32 %v8220_v38, %v6887_v18  ;;  %v6783_v38 = vld [vmem:[%s11466_s7 + $0x220] sm:$0xf] }
 0x2b6   : > { %3469 = vmatpush.bf16.msrb.mxu1 %v6688_v13 }
 0x2b7   : > { %3341 = vmatpush.bf16.msra.mxu3 %v6616_v16  ;;  %v6817_v16 = vld [vmem:[%s11466_s7 + $0x268] sm:$0xf0] }
 0x2bb   : > { %3342 = vmatpush.bf16.msra.mxu3 %v6608_v46  ;;  %v8218_v46 = vld [vmem:[%s11466_s7 + $0x2c4] sm:$0xf0] }
 0x2bd   : > { %v2791_v63 = vpop.f32.mrf.mxu0 }
 0x2be   : > { %v2800_v50 = vadd.f32 %v2791_v63, %v2716_v49  ;;  %v6820_v63 = vor.u32 %v8205_v45, %v6817_v16  ;;  %v6884_v49 = vor.u32 %v8217_v53, %v6881_v4  ;;  %v8209_v45 = vld [vmem:[%s11466_s7 + $0x284] sm:$0xf]  ;;  %v6849_v16 = vld [vmem:[%s11466_s7 + $0x288] sm:$0xf0]  ;;  %v8255_v53 = vld [vmem:[%s11466_s7 + $0x3f4] sm:$0xf] }
 0x2bf   : > { %v7065_v4 = vld [vmem:[%s11466_s7 + $0x3f8] sm:$0xf0] }
 0x2c5   : > { %v2793_v25 = vpop.f32.mrf.mxu0 }
 0x2c6   : > { %v2801_v36 = vadd.f32 %v2793_v25, %v2717_v30  ;;  %v8204_v30 = vld [vmem:[%s11466_s7 + $0x254] sm:$0xf0]  ;;  %v6809_v25 = vld [vmem:[%s11466_s7 + $0x258] sm:$0xf0] }
 0x2c7   : > { %v6812_v43 = vor.u32 %v8203_v0, %v6809_v25  ;;  %v7068_v25 = vor.u32 %v8255_v53, %v7065_v4  ;;  %v6959_v53 = vld [vmem:[%s11466_s7 + $0x340] sm:$0xf]  ;;  %v8234_v4 = vld [vmem:[%s11466_s7 + $0x344] sm:$0xf0] }
 0x2ca   : > { %v2880_v41 = vpop.f32.mrf.mxu1 }
 0x2cb   : > { %v2889_v11 = vadd.f32 %v2880_v41, %v2800_v50  ;;  %v6871_v41 = vld [vmem:[%s11466_s7 + $0x2b0] sm:$0xf] }
 0x2cd   : > { %v2796_v21 = vpop.f32.mrf.mxu0 }
 0x2ce   : > { %v2802_v58 = vadd.f32 %v2796_v21, %v9786_v56  ;;  %v2959_v39 = vpop.f32.mrf.mxu2  ;;  %v6905_v56 = vld [vmem:[%s11466_s7 + $0x2f8] sm:$0xf0]  ;;  %v8215_v21 = vld [vmem:[%s11466_s7 + $0x2b4] sm:$0xf] }
 0x2cf   : > { %v2968_v1 = vadd.f32 %v2959_v39, %v2889_v11  ;;  %v6908_v57 = vor.u32 %v8223_v20, %v6905_v56  ;;  %v8216_v11 = vld [vmem:[%s11466_s7 + $0x2b4] sm:$0xf0]  ;;  %v6801_v20 = vld [vmem:[%s11466_s7 + $0x248] sm:$0xf0] }
 0x2d0   : > { %v6872_v56 = vor.u32 %v8216_v11, %v6871_v41  ;;  %v6804_v12 = vor.u32 %v8201_v31, %v6801_v20  ;;  %v8253_v41 = vld [vmem:[%s11466_s7 + $0x3e4] sm:$0xf]  ;;  %v8240_v31 = vld [vmem:[%s11466_s7 + $0x374] sm:$0xf0]  ;;  %v8239_v20 = vld [vmem:[%s11466_s7 + $0x374] sm:$0xf] }
 0x2d1   : > { %v2975_v14 = vadd.f32 %v9938_v29, %v2968_v1  ;;  %v6808_v1 = vor.u32 %v8204_v30, %v6807_v44  ;;  %v6777_v44 = vld [vmem:[%s11466_s7 + $0x218] sm:$0xf0]  ;;  %v6852_v30 = vor.u32 %v8209_v45, %v6849_v16  ;;  %v7031_v45 = vld [vmem:[%s11466_s7 + $0x3b0] sm:$0xf]  ;;  %v8248_v16 = vld [vmem:[%s11466_s7 + $0x3b4] sm:$0xf0] }
 0x2d2   : > { %v2882_v59 = vpop.f32.mrf.mxu1 }
 0x2d3   : > { %v2978_v10 = vmax.f32 %v2975_v14, 0.0  ;;  %v2890_v9 = vadd.f32 %v2882_v59, %v2801_v36  ;;  %v6880_v36 = vor.u32 %v8218_v46, %v6879_v61  ;;  %v8202_v14 = vld [vmem:[%s11466_s7 + $0x244] sm:$0xf0]  ;;  %v6784_v61 = vor.u32 %v8198_v15, %v6783_v38 }
 0x2d5   : > { %v2981_v35 = vpack.c.bf16 %v2978_v10, %v2978_v10  ;;  %v2798_v55 = vpop.f32.mrf.mxu0  ;;  %v6863_v10 = vld [vmem:[%s11466_s7 + $0x2a0] sm:$0xf] }
 0x2d6   : > { %v2961_v8 = vpop.f32.mrf.mxu2 }
 0x2d7   : > { %v3018_v22 = vunpack.c.l.b16 %v2981_v35  ;;  %v2969_v27 = vadd.f32 %v2961_v8, %v2890_v9  ;;  %3218 = vmatmul.bf16.vlgmr.msra.gmra.mxu1 %v2981_v35  ;;  %3231 = vmatmul.bf16.vlgmr.msra.gmra.mxu2 %v2981_v35  ;;  %v8214_v9 = vld [vmem:[%s11466_s7 + $0x2a4] sm:$0xf0]  ;;  %v8199_v8 = vld [vmem:[%s11466_s7 + $0x234] sm:$0xf] }
 0x2d8   : > { %3716 = vmatpush.bf16.msra.mxu1 %v6904_v40  ;;  %3729 = vmatpush.bf16.msra.mxu2 %v6908_v57  ;;  %v8213_v57 = vld [vmem:[%s11466_s7 + $0x2a4] sm:$0xf]  ;;  %v6796_v18 = vor.u32 %v8199_v8, %v6793_v60  ;;  %v6975_v8 = vld [vmem:[%s11466_s7 + $0x360] sm:$0xf]  ;;  %v8238_v60 = vld [vmem:[%s11466_s7 + $0x364] sm:$0xf0] }
 0x2d9   : > { %v9981_v24 = vpack.c.b16 %v3018_v22, %v3018_v22  ;;  %v9984_v26 = vadd.f32 %v9938_v29, %v2969_v27  ;;  %v6864_v22 = vor.u32 %v8214_v9, %v6863_v10  ;;  %v6868_v27 = vor.u32 %v8213_v57, %v6865_v28 }
 0x2da   : > { %v2885_v13 = vpop.f32.mrf.mxu1  ;;  %v6976_v15 = vor.u32 %v8238_v60, %v6975_v8  ;;  %v8288_v8 = vld [vmem:[%s11466_s7 + $0x4f4] sm:$0xf0] }
 0x2db   : > { %v2891_v2 = vadd.f32 %v2885_v13, %v2802_v58  ;;  %v10002_v5 = vshrl.u32 %v9981_v24, 16  ;;  %v6873_v58 = vld [vmem:[%s11466_s7 + $0x2b8] sm:$0xf0]  ;;  %v3253_v52 = vrot.slane %v9981_v24, 1  ;;  %v8197_v13 = vld [vmem:[%s11466_s7 + $0x224] sm:$0xf] }
 0x2dc   : > { %3717 = vmatpush.bf16.msra.mxu1 %v6896_v62  ;;  %3730 = vmatpush.bf16.msra.mxu2 %v6900_v19  ;;  %v6876_v59 = vor.u32 %v8215_v21, %v6873_v58  ;;  %v6857_v62 = vld [vmem:[%s11466_s7 + $0x298] sm:$0xf0]  ;;  %v6792_v19 = vor.u32 %v8200_v23, %v6791_v37  ;;  %v7057_v58 = vld [vmem:[%s11466_s7 + $0x3e8] sm:$0xf0]  ;;  %v3507_v38 = vrot.slane %v9981_v24, 2 }
 0x2dd   : > { %3112 = vmatmul.bf16.vlgmr.msrb.gmra.mxu3 %v10002_v5  ;;  %3125 = vmatmul.bf16.vlgmr.msra.gmra.mxu0 %v10002_v5  ;;  %v3380_v40 = vrot.slane %v10002_v5, 1  ;;  %v6860_v34 = vor.u32 %v8211_v33, %v6857_v62  ;;  %v7060_v9 = vor.u32 %v8253_v41, %v7057_v58  ;;  %v7039_v33 = vld [vmem:[%s11466_s7 + $0x3c0] sm:$0xf]  ;;  %v8250_v62 = vld [vmem:[%s11466_s7 + $0x3c4] sm:$0xf0] }
 0x2de   : > { %3589 = vmatpush.bf16.msrb.mxu3 %v6824_v42  ;;  %3602 = vmatpush.bf16.msra.mxu0 %v6828_v6  ;;  %v2964_v3 = vpop.f32.mrf.mxu2  ;;  %v6785_v42 = vld [vmem:[%s11466_s7 + $0x228] sm:$0xf0]  ;;  %v6856_v6 = vor.u32 %v8212_v32, %v6855_v47  ;;  %v6951_v41 = vld [vmem:[%s11466_s7 + $0x330] sm:$0xf]  ;;  %v6953_v58 = vld [vmem:[%s11466_s7 + $0x338] sm:$0xf0] }
 0x2df   : > { %v2970_v7 = vadd.f32 %v2964_v3, %v2891_v2  ;;  %v8210_v2 = vld [vmem:[%s11466_s7 + $0x284] sm:$0xf0]  ;;  %v6788_v46 = vor.u32 %v8197_v13, %v6785_v42  ;;  %v6775_v3 = vld [vmem:[%s11466_s7 + $0x210] sm:$0xf]  ;;  %v8236_v42 = vld [vmem:[%s11466_s7 + $0x354] sm:$0xf0] }
 0x2e0   : > { %3718 = vmatpush.bf16.msra.mxu1 %v6888_v51  ;;  %3731 = vmatpush.bf16.msra.mxu2 %v6892_v17  ;;  %v7063_v51 = vld [vmem:[%s11466_s7 + $0x3f0] sm:$0xf]  ;;  %v8256_v17 = vld [vmem:[%s11466_s7 + $0x3f4] sm:$0xf0] }
 0x2e1   : > { %v10040_v50 = vadd.f32 %v9938_v29, %v2970_v7  ;;  %v6799_v29 = vld [vmem:[%s11466_s7 + $0x240] sm:$0xf]  ;;  %v6848_v7 = vor.u32 %v8210_v2, %v6847_v54  ;;  %v7064_v0 = vor.u32 %v8256_v17, %v7063_v51  ;;  %v6967_v13 = vld [vmem:[%s11466_s7 + $0x350] sm:$0xf]  ;;  %v7040_v54 = vor.u32 %v8250_v62, %v7039_v33  ;;  %v8247_v51 = vld [vmem:[%s11466_s7 + $0x3b4] sm:$0xf] }
 0x2e2   : > { %3590 = vmatpush.bf16.msrb.mxu3 %v6816_v48  ;;  %3603 = vmatpush.bf16.msra.mxu0 %v6820_v63  ;;  %v2887_v39 = vpop.f32.mrf.mxu1  ;;  %v6800_v55 = vor.u32 %v8202_v14, %v6799_v29  ;;  %v8196_v48 = vld [vmem:[%s11466_s7 + $0x214] sm:$0xf0]  ;;  %v8195_v63 = vld [vmem:[%s11466_s7 + $0x214] sm:$0xf]  ;;  %v6769_v29 = vld [vmem:[%s11466_s7 + $0x208] sm:$0xf0] }
 0x2e3   : > { %v6776_v11 = vor.u32 %v8196_v48, %v6775_v3  ;;  %v6780_v21 = vor.u32 %v8195_v63, %v6777_v44  ;;  %v6767_v39 = vld [vmem:[%s11466_s7 + $0x200] sm:$0xf]  ;;  %v6983_v14 = vld [vmem:[%s11466_s7 + $0x370] sm:$0xf]  ;;  %v7033_v17 = vld [vmem:[%s11466_s7 + $0x3b8] sm:$0xf0]  ;;  %v7032_v63 = vor.u32 %v8248_v16, %v7031_v45 }
 0x2e4   : > { %3719 = vmatpush.bf16.msra.mxu1 %v6880_v36  ;;  %3732 = vmatpush.bf16.msra.mxu2 %v6884_v49  ;;  %v7055_v36 = vld [vmem:[%s11466_s7 + $0x3e0] sm:$0xf]  ;;  %v8254_v49 = vld [vmem:[%s11466_s7 + $0x3e4] sm:$0xf0]  ;;  %v6984_v37 = vor.u32 %v8240_v31, %v6983_v14  ;;  %v8233_v3 = vld [vmem:[%s11466_s7 + $0x344] sm:$0xf]  ;;  %v7036_v44 = vor.u32 %v8247_v51, %v7033_v17 }
 0x2e5   : > { %v7056_v10 = vor.u32 %v8254_v49, %v7055_v36  ;;  %v6961_v48 = vld [vmem:[%s11466_s7 + $0x348] sm:$0xf0]  ;;  %v6960_v36 = vor.u32 %v8234_v4, %v6959_v53  ;;  %v8243_v14 = vld [vmem:[%s11466_s7 + $0x394] sm:$0xf]  ;;  %v7017_v31 = vld [vmem:[%s11466_s7 + $0x398] sm:$0xf0] }
 0x2e6   : > { %3591 = vmatpush.bf16.msrb.mxu3 %v6808_v1  ;;  %3604 = vmatpush.bf16.msra.mxu0 %v6812_v43  ;;  %v2966_v35 = vpop.f32.mrf.mxu2  ;;  %v8194_v1 = vld [vmem:[%s11466_s7 + $0x204] sm:$0xf0]  ;;  %v8193_v43 = vld [vmem:[%s11466_s7 + $0x204] sm:$0xf]  ;;  %v6964_v49 = vor.u32 %v8233_v3, %v6961_v48  ;;  %v8228_v33 = vld [vmem:[%s11466_s7 + $0x314] sm:$0xf0] }
 0x2e7   : > { %3470 = vmatmul.bf16.vlgmr.msrb.gmra.mxu1 %v3380_v40  ;;  %3483 = vmatmul.bf16.vlgmr.msrb.gmra.mxu2 %v3380_v40  ;;  %v7047_v40 = vld [vmem:[%s11466_s7 + $0x3d0] sm:$0xf]  ;;  %v6768_v57 = vor.u32 %v8194_v1, %v6767_v39  ;;  %v6772_v28 = vor.u32 %v8193_v43, %v6769_v29  ;;  %v8252_v35 = vld [vmem:[%s11466_s7 + $0x3d4] sm:$0xf0]  ;;  %v8227_v62 = vld [vmem:[%s11466_s7 + $0x314] sm:$0xf] }
 0x2e8   : > { %3720 = vmatpush.bf16.msra.mxu1 %v6872_v56  ;;  %3733 = vmatpush.bf16.msra.mxu2 %v6876_v59  ;;  %v6985_v56 = vld [vmem:[%s11466_s7 + $0x378] sm:$0xf0]  ;;  %v3634_v59 = vrot.slane %v10002_v5, 2  ;;  %v7048_v47 = vor.u32 %v8252_v35, %v7047_v40  ;;  %v7015_v43 = vld [vmem:[%s11466_s7 + $0x390] sm:$0xf]  ;;  %v3888_v3 = vrot.slane %v10002_v5, 3 }
 0x2e9   : > { %v6988_v23 = vor.u32 %v8239_v20, %v6985_v56  ;;  %v8244_v29 = vld [vmem:[%s11466_s7 + $0x394] sm:$0xf0]  ;;  %v6945_v40 = vld [vmem:[%s11466_s7 + $0x328] sm:$0xf0]  ;;  %v7007_v35 = vld [vmem:[%s11466_s7 + $0x380] sm:$0xf] }
 0x2ea   : > { %3592 = vmatpush.bf16.msrb.mxu3 %v6800_v55  ;;  %3605 = vmatpush.bf16.msra.mxu0 %v6804_v12  ;;  %v8251_v55 = vld [vmem:[%s11466_s7 + $0x3d4] sm:$0xf]  ;;  %v7049_v12 = vld [vmem:[%s11466_s7 + $0x3d8] sm:$0xf0]  ;;  %v6927_v45 = vld [vmem:[%s11466_s7 + $0x300] sm:$0xf] }
 0x2eb   : > { %v7052_v32 = vor.u32 %v8251_v55, %v7049_v12  ;;  %v8242_v55 = vld [vmem:[%s11466_s7 + $0x384] sm:$0xf0]  ;;  %v8241_v12 = vld [vmem:[%s11466_s7 + $0x384] sm:$0xf]  ;;  %v6929_v17 = vld [vmem:[%s11466_s7 + $0x308] sm:$0xf0] }
 0x2ec   : > { %3721 = vmatpush.bf16.msra.mxu1 %v6864_v22  ;;  %3734 = vmatpush.bf16.msra.mxu2 %v6868_v27  ;;  %v8237_v22 = vld [vmem:[%s11466_s7 + $0x364] sm:$0xf]  ;;  %v6977_v27 = vld [vmem:[%s11466_s7 + $0x368] sm:$0xf0]  ;;  %v8226_v16 = vld [vmem:[%s11466_s7 + $0x304] sm:$0xf0] }
 0x2ed   : > { %3343 = vmatmul.bf16.vlgmr.msra.gmra.mxu3 %v3253_v52  ;;  %3356 = vmatmul.bf16.vlgmr.msrb.gmra.mxu0 %v3253_v52  ;;  %v6980_v52 = vor.u32 %v8237_v22, %v6977_v27  ;;  %v8287_v27 = vld [vmem:[%s11466_s7 + $0x4f4] sm:$0xf]  ;;  %v8225_v51 = vld [vmem:[%s11466_s7 + $0x304] sm:$0xf]  ;;  %v7145_v4 = vld [vmem:[%s11466_s7 + $0x478] sm:$0xf0] }
 0x2ee   : > { %3593 = vmatpush.bf16.msrb.mxu3 %v6792_v19  ;;  %3606 = vmatpush.bf16.msra.mxu0 %v6796_v18  ;;  %v8249_v19 = vld [vmem:[%s11466_s7 + $0x3c4] sm:$0xf]  ;;  %v7041_v18 = vld [vmem:[%s11466_s7 + $0x3c8] sm:$0xf0]  ;;  %v8271_v53 = vld [vmem:[%s11466_s7 + $0x474] sm:$0xf] }
 0x2ef   : > { %v7044_v2 = vor.u32 %v8249_v19, %v7041_v18  ;;  %v6937_v19 = vld [vmem:[%s11466_s7 + $0x318] sm:$0xf0]  ;;  %v7008_v18 = vor.u32 %v8242_v55, %v7007_v35  ;;  %v8283_v5 = vld [vmem:[%s11466_s7 + $0x4d4] sm:$0xf]  ;;  %v7191_v35 = vld [vmem:[%s11466_s7 + $0x4b0] sm:$0xf] }
 0x2f0   : > { %3722 = vmatpush.bf16.msra.mxu1 %v6856_v6  ;;  %3735 = vmatpush.bf16.msra.mxu2 %v6860_v34  ;;  %v8235_v6 = vld [vmem:[%s11466_s7 + $0x354] sm:$0xf]  ;;  %v6969_v34 = vld [vmem:[%s11466_s7 + $0x358] sm:$0xf0]  ;;  %v8280_v55 = vld [vmem:[%s11466_s7 + $0x4b4] sm:$0xf0] }
 0x2f2   : > { %3594 = vmatpush.bf16.msrb.mxu3 %v6784_v61  ;;  %3607 = vmatpush.bf16.msra.mxu0 %v6788_v46  ;;  %v6968_v61 = vor.u32 %v8236_v42, %v6967_v13  ;;  %v6972_v46 = vor.u32 %v8235_v6, %v6969_v34  ;;  %v7215_v13 = vld [vmem:[%s11466_s7 + $0x4e0] sm:$0xf]  ;;  %v8286_v42 = vld [vmem:[%s11466_s7 + $0x4e4] sm:$0xf0]  ;;  %v8285_v6 = vld [vmem:[%s11466_s7 + $0x4e4] sm:$0xf] }
 0x2f3   : > { %v7216_v48 = vor.u32 %v8286_v42, %v7215_v13  ;;  %v7111_v13 = vld [vmem:[%s11466_s7 + $0x430] sm:$0xf]  ;;  %v8264_v42 = vld [vmem:[%s11466_s7 + $0x434] sm:$0xf0] }
 0x2f4   : > { %3723 = vmatpush.bf16.msra.mxu1 %v6848_v7  ;;  %3736 = vmatpush.bf16.msra.mxu2 %v6852_v30  ;;  %v7023_v7 = vld [vmem:[%s11466_s7 + $0x3a0] sm:$0xf]  ;;  %v8246_v30 = vld [vmem:[%s11466_s7 + $0x3a4] sm:$0xf0] }
 0x2f5   : > { %v7024_v39 = vor.u32 %v8246_v30, %v7023_v7  ;;  %v6932_v7 = vor.u32 %v8225_v51, %v6929_v17  ;;  %v7207_v30 = vld [vmem:[%s11466_s7 + $0x4d0] sm:$0xf]  ;;  %v7112_v17 = vor.u32 %v8264_v42, %v7111_v13  ;;  %v7369_v13 = vld [vmem:[%s11466_s7 + $0x5d8] sm:$0xf0]  ;;  %v7295_v42 = vld [vmem:[%s11466_s7 + $0x560] sm:$0xf] }
 0x2f6   : > { %3595 = vmatpush.bf16.msrb.mxu3 %v6776_v11  ;;  %3608 = vmatpush.bf16.msra.mxu0 %v6780_v21  ;;  %v8232_v11 = vld [vmem:[%s11466_s7 + $0x334] sm:$0xf0]  ;;  %v8231_v21 = vld [vmem:[%s11466_s7 + $0x334] sm:$0xf] }
 0x2f7   : > { %3724 = vmatmul.bf16.vlgmr.msra.gmra.mxu1 %v3634_v59  ;;  %3737 = vmatmul.bf16.vlgmr.msra.gmra.mxu2 %v3634_v59  ;;  %v6952_v20 = vor.u32 %v8232_v11, %v6951_v41  ;;  %v6956_v56 = vor.u32 %v8231_v21, %v6953_v58  ;;  %v6943_v59 = vld [vmem:[%s11466_s7 + $0x320] sm:$0xf]  ;;  %v8270_v11 = vld [vmem:[%s11466_s7 + $0x464] sm:$0xf0]  ;;  %v8269_v21 = vld [vmem:[%s11466_s7 + $0x464] sm:$0xf] }
 0x2f8   : > { %3970 = vmatpush.bf16.msrb.mxu1 %v7064_v0  ;;  %3983 = vmatpush.bf16.msrb.mxu2 %v7068_v25  ;;  %v8245_v0 = vld [vmem:[%s11466_s7 + $0x3a4] sm:$0xf]  ;;  %v7025_v25 = vld [vmem:[%s11466_s7 + $0x3a8] sm:$0xf0]  ;;  %v7135_v41 = vld [vmem:[%s11466_s7 + $0x460] sm:$0xf] }
 0x2f9   : > { %v7028_v1 = vor.u32 %v8245_v0, %v7025_v25  ;;  %v8284_v0 = vld [vmem:[%s11466_s7 + $0x4d4] sm:$0xf0]  ;;  %v7137_v58 = vld [vmem:[%s11466_s7 + $0x468] sm:$0xf0] }
 0x2fa   : > { %3596 = vmatpush.bf16.msrb.mxu3 %v6768_v57  ;;  %3609 = vmatpush.bf16.msra.mxu0 %v6772_v28  ;;  %v7016_v57 = vor.u32 %v8244_v29, %v7015_v43  ;;  %v7020_v28 = vor.u32 %v8243_v14, %v7017_v31  ;;  %v7199_v29 = vld [vmem:[%s11466_s7 + $0x4c0] sm:$0xf]  ;;  %v8282_v14 = vld [vmem:[%s11466_s7 + $0x4c4] sm:$0xf0]  ;;  %v7136_v31 = vor.u32 %v8270_v11, %v7135_v41  ;;  %v7169_v41 = vld [vmem:[%s11466_s7 + $0x488] sm:$0xf0] }
 0x2fb   : > { %v7383_v11 = vld [vmem:[%s11466_s7 + $0x5f0] sm:$0xf] }
 0x2fc   : > { %3971 = vmatpush.bf16.msrb.mxu1 %v7056_v10  ;;  %3984 = vmatpush.bf16.msrb.mxu2 %v7060_v9  ;;  %v8230_v10 = vld [vmem:[%s11466_s7 + $0x324] sm:$0xf0]  ;;  %v8229_v9 = vld [vmem:[%s11466_s7 + $0x324] sm:$0xf] }
 0x2fd   : > { %3597 = vmatmul.bf16.vlgmr.msrb.gmra.mxu3 %v3507_v38  ;;  %3610 = vmatmul.bf16.vlgmr.msra.gmra.mxu0 %v3507_v38  ;;  %v6944_v60 = vor.u32 %v8230_v10, %v6943_v59  ;;  %v6948_v22 = vor.u32 %v8229_v9, %v6945_v40  ;;  %v7127_v59 = vld [vmem:[%s11466_s7 + $0x450] sm:$0xf]  ;;  %v8268_v10 = vld [vmem:[%s11466_s7 + $0x454] sm:$0xf0]  ;;  %v8267_v9 = vld [vmem:[%s11466_s7 + $0x454] sm:$0xf] }
 0x2fe   : > { %3843 = vmatpush.bf16.msra.mxu3 %v6984_v37  ;;  %3856 = vmatpush.bf16.msrb.mxu0 %v6988_v23  ;;  %v7009_v37 = vld [vmem:[%s11466_s7 + $0x388] sm:$0xf0]  ;;  %v7223_v23 = vld [vmem:[%s11466_s7 + $0x4f0] sm:$0xf]  ;;  %v7129_v40 = vld [vmem:[%s11466_s7 + $0x458] sm:$0xf0] }
 0x2ff   : > { %v7012_v38 = vor.u32 %v8241_v12, %v7009_v37  ;;  %v7128_v12 = vor.u32 %v8268_v10, %v7127_v59  ;;  %v7132_v37 = vor.u32 %v8267_v9, %v7129_v40  ;;  %v7375_v10 = vld [vmem:[%s11466_s7 + $0x5e0] sm:$0xf]  ;;  %v8318_v9 = vld [vmem:[%s11466_s7 + $0x5e4] sm:$0xf0]  ;;  %v8317_v40 = vld [vmem:[%s11466_s7 + $0x5e4] sm:$0xf] }
 0x300   : > { %3972 = vmatpush.bf16.msrb.mxu1 %v7048_v47  ;;  %3985 = vmatpush.bf16.msrb.mxu2 %v7052_v32  ;;  %v7225_v47 = vld [vmem:[%s11466_s7 + $0x4f8] sm:$0xf0]  ;;  %v6935_v32 = vld [vmem:[%s11466_s7 + $0x310] sm:$0xf] }
 0x301   : > { %v6936_v34 = vor.u32 %v8228_v33, %v6935_v32  ;;  %v2979_v32 = vmax.f32 %v9984_v26, 0.0  ;;  %v7192_v33 = vor.u32 %v8280_v55, %v7191_v35  ;;  %v8277_v26 = vld [vmem:[%s11466_s7 + $0x4a4] sm:$0xf]  ;;  %v7377_v35 = vld [vmem:[%s11466_s7 + $0x5e8] sm:$0xf0] }
 0x302   : > { %3844 = vmatpush.bf16.msra.mxu3 %v6976_v15  ;;  %3857 = vmatpush.bf16.msrb.mxu0 %v6980_v52  ;;  %v7224_v15 = vor.u32 %v8288_v8, %v7223_v23  ;;  %v7228_v52 = vor.u32 %v8287_v27, %v7225_v47  ;;  %v8279_v23 = vld [vmem:[%s11466_s7 + $0x4b4] sm:$0xf]  ;;  %v7193_v8 = vld [vmem:[%s11466_s7 + $0x4b8] sm:$0xf0]  ;;  %v8265_v27 = vld [vmem:[%s11466_s7 + $0x444] sm:$0xf] }
 0x303   : > { %v7121_v47 = vld [vmem:[%s11466_s7 + $0x448] sm:$0xf0]  ;;  %v10484_v51 = vpack.c.bf16 %v2979_v32, %v2979_v32  ;;  %v7087_v55 = vld [vmem:[%s11466_s7 + $0x400] sm:$0xf]  ;;  %v7376_v32 = vor.u32 %v8318_v9, %v7375_v10  ;;  %v8296_v10 = vld [vmem:[%s11466_s7 + $0x534] sm:$0xf0] }
 0x304   : > { %3973 = vmatpush.bf16.msrb.mxu1 %v7040_v54  ;;  %3986 = vmatpush.bf16.msrb.mxu2 %v7044_v2  ;;  %v6940_v54 = vor.u32 %v8227_v62, %v6937_v19  ;;  %v7217_v2 = vld [vmem:[%s11466_s7 + $0x4e8] sm:$0xf0]  ;;  %v7196_v62 = vor.u32 %v8279_v23, %v7193_v8  ;;  %v7183_v19 = vld [vmem:[%s11466_s7 + $0x4a0] sm:$0xf]  ;;  %v7303_v8 = vld [vmem:[%s11466_s7 + $0x570] sm:$0xf] }
 0x305   : > { %v7089_v23 = vld [vmem:[%s11466_s7 + $0x408] sm:$0xf0]  ;;  %v8295_v9 = vld [vmem:[%s11466_s7 + $0x534] sm:$0xf] }
 0x306   : > { %3845 = vmatpush.bf16.msra.mxu3 %v6968_v61  ;;  %3858 = vmatpush.bf16.msrb.mxu0 %v6972_v46  ;;  %v7143_v61 = vld [vmem:[%s11466_s7 + $0x470] sm:$0xf]  ;;  %v8272_v46 = vld [vmem:[%s11466_s7 + $0x474] sm:$0xf0] }
 0x307   : > { %v7144_v25 = vor.u32 %v8272_v46, %v7143_v61  ;;  %v8275_v46 = vld [vmem:[%s11466_s7 + $0x494] sm:$0xf] }
 0x308   : > { %3974 = vmatpush.bf16.msrb.mxu1 %v7032_v63  ;;  %3987 = vmatpush.bf16.msrb.mxu2 %v7036_v44  ;;  %v7220_v63 = vor.u32 %v8285_v6, %v7217_v2  ;;  %v6928_v44 = vor.u32 %v8226_v16, %v6927_v45  ;;  %v8263_v6 = vld [vmem:[%s11466_s7 + $0x434] sm:$0xf]  ;;  %v7175_v45 = vld [vmem:[%s11466_s7 + $0x490] sm:$0xf]  ;;  %v8276_v16 = vld [vmem:[%s11466_s7 + $0x494] sm:$0xf0] }
 0x30a   : > { %3846 = vmatpush.bf16.msra.mxu3 %v6960_v36  ;;  %3859 = vmatpush.bf16.msrb.mxu0 %v6964_v49  ;;  %v7148_v36 = vor.u32 %v8271_v53, %v7145_v4  ;;  %v7209_v49 = vld [vmem:[%s11466_s7 + $0x4d8] sm:$0xf0]  ;;  %v7103_v4 = vld [vmem:[%s11466_s7 + $0x420] sm:$0xf] }
 0x30b   : > { %v7212_v43 = vor.u32 %v8283_v5, %v7209_v49  ;;  %v7177_v53 = vld [vmem:[%s11466_s7 + $0x498] sm:$0xf0] }
 0x30c   : > { %3975 = vmatpush.bf16.msrb.mxu1 %v7024_v39  ;;  %3988 = vmatpush.bf16.msrb.mxu2 %v7028_v1  ;;  %v3761_v39 = vrot.slane %v9981_v24, 3  ;;  %v7208_v1 = vor.u32 %v8284_v0, %v7207_v30  ;;  %v7201_v24 = vld [vmem:[%s11466_s7 + $0x4c8] sm:$0xf0]  ;;  %v7167_v30 = vld [vmem:[%s11466_s7 + $0x480] sm:$0xf] }
 0x30d   : > { %v8274_v0 = vld [vmem:[%s11466_s7 + $0x484] sm:$0xf0] }
 0x30e   : > { %3847 = vmatpush.bf16.msra.mxu3 %v6952_v20  ;;  %3860 = vmatpush.bf16.msrb.mxu0 %v6956_v56  ;;  %v7140_v20 = vor.u32 %v8269_v21, %v7137_v58  ;;  %v8281_v56 = vld [vmem:[%s11466_s7 + $0x4c4] sm:$0xf]  ;;  %v8320_v21 = vld [vmem:[%s11466_s7 + $0x5f4] sm:$0xf0]  ;;  %v8319_v58 = vld [vmem:[%s11466_s7 + $0x5f4] sm:$0xf] }
 0x310   : > { %3976 = vmatpush.bf16.msrb.mxu1 %v7016_v57  ;;  %3989 = vmatpush.bf16.msrb.mxu2 %v7020_v28  ;;  %v7200_v57 = vor.u32 %v8282_v14, %v7199_v29  ;;  %v7204_v28 = vor.u32 %v8281_v56, %v7201_v24  ;;  %v8259_v29 = vld [vmem:[%s11466_s7 + $0x414] sm:$0xf]  ;;  %v7097_v14 = vld [vmem:[%s11466_s7 + $0x418] sm:$0xf0]  ;;  %v7384_v24 = vor.u32 %v8320_v21, %v7383_v11  ;;  %v8298_v11 = vld [vmem:[%s11466_s7 + $0x544] sm:$0xf0] }
 0x311   : > { %v8297_v21 = vld [vmem:[%s11466_s7 + $0x544] sm:$0xf] }
 0x312   : > { %3848 = vmatpush.bf16.msra.mxu3 %v6944_v60  ;;  %3861 = vmatpush.bf16.msrb.mxu0 %v6948_v22  ;;  %v7119_v60 = vld [vmem:[%s11466_s7 + $0x440] sm:$0xf]  ;;  %v8266_v22 = vld [vmem:[%s11466_s7 + $0x444] sm:$0xf0] }
 0x314   : > { %3977 = vmatpush.bf16.msrb.mxu1 %v7008_v18  ;;  %3990 = vmatpush.bf16.msrb.mxu2 %v7012_v38  ;;  %v8278_v18 = vld [vmem:[%s11466_s7 + $0x4a4] sm:$0xf0]  ;;  %v7120_v38 = vor.u32 %v8266_v22, %v7119_v60  ;;  %v8304_v60 = vld [vmem:[%s11466_s7 + $0x574] sm:$0xf0]  ;;  %v8303_v22 = vld [vmem:[%s11466_s7 + $0x574] sm:$0xf] }
 0x316   : > { %3849 = vmatpush.bf16.msra.mxu3 %v6936_v34  ;;  %3862 = vmatpush.bf16.msrb.mxu0 %v6940_v54  ;;  %v7113_v34 = vld [vmem:[%s11466_s7 + $0x438] sm:$0xf0]  ;;  %v7184_v54 = vor.u32 %v8278_v18, %v7183_v19  ;;  %v7367_v18 = vld [vmem:[%s11466_s7 + $0x5d0] sm:$0xf] }
 0x317   : > { %3978 = vmatmul.bf16.vlgmr.msrb.gmra.mxu1 %v3888_v3  ;;  %3991 = vmatmul.bf16.vlgmr.msrb.gmra.mxu2 %v3888_v3  ;;  %v7116_v61 = vor.u32 %v8263_v6, %v7113_v34  ;;  %v8262_v3 = vld [vmem:[%s11466_s7 + $0x424] sm:$0xf0]  ;;  %v8301_v34 = vld [vmem:[%s11466_s7 + $0x564] sm:$0xf] }
 0x318   : > { %4227 = vmatpush.bf16.msra.mxu1 %v7224_v15  ;;  %4240 = vmatpush.bf16.msra.mxu2 %v7228_v52  ;;  %v7124_v15 = vor.u32 %v8265_v27, %v7121_v47  ;;  %v7185_v52 = vld [vmem:[%s11466_s7 + $0x4a8] sm:$0xf0]  ;;  %v7104_v5 = vor.u32 %v8262_v3, %v7103_v4  ;;  %v7305_v27 = vld [vmem:[%s11466_s7 + $0x578] sm:$0xf0]  ;;  %v8302_v6 = vld [vmem:[%s11466_s7 + $0x564] sm:$0xf0] }
 0x319   : > { %v7188_v2 = vor.u32 %v8277_v26, %v7185_v52  ;;  %v7308_v26 = vor.u32 %v8303_v22, %v7305_v27  ;;  %v8315_v52 = vld [vmem:[%s11466_s7 + $0x5d4] sm:$0xf]  ;;  %v7361_v4 = vld [vmem:[%s11466_s7 + $0x5c8] sm:$0xf0]  ;;  %v7287_v3 = vld [vmem:[%s11466_s7 + $0x550] sm:$0xf] }
 0x31a   : > { %3850 = vmatpush.bf16.msra.mxu3 %v6928_v44  ;;  %3863 = vmatpush.bf16.msrb.mxu0 %v6932_v7  ;;  %v7176_v44 = vor.u32 %v8276_v16, %v7175_v45  ;;  %v7180_v7 = vor.u32 %v8275_v46, %v7177_v53  ;;  %v7372_v45 = vor.u32 %v8315_v52, %v7369_v13  ;;  %v7359_v16 = vld [vmem:[%s11466_s7 + $0x5c0] sm:$0xf]  ;;  %v8313_v53 = vld [vmem:[%s11466_s7 + $0x5c4] sm:$0xf]  ;;  %v8294_v22 = vld [vmem:[%s11466_s7 + $0x524] sm:$0xf0] }
 0x31b   : > { %v8293_v27 = vld [vmem:[%s11466_s7 + $0x524] sm:$0xf]  ;;  %v7329_v52 = vld [vmem:[%s11466_s7 + $0x588] sm:$0xf0]  ;;  %v7543_v13 = vld [vmem:[%s11466_s7 + $0x6f0] sm:$0xf] }
 0x31c   : > { %4228 = vmatpush.bf16.msra.mxu1 %v7216_v48  ;;  %4241 = vmatpush.bf16.msra.mxu2 %v7220_v63  ;;  %v8261_v48 = vld [vmem:[%s11466_s7 + $0x424] sm:$0xf]  ;;  %v7105_v63 = vld [vmem:[%s11466_s7 + $0x428] sm:$0xf0] }
 0x31d   : > { %3851 = vmatmul.bf16.vlgmr.msra.gmra.mxu3 %v3761_v39  ;;  %3864 = vmatmul.bf16.vlgmr.msrb.gmra.mxu0 %v3761_v39  ;;  %v7108_v49 = vor.u32 %v8261_v48, %v7105_v63  ;;  %v7385_v39 = vld [vmem:[%s11466_s7 + $0x5f8] sm:$0xf0]  ;;  %v8300_v48 = vld [vmem:[%s11466_s7 + $0x554] sm:$0xf0]  ;;  %v8299_v63 = vld [vmem:[%s11466_s7 + $0x554] sm:$0xf] }
 0x31e   : > { %4095 = vmatpush.bf16.msrb.mxu3 %v7144_v25  ;;  %4108 = vmatpush.bf16.msra.mxu0 %v7148_v36  ;;  %v8273_v25 = vld [vmem:[%s11466_s7 + $0x484] sm:$0xf]  ;;  %v4141_v36 = vunpack.c.l.b16 %v10484_v51  ;;  %v7388_v59 = vor.u32 %v8319_v58, %v7385_v39  ;;  %v7281_v58 = vld [vmem:[%s11466_s7 + $0x548] sm:$0xf0] }
 0x320   : > { %4229 = vmatpush.bf16.msra.mxu1 %v7208_v1  ;;  %4242 = vmatpush.bf16.msra.mxu2 %v7212_v43  ;;  %v7095_v1 = vld [vmem:[%s11466_s7 + $0x410] sm:$0xf]  ;;  %v8260_v43 = vld [vmem:[%s11466_s7 + $0x414] sm:$0xf0]  ;;  %v10541_v56 = vpack.c.b16 %v4141_v36, %v4141_v36  ;;  %v7288_v36 = vor.u32 %v8300_v48, %v7287_v3  ;;  %v8350_v3 = vld [vmem:[%s11466_s7 + $0x6e4] sm:$0xf0] }
 0x321   : > { %v8349_v48 = vld [vmem:[%s11466_s7 + $0x6e4] sm:$0xf] }
 0x322   : > { %4096 = vmatpush.bf16.msrb.mxu3 %v7136_v31  ;;  %4109 = vmatpush.bf16.msra.mxu0 %v7140_v20  ;;  %v7168_v31 = vor.u32 %v8274_v0, %v7167_v30  ;;  %v7172_v20 = vor.u32 %v8273_v25, %v7169_v41  ;;  %v10580_v47 = vshrl.u32 %v10541_v56, 16  ;;  %v7364_v30 = vor.u32 %v8313_v53, %v7361_v4  ;;  %v7351_v0 = vld [vmem:[%s11466_s7 + $0x5b0] sm:$0xf]  ;;  %v8312_v25 = vld [vmem:[%s11466_s7 + $0x5b4] sm:$0xf0] }
 0x323   : > { %v7279_v41 = vld [vmem:[%s11466_s7 + $0x540] sm:$0xf]  ;;  %v7352_v39 = vor.u32 %v8312_v25, %v7351_v0  ;;  %v8290_v0 = vld [vmem:[%s11466_s7 + $0x504] sm:$0xf0]  ;;  %v8289_v25 = vld [vmem:[%s11466_s7 + $0x504] sm:$0xf] }
 0x324   : > { %4230 = vmatpush.bf16.msra.mxu1 %v7200_v57  ;;  %4243 = vmatpush.bf16.msra.mxu2 %v7204_v28  ;;  %v7096_v57 = vor.u32 %v8260_v43, %v7095_v1  ;;  %v7100_v28 = vor.u32 %v8259_v29, %v7097_v14  ;;  %v7343_v43 = vld [vmem:[%s11466_s7 + $0x5a0] sm:$0xf]  ;;  %v8310_v29 = vld [vmem:[%s11466_s7 + $0x5a4] sm:$0xf0]  ;;  %v7280_v14 = vor.u32 %v8298_v11, %v7279_v41  ;;  %v7465_v41 = vld [vmem:[%s11466_s7 + $0x678] sm:$0xf0] }
 0x325   : > { %v7535_v4 = vld [vmem:[%s11466_s7 + $0x6e0] sm:$0xf]  ;;  %v4399_v11 = vrot.slane %v10580_v47, 1 }
 0x326   : > { %4097 = vmatpush.bf16.msrb.mxu3 %v7128_v12  ;;  %4110 = vmatpush.bf16.msra.mxu0 %v7132_v37  ;;  %v8258_v12 = vld [vmem:[%s11466_s7 + $0x404] sm:$0xf0]  ;;  %v8257_v37 = vld [vmem:[%s11466_s7 + $0x404] sm:$0xf] }
 0x327   : > { %v7092_v19 = vor.u32 %v8257_v37, %v7089_v23  ;;  %v8307_v23 = vld [vmem:[%s11466_s7 + $0x594] sm:$0xf] }
 0x328   : > { %4231 = vmatpush.bf16.msra.mxu1 %v7192_v33  ;;  %4244 = vmatpush.bf16.msra.mxu2 %v7196_v62  ;;  %v7380_v33 = vor.u32 %v8317_v40, %v7377_v35  ;;  %v7088_v62 = vor.u32 %v8258_v12, %v7087_v55  ;;  %v7273_v40 = vld [vmem:[%s11466_s7 + $0x538] sm:$0xf0]  ;;  %v7335_v35 = vld [vmem:[%s11466_s7 + $0x590] sm:$0xf]  ;;  %v8308_v55 = vld [vmem:[%s11466_s7 + $0x594] sm:$0xf0] }
 0x329   : > { %v7276_v37 = vor.u32 %v8295_v9, %v7273_v40  ;;  %v8333_v9 = vld [vmem:[%s11466_s7 + $0x664] sm:$0xf]  ;;  %v7457_v40 = vld [vmem:[%s11466_s7 + $0x668] sm:$0xf0] }
 0x32a   : > { %4098 = vmatpush.bf16.msrb.mxu3 %v7120_v38  ;;  %4111 = vmatpush.bf16.msra.mxu0 %v7124_v15  ;;  %v8316_v38 = vld [vmem:[%s11466_s7 + $0x5d4] sm:$0xf0]  ;;  %v7304_v15 = vor.u32 %v8304_v60, %v7303_v8  ;;  %v7337_v8 = vld [vmem:[%s11466_s7 + $0x598] sm:$0xf0]  ;;  %v7263_v60 = vld [vmem:[%s11466_s7 + $0x520] sm:$0xf] }
 0x32c   : > { %4232 = vmatpush.bf16.msra.mxu1 %v7184_v54  ;;  %4245 = vmatpush.bf16.msra.mxu2 %v7188_v2  ;;  %v7297_v54 = vld [vmem:[%s11466_s7 + $0x568] sm:$0xf0]  ;;  %v7368_v2 = vor.u32 %v8316_v38, %v7367_v18  ;;  %v8306_v18 = vld [vmem:[%s11466_s7 + $0x584] sm:$0xf0]  ;;  %v8305_v38 = vld [vmem:[%s11466_s7 + $0x584] sm:$0xf] }
 0x32d   : > { %v7300_v46 = vor.u32 %v8301_v34, %v7297_v54  ;;  %v7545_v34 = vld [vmem:[%s11466_s7 + $0x6f8] sm:$0xf0]  ;;  %v7255_v54 = vld [vmem:[%s11466_s7 + $0x510] sm:$0xf] }
 0x32e   : > { %4099 = vmatpush.bf16.msrb.mxu3 %v7112_v17  ;;  %4112 = vmatpush.bf16.msra.mxu0 %v7116_v61  ;;  %v8314_v17 = vld [vmem:[%s11466_s7 + $0x5c4] sm:$0xf0]  ;;  %v7296_v61 = vor.u32 %v8302_v6, %v7295_v42  ;;  %v8352_v42 = vld [vmem:[%s11466_s7 + $0x6f4] sm:$0xf0]  ;;  %v8351_v6 = vld [vmem:[%s11466_s7 + $0x6f4] sm:$0xf] }
 0x32f   : > { %v7548_v53 = vor.u32 %v8351_v6, %v7545_v34  ;;  %v7439_v6 = vld [vmem:[%s11466_s7 + $0x640] sm:$0xf]  ;;  %v8330_v34 = vld [vmem:[%s11466_s7 + $0x644] sm:$0xf0] }
 0x330   : > { %4233 = vmatpush.bf16.msra.mxu1 %v7176_v44  ;;  %4246 = vmatpush.bf16.msra.mxu2 %v7180_v7  ;;  %v7289_v44 = vld [vmem:[%s11466_s7 + $0x558] sm:$0xf0]  ;;  %v7360_v7 = vor.u32 %v8314_v17, %v7359_v16 }
 0x331   : > { %v7257_v16 = vld [vmem:[%s11466_s7 + $0x518] sm:$0xf0] }
 0x332   : > { %4100 = vmatpush.bf16.msrb.mxu3 %v7104_v5  ;;  %4113 = vmatpush.bf16.msra.mxu0 %v7108_v49  ;;  %v7292_v5 = vor.u32 %v8299_v63, %v7289_v44  ;;  %v7353_v49 = vld [vmem:[%s11466_s7 + $0x5b8] sm:$0xf0] }
 0x334   : > { %4234 = vmatpush.bf16.msra.mxu1 %v7168_v31  ;;  %4247 = vmatpush.bf16.msra.mxu2 %v7172_v20  ;;  %v7284_v31 = vor.u32 %v8297_v21, %v7281_v58  ;;  %v8309_v20 = vld [vmem:[%s11466_s7 + $0x5a4] sm:$0xf]  ;;  %v7536_v21 = vor.u32 %v8350_v3, %v7535_v4  ;;  %v8342_v4 = vld [vmem:[%s11466_s7 + $0x6a4] sm:$0xf0] }
 0x336   : > { %4101 = vmatpush.bf16.msrb.mxu3 %v7096_v57  ;;  %4114 = vmatpush.bf16.msra.mxu0 %v7100_v28  ;;  %v7344_v57 = vor.u32 %v8310_v29, %v7343_v43  ;;  %v7527_v43 = vld [vmem:[%s11466_s7 + $0x6d0] sm:$0xf]  ;;  %v8348_v29 = vld [vmem:[%s11466_s7 + $0x6d4] sm:$0xf0] }
 0x337   : > { %4235 = vmatmul.bf16.vlgmr.msra.gmra.mxu1 %v10580_v47  ;;  %4248 = vmatmul.bf16.vlgmr.msra.gmra.mxu2 %v10580_v47 }
 0x338   : > { %4481 = vmatpush.bf16.msrb.mxu1 %v7384_v24  ;;  %4494 = vmatpush.bf16.msrb.mxu2 %v7388_v59  ;;  %v7345_v24 = vld [vmem:[%s11466_s7 + $0x5a8] sm:$0xf0]  ;;  %v7271_v59 = vld [vmem:[%s11466_s7 + $0x530] sm:$0xf] }
 0x339   : > { %v7348_v28 = vor.u32 %v8309_v20, %v7345_v24  ;;  %v7272_v12 = vor.u32 %v8296_v10, %v7271_v59  ;;  %v8347_v20 = vld [vmem:[%s11466_s7 + $0x6d4] sm:$0xf]  ;;  %v7529_v24 = vld [vmem:[%s11466_s7 + $0x6d8] sm:$0xf0]  ;;  %v7455_v59 = vld [vmem:[%s11466_s7 + $0x660] sm:$0xf] }
 0x33a   : > { %4102 = vmatpush.bf16.msrb.mxu3 %v7088_v62  ;;  %4115 = vmatpush.bf16.msra.mxu0 %v7092_v19  ;;  %v7340_v62 = vor.u32 %v8307_v23, %v7337_v8  ;;  %v7327_v19 = vld [vmem:[%s11466_s7 + $0x580] sm:$0xf]  ;;  %v8334_v10 = vld [vmem:[%s11466_s7 + $0x664] sm:$0xf0]  ;;  %v7460_v8 = vor.u32 %v8333_v9, %v7457_v40 }
 0x33b   : > { %v7328_v17 = vor.u32 %v8306_v18, %v7327_v19  ;;  %v7456_v23 = vor.u32 %v8334_v10, %v7455_v59  ;;  %v7487_v40 = vld [vmem:[%s11466_s7 + $0x680] sm:$0xf] }
 0x33c   : > { %4482 = vmatpush.bf16.msrb.mxu1 %v7376_v32  ;;  %4495 = vmatpush.bf16.msrb.mxu2 %v7380_v33  ;;  %v7265_v32 = vld [vmem:[%s11466_s7 + $0x528] sm:$0xf0]  ;;  %v7336_v33 = vor.u32 %v8308_v55, %v7335_v35  ;;  %v7532_v35 = vor.u32 %v8347_v20, %v7529_v24  ;;  %v7519_v55 = vld [vmem:[%s11466_s7 + $0x6c0] sm:$0xf] }
 0x33d   : > { %4103 = vmatmul.bf16.vlgmr.msrb.gmra.mxu3 %v10484_v51  ;;  %4116 = vmatmul.bf16.vlgmr.msra.gmra.mxu0 %v10484_v51  ;;  %v8311_v51 = vld [vmem:[%s11466_s7 + $0x5b4] sm:$0xf]  ;;  %v7425_v20 = vld [vmem:[%s11466_s7 + $0x628] sm:$0xf0] }
 0x33e   : > { %4354 = vmatpush.bf16.msra.mxu3 %v7304_v15  ;;  %4367 = vmatpush.bf16.msrb.mxu0 %v7308_v26  ;;  %v7356_v1 = vor.u32 %v8311_v51, %v7353_v49  ;;  %v7264_v15 = vor.u32 %v8294_v22, %v7263_v60  ;;  %v7268_v26 = vor.u32 %v8293_v27, %v7265_v32  ;;  %v8336_v51 = vld [vmem:[%s11466_s7 + $0x674] sm:$0xf0]  ;;  %v8335_v49 = vld [vmem:[%s11466_s7 + $0x674] sm:$0xf]  ;;  %v8345_v60 = vld [vmem:[%s11466_s7 + $0x6c4] sm:$0xf] }
 0x33f   : > { %v7521_v22 = vld [vmem:[%s11466_s7 + $0x6c8] sm:$0xf0]  ;;  %v7447_v27 = vld [vmem:[%s11466_s7 + $0x650] sm:$0xf]  ;;  %v8332_v32 = vld [vmem:[%s11466_s7 + $0x654] sm:$0xf0] }
 0x340   : > { %4483 = vmatpush.bf16.msrb.mxu1 %v7368_v2  ;;  %4496 = vmatpush.bf16.msrb.mxu2 %v7372_v45  ;;  %v8292_v2 = vld [vmem:[%s11466_s7 + $0x514] sm:$0xf0]  ;;  %v8291_v45 = vld [vmem:[%s11466_s7 + $0x514] sm:$0xf]  ;;  %v7524_v18 = vor.u32 %v8345_v60, %v7521_v22  ;;  %v7705_v22 = vld [vmem:[%s11466_s7 + $0x7f8] sm:$0xf0] }
 0x341   : > { %v7256_v63 = vor.u32 %v8292_v2, %v7255_v54  ;;  %v7260_v44 = vor.u32 %v8291_v45, %v7257_v16  ;;  %v8329_v54 = vld [vmem:[%s11466_s7 + $0x644] sm:$0xf]  ;;  %v7441_v2 = vld [vmem:[%s11466_s7 + $0x648] sm:$0xf0]  ;;  %v8383_v60 = vld [vmem:[%s11466_s7 + $0x7f4] sm:$0xf] }
 0x342   : > { %4355 = vmatpush.bf16.msra.mxu3 %v7296_v61  ;;  %4368 = vmatpush.bf16.msrb.mxu0 %v7300_v46  ;;  %v7332_v61 = vor.u32 %v8305_v38, %v7329_v52  ;;  %v7544_v46 = vor.u32 %v8352_v42, %v7543_v13  ;;  %v7511_v38 = vld [vmem:[%s11466_s7 + $0x6b0] sm:$0xf]  ;;  %v8343_v13 = vld [vmem:[%s11466_s7 + $0x6b4] sm:$0xf]  ;;  %v7513_v42 = vld [vmem:[%s11466_s7 + $0x6b8] sm:$0xf0] }
 0x344   : > { %4484 = vmatpush.bf16.msrb.mxu1 %v7360_v7  ;;  %4497 = vmatpush.bf16.msrb.mxu2 %v7364_v30  ;;  %v7537_v7 = vld [vmem:[%s11466_s7 + $0x6e8] sm:$0xf0]  ;;  %v7247_v30 = vld [vmem:[%s11466_s7 + $0x500] sm:$0xf] }
 0x345   : > { %v7540_v58 = vor.u32 %v8349_v48, %v7537_v7  ;;  %v7440_v48 = vor.u32 %v8330_v34, %v7439_v6  ;;  %v7505_v7 = vld [vmem:[%s11466_s7 + $0x6a8] sm:$0xf0] }
 0x346   : > { %4356 = vmatpush.bf16.msra.mxu3 %v7288_v36  ;;  %4369 = vmatpush.bf16.msrb.mxu0 %v7292_v5  ;;  %v7249_v36 = vld [vmem:[%s11466_s7 + $0x508] sm:$0xf0]  ;;  %v7463_v5 = vld [vmem:[%s11466_s7 + $0x670] sm:$0xf] }
 0x348   : > { %4485 = vmatpush.bf16.msrb.mxu1 %v7352_v39  ;;  %4498 = vmatpush.bf16.msrb.mxu2 %v7356_v1  ;;  %v7248_v39 = vor.u32 %v8290_v0, %v7247_v30  ;;  %v7252_v1 = vor.u32 %v8289_v25, %v7249_v36  ;;  %v7431_v30 = vld [vmem:[%s11466_s7 + $0x630] sm:$0xf]  ;;  %v8328_v0 = vld [vmem:[%s11466_s7 + $0x634] sm:$0xf0]  ;;  %v8327_v25 = vld [vmem:[%s11466_s7 + $0x634] sm:$0xf] }
 0x349   : > { %v7433_v36 = vld [vmem:[%s11466_s7 + $0x638] sm:$0xf0] }
 0x34a   : > { %4357 = vmatpush.bf16.msra.mxu3 %v7280_v14  ;;  %4370 = vmatpush.bf16.msrb.mxu0 %v7284_v31  ;;  %v7464_v14 = vor.u32 %v8336_v51, %v7463_v5  ;;  %v7468_v31 = vor.u32 %v8335_v49, %v7465_v41  ;;  %v7495_v49 = vld [vmem:[%s11466_s7 + $0x690] sm:$0xf]  ;;  %v8340_v41 = vld [vmem:[%s11466_s7 + $0x694] sm:$0xf0] }
 0x34b   : > { %v7496_v10 = vor.u32 %v8340_v41, %v7495_v49  ;;  %v8380_v49 = vld [vmem:[%s11466_s7 + $0x7d4] sm:$0xf0] }
 0x34c   : > { %4486 = vmatpush.bf16.msrb.mxu1 %v7344_v57  ;;  %4499 = vmatpush.bf16.msrb.mxu2 %v7348_v28  ;;  %v4272_v57 = vrot.slane %v10541_v56, 1  ;;  %v7528_v28 = vor.u32 %v8348_v29, %v7527_v43  ;;  %v7423_v43 = vld [vmem:[%s11466_s7 + $0x620] sm:$0xf] }
 0x34e   : > { %4358 = vmatpush.bf16.msra.mxu3 %v7272_v12  ;;  %4371 = vmatpush.bf16.msrb.mxu0 %v7276_v37  ;;  %v8346_v12 = vld [vmem:[%s11466_s7 + $0x6c4] sm:$0xf0] }
 0x34f   : > { %v7520_v19 = vor.u32 %v8346_v12, %v7519_v55 }
 0x350   : > { %4487 = vmatpush.bf16.msrb.mxu1 %v7336_v33  ;;  %4500 = vmatpush.bf16.msrb.mxu2 %v7340_v62  ;;  %v8331_v33 = vld [vmem:[%s11466_s7 + $0x654] sm:$0xf]  ;;  %v7449_v62 = vld [vmem:[%s11466_s7 + $0x658] sm:$0xf0] }
 0x351   : > { %v7452_v52 = vor.u32 %v8331_v33, %v7449_v62  ;;  %v8323_v33 = vld [vmem:[%s11466_s7 + $0x614] sm:$0xf]  ;;  %v7417_v62 = vld [vmem:[%s11466_s7 + $0x618] sm:$0xf0] }
 0x352   : > { %4359 = vmatpush.bf16.msra.mxu3 %v7264_v15  ;;  %4372 = vmatpush.bf16.msrb.mxu0 %v7268_v26  ;;  %v8344_v15 = vld [vmem:[%s11466_s7 + $0x6b4] sm:$0xf0]  ;;  %v7448_v26 = vor.u32 %v8332_v32, %v7447_v27  ;;  %v7415_v27 = vld [vmem:[%s11466_s7 + $0x610] sm:$0xf]  ;;  %v7420_v34 = vor.u32 %v8323_v33, %v7417_v62 }
 0x353   : > { %v8324_v32 = vld [vmem:[%s11466_s7 + $0x614] sm:$0xf0] }
 0x354   : > { %4488 = vmatpush.bf16.msrb.mxu1 %v7328_v17  ;;  %4501 = vmatpush.bf16.msrb.mxu2 %v7332_v61  ;;  %v3219_v37 = vpop.f32.mrf.mxu1  ;;  %v7512_v61 = vor.u32 %v8344_v15, %v7511_v38  ;;  %v7416_v6 = vor.u32 %v8324_v32, %v7415_v27 }
 0x356   : > { %4360 = vmatpush.bf16.msra.mxu3 %v7256_v63  ;;  %4373 = vmatpush.bf16.msrb.mxu0 %v7260_v44  ;;  %v7444_v63 = vor.u32 %v8329_v54, %v7441_v2  ;;  %v8341_v44 = vld [vmem:[%s11466_s7 + $0x6a4] sm:$0xf]  ;;  %v7697_v54 = vld [vmem:[%s11466_s7 + $0x7e8] sm:$0xf0]  ;;  %v7407_v2 = vld [vmem:[%s11466_s7 + $0x600] sm:$0xf] }
 0x357   : > { %4489 = vmatmul.bf16.vlgmr.msrb.gmra.mxu1 %v4399_v11  ;;  %4502 = vmatmul.bf16.vlgmr.msrb.gmra.mxu2 %v4399_v11  ;;  %v7508_v51 = vor.u32 %v8341_v44, %v7505_v7  ;;  %v7625_v44 = vld [vmem:[%s11466_s7 + $0x778] sm:$0xf0]  ;;  %v4653_v7 = vrot.slane %v10580_v47, 2 }
 0x358   : > { %4735 = vmatpush.bf16.msra.mxu1 %v7544_v46  ;;  %4748 = vmatpush.bf16.msra.mxu2 %v7548_v53  ;;  %v7516_v46 = vor.u32 %v8343_v13, %v7513_v42  ;;  %v7503_v53 = vld [vmem:[%s11466_s7 + $0x6a0] sm:$0xf]  ;;  %v8382_v13 = vld [vmem:[%s11466_s7 + $0x7e4] sm:$0xf0]  ;;  %v8381_v42 = vld [vmem:[%s11466_s7 + $0x7e4] sm:$0xf] }
 0x359   : > { %v7504_v5 = vor.u32 %v8342_v4, %v7503_v53  ;;  %v7409_v53 = vld [vmem:[%s11466_s7 + $0x608] sm:$0xf0]  ;;  %v7623_v4 = vld [vmem:[%s11466_s7 + $0x770] sm:$0xf] }
 0x35a   : > { %4361 = vmatpush.bf16.msra.mxu3 %v7248_v39  ;;  %4374 = vmatpush.bf16.msrb.mxu0 %v7252_v1  ;;  %v3126_v45 = vpop.f32.mrf.mxu0  ;;  %v3232_v16 = vpop.f32.mrf.mxu2  ;;  %v8339_v39 = vld [vmem:[%s11466_s7 + $0x694] sm:$0xf]  ;;  %v7497_v1 = vld [vmem:[%s11466_s7 + $0x698] sm:$0xf0] }
 0x35b   : > { %v10852_v17 = vadd.f32 %v3232_v16, %v3126_v45  ;;  %v7500_v9 = vor.u32 %v8339_v39, %v7497_v1  ;;  %v8322_v45 = vld [vmem:[%s11466_s7 + $0x604] sm:$0xf0]  ;;  %v7615_v39 = vld [vmem:[%s11466_s7 + $0x760] sm:$0xf] }
 0x35c   : > { %4736 = vmatpush.bf16.msra.mxu1 %v7536_v21  ;;  %4749 = vmatpush.bf16.msra.mxu2 %v7540_v58  ;;  %v3221_v3 = vpop.f32.mrf.mxu1  ;;  %v7432_v21 = vor.u32 %v8328_v0, %v7431_v30  ;;  %v7436_v58 = vor.u32 %v8327_v25, %v7433_v36  ;;  %v7700_v25 = vor.u32 %v8381_v42, %v7697_v54  ;;  %v8366_v1 = vld [vmem:[%s11466_s7 + $0x764] sm:$0xf0]  ;;  %v8361_v42 = vld [vmem:[%s11466_s7 + $0x744] sm:$0xf] }
 0x35d   : > { %4362 = vmatmul.bf16.vlgmr.msra.gmra.mxu3 %v4272_v57  ;;  %4375 = vmatmul.bf16.vlgmr.msrb.gmra.mxu0 %v4272_v57  ;;  %v8338_v57 = vld [vmem:[%s11466_s7 + $0x684] sm:$0xf0]  ;;  %v7408_v36 = vor.u32 %v8322_v45, %v7407_v2  ;;  %v7663_v45 = vld [vmem:[%s11466_s7 + $0x7a0] sm:$0xf] }
 0x35e   : > { %4608 = vmatpush.bf16.msrb.mxu3 %v7464_v14  ;;  %4621 = vmatpush.bf16.msra.mxu0 %v7468_v31  ;;  %v8326_v14 = vld [vmem:[%s11466_s7 + $0x624] sm:$0xf0]  ;;  %v8325_v31 = vld [vmem:[%s11466_s7 + $0x624] sm:$0xf] }
 0x35f   : > { %v7424_v55 = vor.u32 %v8326_v14, %v7423_v43  ;;  %v7428_v12 = vor.u32 %v8325_v31, %v7425_v20  ;;  %v8365_v43 = vld [vmem:[%s11466_s7 + $0x764] sm:$0xf]  ;;  %v7617_v14 = vld [vmem:[%s11466_s7 + $0x768] sm:$0xf0] }
 0x360   : > { %4737 = vmatpush.bf16.msra.mxu1 %v7528_v28  ;;  %4750 = vmatpush.bf16.msra.mxu2 %v7532_v35  ;;  %v3113_v11 = vpop.f32.mrf.mxu3  ;;  %v8337_v28 = vld [vmem:[%s11466_s7 + $0x684] sm:$0xf] }
 0x361   : > { %v10893_v29 = vadd.f32 %v3219_v37, %v3113_v11  ;;  %v7489_v37 = vld [vmem:[%s11466_s7 + $0x688] sm:$0xf0] }
 0x362   : > { %4609 = vmatpush.bf16.msrb.mxu3 %v7456_v23  ;;  %4622 = vmatpush.bf16.msra.mxu0 %v7460_v8  ;;  %v3128_v24 = vpop.f32.mrf.mxu0  ;;  %v3234_v59 = vpop.f32.mrf.mxu2  ;;  %v7703_v23 = vld [vmem:[%s11466_s7 + $0x7f0] sm:$0xf]  ;;  %v8384_v8 = vld [vmem:[%s11466_s7 + $0x7f4] sm:$0xf0] }
 0x363   : > { %v7704_v15 = vor.u32 %v8384_v8, %v7703_v23  ;;  %v4526_v24 = vrot.slane %v10541_v56, 2  ;;  %v7607_v23 = vld [vmem:[%s11466_s7 + $0x750] sm:$0xf]  ;;  %v8364_v8 = vld [vmem:[%s11466_s7 + $0x754] sm:$0xf0] }
 0x364   : > { %4738 = vmatpush.bf16.msra.mxu1 %v7520_v19  ;;  %4751 = vmatpush.bf16.msra.mxu2 %v7524_v18  ;;  %v10913_v35 = vpop.f32.mrf.mxu1  ;;  %v7488_v19 = vor.u32 %v8338_v57, %v7487_v40  ;;  %v7492_v18 = vor.u32 %v8337_v28, %v7489_v37  ;;  %v8378_v40 = vld [vmem:[%s11466_s7 + $0x7c4] sm:$0xf0]  ;;  %v7681_v37 = vld [vmem:[%s11466_s7 + $0x7c8] sm:$0xf0] }
 0x366   : > { %4610 = vmatpush.bf16.msrb.mxu3 %v7448_v26  ;;  %4623 = vmatpush.bf16.msra.mxu0 %v7452_v52  ;;  %v7708_v26 = vor.u32 %v8383_v60, %v7705_v22  ;;  %v7695_v52 = vld [vmem:[%s11466_s7 + $0x7e0] sm:$0xf]  ;;  %v8363_v60 = vld [vmem:[%s11466_s7 + $0x754] sm:$0xf]  ;;  %v7609_v22 = vld [vmem:[%s11466_s7 + $0x758] sm:$0xf0] }
 0x367   : > { %v7696_v0 = vor.u32 %v8382_v13, %v7695_v52  ;;  %v7599_v52 = vld [vmem:[%s11466_s7 + $0x740] sm:$0xf]  ;;  %v8362_v13 = vld [vmem:[%s11466_s7 + $0x744] sm:$0xf0] }
 0x368   : > { %4739 = vmatpush.bf16.msra.mxu1 %v7512_v61  ;;  %4752 = vmatpush.bf16.msra.mxu2 %v7516_v46  ;;  %v3115_v38 = vpop.f32.mrf.mxu3  ;;  %v8321_v46 = vld [vmem:[%s11466_s7 + $0x604] sm:$0xf] }
 0x369   : > { %v7612_v38 = vor.u32 %v8363_v60, %v7609_v22  ;;  %v7865_v60 = vld [vmem:[%s11466_s7 + $0x8f8] sm:$0xf0]  ;;  %v7575_v22 = vld [vmem:[%s11466_s7 + $0x710] sm:$0xf] }
 0x36a   : > { %4611 = vmatpush.bf16.msrb.mxu3 %v7440_v48  ;;  %4624 = vmatpush.bf16.msra.mxu0 %v7444_v63  ;;  %v3357_v16 = vpop.f32.mrf.mxu0  ;;  %v3484_v61 = vpop.f32.mrf.mxu2  ;;  %v8368_v48 = vld [vmem:[%s11466_s7 + $0x774] sm:$0xf0]  ;;  %v8367_v63 = vld [vmem:[%s11466_s7 + $0x774] sm:$0xf] }
 0x36b   : > { %v3362_v3 = vadd.f32 %v3357_v16, %v10852_v17  ;;  %v7624_v41 = vor.u32 %v8368_v48, %v7623_v4  ;;  %v7628_v11 = vor.u32 %v8367_v63, %v7625_v44  ;;  %v8374_v16 = vld [vmem:[%s11466_s7 + $0x7a4] sm:$0xf0]  ;;  %v8373_v4 = vld [vmem:[%s11466_s7 + $0x7a4] sm:$0xf]  ;;  %v7591_v48 = vld [vmem:[%s11466_s7 + $0x730] sm:$0xf] }
 0x36c   : > { %4740 = vmatpush.bf16.msra.mxu1 %v7504_v5  ;;  %4753 = vmatpush.bf16.msra.mxu2 %v7508_v51  ;;  %v3473_v30 = vpop.f32.mrf.mxu1  ;;  %v7412_v5 = vor.u32 %v8321_v46, %v7409_v53  ;;  %v7687_v51 = vld [vmem:[%s11466_s7 + $0x7d0] sm:$0xf]  ;;  %v7600_v46 = vor.u32 %v8362_v13, %v7599_v52  ;;  %v8360_v44 = vld [vmem:[%s11466_s7 + $0x734] sm:$0xf0]  ;;  %v8414_v52 = vld [vmem:[%s11466_s7 + $0x8e4] sm:$0xf0] }
 0x36d   : > { %v10980_v17 = vadd.f32 %v3484_v61, %v3362_v3  ;;  %v7688_v59 = vor.u32 %v8380_v49, %v7687_v51  ;;  %v7665_v3 = vld [vmem:[%s11466_s7 + $0x7a8] sm:$0xf0]  ;;  %v7593_v30 = vld [vmem:[%s11466_s7 + $0x738] sm:$0xf0]  ;;  %v7655_v51 = vld [vmem:[%s11466_s7 + $0x790] sm:$0xf] }
 0x36e   : > { %4612 = vmatpush.bf16.msrb.mxu3 %v7432_v21  ;;  %4625 = vmatpush.bf16.msra.mxu0 %v7436_v58  ;;  %v8379_v21 = vld [vmem:[%s11466_s7 + $0x7d4] sm:$0xf]  ;;  %v7689_v58 = vld [vmem:[%s11466_s7 + $0x7d8] sm:$0xf0]  ;;  %v8372_v49 = vld [vmem:[%s11466_s7 + $0x794] sm:$0xf0] }
 0x370   : > { %4741 = vmatpush.bf16.msra.mxu1 %v7496_v10  ;;  %4754 = vmatpush.bf16.msra.mxu2 %v7500_v9  ;;  %v3344_v31 = vpop.f32.mrf.mxu3  ;;  %v7692_v10 = vor.u32 %v8379_v21, %v7689_v58  ;;  %v7679_v9 = vld [vmem:[%s11466_s7 + $0x7c0] sm:$0xf]  ;;  %v7657_v58 = vld [vmem:[%s11466_s7 + $0x798] sm:$0xf0] }
 0x371   : > { %v3361_v20 = vadd.f32 %v3344_v31, %v10893_v29  ;;  %v8377_v29 = vld [vmem:[%s11466_s7 + $0x7c4] sm:$0xf]  ;;  %v7680_v33 = vor.u32 %v8378_v40, %v7679_v9 }
 0x372   : > { %4613 = vmatpush.bf16.msrb.mxu3 %v7424_v55  ;;  %4626 = vmatpush.bf16.msra.mxu0 %v7428_v12  ;;  %v3359_v57 = vpop.f32.mrf.mxu0  ;;  %v3486_v28 = vpop.f32.mrf.mxu2  ;;  %v7616_v55 = vor.u32 %v8366_v1, %v7615_v39  ;;  %v7620_v12 = vor.u32 %v8365_v43, %v7617_v14  ;;  %v7684_v62 = vor.u32 %v8377_v29, %v7681_v37  ;;  %v7583_v39 = vld [vmem:[%s11466_s7 + $0x720] sm:$0xf]  ;;  %v8358_v1 = vld [vmem:[%s11466_s7 + $0x724] sm:$0xf0]  ;;  %v8357_v43 = vld [vmem:[%s11466_s7 + $0x724] sm:$0xf] }
 0x373   : > { %v11033_v27 = vadd.f32 %v10913_v35, %v3361_v20  ;;  %v7608_v35 = vor.u32 %v8364_v8, %v7607_v23  ;;  %v7585_v14 = vld [vmem:[%s11466_s7 + $0x728] sm:$0xf0]  ;;  %v7656_v20 = vor.u32 %v8372_v49, %v7655_v51  ;;  %v8369_v9 = vld [vmem:[%s11466_s7 + $0x784] sm:$0xf]  ;;  %v7584_v28 = vor.u32 %v8358_v1, %v7583_v39  ;;  %v7863_v29 = vld [vmem:[%s11466_s7 + $0x8f0] sm:$0xf] }
 0x374   : > { %4742 = vmatpush.bf16.msra.mxu1 %v7488_v19  ;;  %4755 = vmatpush.bf16.msra.mxu2 %v7492_v18  ;;  %v11035_v32 = vpop.f32.mrf.mxu1  ;;  %v7671_v19 = vld [vmem:[%s11466_s7 + $0x7b0] sm:$0xf]  ;;  %v8376_v18 = vld [vmem:[%s11466_s7 + $0x7b4] sm:$0xf0]  ;;  %v8415_v8 = vld [vmem:[%s11466_s7 + $0x8f4] sm:$0xf] }
 0x375   : > { %v7672_v54 = vor.u32 %v8376_v18, %v7671_v19  ;;  %v8416_v37 = vld [vmem:[%s11466_s7 + $0x8f4] sm:$0xf0]  ;;  %v7775_v51 = vld [vmem:[%s11466_s7 + $0x860] sm:$0xf]  ;;  %v8398_v49 = vld [vmem:[%s11466_s7 + $0x864] sm:$0xf0] }
 0x376   : > { %4614 = vmatpush.bf16.msrb.mxu3 %v7416_v6  ;;  %4627 = vmatpush.bf16.msra.mxu0 %v7420_v34  ;;  %v7601_v6 = vld [vmem:[%s11466_s7 + $0x748] sm:$0xf0]  ;;  %v7839_v1 = vld [vmem:[%s11466_s7 + $0x8c0] sm:$0xf] }
 0x377   : > { %4743 = vmatmul.bf16.vlgmr.msra.gmra.mxu1 %v4653_v7  ;;  %4756 = vmatmul.bf16.vlgmr.msra.gmra.mxu2 %v4653_v7  ;;  %v7604_v53 = vor.u32 %v8361_v42, %v7601_v6  ;;  %v8359_v7 = vld [vmem:[%s11466_s7 + $0x734] sm:$0xf]  ;;  %v7857_v6 = vld [vmem:[%s11466_s7 + $0x8e8] sm:$0xf0] }
 0x378   : > { %4989 = vmatpush.bf16.msrb.mxu1 %v7704_v15  ;;  %5002 = vmatpush.bf16.msrb.mxu2 %v7708_v26  ;;  %v8375_v15 = vld [vmem:[%s11466_s7 + $0x7b4] sm:$0xf]  ;;  %v7673_v26 = vld [vmem:[%s11466_s7 + $0x7b8] sm:$0xf0]  ;;  %v3346_v34 = vpop.f32.mrf.mxu3  ;;  %v7596_v21 = vor.u32 %v8359_v7, %v7593_v30  ;;  %v7847_v30 = vld [vmem:[%s11466_s7 + $0x8d0] sm:$0xf] }
 0x379   : > { %v7676_v2 = vor.u32 %v8375_v15, %v7673_v26  ;;  %v7868_v15 = vor.u32 %v8415_v8, %v7865_v60  ;;  %v7855_v26 = vld [vmem:[%s11466_s7 + $0x8e0] sm:$0xf]  ;;  %v7833_v8 = vld [vmem:[%s11466_s7 + $0x8b8] sm:$0xf0] }
 0x37a   : > { %4615 = vmatpush.bf16.msrb.mxu3 %v7408_v36  ;;  %4628 = vmatpush.bf16.msra.mxu0 %v7412_v5  ;;  %v3738_v61 = vpop.f32.mrf.mxu2  ;;  %v3611_v63 = vpop.f32.mrf.mxu0  ;;  %v7664_v36 = vor.u32 %v8374_v16, %v7663_v45  ;;  %v7668_v5 = vor.u32 %v8373_v4, %v7665_v3  ;;  %v7567_v34 = vld [vmem:[%s11466_s7 + $0x700] sm:$0xf]  ;;  %v7569_v45 = vld [vmem:[%s11466_s7 + $0x708] sm:$0xf0]  ;;  %v7783_v16 = vld [vmem:[%s11466_s7 + $0x870] sm:$0xf] }
 0x37b   : > { %v7785_v4 = vld [vmem:[%s11466_s7 + $0x878] sm:$0xf0]  ;;  %v4907_v3 = vrot.slane %v10580_v47, 3  ;;  %v8411_v47 = vld [vmem:[%s11466_s7 + $0x8d4] sm:$0xf] }
 0x37c   : > { %4990 = vmatpush.bf16.msrb.mxu1 %v7696_v0  ;;  %5003 = vmatpush.bf16.msrb.mxu2 %v7700_v25  ;;  %v3616_v0 = vadd.f32 %v3611_v63, %v10980_v17  ;;  %v3727_v25 = vpop.f32.mrf.mxu1  ;;  %v8371_v17 = vld [vmem:[%s11466_s7 + $0x794] sm:$0xf]  ;;  %v7759_v60 = vld [vmem:[%s11466_s7 + $0x840] sm:$0xf] }
 0x37d   : > { %4616 = vmatmul.bf16.vlgmr.msrb.gmra.mxu3 %v4526_v24  ;;  %4629 = vmatmul.bf16.vlgmr.msra.gmra.mxu0 %v4526_v24  ;;  %v7660_v24 = vor.u32 %v8371_v17, %v7657_v58  ;;  %v4780_v17 = vrot.slane %v10541_v56, 3  ;;  %v7841_v56 = vld [vmem:[%s11466_s7 + $0x8c8] sm:$0xf0] }
 0x37e   : > { %4862 = vmatpush.bf16.msra.mxu3 %v7624_v41  ;;  %4875 = vmatpush.bf16.msrb.mxu0 %v7628_v11  ;;  %v11092_v41 = vadd.f32 %v3738_v61, %v3616_v0  ;;  %v7592_v11 = vor.u32 %v8360_v44, %v7591_v48  ;;  %v7856_v48 = vor.u32 %v8414_v52, %v7855_v26  ;;  %v8412_v0 = vld [vmem:[%s11466_s7 + $0x8d4] sm:$0xf0]  ;;  %v7823_v26 = vld [vmem:[%s11466_s7 + $0x8a0] sm:$0xf]  ;;  %v8406_v52 = vld [vmem:[%s11466_s7 + $0x8a4] sm:$0xf0] }
 0x37f   : > { %v7848_v58 = vor.u32 %v8412_v0, %v7847_v30  ;;  %v7743_v30 = vld [vmem:[%s11466_s7 + $0x820] sm:$0xf] }
 0x380   : > { %4991 = vmatpush.bf16.msrb.mxu1 %v7688_v59  ;;  %5004 = vmatpush.bf16.msrb.mxu2 %v7692_v10  ;;  %v3598_v31 = vpop.f32.mrf.mxu3  ;;  %v7647_v59 = vld [vmem:[%s11466_s7 + $0x780] sm:$0xf]  ;;  %v8370_v10 = vld [vmem:[%s11466_s7 + $0x784] sm:$0xf0] }
 0x381   : > { %v3615_v40 = vadd.f32 %v3598_v31, %v11033_v27  ;;  %v8356_v27 = vld [vmem:[%s11466_s7 + $0x714] sm:$0xf0]  ;;  %v7648_v18 = vor.u32 %v8370_v10, %v7647_v59 }
 0x382   : > { %4863 = vmatpush.bf16.msra.mxu3 %v7616_v55  ;;  %4876 = vmatpush.bf16.msrb.mxu0 %v7620_v12  ;;  %v3740_v57 = vpop.f32.mrf.mxu2  ;;  %v7588_v55 = vor.u32 %v8357_v43, %v7585_v14  ;;  %v7649_v12 = vld [vmem:[%s11466_s7 + $0x788] sm:$0xf0]  ;;  %v3613_v23 = vpop.f32.mrf.mxu0  ;;  %v7576_v13 = vor.u32 %v8356_v27, %v7575_v22  ;;  %v8410_v43 = vld [vmem:[%s11466_s7 + $0x8c4] sm:$0xf0]  ;;  %v7776_v14 = vor.u32 %v8398_v49, %v7775_v51  ;;  %v8396_v10 = vld [vmem:[%s11466_s7 + $0x854] sm:$0xf0] }
 0x383   : > { %v11150_v19 = vadd.f32 %v11035_v32, %v3615_v40  ;;  %v8413_v32 = vld [vmem:[%s11466_s7 + $0x8e4] sm:$0xf]  ;;  %v7769_v40 = vld [vmem:[%s11466_s7 + $0x858] sm:$0xf0]  ;;  %v7840_v57 = vor.u32 %v8410_v43, %v7839_v1  ;;  %v8407_v23 = vld [vmem:[%s11466_s7 + $0x8b4] sm:$0xf] }
 0x384   : > { %4992 = vmatpush.bf16.msrb.mxu1 %v7680_v33  ;;  %5005 = vmatpush.bf16.msrb.mxu2 %v7684_v62  ;;  %v8355_v33 = vld [vmem:[%s11466_s7 + $0x714] sm:$0xf]  ;;  %v7577_v62 = vld [vmem:[%s11466_s7 + $0x718] sm:$0xf0]  ;;  %v7860_v63 = vor.u32 %v8413_v32, %v7857_v6  ;;  %v8394_v22 = vld [vmem:[%s11466_s7 + $0x844] sm:$0xf0] }
 0x385   : > { %v7580_v42 = vor.u32 %v8355_v33, %v7577_v62  ;;  %v8393_v27 = vld [vmem:[%s11466_s7 + $0x844] sm:$0xf]  ;;  %v7761_v33 = vld [vmem:[%s11466_s7 + $0x848] sm:$0xf0]  ;;  %v2980_v62 = vmax.f32 %v10040_v50, 0.0 }
 0x386   : > { %4864 = vmatpush.bf16.msra.mxu3 %v7608_v35  ;;  %4877 = vmatpush.bf16.msrb.mxu0 %v7612_v38  ;;  %v7652_v35 = vor.u32 %v8369_v9, %v7649_v12  ;;  %v7864_v38 = vor.u32 %v8416_v37, %v7863_v29  ;;  %v8395_v9 = vld [vmem:[%s11466_s7 + $0x854] sm:$0xf]  ;;  %v8408_v12 = vld [vmem:[%s11466_s7 + $0x8b4] sm:$0xf0]  ;;  %v7764_v50 = vor.u32 %v8393_v27, %v7761_v33  ;;  %v7825_v6 = vld [vmem:[%s11466_s7 + $0x8a8] sm:$0xf0] }
 0x387   : > { %v7772_v37 = vor.u32 %v8395_v9, %v7769_v40 }
 0x388   : > { %4993 = vmatpush.bf16.msrb.mxu1 %v7672_v54  ;;  %5006 = vmatpush.bf16.msrb.mxu2 %v7676_v2  ;;  %v8354_v54 = vld [vmem:[%s11466_s7 + $0x704] sm:$0xf0]  ;;  %v8353_v2 = vld [vmem:[%s11466_s7 + $0x704] sm:$0xf]  ;;  %v3600_v61 = vpop.f32.mrf.mxu3 }
 0x389   : > { %v7568_v44 = vor.u32 %v8354_v54, %v7567_v34  ;;  %v7572_v7 = vor.u32 %v8353_v2, %v7569_v45  ;;  %v7751_v34 = vld [vmem:[%s11466_s7 + $0x830] sm:$0xf]  ;;  %v8392_v2 = vld [vmem:[%s11466_s7 + $0x834] sm:$0xf0]  ;;  %v7753_v45 = vld [vmem:[%s11466_s7 + $0x838] sm:$0xf0]  ;;  %v7824_v61 = vor.u32 %v8406_v52, %v7823_v26 }
 0x38a   : > { %4865 = vmatpush.bf16.msra.mxu3 %v7600_v46  ;;  %4878 = vmatpush.bf16.msrb.mxu0 %v7604_v53  ;;  %v8400_v46 = vld [vmem:[%s11466_s7 + $0x874] sm:$0xf0]  ;;  %v8399_v53 = vld [vmem:[%s11466_s7 + $0x874] sm:$0xf] }
 0x38b   : > { %v7784_v25 = vor.u32 %v8400_v46, %v7783_v16 }
 0x38c   : > { %4994 = vmatpush.bf16.msrb.mxu1 %v7664_v36  ;;  %5007 = vmatpush.bf16.msrb.mxu2 %v7668_v5  ;;  %v7788_v36 = vor.u32 %v8399_v53, %v7785_v4  ;;  %v7849_v5 = vld [vmem:[%s11466_s7 + $0x8d8] sm:$0xf0]  ;;  %v7815_v53 = vld [vmem:[%s11466_s7 + $0x890] sm:$0xf]  ;;  %v8404_v4 = vld [vmem:[%s11466_s7 + $0x894] sm:$0xf0] }
 0x38d   : > { %v7852_v39 = vor.u32 %v8411_v47, %v7849_v5  ;;  %v7745_v47 = vld [vmem:[%s11466_s7 + $0x828] sm:$0xf0]  ;;  %v7816_v51 = vor.u32 %v8404_v4, %v7815_v53 }
 0x38e   : > { %4866 = vmatpush.bf16.msra.mxu3 %v7592_v11  ;;  %4879 = vmatpush.bf16.msrb.mxu0 %v7596_v21  ;;  %v8397_v11 = vld [vmem:[%s11466_s7 + $0x864] sm:$0xf]  ;;  %v7777_v21 = vld [vmem:[%s11466_s7 + $0x868] sm:$0xf0] }
 0x38f   : > { %v7780_v31 = vor.u32 %v8397_v11, %v7777_v21 }
 0x390   : > { %4995 = vmatpush.bf16.msrb.mxu1 %v7656_v20  ;;  %5008 = vmatpush.bf16.msrb.mxu2 %v7660_v24  ;;  %v8409_v20 = vld [vmem:[%s11466_s7 + $0x8c4] sm:$0xf]  ;;  %v7767_v24 = vld [vmem:[%s11466_s7 + $0x850] sm:$0xf] }
 0x391   : > { %v7768_v29 = vor.u32 %v8396_v10, %v7767_v24  ;;  %v8387_v24 = vld [vmem:[%s11466_s7 + $0x814] sm:$0xf]  ;;  %v7737_v10 = vld [vmem:[%s11466_s7 + $0x818] sm:$0xf0] }
 0x392   : > { %4867 = vmatpush.bf16.msra.mxu3 %v7584_v28  ;;  %4880 = vmatpush.bf16.msrb.mxu0 %v7588_v55  ;;  %v7844_v28 = vor.u32 %v8409_v20, %v7841_v56  ;;  %v7831_v55 = vld [vmem:[%s11466_s7 + $0x8b0] sm:$0xf]  ;;  %v8388_v56 = vld [vmem:[%s11466_s7 + $0x814] sm:$0xf0] }
 0x394   : > { %4996 = vmatpush.bf16.msrb.mxu1 %v7648_v18  ;;  %5009 = vmatpush.bf16.msrb.mxu2 %v7652_v35  ;;  %v11229_v59 = vpop.f32.mrf.mxu1  ;;  %v7832_v18 = vor.u32 %v8408_v12, %v7831_v55  ;;  %v7836_v35 = vor.u32 %v8407_v23, %v7833_v8  ;;  %v7727_v55 = vld [vmem:[%s11466_s7 + $0x800] sm:$0xf]  ;;  %v7729_v23 = vld [vmem:[%s11466_s7 + $0x808] sm:$0xf0] }
 0x396   : > { %4868 = vmatpush.bf16.msra.mxu3 %v7576_v13  ;;  %4881 = vmatpush.bf16.msrb.mxu0 %v7580_v42  ;;  %v7760_v13 = vor.u32 %v8394_v22, %v7759_v60  ;;  %v8405_v42 = vld [vmem:[%s11466_s7 + $0x8a4] sm:$0xf] }
 0x397   : > { %4997 = vmatmul.bf16.vlgmr.msrb.gmra.mxu1 %v4907_v3  ;;  %5010 = vmatmul.bf16.vlgmr.msrb.gmra.mxu2 %v4907_v3  ;;  %v7828_v46 = vor.u32 %v8405_v42, %v7825_v6  ;;  %v2983_v3 = vpack.c.bf16 %v2980_v62, %v2980_v62 }
 0x398   : > { %5246 = vmatpush.bf16.msra.mxu1 %v7864_v38  ;;  %5259 = vmatpush.bf16.msra.mxu2 %v7868_v15 }
 0x39a   : > { %4869 = vmatpush.bf16.msra.mxu3 %v7568_v44  ;;  %4882 = vmatpush.bf16.msrb.mxu0 %v7572_v7  ;;  %v3865_v38 = vpop.f32.mrf.mxu0  ;;  %v3992_v15 = vpop.f32.mrf.mxu2  ;;  %v8403_v44 = vld [vmem:[%s11466_s7 + $0x894] sm:$0xf]  ;;  %v7817_v7 = vld [vmem:[%s11466_s7 + $0x898] sm:$0xf0] }
 0x39b   : > { %v3870_v32 = vadd.f32 %v3865_v38, %v11092_v41  ;;  %v8391_v41 = vld [vmem:[%s11466_s7 + $0x834] sm:$0xf]  ;;  %v7820_v49 = vor.u32 %v8403_v44, %v7817_v7 }
 0x39c   : > { %5247 = vmatpush.bf16.msra.mxu1 %v7856_v48  ;;  %5260 = vmatpush.bf16.msra.mxu2 %v7860_v63  ;;  %v3981_v54 = vpop.f32.mrf.mxu1  ;;  %v7752_v48 = vor.u32 %v8392_v2, %v7751_v34  ;;  %v7756_v63 = vor.u32 %v8391_v41, %v7753_v45 }
 0x39d   : > { %4870 = vmatmul.bf16.vlgmr.msra.gmra.mxu3 %v4780_v17  ;;  %4883 = vmatmul.bf16.vlgmr.msrb.gmra.mxu0 %v4780_v17  ;;  %v11290_v16 = vadd.f32 %v3992_v15, %v3870_v32  ;;  %v7807_v17 = vld [vmem:[%s11466_s7 + $0x880] sm:$0xf] }
 0x39e   : > { %5114 = vmatpush.bf16.msrb.mxu3 %v7784_v25  ;;  %5127 = vmatpush.bf16.msra.mxu0 %v7788_v36  ;;  %v8390_v25 = vld [vmem:[%s11466_s7 + $0x824] sm:$0xf0]  ;;  %v8389_v36 = vld [vmem:[%s11466_s7 + $0x824] sm:$0xf] }
 0x39f   : > { %v7744_v1 = vor.u32 %v8390_v25, %v7743_v30  ;;  %v7748_v43 = vor.u32 %v8389_v36, %v7745_v47  ;;  %v8432_v30 = vld [vmem:[%s11468_s9 + $0x78] sm:$0xff]  ;;  %v8431_v47 = vld [vmem:[%s11468_s9 + $0x70] sm:$0xff] }
 0x3a0   : > { %5248 = vmatpush.bf16.msra.mxu1 %v7848_v58  ;;  %5261 = vmatpush.bf16.msra.mxu2 %v7852_v39  ;;  %v3852_v0 = vpop.f32.mrf.mxu3  ;;  %v8402_v58 = vld [vmem:[%s11466_s7 + $0x884] sm:$0xf0]  ;;  %v5160_v39 = vunpack.c.l.b16 %v2983_v3 }
 0x3a1   : > { %v3869_v5 = vadd.f32 %v3852_v0, %v11150_v19  ;;  %v8401_v19 = vld [vmem:[%s11466_s7 + $0x884] sm:$0xf]  ;;  %v7808_v9 = vor.u32 %v8402_v58, %v7807_v17  ;;  %v8422_v58 = vld [vmem:[%s11468_s9 + $0x28] sm:$0xff] }
 0x3a2   : > { %5115 = vmatpush.bf16.msrb.mxu3 %v7776_v14  ;;  %5128 = vmatpush.bf16.msra.mxu0 %v7780_v31  ;;  %v3867_v11 = vpop.f32.mrf.mxu0  ;;  %v3994_v21 = vpop.f32.mrf.mxu2  ;;  %v7809_v14 = vld [vmem:[%s11466_s7 + $0x888] sm:$0xf0]  ;;  %v7735_v31 = vld [vmem:[%s11466_s7 + $0x810] sm:$0xf]  ;;  %v8429_v17 = vld [vmem:[%s11468_s9 + $0x60] sm:$0xff] }
 0x3a3   : > { %v3996_v20 = vadd.f32 %v11229_v59, %v3869_v5  ;;  %v7812_v40 = vor.u32 %v8401_v19, %v7809_v14  ;;  %v7736_v59 = vor.u32 %v8388_v56, %v7735_v31  ;;  %v8423_v21 = vld [vmem:[%s11468_s9 + $0x30] sm:$0xff]  ;;  %v8420_v14 = vld [vmem:[%s11468_s9 + $0x18] sm:$0xff]  ;;  %v8426_v56 = vld [vmem:[%s11468_s9 + $0x48] sm:$0xff] }
 0x3a4   : > { %5249 = vmatpush.bf16.msra.mxu1 %v7840_v57  ;;  %5262 = vmatpush.bf16.msra.mxu2 %v7844_v28  ;;  %v5161_v57 = vpack.c.b16 %v5160_v39, %v5160_v39  ;;  %v7740_v28 = vor.u32 %v8387_v24, %v7737_v10  ;;  %v8428_v39 = vld [vmem:[%s11468_s9 + $0x58] sm:$0xff]  ;;  %v8427_v19 = vld [vmem:[%s11468_s9 + $0x50] sm:$0xff] }
 0x3a5   : > { %v8419_v10 = vld [vmem:[%s11468_s9 + $0x10] sm:$0xff] }
 0x3a6   : > { %5116 = vmatpush.bf16.msrb.mxu3 %v7768_v29  ;;  %5129 = vmatpush.bf16.msra.mxu0 %v7772_v37  ;;  %v8386_v29 = vld [vmem:[%s11466_s7 + $0x804] sm:$0xf0]  ;;  %v8385_v37 = vld [vmem:[%s11466_s7 + $0x804] sm:$0xf]  ;;  %v5163_v8 = vshrl.u32 %v5161_v57, 16 }
 0x3a7   : > { %v7728_v60 = vor.u32 %v8386_v29, %v7727_v55  ;;  %v7732_v22 = vor.u32 %v8385_v37, %v7729_v23  ;;  %v8418_v57 = vld [vmem:[%s11468_s9 + $0x8] sm:$0xff]  ;;  %v8417_v55 = vld [vmem:[%s11468_s9] sm:$0xff]  ;;  %v8440_v29 = vld [vmem:[%s11470_s11 + $0x38] sm:$0xff] }
 0x3a8   : > { %5250 = vmatpush.bf16.msra.mxu1 %v7832_v18  ;;  %5263 = vmatpush.bf16.msra.mxu2 %v7836_v35  ;;  %v3854_v12 = vpop.f32.mrf.mxu3  ;;  %v8439_v37 = vld [vmem:[%s11470_s11 + $0x30] sm:$0xff] }
 0x3aa   : > { %5117 = vmatpush.bf16.msrb.mxu3 %v7760_v13  ;;  %5130 = vmatpush.bf16.msra.mxu0 %v7764_v50 }
 0x3ac   : > { %5251 = vmatpush.bf16.msra.mxu1 %v7824_v61  ;;  %5264 = vmatpush.bf16.msra.mxu2 %v7828_v46 }
 0x3ae   : > { %5118 = vmatpush.bf16.msrb.mxu3 %v7752_v48  ;;  %5131 = vmatpush.bf16.msra.mxu0 %v7756_v63 }
 0x3b0   : > { %5252 = vmatpush.bf16.msra.mxu1 %v7816_v51  ;;  %5265 = vmatpush.bf16.msra.mxu2 %v7820_v49  ;;  %v8424_v51 = vld [vmem:[%s11468_s9 + $0x38] sm:$0xff]  ;;  %v8430_v49 = vld [vmem:[%s11468_s9 + $0x68] sm:$0xff] }
 0x3b2   : > { %5119 = vmatpush.bf16.msrb.mxu3 %v7744_v1  ;;  %5132 = vmatpush.bf16.msra.mxu0 %v7748_v43  ;;  %v8421_v1 = vld [vmem:[%s11468_s9 + $0x20] sm:$0xff] }
 0x3b4   : > { %5253 = vmatpush.bf16.msra.mxu1 %v7808_v9  ;;  %5266 = vmatpush.bf16.msra.mxu2 %v7812_v40  ;;  %v4236_v27 = vpop.f32.mrf.mxu1  ;;  %v8425_v9 = vld [vmem:[%s11468_s9 + $0x40] sm:$0xff] }
 0x3b6   : > { %5120 = vmatpush.bf16.msrb.mxu3 %v7736_v59  ;;  %5133 = vmatpush.bf16.msra.mxu0 %v7740_v28 }
 0x3b7   : > { %5254 = vmatmul.bf16.vlgmr.msra.gmra.mxu1 %v5163_v8  ;;  %5267 = vmatmul.bf16.vlgmr.msra.gmra.mxu2 %v5163_v8  ;;  %v8438_v8 = vld [vmem:[%s11470_s11 + $0x28] sm:$0xff] }
 0x3b8   : > { %5508 = vmatpush.bf16.msrb.mxu1 %v8440_v29 }
 0x3ba   : > { %5121 = vmatpush.bf16.msrb.mxu3 %v7728_v60  ;;  %5134 = vmatpush.bf16.msra.mxu0 %v7732_v22  ;;  %v4117_v33 = vpop.f32.mrf.mxu0  ;;  %v4249_v62 = vpop.f32.mrf.mxu2 }
 0x3bb   : > { %v4122_v18 = vadd.f32 %v4117_v33, %v11290_v16  ;;  %v5274_v33 = vld [vmem:[%s11467_s8] sm:$0x3] }
 0x3bc   : > { %v4238_v35 = vpop.f32.mrf.mxu1  ;;  %5509 = vmatpush.bf16.msrb.mxu1 %v8439_v37 }
 0x3bd   : > { %5122 = vmatmul.bf16.vlgmr.msrb.gmra.mxu3 %v2983_v3  ;;  %5135 = vmatmul.bf16.vlgmr.msra.gmra.mxu0 %v2983_v3  ;;  %v4254_v38 = vadd.f32 %v4249_v62, %v4122_v18 }
 0x3be   : > { %5428 = vmatpush.bf16.msrb.mxu0 %v8432_v30  ;;  %5415 = vmatpush.bf16.msra.mxu3 %v8424_v51  ;;  %v8444_v30 = vld [vmem:[%s11472_s13 + $0x18] sm:$0xff] }
 0x3bf   : > { %5563 = vmatpush.bf16.msrb.mxu2 %v8444_v30 }
 0x3c0   : > { %v4104_v15 = vpop.f32.mrf.mxu3  ;;  %5510 = vmatpush.bf16.msrb.mxu1 %v8438_v8 }
 0x3c1   : > { %v4121_v26 = vadd.f32 %v4104_v15, %v3996_v20 }
 0x3c2   : > { %v4119_v52 = vpop.f32.mrf.mxu0  ;;  %v4251_v32 = vpop.f32.mrf.mxu2  ;;  %5429 = vmatpush.bf16.msrb.mxu0 %v8431_v47  ;;  %5416 = vmatpush.bf16.msra.mxu3 %v8423_v21 }
 0x3c3   : > { %v4253_v13 = vadd.f32 %v4236_v27, %v4121_v26  ;;  %v5277_v26 = vperm.slane %v5274_v33, 1 }
 0x3c6   : > { %5430 = vmatpush.bf16.msrb.mxu0 %v8430_v49  ;;  %5417 = vmatpush.bf16.msra.mxu3 %v8422_v58 }
 0x3c8   : > { %v4106_v50 = vpop.f32.mrf.mxu3 }
 0x3ca   : > { %5431 = vmatpush.bf16.msrb.mxu0 %v8429_v17  ;;  %5418 = vmatpush.bf16.msra.mxu3 %v8421_v1  ;;  %v5459_v1 = vld [vmem:[%s11471_s12] sm:$0x1] }
 0x3ce   : > { %5432 = vmatpush.bf16.msrb.mxu0 %v8428_v39  ;;  %5419 = vmatpush.bf16.msra.mxu3 %v8420_v14  ;;  %v8441_v39 = vld [vmem:[%s11472_s13] sm:$0xff] }
 0x3d2   : > { %5433 = vmatpush.bf16.msrb.mxu0 %v8427_v19  ;;  %5420 = vmatpush.bf16.msra.mxu3 %v8419_v10 }
 0x3d4   : > { %v4490_v42 = vpop.f32.mrf.mxu1 }
 0x3d6   : > { %5434 = vmatpush.bf16.msrb.mxu0 %v8426_v56  ;;  %5421 = vmatpush.bf16.msra.mxu3 %v8418_v57  ;;  %v5531_v56 = vld [vmem:[%s11473_s14] sm:$0x1] }
 0x3da   : > { %v4376_v6 = vpop.f32.mrf.mxu0  ;;  %v4503_v34 = vpop.f32.mrf.mxu2  ;;  %5435 = vmatpush.bf16.msrb.mxu0 %v8425_v9  ;;  %5422 = vmatpush.bf16.msra.mxu3 %v8417_v55 }
 0x3db   : > { %v4381_v54 = vadd.f32 %v4376_v6, %v4254_v38 }
 0x3dc   : > { %v4492_v2 = vpop.f32.mrf.mxu1 }
 0x3dd   : > { %v4508_v41 = vadd.f32 %v4503_v34, %v4381_v54  ;;  %v5276_v54 = vperm.slane %v5274_v33, 0 }
 0x3e0   : > { %v4363_v45 = vpop.f32.mrf.mxu3 }
 0x3e1   : > { %v4380_v61 = vadd.f32 %v4363_v45, %v4253_v13 }
 0x3e2   : > { %v4378_v46 = vpop.f32.mrf.mxu0  ;;  %v4505_v53 = vpop.f32.mrf.mxu2 }
 0x3e3   : > { %v4507_v4 = vadd.f32 %v4490_v42, %v4380_v61 }
 0x3e8   : > { %v4365_v16 = vpop.f32.mrf.mxu3 }
 0x3f4   : > { %v4744_v3 = vpop.f32.mrf.mxu1 }
 0x3fa   : > { %v4630_v48 = vpop.f32.mrf.mxu0  ;;  %v4757_v63 = vpop.f32.mrf.mxu2 }
 0x3fb   : > { %v4635_v23 = vadd.f32 %v4630_v48, %v4508_v41  ;;  %v8436_v48 = vld [vmem:[%s11470_s11 + $0x18] sm:$0xff] }
 0x3fc   : > { %v4746_v44 = vpop.f32.mrf.mxu1 }
 0x3fd   : > { %v4762_v60 = vadd.f32 %v4757_v63, %v4635_v23  ;;  %v8435_v63 = vld [vmem:[%s11470_s11 + $0x10] sm:$0xff]  ;;  %v8434_v44 = vld [vmem:[%s11470_s11 + $0x8] sm:$0xff] }
 0x400   : > { %v4617_v7 = vpop.f32.mrf.mxu3 }
 0x401   : > { %v4634_v0 = vadd.f32 %v4617_v7, %v4507_v4  ;;  %v8433_v7 = vld [vmem:[%s11470_s11] sm:$0xff] }
 0x402   : > { %v4632_v25 = vpop.f32.mrf.mxu0  ;;  %v4759_v36 = vpop.f32.mrf.mxu2 }
 0x403   : > { %v4761_v5 = vadd.f32 %v4744_v3, %v4634_v0  ;;  %v8437_v3 = vld [vmem:[%s11470_s11 + $0x20] sm:$0xff]  ;;  %v8443_v0 = vld [vmem:[%s11472_s13 + $0x10] sm:$0xff]  ;;  %v8442_v25 = vld [vmem:[%s11472_s13 + $0x8] sm:$0xff] }
 0x404   : > { %5511 = vmatpush.bf16.msrb.mxu1 %v8437_v3  ;;  %5564 = vmatpush.bf16.msrb.mxu2 %v8443_v0 }
 0x408   : > { %v4619_v11 = vpop.f32.mrf.mxu3  ;;  %5512 = vmatpush.bf16.msrb.mxu1 %v8436_v48  ;;  %5565 = vmatpush.bf16.msrb.mxu2 %v8442_v25 }
 0x40c   : > { %5513 = vmatpush.bf16.msrb.mxu1 %v8435_v63  ;;  %5566 = vmatpush.bf16.msrb.mxu2 %v8441_v39 }
 0x410   : > { %5514 = vmatpush.bf16.msrb.mxu1 %v8434_v44 }
 0x414   : > { %v4998_v43 = vpop.f32.mrf.mxu1  ;;  %5515 = vmatpush.bf16.msrb.mxu1 %v8433_v7 }
 0x41a   : > { %v4884_v31 = vpop.f32.mrf.mxu0  ;;  %v5011_v20 = vpop.f32.mrf.mxu2 }
 0x41b   : > { %v4889_v22 = vadd.f32 %v4884_v31, %v4762_v60 }
 0x41c   : > { %v5000_v24 = vpop.f32.mrf.mxu1 }
 0x41d   : > { %v5016_v62 = vadd.f32 %v5011_v20, %v4889_v22 }
 0x420   : > { %v4871_v40 = vpop.f32.mrf.mxu3 }
 0x421   : > { %v4888_v35 = vadd.f32 %v4871_v40, %v4761_v5  ;;  %v5318_v5 = vld [vmem:[%s11469_s10] sm:$0x1] }
 0x422   : > { %v4886_v59 = vpop.f32.mrf.mxu0  ;;  %v5013_v28 = vpop.f32.mrf.mxu2 }
 0x423   : > { %v5015_v50 = vadd.f32 %v4998_v43, %v4888_v35 }
 0x428   : > { %v4873_v12 = vpop.f32.mrf.mxu3 }
 0x434   : > { %v5255_v27 = vpop.f32.mrf.mxu1 }
 0x43a   : > { %v5136_v18 = vpop.f32.mrf.mxu0  ;;  %v5268_v15 = vpop.f32.mrf.mxu2 }
 0x43b   : > { %v5141_v38 = vadd.f32 %v5136_v18, %v5016_v62 }
 0x43c   : > { %v5257_v32 = vpop.f32.mrf.mxu1 }
 0x43d   : > { %v5273_v52 = vadd.f32 %v5268_v15, %v5141_v38 }
 0x43f   : > { %v5281_v13 = vadd.f32 %v5277_v26, %v5273_v52 }
 0x440   : > { %v5123_v42 = vpop.f32.mrf.mxu3 }
 0x441   : > { %v5283_v6 = vmax.f32 %v5281_v13, 0.0  ;;  %v5140_v34 = vadd.f32 %v5123_v42, %v5015_v50 }
 0x442   : > { %v5138_v2 = vpop.f32.mrf.mxu0  ;;  %v5270_v61 = vpop.f32.mrf.mxu2 }
 0x443   : > { %v5285_v41 = vpack.c.bf16 %v5283_v6, %v5283_v6  ;;  %v5272_v45 = vadd.f32 %v5255_v27, %v5140_v34 }
 0x445   : > { %v5280_v46 = vadd.f32 %v5276_v54, %v5272_v45  ;;  %5436 = vmatmul.bf16.vlgmr.msrb.gmra.mxu0 %v5285_v41 }
 0x447   : > { %v5282_v53 = vmax.f32 %v5280_v46, 0.0 }
 0x448   : > { %v5125_v4 = vpop.f32.mrf.mxu3 }
 0x449   : > { %v5284_v16 = vpack.c.bf16 %v5282_v53, %v5282_v53 }
 0x44b   : > { %5423 = vmatmul.bf16.vlgmr.msra.gmra.mxu3 %v5284_v16 }
 0x4c2   : > { %v5437_v36 = vpop.f32.mrf.mxu0 }
 0x4ca   : > { %v5439_v47 = vpop.f32.mrf.mxu0 }
 0x4ce   : > { %v5424_v51 = vpop.f32.mrf.mxu3 }
 0x4cf   : > { %v5425_v49 = vadd.f32 %v5424_v51, %v5318_v5 }
 0x4d1   : > { %v5438_v11 = vadd.f32 %v5437_v36, %v5425_v49 }
 0x4d3   : > { %v5441_v21 = vmax.f32 %v5438_v11, 0.0 }
 0x4d5   : > { %v5442_v17 = vpack.c.bf16 %v5441_v21, %v5441_v21 }
 0x4d6   : > { %v5426_v58 = vpop.f32.mrf.mxu3 }
 0x4d7   : > { %5516 = vmatmul.bf16.vlgmr.msrb.gmra.mxu1 %v5442_v17 }
 0x554   : > { %v5517_v43 = vpop.f32.mrf.mxu1 }
 0x555   : > { %v5518_v19 = vadd.f32 %v5517_v43, %v5459_v1 }
 0x557   : > { %v5521_v14 = vmax.f32 %v5518_v19, 0.0 }
 0x559   : > { %v5522_v31 = vpack.c.bf16 %v5521_v14, %v5521_v14 }
 0x55b   : > { %7981 = vmatmul.msk.bf16.vlgmr.msrb.gmra.mxu2 %vm1164_vm1, %v5522_v31 }
 0x55c   : > { %v5519_v20 = vpop.f32.mrf.mxu1 }
 0x5de   : > { %v5568_v24 = vpop.f32.mrf.mxu2 }
 0x5df   : > { %v5569_v10 = vadd.f32 %v5568_v24, %v5531_v56 }
 0x5e1   : > { %5572 = vst [vmem:[%s490_s28] sm:$0x1] %v5569_v10 }
 0x5e6   : > { %v5570_v9 = vpop.f32.mrf.mxu2 }
 0x5e7 PF: > { %s25_s18 = sadd.s32 1, %s8467_s18  }
 0x5e8   : > { %p22_p4 = scmp.ge.s32.totalorder %s25_s18, 4  }
 0x5ea   :  { %24 = sbr.rel (!%p22_p4) target bundleno = 1 (0x1), region = 143 }

</bundles_post_ra>
